<compile_context>
chip_gen: v7x
topology: tpu7x:2x2x1
jax: 0.10.0
libtpu: 0.0.40
codegen_flags: <defaults>
</compile_context>

<pallas_src>
import functools

import jax
import jax.numpy as jnp
from jax import lax
from jax.experimental import pallas as pl
from jax.experimental.pallas import tpu as pltpu

SCREEN_SIZE = 32
STATE_SIZE = SCREEN_SIZE * SCREEN_SIZE      # 1024
HIDDEN1 = STATE_SIZE * 2                    # 2048
HIDDEN2 = STATE_SIZE * 4                    # 4096
ACTION_SIZE = 2


def actor_kernel(x_ref, w1t_ref, b1_ref, w2_ref, b2_ref, w3t_ref,
                 out_ref, acc_ref):
    """Fused 3-layer MLP over one HIDDEN2 split.

    Grid = (num_splits, HIDDEN1 // tile_k):
      axis 0 (parallel)  : which half of HIDDEN2 (W2 columns) this program owns
      axis 1 (arbitrary) : tiles of HIDDEN1 (output dim of linear1 and
                           contraction dim of linear2) carrying the accumulator
    Per (p, k) step:
      h1_tile = relu(x @ W1^T[k-tile].T + b1[k-tile])      (layer 1, fused)
      acc    += h1_tile @ W2[k-tile, p-half]                (layer 2 partial)
    Last k step: h2 = relu(acc + b2[p-half]); emit the pre-bias partial logits
    h2 @ W3^T[p-half].T.  The cross-split sum, + b3 and sigmoid are a tiny
    (batch, 2) epilogue outside the kernel.
    """
    k = pl.program_id(1)

    @pl.when(k == 0)
    def _init():
        acc_ref[...] = jnp.zeros_like(acc_ref)

    # Layer 1 (one HIDDEN1 output tile) + ReLU.  W1 arrives pre-transposed as
    # (tile_k, STATE_SIZE); contract the STATE_SIZE dims -> (batch, tile_k).
    h1 = lax.dot_general(
        x_ref[...], w1t_ref[...],
        dimension_numbers=(((1,), (1,)), ((), ())),
        preferred_element_type=jnp.float32) + b1_ref[...]
    h1 = jnp.maximum(h1, 0.0)

    # Layer 2 partial accumulation over the HIDDEN1 contraction dim
    # (this split's HIDDEN2 columns only); fp32 accumulation on the MXU.
    acc_ref[...] += jnp.dot(h1.astype(w2_ref.dtype), w2_ref[...],
                            preferred_element_type=jnp.float32)

    @pl.when(k == pl.num_programs(1) - 1)
    def _finalize():
        h2 = jnp.maximum(acc_ref[...] + b2_ref[...], 0.0)
        # W3^T half is lane-dense (ACTION_SIZE, HIDDEN2//splits); contract the
        # HIDDEN2 dims of both operands -> (batch, ACTION_SIZE) partial logits.
        partial = lax.dot_general(
            h2.astype(w3t_ref.dtype), w3t_ref[...],
            dimension_numbers=(((1,), (1,)), ((), ())),
            preferred_element_type=jnp.float32)
        out_ref[...] = partial[None, :, :]


# ------------------------- chip-dependent defaults -------------------------

def _tpu_vmem_bytes():
    try:
        return int(pltpu.get_tpu_info().vmem_capacity_bytes)
    except Exception:
        return 64 * 1024 * 1024            # conservative (v7x-like) guess


def _num_tensorcores():
    # v7x is the only generation with 2 TensorCores per chip; it is also the
    # only one whose TC has 64 MiB of VMEM (v5e/v6e: 128 MiB), so VMEM capacity
    # doubles as a cheap generation detector.  A wrong guess only costs a small
    # extra W1 re-stream; correctness is unaffected.
    return 2 if _tpu_vmem_bytes() < 100 * 1024 * 1024 else 1


def _default_config(weight_dtype):
    """Pick (tile_k, vmem_limit_bytes, num_splits) for this chip + dtype."""
    vmem_cap = _tpu_vmem_bytes()
    small_vmem = vmem_cap < 100 * 1024 * 1024        # v7x-class TC (64 MiB)
    if jnp.dtype(weight_dtype).itemsize <= 2:
        tile_k = 1024                                 # bf16: 2 grid steps everywhere
    else:
        tile_k = 512 if small_vmem else 1024          # fp32: keep blocks modest on v7x
    vmem_limit = (48 if small_vmem else 64) * 1024 * 1024
    return tile_k, vmem_limit, _num_tensorcores()


# ------------------------------ weight setup -------------------------------

def prepare_actor_params(w1, b1, w2, b2, w3, b3, *, weight_dtype=jnp.bfloat16):
    """One-time conversion to kernel layout (do NOT redo this per forward call).

    Inputs use the (in_features, out_features) convention, i.e. PyTorch's
    nn.Linear weight transposed.  Returns:
      w1t : (HIDDEN1, STATE_SIZE)   weight_dtype   (contiguous row-slab tiles)
      b1r : (1, HIDDEN1)            fp32
      w2c : (HIDDEN1, HIDDEN2)      weight_dtype
      b2r : (1, HIDDEN2)            fp32
      w3t : (ACTION_SIZE, HIDDEN2)  weight_dtype   (lane-dense)
      b3r : (1, ACTION_SIZE)        fp32
    """
    w1t = jnp.asarray(w1).T.astype(weight_dtype)
    w2c = jnp.asarray(w2).astype(weight_dtype)
    w3t = jnp.asarray(w3).T.astype(weight_dtype)
    b1r = jnp.asarray(b1).reshape(1, HIDDEN1).astype(jnp.float32)
    b2r = jnp.asarray(b2).reshape(1, HIDDEN2).astype(jnp.float32)
    b3r = jnp.asarray(b3).reshape(1, ACTION_SIZE).astype(jnp.float32)
    return (w1t, b1r, w2c, b2r, w3t, b3r)


# -------------------------------- forward ----------------------------------

@functools.partial(
    jax.jit, static_argnames=("tile_k", "vmem_limit_bytes", "num_splits"))
def _actor_forward_impl(x, w1t, b1r, w2, b2r, w3t, b3r, *, tile_k,
                        vmem_limit_bytes, num_splits):
    batch = x.shape[0]
    wdt = w1t.dtype
    xc = x.astype(wdt)                     # tiny (batch, 1024): negligible
    h2_cols = HIDDEN2 // num_splits
    grid = (num_splits, HIDDEN1 // tile_k)

    partials = pl.pallas_call(
        actor_kernel,
        out_shape=jax.ShapeDtypeStruct((num_splits, batch, ACTION_SIZE),
                                       jnp.float32),
        grid_spec=pltpu.PrefetchScalarGridSpec(
            num_scalar_prefetch=0,
            grid=grid,
            in_specs=[
                pl.BlockSpec((batch, STATE_SIZE), lambda p, k: (0, 0)),       # x
                pl.BlockSpec((tile_k, STATE_SIZE), lambda p, k: (k, 0)),      # W1^T slab
                pl.BlockSpec((1, tile_k), lambda p, k: (0, k)),               # b1 tile
                pl.BlockSpec((tile_k, h2_cols), lambda p, k: (k, p)),         # W2 tile
                pl.BlockSpec((1, h2_cols), lambda p, k: (0, p)),              # b2 half
                pl.BlockSpec((ACTION_SIZE, h2_cols), lambda p, k: (0, p)),    # W3^T half
            ],
            out_specs=pl.BlockSpec((1, batch, ACTION_SIZE),
                                   lambda p, k: (p, 0, 0)),
            scratch_shapes=[pltpu.VMEM((batch, h2_cols), jnp.float32)],
        ),
        compiler_params=pltpu.CompilerParams(
            # p: independent HIDDEN2 halves (shards across v7x TensorCores);
            # k: accumulator-carrying reduction axis.
            dimension_semantics=("parallel", "arbitrary"),
            vmem_limit_bytes=vmem_limit_bytes,
        ),
    )(xc, w1t, b1r, w2, b2r, w3t)

    # Tiny (batch, 2) epilogue: combine splits, add b3, sigmoid (all fp32).
    logits = jnp.sum(partials, axis=0) + b3r
    return jax.nn.sigmoid(logits)


def actor_forward(x, params, *, tile_k=None, vmem_limit_bytes=None,
                  num_splits=None):
    """Actor forward pass using params from prepare_actor_params()."""
    w1t, b1r, w2, b2r, w3t, b3r = params
    dflt_tile_k, dflt_vmem, dflt_splits = _default_config(w1t.dtype)
    if tile_k is None:
        tile_k = dflt_tile_k
    if vmem_limit_bytes is None:
        vmem_limit_bytes = dflt_vmem
    if num_splits is None:
        num_splits = dflt_splits
    num_splits = int(num_splits)
    tile_k = int(tile_k)
    assert HIDDEN1 % tile_k == 0
    assert num_splits in (1, 2) and HIDDEN2 % num_splits == 0

    return _actor_forward_impl(
        x, w1t, b1r, w2, b2r, w3t, b3r,
        tile_k=tile_k, vmem_limit_bytes=int(vmem_limit_bytes),
        num_splits=num_splits)


# ------------------------------ test helpers -------------------------------

def init_linear(key, fan_in, fan_out):
    """Deterministic init matching nn.Linear's default U(-1/sqrt(fan_in), ...).

    Weight stored as (in_features, out_features) = PyTorch weight transposed.
    """
    kw, kb = jax.random.split(key)
    bound = 1.0 / jnp.sqrt(jnp.float32(fan_in))
    w = jax.random.uniform(kw, (fan_in, fan_out), jnp.float32, -bound, bound)
    b = jax.random.uniform(kb, (fan_out,), jnp.float32, -bound, bound)
    return w, b


def actor_reference(x, w1, b1, w2, b2, w3, b3):
    h1 = jax.nn.relu(x @ w1 + b1)
    h2 = jax.nn.relu(h1 @ w2 + b2)
    return jax.nn.sigmoid(h2 @ w3 + b3)


if __name__ == "__main__":
    key = jax.random.PRNGKey(0)
    k_x, k1, k2, k3 = jax.random.split(key, 4)

    batch = 8
    x = jax.random.normal(k_x, (batch, STATE_SIZE), jnp.float32)

    w1, b1 = init_linear(k1, STATE_SIZE, HIDDEN1)
    w2, b2 = init_linear(k2, HIDDEN1, HIDDEN2)
    w3, b3 = init_linear(k3, HIDDEN2, ACTION_SIZE)

    ref = actor_reference(x, w1, b1, w2, b2, w3, b3)

    # Default path: bf16 weight streaming, fp32 accumulation / biases / sigmoid.
    params_bf16 = prepare_actor_params(w1, b1, w2, b2, w3, b3)
    out = jax.block_until_ready(actor_forward(x, params_bf16))
    assert out.shape == (batch, ACTION_SIZE), out.shape
    assert jnp.allclose(out, ref, atol=5e-2, rtol=5e-2), (
        float(jnp.max(jnp.abs(out - ref))))

    # Both HIDDEN2-split configurations must compile and agree on any chip
    # (num_splits=2 is the v7x two-TensorCore path; exercise it regardless).
    for ns in (1, 2):
        out_ns = jax.block_until_ready(
            actor_forward(x, params_bf16, num_splits=ns))
        assert jnp.allclose(out_ns, out, atol=1e-5, rtol=1e-5), (
            ns, float(jnp.max(jnp.abs(out_ns - out))))

    # fp32 weight path: matches the fp32 reference tightly (MXU default
    # precision on both sides, so ~1e-5 rather than bitwise).
    params_f32 = prepare_actor_params(w1, b1, w2, b2, w3, b3,
                                      weight_dtype=jnp.float32)
    out_f32 = jax.block_until_ready(actor_forward(x, params_f32))
    assert jnp.allclose(out_f32, ref, atol=1e-5, rtol=1e-5), (
        float(jnp.max(jnp.abs(out_f32 - ref))))

    # Also exercise the smaller fp32 tile that v7x-class chips default to.
    out_f32_t = jax.block_until_ready(actor_forward(x, params_f32, tile_k=512))
    assert jnp.allclose(out_f32_t, ref, atol=1e-5, rtol=1e-5), (
        float(jnp.max(jnp.abs(out_f32_t - ref))))

    print("KERNEL_OK")
</pallas_src>

<mosaic_0001>
module attributes {stable_mosaic.version = 11 : i64} {
  func.func @actor_kernel(%arg0: i32, %arg1: i32, %arg2: memref<8x1024xbf16, #tpu.memory_space<vmem>>, %arg3: memref<1024x1024xbf16, #tpu.memory_space<vmem>>, %arg4: memref<1x1024xf32, #tpu.memory_space<vmem>>, %arg5: memref<1024x2048xbf16, #tpu.memory_space<vmem>>, %arg6: memref<1x2048xf32, #tpu.memory_space<vmem>>, %arg7: memref<2x2048xbf16, #tpu.memory_space<vmem>>, %arg8: memref<1x8x2xf32, #tpu.memory_space<vmem>>, %arg9: memref<8x2048xf32, #tpu.memory_space<vmem>>) attributes {dimension_semantics = [#tpu.dimension_semantics<parallel>, #tpu.dimension_semantics<arbitrary>], iteration_bounds = array<i64: 2, 2>, scalar_prefetch = 0 : i64, scratch_operands = 1 : i64, tpu.core_type = #tpu.core_type<tc>, window_params = [{pipeline_mode = #tpu.pipeline_mode<synchronous>, transform_indices = @transform_0, window_bounds = array<i64: 8, 1024>}, {transform_indices = @transform_1, window_bounds = array<i64: 1024, 1024>}, {transform_indices = @transform_2, window_bounds = array<i64: 1, 1024>}, {transform_indices = @transform_3, window_bounds = array<i64: 1024, 2048>}, {transform_indices = @transform_4, window_bounds = array<i64: 1, 2048>}, {transform_indices = @transform_5, window_bounds = array<i64: 2, 2048>}, {transform_indices = @transform_6, window_bounds = array<i64: 1, 8, 2>}]} {
    %c0_i32 = arith.constant 0 : i32
    %0 = arith.cmpi eq, %arg1, %c0_i32 : i32
    %1 = arith.extui %0 : i1 to i32
    %c0_i32_0 = arith.constant 0 : i32
    %2 = arith.cmpi ne, %1, %c0_i32_0 : i32
    scf.if %2 {
      %cst_15 = arith.constant 0.000000e+00 : f32
      %20 = vector.broadcast %cst_15 : f32 to vector<8x2048xf32>
      %c0_16 = arith.constant 0 : index
      %c0_17 = arith.constant 0 : index
      %21 = vector.load %arg9[%c0_16, %c0_17] : memref<8x2048xf32, #tpu.memory_space<vmem>>, vector<8x2048xf32>
      tpu.vector_store %arg9[%c0_16, %c0_17], %20 {strides = array<i32>} : memref<8x2048xf32, #tpu.memory_space<vmem>>, vector<8x2048xf32>,
    } else {
    }
    %c0 = arith.constant 0 : index
    %c0_1 = arith.constant 0 : index
    %3 = vector.load %arg2[%c0, %c0_1] : memref<8x1024xbf16, #tpu.memory_space<vmem>>, vector<8x1024xbf16>
    %c0_2 = arith.constant 0 : index
    %c0_3 = arith.constant 0 : index
    %4 = vector.load %arg3[%c0_2, %c0_3] : memref<1024x1024xbf16, #tpu.memory_space<vmem>>, vector<1024x1024xbf16>
    %cst = arith.constant dense<0.000000e+00> : vector<8x1024xf32>
    %5 = tpu.matmul %3, %4, %cst {dimension_numbers = #tpu.dot_dimension_numbers<[1], [1], [0], [0], [0, 0, 1, 0], [], []>} : vector<8x1024xbf16>, vector<1024x1024xbf16>, vector<8x1024xf32> -> vector<8x1024xf32>
    %c0_4 = arith.constant 0 : index
    %c0_5 = arith.constant 0 : index
    %6 = vector.load %arg4[%c0_4, %c0_5] : memref<1x1024xf32, #tpu.memory_space<vmem>>, vector<1x1024xf32>
    %7 = vector.broadcast %6 : vector<1x1024xf32> to vector<8x1024xf32>
    %8 = arith.addf %5, %7 : vector<8x1024xf32>
    %cst_6 = arith.constant 0.000000e+00 : f32
    %9 = vector.broadcast %cst_6 : f32 to vector<8x1024xf32>
    %10 = arith.maximumf %8, %9 : vector<8x1024xf32>
    %c0_7 = arith.constant 0 : index
    %c0_8 = arith.constant 0 : index
    %11 = vector.load %arg9[%c0_7, %c0_8] : memref<8x2048xf32, #tpu.memory_space<vmem>>, vector<8x2048xf32>
    %12 = arith.truncf %10 : vector<8x1024xf32> to vector<8x1024xbf16>
    %c0_9 = arith.constant 0 : index
    %c0_10 = arith.constant 0 : index
    %13 = vector.load %arg5[%c0_9, %c0_10] : memref<1024x2048xbf16, #tpu.memory_space<vmem>>, vector<1024x2048xbf16>
    %cst_11 = arith.constant dense<0.000000e+00> : vector<8x2048xf32>
    %14 = tpu.matmul %12, %13, %cst_11 {dimension_numbers = #tpu.dot_dimension_numbers<[1], [0], [0], [1], [0, 0, 1, 1], [], []>} : vector<8x1024xbf16>, vector<1024x2048xbf16>, vector<8x2048xf32> -> vector<8x2048xf32>
    %15 = arith.addf %11, %14 : vector<8x2048xf32>
    %c0_12 = arith.constant 0 : index
    %c0_13 = arith.constant 0 : index
    %16 = vector.load %arg9[%c0_12, %c0_13] : memref<8x2048xf32, #tpu.memory_space<vmem>>, vector<8x2048xf32>
    tpu.vector_store %arg9[%c0_12, %c0_13], %15 {strides = array<i32>} : memref<8x2048xf32, #tpu.memory_space<vmem>>, vector<8x2048xf32>,
    %c1_i32 = arith.constant 1 : i32
    %17 = arith.cmpi eq, %arg1, %c1_i32 : i32
    %18 = arith.extui %17 : i1 to i32
    %c0_i32_14 = arith.constant 0 : i32
    %19 = arith.cmpi ne, %18, %c0_i32_14 : i32
    scf.if %19 {
      %c0_15 = arith.constant 0 : index
      %c0_16 = arith.constant 0 : index
      %20 = vector.load %arg9[%c0_15, %c0_16] : memref<8x2048xf32, #tpu.memory_space<vmem>>, vector<8x2048xf32>
      %c0_17 = arith.constant 0 : index
      %c0_18 = arith.constant 0 : index
      %21 = vector.load %arg6[%c0_17, %c0_18] : memref<1x2048xf32, #tpu.memory_space<vmem>>, vector<1x2048xf32>
      %22 = vector.broadcast %21 : vector<1x2048xf32> to vector<8x2048xf32>
      %23 = arith.addf %20, %22 : vector<8x2048xf32>
      %cst_19 = arith.constant 0.000000e+00 : f32
      %24 = vector.broadcast %cst_19 : f32 to vector<8x2048xf32>
      %25 = arith.maximumf %23, %24 : vector<8x2048xf32>
      %26 = arith.truncf %25 : vector<8x2048xf32> to vector<8x2048xbf16>
      %c0_20 = arith.constant 0 : index
      %c0_21 = arith.constant 0 : index
      %27 = vector.load %arg7[%c0_20, %c0_21] : memref<2x2048xbf16, #tpu.memory_space<vmem>>, vector<2x2048xbf16>
      %cst_22 = arith.constant dense<0.000000e+00> : vector<8x2xf32>
      %28 = tpu.matmul %26, %27, %cst_22 {dimension_numbers = #tpu.dot_dimension_numbers<[1], [1], [0], [0], [0, 0, 1, 0], [], []>} : vector<8x2048xbf16>, vector<2x2048xbf16>, vector<8x2xf32> -> vector<8x2xf32>
      %29 = vector.shape_cast %28 : vector<8x2xf32> to vector<1x8x2xf32>
      %c0_23 = arith.constant 0 : index
      %c0_24 = arith.constant 0 : index
      %c0_25 = arith.constant 0 : index
      %30 = vector.load %arg8[%c0_23, %c0_24, %c0_25] : memref<1x8x2xf32, #tpu.memory_space<vmem>>, vector<1x8x2xf32>
      tpu.vector_store %arg8[%c0_23, %c0_24, %c0_25], %29 {strides = array<i32>} : memref<1x8x2xf32, #tpu.memory_space<vmem>>, vector<1x8x2xf32>,
    } else {
    }
    return
  }
  func.func @transform_0(%arg0: i32, %arg1: i32) -> (i32, i32) {
    %c0_i32 = arith.constant 0 : i32
    %c0_i32_0 = arith.constant 0 : i32
    %c0_i32_1 = arith.constant 0 : i32
    return %c0_i32, %c0_i32_0 : i32, i32
  }
  func.func @transform_1(%arg0: i32, %arg1: i32) -> (i32, i32) {
    %c0_i32 = arith.constant 0 : i32
    %c0_i32_0 = arith.constant 0 : i32
    return %arg1, %c0_i32 : i32, i32
  }
  func.func @transform_2(%arg0: i32, %arg1: i32) -> (i32, i32) {
    %c0_i32 = arith.constant 0 : i32
    %c0_i32_0 = arith.constant 0 : i32
    return %c0_i32, %arg1 : i32, i32
  }
  func.func @transform_3(%arg0: i32, %arg1: i32) -> (i32, i32) {
    %c0_i32 = arith.constant 0 : i32
    return %arg1, %arg0 : i32, i32
  }
  func.func @transform_4(%arg0: i32, %arg1: i32) -> (i32, i32) {
    %c0_i32 = arith.constant 0 : i32
    %c0_i32_0 = arith.constant 0 : i32
    return %c0_i32, %arg0 : i32, i32
  }
  func.func @transform_5(%arg0: i32, %arg1: i32) -> (i32, i32) {
    %c0_i32 = arith.constant 0 : i32
    %c0_i32_0 = arith.constant 0 : i32
    return %c0_i32, %arg0 : i32, i32
  }
  func.func @transform_6(%arg0: i32, %arg1: i32) -> (i32, i32, i32) {
    %c0_i32 = arith.constant 0 : i32
    %c0_i32_0 = arith.constant 0 : i32
    %c0_i32_1 = arith.constant 0 : i32
    return %arg0, %c0_i32, %c0_i32_0 : i32, i32, i32
  }
}

</mosaic_0001>

<bundles_post_ra>
// kernel: _actor_forward_impl.1
= control target key start
LH: loop header
LB: loop body
LE: loop exit
PB: predicated region body
PF: predicated region fallthrough
CT: control target
= control target key end

     0   :  { %s17024_s0 = inlined_call_operand.vmem [shape: bf16[8,1024], index: 0, kind: input, shape index: {}]   ;;  %s17025_s1 = inlined_call_operand.hbm [shape: bf16[2048,1024], index: 1, kind: input, shape index: {}]   ;;  %s17026_s2 = inlined_call_operand.hbm [shape: f32[1,2048], index: 2, kind: input, shape index: {}]   ;;  %s17027_s3 = inlined_call_operand.hbm [shape: bf16[2048,4096], index: 3, kind: input, shape index: {}]   ;;  %s17028_s4 = inlined_call_operand.hbm [shape: f32[1,4096], index: 4, kind: input, shape index: {}]   ;;  %s17029_s5 = inlined_call_operand.hbm [shape: bf16[2,4096], index: 5, kind: input, shape index: {}]   ;;  %s17030_s6 = inlined_call_operand.vmem [shape: f32[2,8,2], index: 6, kind: output, shape index: {}]  }
   0x1   :  { %17058 = sst [smem:[#allocation30_spill]] %s17024_s0 }
   0x2   :  { %17059 = sst [smem:[#allocation31_spill]] %s17025_s1 }
   0x3   :  { %17060 = sst [smem:[#allocation32_spill]] %s17026_s2 }
   0x4   :  { %17061 = sst [smem:[#allocation33_spill]] %s17028_s4 }
   0x5   :  { %17062 = sst [smem:[#allocation34_spill]] %s17030_s6 }
   0x6   :  { %11 = vsyncpa [#allocation4], 0 }
   0x7   :  { %13 = vsyncpa [#allocation4 + $0x1], 0 }
   0x8   :  { %14 = vsyncpa [#allocation6], 0 }
   0x9   :  { %16 = vsyncpa [#allocation6 + $0x1], 0 }
   0xa   :  { %17 = vsyncpa [#allocation9], 0 }
   0xb   :  { %19 = vsyncpa [#allocation9 + $0x1], 0  ;;  %s14687_s21 = smov 0   ;;  %s14689_s22 = smov 0  }
   0xc   :  { %s14691_s23 = smov 0   ;;  %s14693_s24 = smov 0  }
   0xd   :  { %s14695_s25 = smov 0   ;;  %s14697_s26 = smov 0  }
   0xe   :  { %s14699_s27 = smov 0   ;;  %s14701_s28 = smov 0  }
   0xf   :  { %s14703_s29 = smov 0   ;;  %s14705_s30 = smov 0  }
  0x10   :  { %s14707_s7 = smov 0   ;;  %s14709_s8 = smov 0  }
  0x11   :  { %s14711_s9 = smov 0   ;;  %s14713_s10 = smov 0  }
  0x12 LB: > { %17063 = sst [smem:[#allocation15_spill]] %s14590_s22  ;;  %s17031_s11 = sadd.s32 4294967295, %s14638_s10   ;;  %s14638_s10 = sphi %s14713_s10, %s25_s10   ;;  %s14634_s9 = sphi %s14711_s9, %s17139_s9   ;;  %s14630_s8 = sphi %s14709_s8, %s17138_s8   ;;  %s14626_s7 = sphi %s14707_s7, %s17137_s7   ;;  %s14622_s30 = sphi %s14705_s30, %s17136_s30   ;;  %s14618_s29 = sphi %s14703_s29, %s17131_s29   ;;  %s14614_s28 = sphi %s14701_s28, %s17130_s28   ;;  %s14610_s27 = sphi %s14699_s27, %s17129_s27   ;;  %s14606_s26 = sphi %s14697_s26, %s17135_s26   ;;  %s14602_s25 = sphi %s14695_s25, %s17134_s25   ;;  %s14598_s24 = sphi %s14693_s24, %s17127_s24   ;;  %s14594_s23 = sphi %s14691_s23, %s17126_s23   ;;  %s14590_s22 = sphi %s14689_s22, %s17125_s22   ;;  %s14586_s21 = sphi %s14687_s21, %s17124_s21  }
  0x13   : > { %17064 = sst [smem:[#allocation16_spill]] %s14594_s23  ;;  %s34_s12 = sadd.s32 1, %s14630_s8 }
  0x14   : > { %17065 = sst [smem:[#allocation17_spill]] %s14602_s25  ;;  %p14755_p0 = scmp.ge.s32.totalorder %s34_s12, 2 }
  0x15   : > { %17066 = sst [smem:[#allocation18_spill]] %s14614_s28  ;;  %s65_s14 = sadd.s32 1, %s14618_s29 }
  0x16   : > { %17067 = sst [smem:[#allocation19_spill]] %s14618_s29  ;;  %p72_p1 = scmp.ne.s32.totalorder %s14618_s29, %s14614_s28 }
  0x17   : > { %17068 = sst [smem:[#allocation20_spill]] %s14622_s30  ;;  %p17038_p2 = scmp.eq.s32.totalorder %s14638_s10, 0 }
  0x18   : > { %17069 = sst [smem:[#allocation21_spill]] %s14626_s7  ;;  %s17141_s12 = smov (%p14755_p0, %s34_s12), 0 }
  0x19   : > { %s17070_s13 = scalar_select %p14755_p0, 1, 0 }
  0x1a   : > { %17071 = sst [smem:[#allocation22_spill]] %s17141_s12  ;;  %p14769_p3 = por %p17038_p2, %p72_p1 }
  0x1b   : > { %p78_p4 = scmp.ne.s32.totalorder %s14614_s28, %s14610_s27  ;;  %s14776_s16 = ssub.s32 %s14630_s8, %s17141_s12 }
  0x1c   : > { %p14780_p5 = scmp.eq.s32.totalorder %s17031_s11, 0  ;;  %p63_p6 = scmp.eq.s32.totalorder %s14776_s16, 0 }
  0x1d   : > { %p126_p7 = scmp.ne.s32.totalorder %s14606_s26, %s14602_s25  ;;  %p132_p9 = scmp.ne.s32.totalorder %s14602_s25, %s14598_s24 }
  0x1e   : > { %s17073_s17 = scalar_select %p14780_p5, 1, 0 }
  0x1f   : > { %p14789_p8 = por %p14780_p5, %p78_p4  ;;  %p14799_p10 = por %p126_p7, %p17038_p2 }
  0x20   : > { %s14795_s19 = scalar_select %p63_p6, %s14618_s29, %s65_s14  }
  0x21   : > { %s17074_s18 = scalar_select %p14789_p8, 1, 0 }
  0x22   : > { %17076 = sst [smem:[#allocation24_spill]] %s14795_s19  ;;  %p14805_p11 = por %p132_p9, %p14780_p5 }
  0x23   : > { %17075 = sst [smem:[#allocation23_spill]] %s17074_s18  ;;  %p17039_p12 = scmp.lt.s32.totalorder %s14638_s10, 4 }
  0x24   : > { %s17078_s27 = scalar_select %p14805_p11, 1, 0 }
  0x25   : > { %s14811_s11 = sand.u32 1, %s14618_s29   ;;  %s17042_s12 = sand.u32 1, %s14638_s10  }
  0x26   : > { %17079 = sst [smem:[#allocation25_spill]] %s17078_s27  ;;  %p14819_p13 = pnand %p17039_p12, %p14769_p3 }
  0x27   : > { %s12550_s14 = sshll.u32 %s14811_s11, 3  ;;  %s14121_s19 = sshll.u32 %s14630_s8, 7 }
  0x28   : > { %s263_s30 = scalar_lea.vmem [#allocation5], %s12550_s14  ;;  %s17081_s2 = sld [smem:[#allocation32_spill]] }
  0x29   : > { %s271_s6 = sshll.u32 %s263_s30, 4  ;;  %s14834_s15 = scalar_lea.sflag [#allocation6], %s17042_s12  ;;  %s14830_s6 = int_to_ptr.vmem [resolvable:$true] %s271_s6 }
  0x2a   : > { %p17052_p3 = pneg %p14819_p13 }
  0x2e   : > { %s14828_s29 = scalar_lea.hbm %s17081_s2, %s14121_s19  ;;  %s14367_s19 = scalar_lea.hbm %s17081_s2, 256 }
  0x2f   : > { %s14362_s0 = scalar_lea.hbm %s14828_s29, 128  ;;  %p14368_p7 = scmp.lt.u32.totalorder %s14828_s29, %s17081_s2 }
  0x30   : > { %p14363_p1 = scmp.ne.s32.totalorder %s14828_s29, %s14362_s0  ;;  %p14369_p9 = scmp.lt.u32.totalorder %s14367_s19, %s14362_s0 }
  0x31   : > { %p14371_p12 = scmp.lt.u32.totalorder %s14362_s0, %s14828_s29 }
  0x32   : > { %p14365_p4 = pnand %p17052_p3, %p14363_p1  ;;  %p14370_p2 = por %p14369_p9, %p14368_p7 }
  0x34   : > { %p14366_p6 = pneg %p14365_p4  ;;  %p14372_p11 = por %p14371_p12, %p14370_p2 }
  0x36   : > { %p14373_p8 = pnand %p14372_p11, %p14366_p6 }
  0x38   : > { %14376 = shalt.err (!%p14373_p8)
}
  0x39   : > { %s14377_s12 = scalar_lea.vmem %s14830_s6, 128  ;;  %s14640_s30 = smov [#allocation5]  }
  0x3a   : > { %p14378_p1 = scmp.ne.s32.totalorder %s14830_s6, %s14377_s12  ;;  %s14382_s7 = sshll.u32 %s14640_s30, 4  ;;  %s14383_s7 = int_to_ptr.vmem [resolvable:$false] %s14382_s7 }
  0x3b   : > { %s14384_s27 = scalar_lea.vmem %s14383_s7, 256  ;;  %p14385_p0 = scmp.lt.s32.totalorder %s14830_s6, %s14383_s7 }
  0x3c   : > { %p14380_p4 = pnand %p14378_p1, %p17052_p3  ;;  %p14386_p7 = scmp.lt.s32.totalorder %s14384_s27, %s14377_s12 }
  0x3e   : > { %p14381_p5 = pneg %p14380_p4  ;;  %p14387_p9 = por %p14386_p7, %p14385_p0 }
  0x40   : > { %p14388_p2 = pnand %p14387_p9, %p14381_p5 }
  0x42   : > { %14391 = shalt.err (!%p14388_p2)
}
  0x43   : > { %14222 = dma.hbm_to_vmem [thread:$0]  (!%p14819_p13), %s14828_s29, 128, %s14830_s6, %s14834_s15  }
  0x44   : > { %p17082_p0 = scmp.lt.s32.totalorder %s14638_s10, 4  ;;  %p12564_p8 = scmp.ge.s32.totalorder %s14638_s10, 1 }
  0x45   : > { %p338_p11 = scmp.lt.s32.totalorder %s14638_s10, 5  ;;  %s37_s14 = sadd.s32 1, %s14634_s9 }
  0x46   : > { %p14867_p5 = pnand %p17082_p0, %p14799_p10  ;;  %s119_s30 = sadd.s32 1, %s14606_s26 }
  0x47   : > { %p14873_p12 = pnand %p12564_p8, %p338_p11  ;;  %p17085_p6 = scmp.ne.s32.totalorder %s17070_s13, 0 }
  0x48   : > { %s17083_s12 = scalar_select %p14867_p5, 1, 0 }
  0x49   : > { %s17084_s19 = scalar_select %p14873_p12, 1, 0 }
  0x4a   : > { %s17143_s14 = smov (!%p17085_p6, %s37_s14), %s14634_s9  ;;  %s145_s6 = sadd.s32 1, %s14594_s23 }
  0x4b   : > { %p152_p1 = scmp.ne.s32.totalorder %s14594_s23, %s14590_s22  ;;  %p39_p10 = scmp.ge.s32.totalorder %s17143_s14, 2 }
  0x4c   : > { %p158_p4 = scmp.ne.s32.totalorder %s14590_s22, %s14586_s21  ;;  %p17086_p7 = scmp.eq.s32.totalorder %s14638_s10, 0 }
  0x4d   : > { %s17145_s14 = smov (%p39_p10, %s17143_s14), 0  ;;  %p17089_p2 = scmp.ne.s32.totalorder %s17073_s17, 0 }
  0x4e   : > { %p14889_p9 = por %p152_p1, %p17086_p7  ;;  %17088 = sst [smem:[#allocation26_spill]] %s17145_s14 }
  0x4f   : > { %p14897_p0 = por %p158_p4, %p17089_p2  ;;  %s304_s20 = sand.u32 1, %s14594_s23  }
  0x50   : > { %s115_s7 = ssub.s32 %s14634_s9, %s17145_s14  ;;  %s14904_s27 = sshll.u32 %s304_s20, 4 }
  0x51   : > { %s17090_s13 = scalar_select %p14897_p0, 1, 0 }
  0x52   : > { %s116_s21 = sor.u32 %s115_s7, %s14776_s16  ;;  %p143_p8 = scmp.eq.s32.totalorder %s115_s7, 0 }
  0x53   : > { %17091 = sst [smem:[#allocation27_spill]] %s17090_s13  ;;  %p117_p11 = scmp.eq.s32.totalorder %s116_s21, 0 }
  0x54   : > { %s14908_s0 = scalar_select %p143_p8, %s14594_s23, %s145_s6  }
  0x55   : > { %s14911_s2 = scalar_select %p117_p11, %s14606_s26, %s119_s30  }
  0x56   : > { %17092 = sst [smem:[#allocation28_spill]] %s14908_s0  ;;  %s14123_s22 = sshll.u32 %s14634_s9, 8 }
  0x57   : > { %17093 = sst [smem:[#allocation29_spill]] %s14911_s2  ;;  %s306_s17 = scalar_lea.vmem [#allocation8], %s14904_s27 }
  0x58   : > { %s314_s25 = sshll.u32 %s306_s17, 4  ;;  %s17094_s4 = sld [smem:[#allocation33_spill]]  ;;  %s14920_s25 = int_to_ptr.vmem [resolvable:$true] %s314_s25 }
  0x59   : > { %p17095_p6 = scmp.lt.s32.totalorder %s14638_s10, 4  ;;  %s14933_s28 = scalar_lea.hbm %s17029_s5, %s14123_s22 }
  0x5a   : > { %s17097_s18 = sand.u32 1, %s14638_s10  }
  0x5b   : > { %p14926_p1 = pnand %p17095_p6, %p14889_p9  ;;  %s14937_s20 = scalar_lea.sflag [#allocation9], %s17097_s18 }
  0x5d   : > { %p17055_p4 = pneg %p14926_p1 }
  0x5e   : > { %s14918_s13 = scalar_lea.hbm %s17094_s4, %s14123_s22  ;;  %s14397_s17 = scalar_lea.hbm %s17094_s4, 512 }
  0x5f   : > { %s14392_s7 = scalar_lea.hbm %s14918_s13, 256  ;;  %p14398_p2 = scmp.lt.u32.totalorder %s14918_s13, %s17094_s4 }
  0x60   : > { %p14393_p10 = scmp.ne.s32.totalorder %s14918_s13, %s14392_s7  ;;  %p14399_p8 = scmp.lt.u32.totalorder %s14397_s17, %s14392_s7 }
  0x61   : > { %p14401_p6 = scmp.lt.u32.totalorder %s14392_s7, %s14918_s13 }
  0x62   : > { %p14395_p7 = pnand %p17055_p4, %p14393_p10  ;;  %p14400_p11 = por %p14399_p8, %p14398_p2 }
  0x64   : > { %p14396_p9 = pneg %p14395_p7  ;;  %p14402_p3 = por %p14401_p6, %p14400_p11 }
  0x66   : > { %p14403_p0 = pnand %p14402_p3, %p14396_p9 }
  0x68   : > { %14406 = shalt.err (!%p14403_p0)
}
  0x69   : > { %s14407_s22 = scalar_lea.vmem %s14920_s25, 256  ;;  %s14641_s18 = smov [#allocation8]  }
  0x6a   : > { %p14408_p10 = scmp.ne.s32.totalorder %s14920_s25, %s14407_s22  ;;  %s14412_s29 = sshll.u32 %s14641_s18, 4  ;;  %s14413_s29 = int_to_ptr.vmem [resolvable:$false] %s14412_s29 }
  0x6b   : > { %s14414_s21 = scalar_lea.vmem %s14413_s29, 512  ;;  %p14415_p5 = scmp.lt.s32.totalorder %s14920_s25, %s14413_s29 }
  0x6c   : > { %p14410_p7 = pnand %p14408_p10, %p17055_p4  ;;  %p14416_p2 = scmp.lt.s32.totalorder %s14414_s21, %s14407_s22 }
  0x6e   : > { %p14411_p12 = pneg %p14410_p7  ;;  %p14417_p8 = por %p14416_p2, %p14415_p5 }
  0x70   : > { %p14418_p11 = pnand %p14417_p8, %p14411_p12 }
  0x72   : > { %14421 = shalt.err (!%p14418_p11)
}
  0x73   : > { %14228 = dma.hbm_to_vmem [thread:$0]  (!%p14926_p1), %s14918_s13, 256, %s14920_s25, %s14937_s20  }
  0x74   : > { %s14120_s7 = sshll.u32 %s14630_s8, 16  ;;  %s17098_s17 = sshll.u32 %s14811_s11, 12 }
  0x75   : > { %s241_s30 = scalar_lea.vmem [#allocation3], %s17098_s17  ;;  %s17099_s1 = sld [smem:[#allocation31_spill]] }
  0x76   : > { %s249_s6 = sshll.u32 %s241_s30, 4  ;;  %s238_s21 = scalar_lea.sflag [#allocation4], %s14811_s11  ;;  %s14973_s6 = int_to_ptr.vmem [resolvable:$true] %s249_s6 }
  0x77   : > { %p17100_p5 = pneg %p14819_p13 }
  0x7b   : > { %s14971_s22 = scalar_lea.hbm %s17099_s1, %s14120_s7  ;;  %s14427_s17 = scalar_lea.hbm %s17099_s1, 131072 }
  0x7c   : > { %s14422_s4 = scalar_lea.hbm %s14971_s22, 65536  ;;  %p14428_p9 = scmp.lt.u32.totalorder %s14971_s22, %s17099_s1 }
  0x7d   : > { %p14423_p3 = scmp.ne.s32.totalorder %s14971_s22, %s14422_s4  ;;  %p14429_p6 = scmp.lt.u32.totalorder %s14427_s17, %s14422_s4 }
  0x7e   : > { %p14431_p7 = scmp.lt.u32.totalorder %s14422_s4, %s14971_s22 }
  0x7f   : > { %p14425_p12 = pnand %p14423_p3, %p17100_p5  ;;  %p14430_p10 = por %p14429_p6, %p14428_p9 }
  0x81   : > { %p14426_p0 = pneg %p14425_p12  ;;  %p14432_p2 = por %p14431_p7, %p14430_p10 }
  0x83   : > { %p14433_p8 = pnand %p14432_p2, %p14426_p0 }
  0x85   : > { %14436 = shalt.err (!%p14433_p8)
}
  0x86   : > { %s14437_s18 = scalar_lea.vmem %s14973_s6, 65536  ;;  %p17101_p3 = pmov %p17100_p5 }
  0x87   : > { %p14438_p11 = scmp.ne.s32.totalorder %s14973_s6, %s14437_s18  ;;  %s14642_s29 = smov [#allocation3]  }
  0x88   : > { %s14442_s25 = sshll.u32 %s14642_s29, 4  ;;  %s14443_s25 = int_to_ptr.vmem [resolvable:$false] %s14442_s25 }
  0x89   : > { %p14440_p5 = pnand %p14438_p11, %p17101_p3  ;;  %s14444_s13 = scalar_lea.vmem %s14443_s25, 131072 }
  0x8a   : > { %p14445_p4 = scmp.lt.s32.totalorder %s14973_s6, %s14443_s25  ;;  %p14446_p9 = scmp.lt.s32.totalorder %s14444_s13, %s14437_s18 }
  0x8b   : > { %p14441_p12 = pneg %p14440_p5 }
  0x8c   : > { %p14447_p6 = por %p14446_p9, %p14445_p4 }
  0x8e   : > { %p14448_p10 = pnand %p14447_p6, %p14441_p12 }
  0x90   : > { %14451 = shalt.err (!%p14448_p10)
}
  0x91   : > { %s14643_s4 = smov 512   ;;  %s14644_s17 = smov 32  }
  0x92   : > { %14219 = dma.hbm_to_vmem [thread:$0]  (!%p14819_p13), %s14971_s22, 65536, %s14973_s6, %s238_s21, %s14643_s4, %s14643_s4, %s14644_s17  }
  0x93   : > { %s280_s30 = sand.u32 1, %s14606_s26   ;;  %s12555_s7 = sshll.u32 %s14634_s9, 4 }
  0x94   : > { %s12553_s18 = sshll.u32 %s280_s30, 13  ;;  %s17102_s29 = sshll.u32 %s14630_s8, 12 }
  0x95   : > { %s289_s25 = sadd.s32 %s17102_s29, %s12555_s7  ;;  %s282_s0 = scalar_lea.vmem [#allocation7], %s12553_s18 }
  0x96   : > { %s12557_s13 = sshll.u32 %s289_s25, 6  ;;  %s292_s23 = sshll.u32 %s282_s0, 4  ;;  %s15010_s23 = int_to_ptr.vmem [resolvable:$true] %s292_s23 }
  0x97   : > { %s15008_s2 = scalar_lea.hbm %s17027_s3, %s12557_s13  ;;  %p17103_p4 = scmp.ne.s32.totalorder %s17083_s12, 0 }
  0x98   : > { %s14452_s11 = scalar_lea.hbm %s15008_s2, 131072  ;;  %s14457_s14 = scalar_lea.hbm %s17027_s3, 524288 }
  0x99   : > { %p14453_p13 = scmp.ne.s32.totalorder %s15008_s2, %s14452_s11  ;;  %p14454_p0 = pneg %p17103_p4 }
  0x9a   : > { %p14458_p8 = scmp.lt.u32.totalorder %s15008_s2, %s17027_s3  ;;  %p14459_p11 = scmp.lt.u32.totalorder %s14457_s14, %s14452_s11 }
  0x9b   : > { %p14455_p7 = pnand %p14454_p0, %p14453_p13  ;;  %p14461_p5 = scmp.lt.u32.totalorder %s14452_s11, %s15008_s2 }
  0x9c   : > { %p14460_p3 = por %p14459_p11, %p14458_p8 }
  0x9d   : > { %p14456_p2 = pneg %p14455_p7 }
  0x9e   : > { %p14462_p12 = por %p14461_p5, %p14460_p3 }
  0xa0   : > { %p14463_p9 = pnand %p14462_p12, %p14456_p2 }
  0xa2   : > { %14466 = shalt.err (!%p14463_p9)
}
  0xa3   : > { %s14467_s0 = scalar_lea.vmem %s15010_s23, 131072  ;;  %s14645_s21 = smov [#allocation7]  }
  0xa4   : > { %p14468_p6 = scmp.ne.s32.totalorder %s15010_s23, %s14467_s0  ;;  %s14472_s4 = sshll.u32 %s14645_s21, 4  ;;  %s14473_s4 = int_to_ptr.vmem [resolvable:$false] %s14472_s4 }
  0xa5   : > { %s14474_s17 = scalar_lea.vmem %s14473_s4, 262144  ;;  %p14475_p7 = scmp.lt.s32.totalorder %s15010_s23, %s14473_s4 }
  0xa6   : > { %p14470_p10 = pnand %p14468_p6, %p14454_p0  ;;  %p14476_p8 = scmp.lt.s32.totalorder %s14474_s17, %s14467_s0 }
  0xa8   : > { %p14471_p13 = pneg %p14470_p10  ;;  %p14477_p11 = por %p14476_p8, %p14475_p7 }
  0xaa   : > { %p14478_p3 = pnand %p14477_p11, %p14471_p13 }
  0xac   : > { %14481 = shalt.err (!%p14478_p3)
}
  0xad   : > { %s14646_s30 = smov 2048   ;;  %s14647_s7 = smov 1024  }
  0xae   : > { %s14648_s18 = smov 64   ;;  %s325_s29 = scalar_lea.vmem [#allocation10], %s14904_s27 }
  0xaf   : > { %14225 = dma.hbm_to_vmem [thread:$0]  (!%p17103_p4), %s15008_s2, 131072, %s15010_s23, %s14834_s15, %s14646_s30, %s14647_s7, %s14648_s18  }
  0xb0   : > { %s333_s25 = sshll.u32 %s325_s29, 4  ;;  %s14482_s13 = scalar_lea.hbm %s14933_s28, 256  ;;  %s334_s25 = int_to_ptr.vmem [resolvable:$true] %s333_s25 }
  0xb1   : > { %p14483_p0 = scmp.ne.s32.totalorder %s14933_s28, %s14482_s13  ;;  %p17104_p2 = pneg %p14926_p1 }
  0xb2   : > { %s14487_s1 = scalar_lea.hbm %s17029_s5, 512  ;;  %p14488_p9 = scmp.lt.u32.totalorder %s14933_s28, %s17029_s5 }
  0xb3   : > { %p14485_p5 = pnand %p14483_p0, %p17104_p2  ;;  %p14489_p6 = scmp.lt.u32.totalorder %s14487_s1, %s14482_s13 }
  0xb4   : > { %p14491_p4 = scmp.lt.u32.totalorder %s14482_s13, %s14933_s28 }
  0xb5   : > { %p14486_p12 = pneg %p14485_p5  ;;  %p14490_p10 = por %p14489_p6, %p14488_p9 }
  0xb7   : > { %p14492_p13 = por %p14491_p4, %p14490_p10 }
  0xb9   : > { %p14493_p7 = pnand %p14492_p13, %p14486_p12 }
  0xbb   : > { %14496 = shalt.err (!%p14493_p7)
}
  0xbc   : > { %s14497_s2 = scalar_lea.vmem %s334_s25, 256  ;;  %p17105_p11 = pmov %p17104_p2 }
  0xbd   : > { %p14498_p8 = scmp.ne.s32.totalorder %s334_s25, %s14497_s2  ;;  %s14649_s23 = smov [#allocation10]  }
  0xbe   : > { %s14502_s15 = sshll.u32 %s14649_s23, 4  ;;  %s14503_s15 = int_to_ptr.vmem [resolvable:$false] %s14502_s15 }
  0xbf   : > { %p14500_p3 = pnand %p14498_p8, %p17105_p11  ;;  %s14504_s12 = scalar_lea.vmem %s14503_s15, 512 }
  0xc0   : > { %p14505_p2 = scmp.lt.s32.totalorder %s334_s25, %s14503_s15  ;;  %p14506_p5 = scmp.lt.s32.totalorder %s14504_s12, %s14497_s2 }
  0xc1   : > { %p14501_p0 = pneg %p14500_p3 }
  0xc2   : > { %p14507_p6 = por %p14506_p5, %p14505_p2 }
  0xc4   : > { %p14508_p9 = pnand %p14507_p6, %p14501_p0 }
  0xc6   : > { %14511 = shalt.err (!%p14508_p9)
}
  0xc7   : > { %14231 = dma.hbm_to_vmem [thread:$0]  (!%p14926_p1), %s14933_s28, 256, %s334_s25, %s14937_s20  }
  0xc8   : > { %p17106_p12 = scmp.ne.s32.totalorder %s17084_s19, 0 }
  0xc9   : > { %s17107_s27 = sld [smem:[#allocation18_spill]] (!%p17106_p12)  ;;  %s17108_s22 = sld [smem:[#allocation23_spill]] (!%p17106_p12) }
  0xca   : > { %342 = sbr.rel (%p17106_p12) target bundleno = 2868 (0xb34), region = 44 }
  0xcf   : > { %s344_s0 = sand.u32 (!%p17106_p12), 1, %s17107_s27   ;;  %p17109_p10 = scmp.ne.s32.totalorder (!%p17106_p12), %s17108_s22, 0 }
  0xd0   : > { %s12565_s21 = sshll.u32 (!%p17106_p12), %s344_s0, 12  ;;  %s345_s4 = scalar_lea.sflag (!%p17106_p12), [#allocation4], %s344_s0 }
  0xd1   : > { %s15062_s17 = scalar_lea.vmem [#allocation3], %s12565_s21 }
  0xd2   : > { %14569 = dma.done.wait (%p17109_p10), %s345_s4, 65536  }
  0xd3   : > { %14571 = vsyncadd (%p17109_p10), %s345_s4, 4294901760  ;;  %s17110_s16 = sadd.s32 4294967295, %s14638_s10   ;;  %s12566_s28 = sshll.u32 %s344_s0, 3 }
  0xd4   : > { %s353_s30 = sand.u32 1, %s17110_s16   ;;  %s15070_s19 = scalar_lea.vmem [#allocation5], %s12566_s28 }
  0xd5   : > { %s354_s20 = scalar_lea.sflag [#allocation6], %s353_s30 }
  0xd6   : > { %14573 = dma.done.wait (%p17109_p10), %s354_s20, 128  }
  0xd7   : > { %14575 = vsyncadd (%p17109_p10), %s354_s20, 4294967168  ;;  %s17111_s7 = sld [smem:[#allocation17_spill]]  ;;  %s17112_s18 = sld [smem:[#allocation25_spill]] }
  0xdd   : > { %s364_s29 = sand.u32 1, %s17111_s7   ;;  %p17113_p1 = scmp.ne.s32.totalorder %s17112_s18, 0 }
  0xde   : > { %s12567_s25 = sshll.u32 %s364_s29, 13 }
  0xdf   : > { %s15077_s13 = scalar_lea.vmem [#allocation7], %s12567_s25 }
  0xe0   : > { %14577 = dma.done.wait (%p17113_p1), %s354_s20, 131072  }
  0xe1   : > { %14579 = vsyncadd (%p17113_p1), %s354_s20, 4294836224  ;;  %s17114_s11 = sld [smem:[#allocation15_spill]]  ;;  %s17115_s24 = sld [smem:[#allocation27_spill]] }
  0xe2   : > { %s372_s6 = scalar_lea.sflag [#allocation9], %s353_s30 }
  0xe7   : > { %s373_s1 = sand.u32 1, %s17114_s11   ;;  %p17116_p4 = scmp.ne.s32.totalorder %s17115_s24, 0 }
  0xe8   : > { %s15084_s14 = sshll.u32 %s373_s1, 4 }
  0xe9   : > { %s375_s2 = scalar_lea.vmem [#allocation8], %s15084_s14 }
  0xea   : > { %14581 = dma.done.wait (%p17116_p4), %s372_s6, 512  }
  0xeb   : > { %14583 = vsyncadd (%p17116_p4), %s372_s6, 4294966784  ;;  %s17117_s23 = sld [smem:[#allocation21_spill]]  ;;  %s17118_s22 = sld [smem:[#allocation34_spill]] }
  0xec   : > { %s384_s21 = scalar_lea.vmem [#allocation10], %s15084_s14  ;;  %s17119_s4 = sld [smem:[#allocation20_spill]] }
  0xf1   : > { %p438_p13 = scmp.lt.s32.totalorder %s17117_s23, 1 }
  0xf2   : > { %p12571_p7 = scmp.ne.s32.totalorder %s17119_s4, 0 }
  0xf3   : > { %s17147_s23 = smov (!%p438_p13, %s17117_s23), 1  ;;  %v14650_v0 = vmov (!%p12571_p7), 0.0  }
  0xf4   : > { %s12570_s15 = sshll.u32 %s17147_s23, 3  ;;  %446 = sbr.rel (%p12571_p7) target bundleno = 252 (0xfc), region = 68  ;;  %447 = vst [vmem:[#allocation2] sm:$0xff] (!%p12571_p7), %v14650_v0  ;;  %448 = vst [vmem:[#allocation2 + $0x8] sm:$0xff] (!%p12571_p7), %v14650_v0 }
  0xf5   : > { %s15096_s0 = scalar_lea.vmem %s17118_s22, %s12570_s15  ;;  %449 = vst [vmem:[#allocation2 + $0x10] sm:$0xff] (!%p12571_p7), %v14650_v0  ;;  %450 = vst [vmem:[#allocation2 + $0x18] sm:$0xff] (!%p12571_p7), %v14650_v0 }
  0xf6   : > { %451 = vst [vmem:[#allocation2 + $0x20] sm:$0xff] (!%p12571_p7), %v14650_v0  ;;  %452 = vst [vmem:[#allocation2 + $0x28] sm:$0xff] (!%p12571_p7), %v14650_v0 }
  0xf7   : > { %453 = vst [vmem:[#allocation2 + $0x30] sm:$0xff] (!%p12571_p7), %v14650_v0  ;;  %454 = vst [vmem:[#allocation2 + $0x38] sm:$0xff] (!%p12571_p7), %v14650_v0 }
  0xf8   : > { %455 = vst [vmem:[#allocation2 + $0x40] sm:$0xff] (!%p12571_p7), %v14650_v0  ;;  %456 = vst [vmem:[#allocation2 + $0x48] sm:$0xff] (!%p12571_p7), %v14650_v0 }
  0xf9   : > { %457 = vst [vmem:[#allocation2 + $0x50] sm:$0xff] (!%p12571_p7), %v14650_v0  ;;  %458 = vst [vmem:[#allocation2 + $0x58] sm:$0xff] (!%p12571_p7), %v14650_v0 }
  0xfa   : > { %459 = vst [vmem:[#allocation2 + $0x60] sm:$0xff] (!%p12571_p7), %v14650_v0  ;;  %460 = vst [vmem:[#allocation2 + $0x68] sm:$0xff] (!%p12571_p7), %v14650_v0 }
  0xfb   : > { %461 = vst [vmem:[#allocation2 + $0x70] sm:$0xff] %v14650_v0  ;;  %462 = vst [vmem:[#allocation2 + $0x78] sm:$0xff] %v14650_v0 }
  0xfc PF: > { %v467_v1 = vld [vmem:[%s15062_s17] sm:$0xff]  ;;  %s17120_s28 = sld [smem:[#allocation30_spill]] }
  0xfd   : > { %v471_v2 = vld [vmem:[%s15062_s17 + $0x20] sm:$0xff] }
  0xfe   : > { %v595_v3 = vld [vmem:[%s15062_s17 + $0x400] sm:$0xff]  ;;  %v12581_v4 = vcombine.high %v467_v1, %v471_v2  ;;  %v12580_v6 = vcombine.low %v467_v1, %v471_v2 }
  0xff   : > { %v599_v5 = vld [vmem:[%s15062_s17 + $0x420] sm:$0xff] }
 0x100   : > { %v475_v7 = vld [vmem:[%s15062_s17 + $0x40] sm:$0xff]  ;;  %v12709_v9 = vcombine.high %v595_v3, %v599_v5  ;;  %v12708_v10 = vcombine.low %v595_v3, %v599_v5  ;;  %3609 = vmatprep.subr.bf16.mxu0 %v12581_v4 }
 0x101   : > { %v479_v8 = vld [vmem:[%s15062_s17 + $0x60] sm:$0xff]  ;;  %3610 = vmatpush1.bf16.xpose.msra.mxu0 %v12580_v6 }
 0x102   : > { %v12589_v11 = vcombine.high %v475_v7, %v479_v8  ;;  %v603_v12 = vld [vmem:[%s15062_s17 + $0x440] sm:$0xff]  ;;  %3773 = vmatprep.subr.bf16.mxu1 %v12709_v9  ;;  %v12588_v19 = vcombine.low %v475_v7, %v479_v8  ;;  %s17121_s20 = smov %s17120_s28 }
 0x103   : > { %v607_v13 = vld [vmem:[%s15062_s17 + $0x460] sm:$0xff]  ;;  %3774 = vmatpush1.bf16.xpose.msra.mxu1 %v12708_v10 }
 0x104   : > { %v12717_v14 = vcombine.high %v603_v12, %v607_v13  ;;  %3611 = vmatprep.subr.bf16.mxu0 %v12589_v11  ;;  %v483_v15 = vld [vmem:[%s15062_s17 + $0x80] sm:$0xff]  ;;  %v12716_v20 = vcombine.low %v603_v12, %v607_v13 }
 0x105   : > { %v487_v16 = vld [vmem:[%s15062_s17 + $0xa0] sm:$0xff] }
 0x106   : > { %3775 = vmatprep.subr.bf16.mxu1 %v12717_v14  ;;  %v611_v17 = vld [vmem:[%s15062_s17 + $0x480] sm:$0xff]  ;;  %v12597_v21 = vcombine.high %v483_v15, %v487_v16  ;;  %v12596_v27 = vcombine.low %v483_v15, %v487_v16 }
 0x107   : > { %v615_v18 = vld [vmem:[%s15062_s17 + $0x4a0] sm:$0xff] }
 0x108   : > { %v12725_v22 = vcombine.high %v611_v17, %v615_v18  ;;  %v491_v23 = vld [vmem:[%s15062_s17 + $0xc0] sm:$0xff]  ;;  %v12724_v28 = vcombine.low %v611_v17, %v615_v18 }
 0x109   : > { %3612 = vmatpush1.bf16.xpose.msra.mxu0 %v12588_v19  ;;  %v495_v24 = vld [vmem:[%s15062_s17 + $0xe0] sm:$0xff] }
 0x10a   : > { %3613 = vmatprep.subr.bf16.mxu0 %v12597_v21  ;;  %v619_v25 = vld [vmem:[%s15062_s17 + $0x4c0] sm:$0xff]  ;;  %v12605_v29 = vcombine.high %v491_v23, %v495_v24  ;;  %v12604_v37 = vcombine.low %v491_v23, %v495_v24 }
 0x10b   : > { %3776 = vmatpush1.bf16.xpose.msra.mxu1 %v12716_v20  ;;  %v623_v26 = vld [vmem:[%s15062_s17 + $0x4e0] sm:$0xff] }
 0x10c   : > { %3777 = vmatprep.subr.bf16.mxu1 %v12725_v22  ;;  %v12733_v30 = vcombine.high %v619_v25, %v623_v26  ;;  %v15119_v31 = vld [vmem:[%s17120_s28] sm:$0xff]  ;;  %v12732_v38 = vcombine.low %v619_v25, %v623_v26 }
 0x10d   : > { %v499_v32 = vld [vmem:[%s15062_s17 + $0x100] sm:$0xff]  ;;  %v15125_v34 = vcombine.high %v15119_v31, %v15119_v31 }
 0x10e   : > { %v503_v33 = vld [vmem:[%s15062_s17 + $0x120] sm:$0xff] }
 0x10f   : > { %v627_v35 = vld [vmem:[%s15062_s17 + $0x500] sm:$0xff]  ;;  %3641 = vmatprep.mubr.bf16.mxu0 %v15125_v34  ;;  %3805 = vmatprep.mubr.bf16.mxu1 %v15125_v34  ;;  %v12613_v39 = vcombine.high %v499_v32, %v503_v33  ;;  %v12612_v45 = vcombine.low %v499_v32, %v503_v33 }
 0x110   : > { %v631_v36 = vld [vmem:[%s15062_s17 + $0x520] sm:$0xff] }
 0x111   : > { %3614 = vmatpush1.bf16.xpose.msra.mxu0 %v12596_v27  ;;  %v12741_v40 = vcombine.high %v627_v35, %v631_v36  ;;  %v507_v41 = vld [vmem:[%s15062_s17 + $0x140] sm:$0xff]  ;;  %v12740_v46 = vcombine.low %v627_v35, %v631_v36 }
 0x112   : > { %3615 = vmatprep.subr.bf16.mxu0 %v12605_v29  ;;  %v511_v42 = vld [vmem:[%s15062_s17 + $0x160] sm:$0xff] }
 0x113   : > { %3778 = vmatpush1.bf16.xpose.msra.mxu1 %v12724_v28  ;;  %v635_v43 = vld [vmem:[%s15062_s17 + $0x540] sm:$0xff]  ;;  %v12621_v47 = vcombine.high %v507_v41, %v511_v42  ;;  %v12620_v53 = vcombine.low %v507_v41, %v511_v42 }
 0x114   : > { %3779 = vmatprep.subr.bf16.mxu1 %v12733_v30  ;;  %v639_v44 = vld [vmem:[%s15062_s17 + $0x560] sm:$0xff] }
 0x115   : > { %v12749_v48 = vcombine.high %v635_v43, %v639_v44  ;;  %v515_v49 = vld [vmem:[%s15062_s17 + $0x180] sm:$0xff]  ;;  %v12748_v54 = vcombine.low %v635_v43, %v639_v44 }
 0x116   : > { %v519_v50 = vld [vmem:[%s15062_s17 + $0x1a0] sm:$0xff] }
 0x117   : > { %v643_v51 = vld [vmem:[%s15062_s17 + $0x580] sm:$0xff]  ;;  %v12629_v55 = vcombine.high %v515_v49, %v519_v50  ;;  %v12628_v61 = vcombine.low %v515_v49, %v519_v50 }
 0x118   : > { %v647_v52 = vld [vmem:[%s15062_s17 + $0x5a0] sm:$0xff] }
 0x119   : > { %3616 = vmatpush1.bf16.xpose.msra.mxu0 %v12604_v37  ;;  %v12757_v56 = vcombine.high %v643_v51, %v647_v52  ;;  %v523_v57 = vld [vmem:[%s15062_s17 + $0x1c0] sm:$0xff]  ;;  %v12756_v62 = vcombine.low %v643_v51, %v647_v52 }
 0x11a   : > { %3617 = vmatprep.subr.bf16.mxu0 %v12613_v39  ;;  %v527_v58 = vld [vmem:[%s15062_s17 + $0x1e0] sm:$0xff] }
 0x11b   : > { %3780 = vmatpush1.bf16.xpose.msra.mxu1 %v12732_v38  ;;  %v651_v59 = vld [vmem:[%s15062_s17 + $0x5c0] sm:$0xff]  ;;  %v12637_v63 = vcombine.high %v523_v57, %v527_v58  ;;  %v12636_v5 = vcombine.low %v523_v57, %v527_v58 }
 0x11c   : > { %3781 = vmatprep.subr.bf16.mxu1 %v12741_v40  ;;  %v655_v60 = vld [vmem:[%s15062_s17 + $0x5e0] sm:$0xff] }
 0x11d   : > { %v12765_v0 = vcombine.high %v651_v59, %v655_v60  ;;  %v531_v1 = vld [vmem:[%s15062_s17 + $0x200] sm:$0xff]  ;;  %v12764_v6 = vcombine.low %v651_v59, %v655_v60 }
 0x11e   : > { %v535_v2 = vld [vmem:[%s15062_s17 + $0x220] sm:$0xff] }
 0x11f   : > { %v659_v3 = vld [vmem:[%s15062_s17 + $0x600] sm:$0xff]  ;;  %v12645_v7 = vcombine.high %v531_v1, %v535_v2  ;;  %v12644_v13 = vcombine.low %v531_v1, %v535_v2 }
 0x120   : > { %v663_v4 = vld [vmem:[%s15062_s17 + $0x620] sm:$0xff] }
 0x121   : > { %3618 = vmatpush1.bf16.xpose.msra.mxu0 %v12612_v45  ;;  %v12773_v8 = vcombine.high %v659_v3, %v663_v4  ;;  %v539_v9 = vld [vmem:[%s15062_s17 + $0x240] sm:$0xff]  ;;  %v12772_v14 = vcombine.low %v659_v3, %v663_v4  ;;  %v468_v3 = vld [vmem:[%s15062_s17 + $0x8] sm:$0xff] }
 0x122   : > { %3619 = vmatprep.subr.bf16.mxu0 %v12621_v47  ;;  %v543_v10 = vld [vmem:[%s15062_s17 + $0x260] sm:$0xff]  ;;  %v472_v4 = vld [vmem:[%s15062_s17 + $0x28] sm:$0xff] }
 0x123   : > { %3782 = vmatpush1.bf16.xpose.msra.mxu1 %v12740_v46  ;;  %v667_v11 = vld [vmem:[%s15062_s17 + $0x640] sm:$0xff]  ;;  %v12653_v15 = vcombine.high %v539_v9, %v543_v10  ;;  %v12652_v21 = vcombine.low %v539_v9, %v543_v10  ;;  %v12583_v9 = vcombine.high %v468_v3, %v472_v4 }
 0x124   : > { %3783 = vmatprep.subr.bf16.mxu1 %v12749_v48  ;;  %v671_v12 = vld [vmem:[%s15062_s17 + $0x660] sm:$0xff] }
 0x125   : > { %v12781_v16 = vcombine.high %v667_v11, %v671_v12  ;;  %v547_v17 = vld [vmem:[%s15062_s17 + $0x280] sm:$0xff]  ;;  %v12780_v22 = vcombine.low %v667_v11, %v671_v12  ;;  %v476_v11 = vld [vmem:[%s15062_s17 + $0x48] sm:$0xff] }
 0x126   : > { %v551_v18 = vld [vmem:[%s15062_s17 + $0x2a0] sm:$0xff]  ;;  %v480_v12 = vld [vmem:[%s15062_s17 + $0x68] sm:$0xff] }
 0x127   : > { %v675_v19 = vld [vmem:[%s15062_s17 + $0x680] sm:$0xff]  ;;  %v12661_v23 = vcombine.high %v547_v17, %v551_v18  ;;  %v12660_v29 = vcombine.low %v547_v17, %v551_v18  ;;  %v12582_v17 = vcombine.low %v468_v3, %v472_v4 }
 0x128   : > { %v679_v20 = vld [vmem:[%s15062_s17 + $0x6a0] sm:$0xff] }
 0x129   : > { %3620 = vmatpush1.bf16.xpose.msra.mxu0 %v12620_v53  ;;  %v12789_v24 = vcombine.high %v675_v19, %v679_v20  ;;  %v555_v25 = vld [vmem:[%s15062_s17 + $0x2c0] sm:$0xff]  ;;  %v12788_v30 = vcombine.low %v675_v19, %v679_v20  ;;  %v12591_v19 = vcombine.high %v476_v11, %v480_v12 }
 0x12a   : > { %3621 = vmatprep.subr.bf16.mxu0 %v12629_v55  ;;  %v559_v26 = vld [vmem:[%s15062_s17 + $0x2e0] sm:$0xff] }
 0x12b   : > { %3784 = vmatpush1.bf16.xpose.msra.mxu1 %v12748_v54  ;;  %v683_v27 = vld [vmem:[%s15062_s17 + $0x6c0] sm:$0xff]  ;;  %v12669_v32 = vcombine.high %v555_v25, %v559_v26  ;;  %v12668_v39 = vcombine.low %v555_v25, %v559_v26  ;;  %v12590_v25 = vcombine.low %v476_v11, %v480_v12 }
 0x12c   : > { %3785 = vmatprep.subr.bf16.mxu1 %v12757_v56  ;;  %v687_v28 = vld [vmem:[%s15062_s17 + $0x6e0] sm:$0xff] }
 0x12d   : > { %v12797_v33 = vcombine.high %v683_v27, %v687_v28  ;;  %v563_v35 = vld [vmem:[%s15062_s17 + $0x300] sm:$0xff]  ;;  %v12796_v40 = vcombine.low %v683_v27, %v687_v28 }
 0x12e   : > { %v567_v36 = vld [vmem:[%s15062_s17 + $0x320] sm:$0xff] }
 0x12f   : > { %v691_v37 = vld [vmem:[%s15062_s17 + $0x700] sm:$0xff]  ;;  %v12677_v41 = vcombine.high %v563_v35, %v567_v36  ;;  %v12676_v47 = vcombine.low %v563_v35, %v567_v36 }
 0x130   : > { %v695_v38 = vld [vmem:[%s15062_s17 + $0x720] sm:$0xff] }
 0x131   : > { %3622 = vmatpush1.bf16.xpose.msra.mxu0 %v12628_v61  ;;  %v12805_v42 = vcombine.high %v691_v37, %v695_v38  ;;  %v571_v43 = vld [vmem:[%s15062_s17 + $0x340] sm:$0xff]  ;;  %v12804_v48 = vcombine.low %v691_v37, %v695_v38 }
 0x132   : > { %3623 = vmatprep.subr.bf16.mxu0 %v12637_v63  ;;  %v575_v44 = vld [vmem:[%s15062_s17 + $0x360] sm:$0xff] }
 0x133   : > { %3786 = vmatpush1.bf16.xpose.msra.mxu1 %v12756_v62  ;;  %v699_v45 = vld [vmem:[%s15062_s17 + $0x740] sm:$0xff]  ;;  %v12685_v49 = vcombine.high %v571_v43, %v575_v44  ;;  %v12684_v55 = vcombine.low %v571_v43, %v575_v44 }
 0x134   : > { %3787 = vmatprep.subr.bf16.mxu1 %v12765_v0  ;;  %v703_v46 = vld [vmem:[%s15062_s17 + $0x760] sm:$0xff] }
 0x135   : > { %v12813_v50 = vcombine.high %v699_v45, %v703_v46  ;;  %v579_v51 = vld [vmem:[%s15062_s17 + $0x380] sm:$0xff]  ;;  %v12812_v56 = vcombine.low %v699_v45, %v703_v46 }
 0x136   : > { %v583_v52 = vld [vmem:[%s15062_s17 + $0x3a0] sm:$0xff] }
 0x137   : > { %v707_v53 = vld [vmem:[%s15062_s17 + $0x780] sm:$0xff]  ;;  %v12693_v57 = vcombine.high %v579_v51, %v583_v52  ;;  %v12692_v63 = vcombine.low %v579_v51, %v583_v52 }
 0x138   : > { %v711_v54 = vld [vmem:[%s15062_s17 + $0x7a0] sm:$0xff] }
 0x139   : > { %3624 = vmatpush1.bf16.xpose.msra.mxu0 %v12636_v5  ;;  %v12821_v58 = vcombine.high %v707_v53, %v711_v54  ;;  %v587_v59 = vld [vmem:[%s15062_s17 + $0x3c0] sm:$0xff]  ;;  %v12820_v0 = vcombine.low %v707_v53, %v711_v54  ;;  %v596_v5 = vld [vmem:[%s15062_s17 + $0x408] sm:$0xff] }
 0x13a   : > { %3625 = vmatprep.subr.bf16.mxu0 %v12645_v7  ;;  %v591_v60 = vld [vmem:[%s15062_s17 + $0x3e0] sm:$0xff] }
 0x13b   : > { %3788 = vmatpush1.bf16.xpose.msra.mxu1 %v12764_v6  ;;  %v715_v61 = vld [vmem:[%s15062_s17 + $0x7c0] sm:$0xff]  ;;  %v12701_v1 = vcombine.high %v587_v59, %v591_v60  ;;  %v600_v6 = vld [vmem:[%s15062_s17 + $0x428] sm:$0xff]  ;;  %v12700_v7 = vcombine.low %v587_v59, %v591_v60 }
 0x13c   : > { %3789 = vmatprep.subr.bf16.mxu1 %v12773_v8  ;;  %v719_v62 = vld [vmem:[%s15062_s17 + $0x7e0] sm:$0xff]  ;;  %v12711_v10 = vcombine.high %v596_v5, %v600_v6  ;;  %v12710_v18 = vcombine.low %v596_v5, %v600_v6 }
 0x13d   : > { %v12829_v2 = vcombine.high %v715_v61, %v719_v62  ;;  %v12828_v8 = vcombine.low %v715_v61, %v719_v62 }
 0x141   : > { %3626 = vmatpush1.bf16.xpose.msra.mxu0 %v12644_v13  ;;  %v15183_v13 = vcombine.low %v15119_v31, %v15119_v31  ;;  %v484_v31 = vld [vmem:[%s15062_s17 + $0x88] sm:$0xff] }
 0x142   : > { %3627 = vmatprep.subr.bf16.mxu0 %v12653_v15  ;;  %v608_v15 = vld [vmem:[%s15062_s17 + $0x468] sm:$0xff] }
 0x143   : > { %3790 = vmatpush1.bf16.xpose.msra.mxu1 %v12772_v14  ;;  %v604_v14 = vld [vmem:[%s15062_s17 + $0x448] sm:$0xff] }
 0x144   : > { %3791 = vmatprep.subr.bf16.mxu1 %v12781_v16  ;;  %v15190_v16 = vld [vmem:[%s17121_s20 + $0x8] sm:$0xff]  ;;  %v12719_v20 = vcombine.high %v604_v14, %v608_v15  ;;  %v12718_v26 = vcombine.low %v604_v14, %v608_v15 }
 0x149   : > { %3628 = vmatpush1.bf16.xpose.msra.mxu0 %v12652_v21  ;;  %v15194_v21 = vcombine.high %v15190_v16, %v15190_v16 }
 0x14a   : > { %3629 = vmatprep.subr.bf16.mxu0 %v12661_v23  ;;  %v612_v23 = vld [vmem:[%s15062_s17 + $0x488] sm:$0xff] }
 0x14b   : > { %3792 = vmatpush1.bf16.xpose.msra.mxu1 %v12780_v22  ;;  %v488_v22 = vld [vmem:[%s15062_s17 + $0xa8] sm:$0xff] }
 0x14c   : > { %3793 = vmatprep.subr.bf16.mxu1 %v12789_v24  ;;  %v616_v24 = vld [vmem:[%s15062_s17 + $0x4a8] sm:$0xff]  ;;  %v12599_v27 = vcombine.high %v484_v31, %v488_v22  ;;  %v12598_v35 = vcombine.low %v484_v31, %v488_v22 }
 0x14d   : > { %v12727_v28 = vcombine.high %v612_v23, %v616_v24  ;;  %v12726_v36 = vcombine.low %v612_v23, %v616_v24 }
 0x151   : > { %3630 = vmatpush1.bf16.xpose.msra.mxu0 %v12660_v29  ;;  %v492_v29 = vld [vmem:[%s15062_s17 + $0xc8] sm:$0xff] }
 0x152   : > { %3631 = vmatprep.subr.bf16.mxu0 %v12669_v32  ;;  %v620_v32 = vld [vmem:[%s15062_s17 + $0x4c8] sm:$0xff] }
 0x153   : > { %3794 = vmatpush1.bf16.xpose.msra.mxu1 %v12788_v30  ;;  %v496_v30 = vld [vmem:[%s15062_s17 + $0xe8] sm:$0xff] }
 0x154   : > { %3795 = vmatprep.subr.bf16.mxu1 %v12797_v33  ;;  %v624_v33 = vld [vmem:[%s15062_s17 + $0x4e8] sm:$0xff]  ;;  %v12607_v37 = vcombine.high %v492_v29, %v496_v30  ;;  %v12606_v43 = vcombine.low %v492_v29, %v496_v30 }
 0x155   : > { %v12735_v38 = vcombine.high %v620_v32, %v624_v33  ;;  %v12734_v44 = vcombine.low %v620_v32, %v624_v33 }
 0x159   : > { %3632 = vmatpush1.bf16.xpose.msra.mxu0 %v12668_v39  ;;  %v500_v39 = vld [vmem:[%s15062_s17 + $0x108] sm:$0xff] }
 0x15a   : > { %3633 = vmatprep.subr.bf16.mxu0 %v12677_v41  ;;  %v628_v41 = vld [vmem:[%s15062_s17 + $0x508] sm:$0xff] }
 0x15b   : > { %3796 = vmatpush1.bf16.xpose.msra.mxu1 %v12796_v40  ;;  %v504_v40 = vld [vmem:[%s15062_s17 + $0x128] sm:$0xff] }
 0x15c   : > { %3797 = vmatprep.subr.bf16.mxu1 %v12805_v42  ;;  %v632_v42 = vld [vmem:[%s15062_s17 + $0x528] sm:$0xff]  ;;  %v12615_v45 = vcombine.high %v500_v39, %v504_v40  ;;  %v12614_v51 = vcombine.low %v500_v39, %v504_v40 }
 0x15d   : > { %v12743_v46 = vcombine.high %v628_v41, %v632_v42  ;;  %v12742_v52 = vcombine.low %v628_v41, %v632_v42 }
 0x161   : > { %3634 = vmatpush1.bf16.xpose.msra.mxu0 %v12676_v47  ;;  %v508_v47 = vld [vmem:[%s15062_s17 + $0x148] sm:$0xff] }
 0x162   : > { %3635 = vmatprep.subr.bf16.mxu0 %v12685_v49  ;;  %v636_v49 = vld [vmem:[%s15062_s17 + $0x548] sm:$0xff] }
 0x163   : > { %3798 = vmatpush1.bf16.xpose.msra.mxu1 %v12804_v48  ;;  %v512_v48 = vld [vmem:[%s15062_s17 + $0x168] sm:$0xff] }
 0x164   : > { %3799 = vmatprep.subr.bf16.mxu1 %v12813_v50  ;;  %v640_v50 = vld [vmem:[%s15062_s17 + $0x568] sm:$0xff]  ;;  %v12623_v53 = vcombine.high %v508_v47, %v512_v48  ;;  %v12622_v59 = vcombine.low %v508_v47, %v512_v48 }
 0x165   : > { %v12751_v54 = vcombine.high %v636_v49, %v640_v50  ;;  %v12750_v60 = vcombine.low %v636_v49, %v640_v50 }
 0x169   : > { %3636 = vmatpush1.bf16.xpose.msra.mxu0 %v12684_v55  ;;  %v516_v55 = vld [vmem:[%s15062_s17 + $0x188] sm:$0xff] }
 0x16a   : > { %3637 = vmatprep.subr.bf16.mxu0 %v12693_v57  ;;  %v644_v57 = vld [vmem:[%s15062_s17 + $0x588] sm:$0xff] }
 0x16b   : > { %3800 = vmatpush1.bf16.xpose.msra.mxu1 %v12812_v56  ;;  %v520_v56 = vld [vmem:[%s15062_s17 + $0x1a8] sm:$0xff] }
 0x16c   : > { %3801 = vmatprep.subr.bf16.mxu1 %v12821_v58  ;;  %v648_v58 = vld [vmem:[%s15062_s17 + $0x5a8] sm:$0xff]  ;;  %v12631_v61 = vcombine.high %v516_v55, %v520_v56  ;;  %v12630_v3 = vcombine.low %v516_v55, %v520_v56 }
 0x16d   : > { %v12759_v62 = vcombine.high %v644_v57, %v648_v58  ;;  %v12758_v4 = vcombine.low %v644_v57, %v648_v58 }
 0x171   : > { %3638 = vmatpush1.bf16.xpose.msra.mxu0 %v12692_v63  ;;  %v524_v63 = vld [vmem:[%s15062_s17 + $0x1c8] sm:$0xff] }
 0x172   : > { %3639 = vmatprep.subr.bf16.mxu0 %v12701_v1  ;;  %v652_v1 = vld [vmem:[%s15062_s17 + $0x5c8] sm:$0xff] }
 0x173   : > { %3802 = vmatpush1.bf16.xpose.msra.mxu1 %v12820_v0  ;;  %v528_v0 = vld [vmem:[%s15062_s17 + $0x1e8] sm:$0xff] }
 0x174   : > { %3803 = vmatprep.subr.bf16.mxu1 %v12829_v2  ;;  %v656_v2 = vld [vmem:[%s15062_s17 + $0x5e8] sm:$0xff]  ;;  %v12639_v5 = vcombine.high %v524_v63, %v528_v0  ;;  %v12638_v11 = vcombine.low %v524_v63, %v528_v0 }
 0x175   : > { %v12767_v6 = vcombine.high %v652_v1, %v656_v2  ;;  %v12766_v12 = vcombine.low %v652_v1, %v656_v2 }
 0x179   : > { %3640 = vmatpush1.bf16.xpose.msra.mxu0 %v12700_v7  ;;  %v532_v7 = vld [vmem:[%s15062_s17 + $0x208] sm:$0xff] }
 0x17a   : > { %3650 = vmatprep.subr.bf16.mxu0 %v12583_v9  ;;  %v660_v9 = vld [vmem:[%s15062_s17 + $0x608] sm:$0xff] }
 0x17b   : > { %3804 = vmatpush1.bf16.xpose.msra.mxu1 %v12828_v8  ;;  %v536_v8 = vld [vmem:[%s15062_s17 + $0x228] sm:$0xff] }
 0x17c   : > { %3814 = vmatprep.subr.bf16.mxu1 %v12711_v10  ;;  %v664_v10 = vld [vmem:[%s15062_s17 + $0x628] sm:$0xff]  ;;  %v12647_v14 = vcombine.high %v532_v7, %v536_v8  ;;  %v12646_v31 = vcombine.low %v532_v7, %v536_v8 }
 0x17d   : > { %v12775_v15 = vcombine.high %v660_v9, %v664_v10  ;;  %v12774_v22 = vcombine.low %v660_v9, %v664_v10 }
 0x180   : > { %3642 = vmatmul.mubr.bf16.vlgmr.msra.gmra.mrb[0].mxu0 %v15183_v13 }
 0x181   : > { %3651 = vmatpush1.bf16.xpose.msra.mxu0 %v12582_v17  ;;  %3682 = vmatprep.mubr.bf16.mxu0 %v15194_v21  ;;  %v540_v17 = vld [vmem:[%s15062_s17 + $0x248] sm:$0xff] }
 0x182   : > { %3806 = vmatmul.mubr.bf16.vlgmr.msra.gmra.mrb[0].mxu1 %v15183_v13  ;;  %3652 = vmatprep.subr.bf16.mxu0 %v12591_v19  ;;  %v668_v19 = vld [vmem:[%s15062_s17 + $0x648] sm:$0xff] }
 0x183   : > { %3815 = vmatpush1.bf16.xpose.msra.mxu1 %v12710_v18  ;;  %3846 = vmatprep.mubr.bf16.mxu1 %v15194_v21  ;;  %v544_v18 = vld [vmem:[%s15062_s17 + $0x268] sm:$0xff] }
 0x184   : > { %3816 = vmatprep.subr.bf16.mxu1 %v12719_v20  ;;  %v672_v20 = vld [vmem:[%s15062_s17 + $0x668] sm:$0xff]  ;;  %v12655_v23 = vcombine.high %v540_v17, %v544_v18  ;;  %v12654_v29 = vcombine.low %v540_v17, %v544_v18 }
 0x185   : > { %v12783_v24 = vcombine.high %v668_v19, %v672_v20  ;;  %v12782_v30 = vcombine.low %v668_v19, %v672_v20 }
 0x189   : > { %3653 = vmatpush1.bf16.xpose.msra.mxu0 %v12590_v25  ;;  %v548_v25 = vld [vmem:[%s15062_s17 + $0x288] sm:$0xff] }
 0x18a   : > { %3654 = vmatprep.subr.bf16.mxu0 %v12599_v27  ;;  %v676_v27 = vld [vmem:[%s15062_s17 + $0x688] sm:$0xff] }
 0x18b   : > { %3817 = vmatpush1.bf16.xpose.msra.mxu1 %v12718_v26  ;;  %v552_v26 = vld [vmem:[%s15062_s17 + $0x2a8] sm:$0xff] }
 0x18c   : > { %3818 = vmatprep.subr.bf16.mxu1 %v12727_v28  ;;  %v680_v28 = vld [vmem:[%s15062_s17 + $0x6a8] sm:$0xff]  ;;  %v12663_v32 = vcombine.high %v548_v25, %v552_v26  ;;  %v12662_v39 = vcombine.low %v548_v25, %v552_v26  ;;  %v609_v25 = vld [vmem:[%s15062_s17 + $0x470] sm:$0xff] }
 0x18d   : > { %v12791_v33 = vcombine.high %v676_v27, %v680_v28  ;;  %v12790_v40 = vcombine.low %v676_v27, %v680_v28  ;;  %v15271_v26 = vld [vmem:[%s17121_s20 + $0x10] sm:$0xff] }
 0x191   : > { %3655 = vmatpush1.bf16.xpose.msra.mxu0 %v12598_v35  ;;  %v556_v35 = vld [vmem:[%s15062_s17 + $0x2c8] sm:$0xff] }
 0x192   : > { %3656 = vmatprep.subr.bf16.mxu0 %v12607_v37  ;;  %v684_v37 = vld [vmem:[%s15062_s17 + $0x6c8] sm:$0xff] }
 0x193   : > { %3819 = vmatpush1.bf16.xpose.msra.mxu1 %v12726_v36  ;;  %v560_v36 = vld [vmem:[%s15062_s17 + $0x2e8] sm:$0xff] }
 0x194   : > { %3820 = vmatprep.subr.bf16.mxu1 %v12735_v38  ;;  %v688_v38 = vld [vmem:[%s15062_s17 + $0x6e8] sm:$0xff]  ;;  %v12671_v41 = vcombine.high %v556_v35, %v560_v36  ;;  %v12670_v47 = vcombine.low %v556_v35, %v560_v36  ;;  %v613_v35 = vld [vmem:[%s15062_s17 + $0x490] sm:$0xff] }
 0x195   : > { %v12799_v42 = vcombine.high %v684_v37, %v688_v38  ;;  %v12798_v48 = vcombine.low %v684_v37, %v688_v38  ;;  %v617_v36 = vld [vmem:[%s15062_s17 + $0x4b0] sm:$0xff] }
 0x199   : > { %3657 = vmatpush1.bf16.xpose.msra.mxu0 %v12606_v43  ;;  %v564_v43 = vld [vmem:[%s15062_s17 + $0x308] sm:$0xff] }
 0x19a   : > { %3658 = vmatprep.subr.bf16.mxu0 %v12615_v45  ;;  %v692_v45 = vld [vmem:[%s15062_s17 + $0x708] sm:$0xff] }
 0x19b   : > { %3821 = vmatpush1.bf16.xpose.msra.mxu1 %v12734_v44  ;;  %v568_v44 = vld [vmem:[%s15062_s17 + $0x328] sm:$0xff] }
 0x19c   : > { %3822 = vmatprep.subr.bf16.mxu1 %v12743_v46  ;;  %v696_v46 = vld [vmem:[%s15062_s17 + $0x728] sm:$0xff]  ;;  %v12679_v49 = vcombine.high %v564_v43, %v568_v44  ;;  %v12678_v55 = vcombine.low %v564_v43, %v568_v44  ;;  %v621_v43 = vld [vmem:[%s15062_s17 + $0x4d0] sm:$0xff] }
 0x19d   : > { %v12807_v50 = vcombine.high %v692_v45, %v696_v46  ;;  %v12806_v56 = vcombine.low %v692_v45, %v696_v46  ;;  %v625_v44 = vld [vmem:[%s15062_s17 + $0x4f0] sm:$0xff]  ;;  %v12728_v46 = vcombine.low %v613_v35, %v617_v36 }
 0x1a1   : > { %3659 = vmatpush1.bf16.xpose.msra.mxu0 %v12614_v51  ;;  %v572_v51 = vld [vmem:[%s15062_s17 + $0x348] sm:$0xff] }
 0x1a2   : > { %3660 = vmatprep.subr.bf16.mxu0 %v12623_v53  ;;  %v700_v53 = vld [vmem:[%s15062_s17 + $0x748] sm:$0xff] }
 0x1a3   : > { %3823 = vmatpush1.bf16.xpose.msra.mxu1 %v12742_v52  ;;  %v576_v52 = vld [vmem:[%s15062_s17 + $0x368] sm:$0xff] }
 0x1a4   : > { %3824 = vmatprep.subr.bf16.mxu1 %v12751_v54  ;;  %v704_v54 = vld [vmem:[%s15062_s17 + $0x768] sm:$0xff]  ;;  %v12687_v57 = vcombine.high %v572_v51, %v576_v52  ;;  %v12686_v63 = vcombine.low %v572_v51, %v576_v52  ;;  %v629_v51 = vld [vmem:[%s15062_s17 + $0x510] sm:$0xff] }
 0x1a5   : > { %v12815_v58 = vcombine.high %v700_v53, %v704_v54  ;;  %v12814_v0 = vcombine.low %v700_v53, %v704_v54  ;;  %v633_v52 = vld [vmem:[%s15062_s17 + $0x530] sm:$0xff]  ;;  %v12736_v54 = vcombine.low %v621_v43, %v625_v44 }
 0x1a9   : > { %3661 = vmatpush1.bf16.xpose.msra.mxu0 %v12622_v59  ;;  %v580_v59 = vld [vmem:[%s15062_s17 + $0x388] sm:$0xff] }
 0x1aa   : > { %3662 = vmatprep.subr.bf16.mxu0 %v12631_v61  ;;  %v708_v61 = vld [vmem:[%s15062_s17 + $0x788] sm:$0xff] }
 0x1ab   : > { %3825 = vmatpush1.bf16.xpose.msra.mxu1 %v12750_v60  ;;  %v584_v60 = vld [vmem:[%s15062_s17 + $0x3a8] sm:$0xff] }
 0x1ac   : > { %3826 = vmatprep.subr.bf16.mxu1 %v12759_v62  ;;  %v712_v62 = vld [vmem:[%s15062_s17 + $0x7a8] sm:$0xff]  ;;  %v12695_v1 = vcombine.high %v580_v59, %v584_v60  ;;  %v12694_v7 = vcombine.low %v580_v59, %v584_v60  ;;  %v637_v59 = vld [vmem:[%s15062_s17 + $0x550] sm:$0xff] }
 0x1ad   : > { %v12823_v2 = vcombine.high %v708_v61, %v712_v62  ;;  %v12822_v8 = vcombine.low %v708_v61, %v712_v62  ;;  %v641_v60 = vld [vmem:[%s15062_s17 + $0x570] sm:$0xff]  ;;  %v12744_v62 = vcombine.low %v629_v51, %v633_v52 }
 0x1b1   : > { %3663 = vmatpush1.bf16.xpose.msra.mxu0 %v12630_v3  ;;  %v588_v3 = vld [vmem:[%s15062_s17 + $0x3c8] sm:$0xff] }
 0x1b2   : > { %3664 = vmatprep.subr.bf16.mxu0 %v12639_v5  ;;  %v716_v5 = vld [vmem:[%s15062_s17 + $0x7c8] sm:$0xff] }
 0x1b3   : > { %3827 = vmatpush1.bf16.xpose.msra.mxu1 %v12758_v4  ;;  %v592_v4 = vld [vmem:[%s15062_s17 + $0x3e8] sm:$0xff] }
 0x1b4   : > { %3828 = vmatprep.subr.bf16.mxu1 %v12767_v6  ;;  %v720_v6 = vld [vmem:[%s15062_s17 + $0x7e8] sm:$0xff]  ;;  %v12703_v9 = vcombine.high %v588_v3, %v592_v4  ;;  %v12702_v17 = vcombine.low %v588_v3, %v592_v4  ;;  %v645_v3 = vld [vmem:[%s15062_s17 + $0x590] sm:$0xff] }
 0x1b5   : > { %v12831_v10 = vcombine.high %v716_v5, %v720_v6  ;;  %v12830_v18 = vcombine.low %v716_v5, %v720_v6  ;;  %v649_v4 = vld [vmem:[%s15062_s17 + $0x5b0] sm:$0xff]  ;;  %v12752_v6 = vcombine.low %v637_v59, %v641_v60 }
 0x1b9   : > { %3665 = vmatpush1.bf16.xpose.msra.mxu0 %v12638_v11  ;;  %v469_v11 = vld [vmem:[%s15062_s17 + $0x10] sm:$0xff] }
 0x1ba   : > { %3666 = vmatprep.subr.bf16.mxu0 %v12647_v14  ;;  %v597_v14 = vld [vmem:[%s15062_s17 + $0x410] sm:$0xff] }
 0x1bb   : > { %3829 = vmatpush1.bf16.xpose.msra.mxu1 %v12766_v12  ;;  %v473_v12 = vld [vmem:[%s15062_s17 + $0x30] sm:$0xff] }
 0x1bc   : > { %3830 = vmatprep.subr.bf16.mxu1 %v12775_v15  ;;  %v601_v15 = vld [vmem:[%s15062_s17 + $0x430] sm:$0xff]  ;;  %v12585_v19 = vcombine.high %v469_v11, %v473_v12  ;;  %v12584_v27 = vcombine.low %v469_v11, %v473_v12 }
 0x1bd   : > { %v12713_v20 = vcombine.high %v597_v14, %v601_v15  ;;  %v12712_v28 = vcombine.low %v597_v14, %v601_v15  ;;  %v653_v11 = vld [vmem:[%s15062_s17 + $0x5d0] sm:$0xff]  ;;  %v12760_v15 = vcombine.low %v645_v3, %v649_v4 }
 0x1be   : > { %v657_v12 = vld [vmem:[%s15062_s17 + $0x5f0] sm:$0xff] }
 0x1c1   : > { %3667 = vmatpush1.bf16.xpose.msra.mxu0 %v12646_v31  ;;  %v477_v31 = vld [vmem:[%s15062_s17 + $0x50] sm:$0xff] }
 0x1c2   : > { %3668 = vmatprep.subr.bf16.mxu0 %v12655_v23  ;;  %v15264_v23 = vcombine.low %v15190_v16, %v15190_v16  ;;  %v485_v16 = vld [vmem:[%s15062_s17 + $0x90] sm:$0xff] }
 0x1c3   : > { %3831 = vmatpush1.bf16.xpose.msra.mxu1 %v12774_v22  ;;  %v481_v22 = vld [vmem:[%s15062_s17 + $0x70] sm:$0xff] }
 0x1c4   : > { %3832 = vmatprep.subr.bf16.mxu1 %v12783_v24  ;;  %v605_v24 = vld [vmem:[%s15062_s17 + $0x450] sm:$0xff]  ;;  %v12592_v37 = vcombine.low %v477_v31, %v481_v22 }
 0x1c5   : > { %v12720_v38 = vcombine.low %v605_v24, %v609_v25 }
 0x1c9   : > { %3669 = vmatpush1.bf16.xpose.msra.mxu0 %v12654_v29  ;;  %v12593_v29 = vcombine.high %v477_v31, %v481_v22  ;;  %v661_v31 = vld [vmem:[%s15062_s17 + $0x610] sm:$0xff] }
 0x1ca   : > { %3670 = vmatprep.subr.bf16.mxu0 %v12663_v32  ;;  %v15275_v32 = vcombine.high %v15271_v26, %v15271_v26  ;;  %v665_v22 = vld [vmem:[%s15062_s17 + $0x630] sm:$0xff] }
 0x1cb   : > { %3833 = vmatpush1.bf16.xpose.msra.mxu1 %v12782_v30  ;;  %v12721_v30 = vcombine.high %v605_v24, %v609_v25  ;;  %v12768_v25 = vcombine.low %v653_v11, %v657_v12 }
 0x1cc   : > { %3834 = vmatprep.subr.bf16.mxu1 %v12791_v33  ;;  %v489_v33 = vld [vmem:[%s15062_s17 + $0xb0] sm:$0xff] }
 0x1cd   : > { %v12600_v45 = vcombine.low %v485_v16, %v489_v33 }
 0x1d1   : > { %3671 = vmatpush1.bf16.xpose.msra.mxu0 %v12662_v39  ;;  %v12601_v39 = vcombine.high %v485_v16, %v489_v33  ;;  %v669_v16 = vld [vmem:[%s15062_s17 + $0x650] sm:$0xff] }
 0x1d2   : > { %3672 = vmatprep.subr.bf16.mxu0 %v12671_v41  ;;  %v493_v41 = vld [vmem:[%s15062_s17 + $0xd0] sm:$0xff] }
 0x1d3   : > { %3835 = vmatpush1.bf16.xpose.msra.mxu1 %v12790_v40  ;;  %v12729_v40 = vcombine.high %v613_v35, %v617_v36  ;;  %v673_v33 = vld [vmem:[%s15062_s17 + $0x670] sm:$0xff]  ;;  %v12776_v36 = vcombine.low %v661_v31, %v665_v22 }
 0x1d4   : > { %3836 = vmatprep.subr.bf16.mxu1 %v12799_v42  ;;  %v497_v42 = vld [vmem:[%s15062_s17 + $0xf0] sm:$0xff] }
 0x1d5   : > { %v12608_v53 = vcombine.low %v493_v41, %v497_v42 }
 0x1d9   : > { %3673 = vmatpush1.bf16.xpose.msra.mxu0 %v12670_v47  ;;  %v12609_v47 = vcombine.high %v493_v41, %v497_v42  ;;  %v677_v41 = vld [vmem:[%s15062_s17 + $0x690] sm:$0xff] }
 0x1da   : > { %3674 = vmatprep.subr.bf16.mxu0 %v12679_v49  ;;  %v501_v49 = vld [vmem:[%s15062_s17 + $0x110] sm:$0xff] }
 0x1db   : > { %3837 = vmatpush1.bf16.xpose.msra.mxu1 %v12798_v48  ;;  %v12737_v48 = vcombine.high %v621_v43, %v625_v44  ;;  %v681_v42 = vld [vmem:[%s15062_s17 + $0x6b0] sm:$0xff]  ;;  %v12784_v44 = vcombine.low %v669_v16, %v673_v33 }
 0x1dc   : > { %3838 = vmatprep.subr.bf16.mxu1 %v12807_v50  ;;  %v505_v50 = vld [vmem:[%s15062_s17 + $0x130] sm:$0xff] }
 0x1dd   : > { %v12616_v61 = vcombine.low %v501_v49, %v505_v50 }
 0x1e1   : > { %3675 = vmatpush1.bf16.xpose.msra.mxu0 %v12678_v55  ;;  %v12617_v55 = vcombine.high %v501_v49, %v505_v50  ;;  %v685_v49 = vld [vmem:[%s15062_s17 + $0x6d0] sm:$0xff] }
 0x1e2   : > { %3676 = vmatprep.subr.bf16.mxu0 %v12687_v57  ;;  %v509_v57 = vld [vmem:[%s15062_s17 + $0x150] sm:$0xff] }
 0x1e3   : > { %3839 = vmatpush1.bf16.xpose.msra.mxu1 %v12806_v56  ;;  %v12745_v56 = vcombine.high %v629_v51, %v633_v52  ;;  %v689_v50 = vld [vmem:[%s15062_s17 + $0x6f0] sm:$0xff]  ;;  %v12792_v52 = vcombine.low %v677_v41, %v681_v42 }
 0x1e4   : > { %3840 = vmatprep.subr.bf16.mxu1 %v12815_v58  ;;  %v513_v58 = vld [vmem:[%s15062_s17 + $0x170] sm:$0xff] }
 0x1e5   : > { %v12624_v5 = vcombine.low %v509_v57, %v513_v58 }
 0x1e9   : > { %3677 = vmatpush1.bf16.xpose.msra.mxu0 %v12686_v63  ;;  %v12625_v63 = vcombine.high %v509_v57, %v513_v58  ;;  %v693_v57 = vld [vmem:[%s15062_s17 + $0x710] sm:$0xff] }
 0x1ea   : > { %3678 = vmatprep.subr.bf16.mxu0 %v12695_v1  ;;  %v517_v1 = vld [vmem:[%s15062_s17 + $0x190] sm:$0xff] }
 0x1eb   : > { %3841 = vmatpush1.bf16.xpose.msra.mxu1 %v12814_v0  ;;  %v12753_v0 = vcombine.high %v637_v59, %v641_v60  ;;  %v697_v58 = vld [vmem:[%s15062_s17 + $0x730] sm:$0xff]  ;;  %v12800_v60 = vcombine.low %v685_v49, %v689_v50 }
 0x1ec   : > { %3842 = vmatprep.subr.bf16.mxu1 %v12823_v2  ;;  %v521_v2 = vld [vmem:[%s15062_s17 + $0x1b0] sm:$0xff] }
 0x1ed   : > { %v12632_v14 = vcombine.low %v517_v1, %v521_v2 }
 0x1f1   : > { %3679 = vmatpush1.bf16.xpose.msra.mxu0 %v12694_v7  ;;  %v12633_v7 = vcombine.high %v517_v1, %v521_v2  ;;  %v701_v1 = vld [vmem:[%s15062_s17 + $0x750] sm:$0xff] }
 0x1f2   : > { %3680 = vmatprep.subr.bf16.mxu0 %v12703_v9  ;;  %v525_v9 = vld [vmem:[%s15062_s17 + $0x1d0] sm:$0xff] }
 0x1f3   : > { %3843 = vmatpush1.bf16.xpose.msra.mxu1 %v12822_v8  ;;  %v12761_v8 = vcombine.high %v645_v3, %v649_v4  ;;  %v705_v2 = vld [vmem:[%s15062_s17 + $0x770] sm:$0xff]  ;;  %v12808_v4 = vcombine.low %v693_v57, %v697_v58 }
 0x1f4   : > { %3844 = vmatprep.subr.bf16.mxu1 %v12831_v10  ;;  %v529_v10 = vld [vmem:[%s15062_s17 + $0x1f0] sm:$0xff] }
 0x1f5   : > { %v12640_v24 = vcombine.low %v525_v9, %v529_v10 }
 0x1f9   : > { %3681 = vmatpush1.bf16.xpose.msra.mxu0 %v12702_v17  ;;  %v12641_v17 = vcombine.high %v525_v9, %v529_v10  ;;  %v709_v9 = vld [vmem:[%s15062_s17 + $0x790] sm:$0xff] }
 0x1fa   : > { %3691 = vmatprep.subr.bf16.mxu0 %v12585_v19  ;;  %v533_v19 = vld [vmem:[%s15062_s17 + $0x210] sm:$0xff] }
 0x1fb   : > { %3845 = vmatpush1.bf16.xpose.msra.mxu1 %v12830_v18  ;;  %v12769_v18 = vcombine.high %v653_v11, %v657_v12  ;;  %v713_v10 = vld [vmem:[%s15062_s17 + $0x7b0] sm:$0xff]  ;;  %v12816_v12 = vcombine.low %v701_v1, %v705_v2 }
 0x1fc   : > { %3855 = vmatprep.subr.bf16.mxu1 %v12713_v20  ;;  %v537_v20 = vld [vmem:[%s15062_s17 + $0x230] sm:$0xff] }
 0x1fd   : > { %v12648_v35 = vcombine.low %v533_v19, %v537_v20 }
 0x200   : > { %3683 = vmatmul.mubr.bf16.vlgmr.msra.gmra.mrb[0].mxu0 %v15264_v23 }
 0x201   : > { %3692 = vmatpush1.bf16.xpose.msra.mxu0 %v12584_v27  ;;  %3723 = vmatprep.mubr.bf16.mxu0 %v15275_v32  ;;  %v12649_v27 = vcombine.high %v533_v19, %v537_v20  ;;  %v717_v19 = vld [vmem:[%s15062_s17 + $0x7d0] sm:$0xff] }
 0x202   : > { %3847 = vmatmul.mubr.bf16.vlgmr.msra.gmra.mrb[0].mxu1 %v15264_v23  ;;  %3693 = vmatprep.subr.bf16.mxu0 %v12593_v29  ;;  %v541_v29 = vld [vmem:[%s15062_s17 + $0x250] sm:$0xff] }
 0x203   : > { %3856 = vmatpush1.bf16.xpose.msra.mxu1 %v12712_v28  ;;  %3887 = vmatprep.mubr.bf16.mxu1 %v15275_v32  ;;  %v12777_v28 = vcombine.high %v661_v31, %v665_v22  ;;  %v721_v20 = vld [vmem:[%s15062_s17 + $0x7f0] sm:$0xff]  ;;  %v12824_v22 = vcombine.low %v709_v9, %v713_v10 }
 0x204   : > { %3857 = vmatprep.subr.bf16.mxu1 %v12721_v30  ;;  %v545_v30 = vld [vmem:[%s15062_s17 + $0x270] sm:$0xff] }
 0x205   : > { %v12656_v43 = vcombine.low %v541_v29, %v545_v30 }
 0x209   : > { %3694 = vmatpush1.bf16.xpose.msra.mxu0 %v12592_v37  ;;  %v12657_v37 = vcombine.high %v541_v29, %v545_v30  ;;  %v598_v29 = vld [vmem:[%s15062_s17 + $0x418] sm:$0xff] }
 0x20a   : > { %3695 = vmatprep.subr.bf16.mxu0 %v12601_v39  ;;  %v549_v39 = vld [vmem:[%s15062_s17 + $0x290] sm:$0xff]  ;;  %v602_v30 = vld [vmem:[%s15062_s17 + $0x438] sm:$0xff] }
 0x20b   : > { %3858 = vmatpush1.bf16.xpose.msra.mxu1 %v12720_v38  ;;  %v12785_v38 = vcombine.high %v669_v16, %v673_v33  ;;  %v12832_v33 = vcombine.low %v717_v19, %v721_v20 }
 0x20c   : > { %3859 = vmatprep.subr.bf16.mxu1 %v12729_v40  ;;  %v553_v40 = vld [vmem:[%s15062_s17 + $0x2b0] sm:$0xff] }
 0x20d   : > { %v12664_v51 = vcombine.low %v549_v39, %v553_v40 }
 0x211   : > { %3696 = vmatpush1.bf16.xpose.msra.mxu0 %v12600_v45  ;;  %v12665_v45 = vcombine.high %v549_v39, %v553_v40  ;;  %v15345_v39 = vcombine.low %v15271_v26, %v15271_v26  ;;  %v606_v40 = vld [vmem:[%s15062_s17 + $0x458] sm:$0xff] }
 0x212   : > { %3697 = vmatprep.subr.bf16.mxu0 %v12609_v47  ;;  %v557_v47 = vld [vmem:[%s15062_s17 + $0x2d0] sm:$0xff]  ;;  %v486_v26 = vld [vmem:[%s15062_s17 + $0x98] sm:$0xff] }
 0x213   : > { %3860 = vmatpush1.bf16.xpose.msra.mxu1 %v12728_v46  ;;  %v12793_v46 = vcombine.high %v677_v41, %v681_v42  ;;  %v610_v41 = vld [vmem:[%s15062_s17 + $0x478] sm:$0xff] }
 0x214   : > { %3861 = vmatprep.subr.bf16.mxu1 %v12737_v48  ;;  %v561_v48 = vld [vmem:[%s15062_s17 + $0x2f0] sm:$0xff]  ;;  %v15352_v42 = vld [vmem:[%s17121_s20 + $0x18] sm:$0xff] }
 0x215   : > { %v12672_v59 = vcombine.low %v557_v47, %v561_v48 }
 0x219   : > { %3698 = vmatpush1.bf16.xpose.msra.mxu0 %v12608_v53  ;;  %v12673_v53 = vcombine.high %v557_v47, %v561_v48  ;;  %v15356_v47 = vcombine.high %v15352_v42, %v15352_v42  ;;  %v490_v48 = vld [vmem:[%s15062_s17 + $0xb8] sm:$0xff] }
 0x21a   : > { %3699 = vmatprep.subr.bf16.mxu0 %v12617_v55  ;;  %v565_v55 = vld [vmem:[%s15062_s17 + $0x310] sm:$0xff] }
 0x21b   : > { %3862 = vmatpush1.bf16.xpose.msra.mxu1 %v12736_v54  ;;  %v12801_v54 = vcombine.high %v685_v49, %v689_v50  ;;  %v614_v49 = vld [vmem:[%s15062_s17 + $0x498] sm:$0xff] }
 0x21c   : > { %3863 = vmatprep.subr.bf16.mxu1 %v12745_v56  ;;  %v569_v56 = vld [vmem:[%s15062_s17 + $0x330] sm:$0xff]  ;;  %v618_v50 = vld [vmem:[%s15062_s17 + $0x4b8] sm:$0xff] }
 0x21d   : > { %v12680_v3 = vcombine.low %v565_v55, %v569_v56 }
 0x221   : > { %3700 = vmatpush1.bf16.xpose.msra.mxu0 %v12616_v61  ;;  %v12681_v61 = vcombine.high %v565_v55, %v569_v56  ;;  %v494_v55 = vld [vmem:[%s15062_s17 + $0xd8] sm:$0xff] }
 0x222   : > { %3701 = vmatprep.subr.bf16.mxu0 %v12625_v63  ;;  %v573_v63 = vld [vmem:[%s15062_s17 + $0x350] sm:$0xff]  ;;  %v498_v56 = vld [vmem:[%s15062_s17 + $0xf8] sm:$0xff] }
 0x223   : > { %3864 = vmatpush1.bf16.xpose.msra.mxu1 %v12744_v62  ;;  %v12809_v62 = vcombine.high %v693_v57, %v697_v58  ;;  %v622_v57 = vld [vmem:[%s15062_s17 + $0x4d8] sm:$0xff] }
 0x224   : > { %3865 = vmatprep.subr.bf16.mxu1 %v12753_v0  ;;  %v577_v0 = vld [vmem:[%s15062_s17 + $0x370] sm:$0xff]  ;;  %v626_v58 = vld [vmem:[%s15062_s17 + $0x4f8] sm:$0xff] }
 0x225   : > { %v12688_v11 = vcombine.low %v573_v63, %v577_v0 }
 0x229   : > { %3702 = vmatpush1.bf16.xpose.msra.mxu0 %v12624_v5  ;;  %v12689_v5 = vcombine.high %v573_v63, %v577_v0  ;;  %v502_v63 = vld [vmem:[%s15062_s17 + $0x118] sm:$0xff] }
 0x22a   : > { %3703 = vmatprep.subr.bf16.mxu0 %v12633_v7  ;;  %v581_v7 = vld [vmem:[%s15062_s17 + $0x390] sm:$0xff]  ;;  %v506_v0 = vld [vmem:[%s15062_s17 + $0x138] sm:$0xff] }
 0x22b   : > { %3866 = vmatpush1.bf16.xpose.msra.mxu1 %v12752_v6  ;;  %v12817_v6 = vcombine.high %v701_v1, %v705_v2  ;;  %v630_v1 = vld [vmem:[%s15062_s17 + $0x518] sm:$0xff] }
 0x22c   : > { %3867 = vmatprep.subr.bf16.mxu1 %v12761_v8  ;;  %v585_v8 = vld [vmem:[%s15062_s17 + $0x3b0] sm:$0xff]  ;;  %v634_v2 = vld [vmem:[%s15062_s17 + $0x538] sm:$0xff] }
 0x22d   : > { %v12696_v31 = vcombine.low %v581_v7, %v585_v8 }
 0x231   : > { %3704 = vmatpush1.bf16.xpose.msra.mxu0 %v12632_v14  ;;  %v12697_v14 = vcombine.high %v581_v7, %v585_v8  ;;  %v510_v7 = vld [vmem:[%s15062_s17 + $0x158] sm:$0xff] }
 0x232   : > { %3705 = vmatprep.subr.bf16.mxu0 %v12641_v17  ;;  %v589_v17 = vld [vmem:[%s15062_s17 + $0x3d0] sm:$0xff]  ;;  %v514_v8 = vld [vmem:[%s15062_s17 + $0x178] sm:$0xff] }
 0x233   : > { %3868 = vmatpush1.bf16.xpose.msra.mxu1 %v12760_v15  ;;  %v12825_v15 = vcombine.high %v709_v9, %v713_v10  ;;  %v638_v9 = vld [vmem:[%s15062_s17 + $0x558] sm:$0xff] }
 0x234   : > { %3869 = vmatprep.subr.bf16.mxu1 %v12769_v18  ;;  %v593_v18 = vld [vmem:[%s15062_s17 + $0x3f0] sm:$0xff]  ;;  %v642_v10 = vld [vmem:[%s15062_s17 + $0x578] sm:$0xff] }
 0x235   : > { %v12704_v16 = vcombine.low %v589_v17, %v593_v18 }
 0x239   : > { %3706 = vmatpush1.bf16.xpose.msra.mxu0 %v12640_v24  ;;  %v12705_v24 = vcombine.high %v589_v17, %v593_v18  ;;  %v518_v17 = vld [vmem:[%s15062_s17 + $0x198] sm:$0xff] }
 0x23a   : > { %3707 = vmatprep.subr.bf16.mxu0 %v12649_v27  ;;  %v470_v27 = vld [vmem:[%s15062_s17 + $0x18] sm:$0xff] }
 0x23b   : > { %3870 = vmatpush1.bf16.xpose.msra.mxu1 %v12768_v25  ;;  %v12833_v25 = vcombine.high %v717_v19, %v721_v20  ;;  %v522_v18 = vld [vmem:[%s15062_s17 + $0x1b8] sm:$0xff] }
 0x23c   : > { %3871 = vmatprep.subr.bf16.mxu1 %v12777_v28  ;;  %v474_v28 = vld [vmem:[%s15062_s17 + $0x38] sm:$0xff] }
 0x23d   : > { %v646_v19 = vld [vmem:[%s15062_s17 + $0x598] sm:$0xff] }
 0x23e   : > { %v650_v20 = vld [vmem:[%s15062_s17 + $0x5b8] sm:$0xff] }
 0x241   : > { %3708 = vmatpush1.bf16.xpose.msra.mxu0 %v12648_v35  ;;  %v12587_v35 = vcombine.high %v470_v27, %v474_v28 }
 0x242   : > { %3709 = vmatprep.subr.bf16.mxu0 %v12657_v37  ;;  %v478_v37 = vld [vmem:[%s15062_s17 + $0x58] sm:$0xff] }
 0x243   : > { %3872 = vmatpush1.bf16.xpose.msra.mxu1 %v12776_v36  ;;  %v12715_v36 = vcombine.high %v598_v29, %v602_v30 }
 0x244   : > { %3873 = vmatprep.subr.bf16.mxu1 %v12785_v38  ;;  %v482_v38 = vld [vmem:[%s15062_s17 + $0x78] sm:$0xff] }
 0x249   : > { %3710 = vmatpush1.bf16.xpose.msra.mxu0 %v12656_v43  ;;  %v12586_v43 = vcombine.low %v470_v27, %v474_v28  ;;  %v526_v27 = vld [vmem:[%s15062_s17 + $0x1d8] sm:$0xff] }
 0x24a   : > { %3711 = vmatprep.subr.bf16.mxu0 %v12665_v45  ;;  %v12595_v45 = vcombine.high %v478_v37, %v482_v38  ;;  %v530_v28 = vld [vmem:[%s15062_s17 + $0x1f8] sm:$0xff] }
 0x24b   : > { %3874 = vmatpush1.bf16.xpose.msra.mxu1 %v12784_v44  ;;  %v12714_v44 = vcombine.low %v598_v29, %v602_v30  ;;  %v654_v29 = vld [vmem:[%s15062_s17 + $0x5d8] sm:$0xff] }
 0x24c   : > { %3875 = vmatprep.subr.bf16.mxu1 %v12793_v46  ;;  %v12723_v46 = vcombine.high %v606_v40, %v610_v41  ;;  %v658_v30 = vld [vmem:[%s15062_s17 + $0x5f8] sm:$0xff] }
 0x251   : > { %3712 = vmatpush1.bf16.xpose.msra.mxu0 %v12664_v51  ;;  %v12594_v51 = vcombine.low %v478_v37, %v482_v38  ;;  %v534_v37 = vld [vmem:[%s15062_s17 + $0x218] sm:$0xff] }
 0x252   : > { %3713 = vmatprep.subr.bf16.mxu0 %v12673_v53  ;;  %v12603_v53 = vcombine.high %v486_v26, %v490_v48  ;;  %v538_v38 = vld [vmem:[%s15062_s17 + $0x238] sm:$0xff] }
 0x253   : > { %3876 = vmatpush1.bf16.xpose.msra.mxu1 %v12792_v52  ;;  %v12722_v52 = vcombine.low %v606_v40, %v610_v41  ;;  %v662_v40 = vld [vmem:[%s15062_s17 + $0x618] sm:$0xff] }
 0x254   : > { %3877 = vmatprep.subr.bf16.mxu1 %v12801_v54  ;;  %v12731_v54 = vcombine.high %v614_v49, %v618_v50  ;;  %v666_v41 = vld [vmem:[%s15062_s17 + $0x638] sm:$0xff] }
 0x259   : > { %3714 = vmatpush1.bf16.xpose.msra.mxu0 %v12672_v59  ;;  %v12602_v59 = vcombine.low %v486_v26, %v490_v48  ;;  %v542_v26 = vld [vmem:[%s15062_s17 + $0x258] sm:$0xff] }
 0x25a   : > { %3715 = vmatprep.subr.bf16.mxu0 %v12681_v61  ;;  %v12611_v61 = vcombine.high %v494_v55, %v498_v56  ;;  %v546_v48 = vld [vmem:[%s15062_s17 + $0x278] sm:$0xff] }
 0x25b   : > { %3878 = vmatpush1.bf16.xpose.msra.mxu1 %v12800_v60  ;;  %v12730_v60 = vcombine.low %v614_v49, %v618_v50  ;;  %v670_v49 = vld [vmem:[%s15062_s17 + $0x658] sm:$0xff] }
 0x25c   : > { %3879 = vmatprep.subr.bf16.mxu1 %v12809_v62  ;;  %v12739_v62 = vcombine.high %v622_v57, %v626_v58  ;;  %v674_v50 = vld [vmem:[%s15062_s17 + $0x678] sm:$0xff] }
 0x261   : > { %3716 = vmatpush1.bf16.xpose.msra.mxu0 %v12680_v3  ;;  %v12610_v3 = vcombine.low %v494_v55, %v498_v56  ;;  %v550_v55 = vld [vmem:[%s15062_s17 + $0x298] sm:$0xff] }
 0x262   : > { %3717 = vmatprep.subr.bf16.mxu0 %v12689_v5  ;;  %v12619_v5 = vcombine.high %v502_v63, %v506_v0  ;;  %v554_v56 = vld [vmem:[%s15062_s17 + $0x2b8] sm:$0xff] }
 0x263   : > { %3880 = vmatpush1.bf16.xpose.msra.mxu1 %v12808_v4  ;;  %v12738_v4 = vcombine.low %v622_v57, %v626_v58  ;;  %v678_v57 = vld [vmem:[%s15062_s17 + $0x698] sm:$0xff] }
 0x264   : > { %3881 = vmatprep.subr.bf16.mxu1 %v12817_v6  ;;  %v12747_v6 = vcombine.high %v630_v1, %v634_v2  ;;  %v682_v58 = vld [vmem:[%s15062_s17 + $0x6b8] sm:$0xff] }
 0x269   : > { %3718 = vmatpush1.bf16.xpose.msra.mxu0 %v12688_v11  ;;  %v12618_v11 = vcombine.low %v502_v63, %v506_v0  ;;  %v558_v63 = vld [vmem:[%s15062_s17 + $0x2d8] sm:$0xff] }
 0x26a   : > { %3719 = vmatprep.subr.bf16.mxu0 %v12697_v14  ;;  %v12627_v14 = vcombine.high %v510_v7, %v514_v8  ;;  %v562_v0 = vld [vmem:[%s15062_s17 + $0x2f8] sm:$0xff] }
 0x26b   : > { %3882 = vmatpush1.bf16.xpose.msra.mxu1 %v12816_v12  ;;  %v12746_v12 = vcombine.low %v630_v1, %v634_v2  ;;  %v686_v1 = vld [vmem:[%s15062_s17 + $0x6d8] sm:$0xff] }
 0x26c   : > { %3883 = vmatprep.subr.bf16.mxu1 %v12825_v15  ;;  %v12755_v15 = vcombine.high %v638_v9, %v642_v10  ;;  %v690_v2 = vld [vmem:[%s15062_s17 + $0x6f8] sm:$0xff] }
 0x271   : > { %3720 = vmatpush1.bf16.xpose.msra.mxu0 %v12696_v31  ;;  %v12626_v31 = vcombine.low %v510_v7, %v514_v8  ;;  %v566_v7 = vld [vmem:[%s15062_s17 + $0x318] sm:$0xff] }
 0x272   : > { %3721 = vmatprep.subr.bf16.mxu0 %v12705_v24  ;;  %v12635_v24 = vcombine.high %v518_v17, %v522_v18  ;;  %v570_v8 = vld [vmem:[%s15062_s17 + $0x338] sm:$0xff] }
 0x273   : > { %3884 = vmatpush1.bf16.xpose.msra.mxu1 %v12824_v22  ;;  %v12754_v22 = vcombine.low %v638_v9, %v642_v10  ;;  %v694_v9 = vld [vmem:[%s15062_s17 + $0x718] sm:$0xff] }
 0x274   : > { %3885 = vmatprep.subr.bf16.mxu1 %v12833_v25  ;;  %v12763_v25 = vcombine.high %v646_v19, %v650_v20  ;;  %v698_v10 = vld [vmem:[%s15062_s17 + $0x738] sm:$0xff] }
 0x279   : > { %3722 = vmatpush1.bf16.xpose.msra.mxu0 %v12704_v16  ;;  %v12634_v16 = vcombine.low %v518_v17, %v522_v18  ;;  %v574_v17 = vld [vmem:[%s15062_s17 + $0x358] sm:$0xff] }
 0x27a   : > { %3732 = vmatprep.subr.bf16.mxu0 %v12587_v35  ;;  %v12643_v35 = vcombine.high %v526_v27, %v530_v28  ;;  %v578_v18 = vld [vmem:[%s15062_s17 + $0x378] sm:$0xff] }
 0x27b   : > { %3886 = vmatpush1.bf16.xpose.msra.mxu1 %v12832_v33  ;;  %v12762_v33 = vcombine.low %v646_v19, %v650_v20  ;;  %v702_v19 = vld [vmem:[%s15062_s17 + $0x758] sm:$0xff] }
 0x27c   : > { %3896 = vmatprep.subr.bf16.mxu1 %v12715_v36  ;;  %v12771_v36 = vcombine.high %v654_v29, %v658_v30  ;;  %v706_v20 = vld [vmem:[%s15062_s17 + $0x778] sm:$0xff] }
 0x280   : > { %3724 = vmatmul.mubr.bf16.vlgmr.msra.gmra.mrb[0].mxu0 %v15345_v39 }
 0x281   : > { %3733 = vmatpush1.bf16.xpose.msra.mxu0 %v12586_v43  ;;  %3764 = vmatprep.mubr.bf16.mxu0 %v15356_v47  ;;  %v12642_v43 = vcombine.low %v526_v27, %v530_v28  ;;  %v582_v27 = vld [vmem:[%s15062_s17 + $0x398] sm:$0xff] }
 0x282   : > { %3888 = vmatmul.mubr.bf16.vlgmr.msra.gmra.mrb[0].mxu1 %v15345_v39  ;;  %3734 = vmatprep.subr.bf16.mxu0 %v12595_v45  ;;  %v12651_v45 = vcombine.high %v534_v37, %v538_v38  ;;  %v586_v28 = vld [vmem:[%s15062_s17 + $0x3b8] sm:$0xff] }
 0x283   : > { %3897 = vmatpush1.bf16.xpose.msra.mxu1 %v12714_v44  ;;  %3928 = vmatprep.mubr.bf16.mxu1 %v15356_v47  ;;  %v12770_v44 = vcombine.low %v654_v29, %v658_v30  ;;  %v710_v29 = vld [vmem:[%s15062_s17 + $0x798] sm:$0xff] }
 0x284   : > { %3898 = vmatprep.subr.bf16.mxu1 %v12723_v46  ;;  %v12779_v46 = vcombine.high %v662_v40, %v666_v41  ;;  %v714_v30 = vld [vmem:[%s15062_s17 + $0x7b8] sm:$0xff] }
 0x289   : > { %3735 = vmatpush1.bf16.xpose.msra.mxu0 %v12594_v51  ;;  %v12650_v51 = vcombine.low %v534_v37, %v538_v38  ;;  %v590_v37 = vld [vmem:[%s15062_s17 + $0x3d8] sm:$0xff] }
 0x28a   : > { %3736 = vmatprep.subr.bf16.mxu0 %v12603_v53  ;;  %v12659_v53 = vcombine.high %v542_v26, %v546_v48  ;;  %v594_v38 = vld [vmem:[%s15062_s17 + $0x3f8] sm:$0xff] }
 0x28b   : > { %3899 = vmatpush1.bf16.xpose.msra.mxu1 %v12722_v52  ;;  %v12778_v52 = vcombine.low %v662_v40, %v666_v41  ;;  %v718_v40 = vld [vmem:[%s15062_s17 + $0x7d8] sm:$0xff] }
 0x28c   : > { %3900 = vmatprep.subr.bf16.mxu1 %v12731_v54  ;;  %v12787_v54 = vcombine.high %v670_v49, %v674_v50  ;;  %v722_v41 = vld [vmem:[%s15062_s17 + $0x7f8] sm:$0xff] }
 0x291   : > { %3737 = vmatpush1.bf16.xpose.msra.mxu0 %v12602_v59  ;;  %v12658_v59 = vcombine.low %v542_v26, %v546_v48  ;;  %v723_v26 = vld [vmem:[%s15062_s17 + $0x800] sm:$0xff] }
 0x292   : > { %3738 = vmatprep.subr.bf16.mxu0 %v12611_v61  ;;  %v12667_v61 = vcombine.high %v550_v55, %v554_v56  ;;  %v727_v48 = vld [vmem:[%s15062_s17 + $0x820] sm:$0xff] }
 0x293   : > { %3901 = vmatpush1.bf16.xpose.msra.mxu1 %v12730_v60  ;;  %v12786_v60 = vcombine.low %v670_v49, %v674_v50  ;;  %v851_v49 = vld [vmem:[%s15062_s17 + $0xc00] sm:$0xff] }
 0x294   : > { %3902 = vmatprep.subr.bf16.mxu1 %v12739_v62  ;;  %v12795_v62 = vcombine.high %v678_v57, %v682_v58  ;;  %v855_v50 = vld [vmem:[%s15062_s17 + $0xc20] sm:$0xff] }
 0x299   : > { %3739 = vmatpush1.bf16.xpose.msra.mxu0 %v12610_v3  ;;  %v12666_v3 = vcombine.low %v550_v55, %v554_v56  ;;  %v731_v55 = vld [vmem:[%s15062_s17 + $0x840] sm:$0xff] }
 0x29a   : > { %3740 = vmatprep.subr.bf16.mxu0 %v12619_v5  ;;  %v12675_v5 = vcombine.high %v558_v63, %v562_v0  ;;  %v735_v56 = vld [vmem:[%s15062_s17 + $0x860] sm:$0xff] }
 0x29b   : > { %3903 = vmatpush1.bf16.xpose.msra.mxu1 %v12738_v4  ;;  %v12794_v4 = vcombine.low %v678_v57, %v682_v58  ;;  %v15426_v57 = vcombine.low %v15352_v42, %v15352_v42  ;;  %v859_v58 = vld [vmem:[%s15062_s17 + $0xc40] sm:$0xff] }
 0x29c   : > { %3904 = vmatprep.subr.bf16.mxu1 %v12747_v6  ;;  %v12803_v6 = vcombine.high %v686_v1, %v690_v2  ;;  %v739_v42 = vld [vmem:[%s15062_s17 + $0x880] sm:$0xff] }
 0x2a1   : > { %3741 = vmatpush1.bf16.xpose.msra.mxu0 %v12618_v11  ;;  %v12674_v11 = vcombine.low %v558_v63, %v562_v0  ;;  %v743_v0 = vld [vmem:[%s15062_s17 + $0x8a0] sm:$0xff] }
 0x2a2   : > { %3742 = vmatprep.subr.bf16.mxu0 %v12627_v14  ;;  %v12683_v14 = vcombine.high %v566_v7, %v570_v8 }
 0x2a3   : > { %3905 = vmatpush1.bf16.xpose.msra.mxu1 %v12746_v12  ;;  %v12802_v12 = vcombine.low %v686_v1, %v690_v2  ;;  %v867_v1 = vld [vmem:[%s15062_s17 + $0xc80] sm:$0xff] }
 0x2a4   : > { %3906 = vmatprep.subr.bf16.mxu1 %v12755_v15  ;;  %v12811_v15 = vcombine.high %v694_v9, %v698_v10  ;;  %v871_v2 = vld [vmem:[%s15062_s17 + $0xca0] sm:$0xff] }
 0x2a9   : > { %3743 = vmatpush1.bf16.xpose.msra.mxu0 %v12626_v31  ;;  %v12682_v31 = vcombine.low %v566_v7, %v570_v8  ;;  %v747_v7 = vld [vmem:[%s15062_s17 + $0x8c0] sm:$0xff] }
 0x2aa   : > { %3744 = vmatprep.subr.bf16.mxu0 %v12635_v24  ;;  %v12691_v24 = vcombine.high %v574_v17, %v578_v18  ;;  %v751_v8 = vld [vmem:[%s15062_s17 + $0x8e0] sm:$0xff] }
 0x2ab   : > { %3907 = vmatpush1.bf16.xpose.msra.mxu1 %v12754_v22  ;;  %v12810_v22 = vcombine.low %v694_v9, %v698_v10  ;;  %v875_v9 = vld [vmem:[%s15062_s17 + $0xcc0] sm:$0xff] }
 0x2ac   : > { %3908 = vmatprep.subr.bf16.mxu1 %v12763_v25  ;;  %v12819_v25 = vcombine.high %v702_v19, %v706_v20  ;;  %v879_v10 = vld [vmem:[%s15062_s17 + $0xce0] sm:$0xff] }
 0x2b1   : > { %3745 = vmatpush1.bf16.xpose.msra.mxu0 %v12634_v16  ;;  %v12690_v16 = vcombine.low %v574_v17, %v578_v18  ;;  %v759_v17 = vld [vmem:[%s15062_s17 + $0x920] sm:$0xff] }
 0x2b2   : > { %3746 = vmatprep.subr.bf16.mxu0 %v12643_v35  ;;  %v12699_v35 = vcombine.high %v582_v27, %v586_v28  ;;  %v883_v18 = vld [vmem:[%s15062_s17 + $0xd00] sm:$0xff] }
 0x2b3   : > { %3909 = vmatpush1.bf16.xpose.msra.mxu1 %v12762_v33  ;;  %v12818_v33 = vcombine.low %v702_v19, %v706_v20  ;;  %v887_v19 = vld [vmem:[%s15062_s17 + $0xd20] sm:$0xff]  ;;  %v12860_v20 = vcombine.low %v747_v7, %v751_v8 }
 0x2b4   : > { %3910 = vmatprep.subr.bf16.mxu1 %v12771_v36  ;;  %v12827_v36 = vcombine.high %v710_v29, %v714_v30 }
 0x2b9   : > { %3747 = vmatpush1.bf16.xpose.msra.mxu0 %v12642_v43  ;;  %v12698_v43 = vcombine.low %v582_v27, %v586_v28  ;;  %v767_v27 = vld [vmem:[%s15062_s17 + $0x960] sm:$0xff] }
 0x2ba   : > { %3748 = vmatprep.subr.bf16.mxu0 %v12651_v45  ;;  %v12707_v45 = vcombine.high %v590_v37, %v594_v38  ;;  %v891_v28 = vld [vmem:[%s15062_s17 + $0xd40] sm:$0xff] }
 0x2bb   : > { %3911 = vmatpush1.bf16.xpose.msra.mxu1 %v12770_v44  ;;  %v12826_v44 = vcombine.low %v710_v29, %v714_v30  ;;  %v895_v29 = vld [vmem:[%s15062_s17 + $0xd60] sm:$0xff] }
 0x2bc   : > { %3912 = vmatprep.subr.bf16.mxu1 %v12779_v46  ;;  %v12835_v46 = vcombine.high %v718_v40, %v722_v41 }
 0x2c1   : > { %3749 = vmatpush1.bf16.xpose.msra.mxu0 %v12650_v51  ;;  %v12706_v51 = vcombine.low %v590_v37, %v594_v38  ;;  %v775_v37 = vld [vmem:[%s15062_s17 + $0x9a0] sm:$0xff] }
 0x2c2   : > { %3750 = vmatprep.subr.bf16.mxu0 %v12659_v53  ;;  %v12837_v53 = vcombine.high %v723_v26, %v727_v48  ;;  %v899_v38 = vld [vmem:[%s15062_s17 + $0xd80] sm:$0xff] }
 0x2c3   : > { %3913 = vmatpush1.bf16.xpose.msra.mxu1 %v12778_v52  ;;  %v12834_v52 = vcombine.low %v718_v40, %v722_v41  ;;  %v903_v40 = vld [vmem:[%s15062_s17 + $0xda0] sm:$0xff] }
 0x2c4   : > { %3914 = vmatprep.subr.bf16.mxu1 %v12787_v54  ;;  %v12965_v54 = vcombine.high %v851_v49, %v855_v50 }
 0x2c9   : > { %3751 = vmatpush1.bf16.xpose.msra.mxu0 %v12658_v59  ;;  %v863_v59 = vld [vmem:[%s15062_s17 + $0xc60] sm:$0xff] }
 0x2ca   : > { %3752 = vmatprep.subr.bf16.mxu0 %v12667_v61  ;;  %v12964_v61 = vcombine.low %v851_v49, %v855_v50  ;;  %v12973_v63 = vcombine.high %v859_v58, %v863_v59  ;;  %v911_v49 = vld [vmem:[%s15062_s17 + $0xde0] sm:$0xff] }
 0x2cb   : > { %3915 = vmatpush1.bf16.xpose.msra.mxu1 %v12786_v60  ;;  %v12836_v60 = vcombine.low %v723_v26, %v727_v48  ;;  %v783_v26 = vld [vmem:[%s15062_s17 + $0x9e0] sm:$0xff] }
 0x2cc   : > { %3916 = vmatprep.subr.bf16.mxu1 %v12795_v62  ;;  %v12845_v62 = vcombine.high %v731_v55, %v735_v56  ;;  %v907_v48 = vld [vmem:[%s15062_s17 + $0xdc0] sm:$0xff] }
 0x2d1   : > { %3753 = vmatpush1.bf16.xpose.msra.mxu0 %v12666_v3  ;;  %v12844_v3 = vcombine.low %v731_v55, %v735_v56  ;;  %v791_v55 = vld [vmem:[%s15062_s17 + $0xa20] sm:$0xff] }
 0x2d2   : > { %3754 = vmatprep.subr.bf16.mxu0 %v12675_v5  ;;  %v12853_v5 = vcombine.high %v739_v42, %v743_v0  ;;  %v915_v56 = vld [vmem:[%s15062_s17 + $0xe00] sm:$0xff] }
 0x2d3   : > { %3917 = vmatpush1.bf16.xpose.msra.mxu1 %v12794_v4  ;;  %v12972_v4 = vcombine.low %v859_v58, %v863_v59  ;;  %v919_v58 = vld [vmem:[%s15062_s17 + $0xe20] sm:$0xff] }
 0x2d4   : > { %3918 = vmatprep.subr.bf16.mxu1 %v12803_v6  ;;  %v12981_v6 = vcombine.high %v867_v1, %v871_v2 }
 0x2d9   : > { %3755 = vmatpush1.bf16.xpose.msra.mxu0 %v12674_v11  ;;  %v12852_v11 = vcombine.low %v739_v42, %v743_v0  ;;  %v799_v42 = vld [vmem:[%s15062_s17 + $0xa60] sm:$0xff] }
 0x2da   : > { %3756 = vmatprep.subr.bf16.mxu0 %v12683_v14  ;;  %v12861_v14 = vcombine.high %v747_v7, %v751_v8  ;;  %v923_v0 = vld [vmem:[%s15062_s17 + $0xe40] sm:$0xff] }
 0x2db   : > { %3919 = vmatpush1.bf16.xpose.msra.mxu1 %v12802_v12  ;;  %v12980_v12 = vcombine.low %v867_v1, %v871_v2  ;;  %v927_v1 = vld [vmem:[%s15062_s17 + $0xe60] sm:$0xff] }
 0x2dc   : > { %3920 = vmatprep.subr.bf16.mxu1 %v12811_v15  ;;  %v755_v15 = vld [vmem:[%s15062_s17 + $0x900] sm:$0xff] }
 0x2dd   : > { %v12868_v30 = vcombine.low %v755_v15, %v759_v17  ;;  %v807_v7 = vld [vmem:[%s15062_s17 + $0xaa0] sm:$0xff] }
 0x2de   : > { %v931_v8 = vld [vmem:[%s15062_s17 + $0xe80] sm:$0xff] }
 0x2e1   : > { %3757 = vmatpush1.bf16.xpose.msra.mxu0 %v12682_v31  ;;  %v12988_v31 = vcombine.low %v875_v9, %v879_v10 }
 0x2e2   : > { %3758 = vmatprep.subr.bf16.mxu0 %v12691_v24  ;;  %v12997_v24 = vcombine.high %v883_v18, %v887_v19 }
 0x2e3   : > { %3921 = vmatpush1.bf16.xpose.msra.mxu1 %v12810_v22  ;;  %v12869_v22 = vcombine.high %v755_v15, %v759_v17  ;;  %v815_v15 = vld [vmem:[%s15062_s17 + $0xae0] sm:$0xff] }
 0x2e4   : > { %3922 = vmatprep.subr.bf16.mxu1 %v12819_v25  ;;  %v763_v25 = vld [vmem:[%s15062_s17 + $0x940] sm:$0xff] }
 0x2e5   : > { %v12876_v41 = vcombine.low %v763_v25, %v767_v27  ;;  %v939_v17 = vld [vmem:[%s15062_s17 + $0xec0] sm:$0xff] }
 0x2e9   : > { %3759 = vmatpush1.bf16.xpose.msra.mxu0 %v12690_v16  ;;  %v12996_v16 = vcombine.low %v883_v18, %v887_v19  ;;  %v943_v18 = vld [vmem:[%s15062_s17 + $0xee0] sm:$0xff] }
 0x2ea   : > { %3760 = vmatprep.subr.bf16.mxu0 %v12699_v35  ;;  %v13005_v35 = vcombine.high %v891_v28, %v895_v29 }
 0x2eb   : > { %3923 = vmatpush1.bf16.xpose.msra.mxu1 %v12818_v33  ;;  %v12877_v33 = vcombine.high %v763_v25, %v767_v27  ;;  %v823_v25 = vld [vmem:[%s15062_s17 + $0xb20] sm:$0xff] }
 0x2ec   : > { %3924 = vmatprep.subr.bf16.mxu1 %v12827_v36  ;;  %v771_v36 = vld [vmem:[%s15062_s17 + $0x980] sm:$0xff] }
 0x2ed   : > { %v12884_v50 = vcombine.low %v771_v36, %v775_v37  ;;  %v947_v27 = vld [vmem:[%s15062_s17 + $0xf00] sm:$0xff] }
 0x2f1   : > { %3761 = vmatpush1.bf16.xpose.msra.mxu0 %v12698_v43  ;;  %v13004_v43 = vcombine.low %v891_v28, %v895_v29  ;;  %v951_v28 = vld [vmem:[%s15062_s17 + $0xf20] sm:$0xff] }
 0x2f2   : > { %3762 = vmatprep.subr.bf16.mxu0 %v12707_v45  ;;  %v13013_v45 = vcombine.high %v899_v38, %v903_v40 }
 0x2f3   : > { %3925 = vmatpush1.bf16.xpose.msra.mxu1 %v12826_v44  ;;  %v12885_v44 = vcombine.high %v771_v36, %v775_v37  ;;  %v831_v36 = vld [vmem:[%s15062_s17 + $0xb60] sm:$0xff] }
 0x2f4   : > { %3926 = vmatprep.subr.bf16.mxu1 %v12835_v46  ;;  %v779_v46 = vld [vmem:[%s15062_s17 + $0x9c0] sm:$0xff] }
 0x2f5   : > { %v12892_v59 = vcombine.low %v779_v46, %v783_v26  ;;  %v955_v37 = vld [vmem:[%s15062_s17 + $0xf40] sm:$0xff] }
 0x2f9   : > { %3763 = vmatpush1.bf16.xpose.msra.mxu0 %v12706_v51  ;;  %v13012_v51 = vcombine.low %v899_v38, %v903_v40  ;;  %v959_v38 = vld [vmem:[%s15062_s17 + $0xf60] sm:$0xff] }
 0x2fa   : > { %3937 = vmatprep.subr.bf16.mxu0 %v12837_v53  ;;  %v13021_v53 = vcombine.high %v907_v48, %v911_v49 }
 0x2fb   : > { %3927 = vmatpush1.bf16.xpose.msra.mxu1 %v12834_v52  ;;  %v12893_v52 = vcombine.high %v779_v46, %v783_v26  ;;  %v839_v46 = vld [vmem:[%s15062_s17 + $0xba0] sm:$0xff] }
 0x2fc   : > { %4101 = vmatprep.subr.bf16.mxu1 %v12965_v54  ;;  %v787_v54 = vld [vmem:[%s15062_s17 + $0xa00] sm:$0xff] }
 0x2fd   : > { %v12900_v2 = vcombine.low %v787_v54, %v791_v55  ;;  %v963_v26 = vld [vmem:[%s15062_s17 + $0xf80] sm:$0xff] }
 0x300   : > { %3765 = vmatmul.mubr.bf16.vlgmr.msra.gmra.mrb[0].mxu0 %v15426_v57 }
 0x301   : > { %3938 = vmatpush1.bf16.xpose.msra.mxu0 %v12836_v60  ;;  %3969 = vmatprep.mubr.bf16.mxu0 %v15125_v34  ;;  %v13020_v60 = vcombine.low %v907_v48, %v911_v49  ;;  %v967_v48 = vld [vmem:[%s15062_s17 + $0xfa0] sm:$0xff] }
 0x302   : > { %3929 = vmatmul.mubr.bf16.vlgmr.msra.gmra.mrb[0].mxu1 %v15426_v57  ;;  %3939 = vmatprep.subr.bf16.mxu0 %v12845_v62  ;;  %v13029_v62 = vcombine.high %v915_v56, %v919_v58 }
 0x303   : > { %4102 = vmatpush1.bf16.xpose.msra.mxu1 %v12964_v61  ;;  %4133 = vmatprep.mubr.bf16.mxu1 %v15125_v34  ;;  %v12989_v34 = vcombine.high %v875_v9, %v879_v10  ;;  %v12901_v61 = vcombine.high %v787_v54, %v791_v55  ;;  %v935_v9 = vld [vmem:[%s15062_s17 + $0xea0] sm:$0xff] }
 0x304   : > { %4103 = vmatprep.subr.bf16.mxu1 %v12973_v63  ;;  %v795_v63 = vld [vmem:[%s15062_s17 + $0xa40] sm:$0xff] }
 0x305   : > { %v12908_v10 = vcombine.low %v795_v63, %v799_v42  ;;  %v847_v54 = vld [vmem:[%s15062_s17 + $0xbe0] sm:$0xff] }
 0x306   : > { %v971_v55 = vld [vmem:[%s15062_s17 + $0xfc0] sm:$0xff] }
 0x309   : > { %3940 = vmatpush1.bf16.xpose.msra.mxu0 %v12844_v3  ;;  %v13028_v3 = vcombine.low %v915_v56, %v919_v58  ;;  %v975_v56 = vld [vmem:[%s15062_s17 + $0xfe0] sm:$0xff] }
 0x30a   : > { %3941 = vmatprep.subr.bf16.mxu0 %v12853_v5  ;;  %v13037_v5 = vcombine.high %v923_v0, %v927_v1 }
 0x30b   : > { %4104 = vmatpush1.bf16.xpose.msra.mxu1 %v12972_v4  ;;  %v12909_v4 = vcombine.high %v795_v63, %v799_v42  ;;  %v728_v63 = vld [vmem:[%s15062_s17 + $0x828] sm:$0xff] }
 0x30c   : > { %4105 = vmatprep.subr.bf16.mxu1 %v12981_v6  ;;  %v803_v6 = vld [vmem:[%s15062_s17 + $0xa80] sm:$0xff]  ;;  %v852_v42 = vld [vmem:[%s15062_s17 + $0xc08] sm:$0xff] }
 0x30d   : > { %v12916_v19 = vcombine.low %v803_v6, %v807_v7 }
 0x311   : > { %3942 = vmatpush1.bf16.xpose.msra.mxu0 %v12852_v11  ;;  %v13036_v11 = vcombine.low %v923_v0, %v927_v1  ;;  %v856_v0 = vld [vmem:[%s15062_s17 + $0xc28] sm:$0xff] }
 0x312   : > { %3943 = vmatprep.subr.bf16.mxu0 %v12861_v14  ;;  %v13045_v14 = vcombine.high %v931_v8, %v935_v9 }
 0x313   : > { %4106 = vmatpush1.bf16.xpose.msra.mxu1 %v12980_v12  ;;  %v12917_v12 = vcombine.high %v803_v6, %v807_v7  ;;  %v736_v6 = vld [vmem:[%s15062_s17 + $0x868] sm:$0xff] }
 0x314   : > { %4107 = vmatprep.subr.bf16.mxu1 %v12989_v34  ;;  %v811_v34 = vld [vmem:[%s15062_s17 + $0xac0] sm:$0xff]  ;;  %v860_v7 = vld [vmem:[%s15062_s17 + $0xc48] sm:$0xff] }
 0x315   : > { %v12924_v29 = vcombine.low %v811_v34, %v815_v15 }
 0x319   : > { %3944 = vmatpush1.bf16.xpose.msra.mxu0 %v12860_v20  ;;  %v13044_v20 = vcombine.low %v931_v8, %v935_v9  ;;  %v864_v8 = vld [vmem:[%s15062_s17 + $0xc68] sm:$0xff] }
 0x31a   : > { %3945 = vmatprep.subr.bf16.mxu0 %v12869_v22  ;;  %v13053_v22 = vcombine.high %v939_v17, %v943_v18 }
 0x31b   : > { %4108 = vmatpush1.bf16.xpose.msra.mxu1 %v12988_v31  ;;  %v12925_v31 = vcombine.high %v811_v34, %v815_v15  ;;  %v744_v34 = vld [vmem:[%s15062_s17 + $0x8a8] sm:$0xff] }
 0x31c   : > { %4109 = vmatprep.subr.bf16.mxu1 %v12997_v24  ;;  %v819_v24 = vld [vmem:[%s15062_s17 + $0xb00] sm:$0xff]  ;;  %v868_v15 = vld [vmem:[%s15062_s17 + $0xc88] sm:$0xff] }
 0x31d   : > { %v12932_v40 = vcombine.low %v819_v24, %v823_v25 }
 0x321   : > { %3946 = vmatpush1.bf16.xpose.msra.mxu0 %v12868_v30  ;;  %v13052_v30 = vcombine.low %v939_v17, %v943_v18  ;;  %v872_v17 = vld [vmem:[%s15062_s17 + $0xca8] sm:$0xff] }
 0x322   : > { %3947 = vmatprep.subr.bf16.mxu0 %v12877_v33  ;;  %v13061_v33 = vcombine.high %v947_v27, %v951_v28 }
 0x323   : > { %4110 = vmatpush1.bf16.xpose.msra.mxu1 %v12996_v16  ;;  %v12933_v16 = vcombine.high %v819_v24, %v823_v25  ;;  %v876_v24 = vld [vmem:[%s15062_s17 + $0xcc8] sm:$0xff] }
 0x324   : > { %4111 = vmatprep.subr.bf16.mxu1 %v13005_v35  ;;  %v827_v35 = vld [vmem:[%s15062_s17 + $0xb40] sm:$0xff]  ;;  %v880_v25 = vld [vmem:[%s15062_s17 + $0xce8] sm:$0xff] }
 0x325   : > { %v12940_v49 = vcombine.low %v827_v35, %v831_v36 }
 0x329   : > { %3948 = vmatpush1.bf16.xpose.msra.mxu0 %v12876_v41  ;;  %v13060_v41 = vcombine.low %v947_v27, %v951_v28  ;;  %v12982_v28 = vcombine.low %v868_v15, %v872_v17 }
 0x32a   : > { %3949 = vmatprep.subr.bf16.mxu0 %v12885_v44  ;;  %v13069_v44 = vcombine.high %v955_v37, %v959_v38 }
 0x32b   : > { %4112 = vmatpush1.bf16.xpose.msra.mxu1 %v13004_v43  ;;  %v12941_v43 = vcombine.high %v827_v35, %v831_v36  ;;  %v888_v35 = vld [vmem:[%s15062_s17 + $0xd28] sm:$0xff] }
 0x32c   : > { %4113 = vmatprep.subr.bf16.mxu1 %v13013_v45  ;;  %v835_v45 = vld [vmem:[%s15062_s17 + $0xb80] sm:$0xff] }
 0x32d   : > { %v12948_v58 = vcombine.low %v835_v45, %v839_v46 }
 0x331   : > { %3950 = vmatpush1.bf16.xpose.msra.mxu0 %v12884_v50  ;;  %v13068_v50 = vcombine.low %v955_v37, %v959_v38  ;;  %v12990_v37 = vcombine.low %v876_v24, %v880_v25 }
 0x332   : > { %3951 = vmatprep.subr.bf16.mxu0 %v12893_v52  ;;  %v13077_v52 = vcombine.high %v963_v26, %v967_v48 }
 0x333   : > { %4114 = vmatpush1.bf16.xpose.msra.mxu1 %v13012_v51  ;;  %v12949_v51 = vcombine.high %v835_v45, %v839_v46  ;;  %v896_v45 = vld [vmem:[%s15062_s17 + $0xd68] sm:$0xff] }
 0x334   : > { %4115 = vmatprep.subr.bf16.mxu1 %v13021_v53  ;;  %v843_v53 = vld [vmem:[%s15062_s17 + $0xbc0] sm:$0xff] }
 0x335   : > { %v12956_v1 = vcombine.low %v843_v53, %v847_v54 }
 0x339   : > { %3952 = vmatpush1.bf16.xpose.msra.mxu0 %v12892_v59  ;;  %v13076_v59 = vcombine.low %v963_v26, %v967_v48 }
 0x33a   : > { %3953 = vmatprep.subr.bf16.mxu0 %v12901_v61  ;;  %v13085_v61 = vcombine.high %v971_v55, %v975_v56 }
 0x33b   : > { %4116 = vmatpush1.bf16.xpose.msra.mxu1 %v13020_v60  ;;  %v12957_v60 = vcombine.high %v843_v53, %v847_v54  ;;  %v904_v53 = vld [vmem:[%s15062_s17 + $0xda8] sm:$0xff] }
 0x33c   : > { %4117 = vmatprep.subr.bf16.mxu1 %v13029_v62  ;;  %v724_v62 = vld [vmem:[%s15062_s17 + $0x808] sm:$0xff] }
 0x33d   : > { %v12838_v9 = vcombine.low %v724_v62, %v728_v63 }
 0x341   : > { %3954 = vmatpush1.bf16.xpose.msra.mxu0 %v12900_v2  ;;  %v13084_v2 = vcombine.low %v971_v55, %v975_v56 }
 0x342   : > { %3955 = vmatprep.subr.bf16.mxu0 %v12909_v4  ;;  %v12967_v4 = vcombine.high %v852_v42, %v856_v0 }
 0x343   : > { %4118 = vmatpush1.bf16.xpose.msra.mxu1 %v13028_v3  ;;  %v12839_v3 = vcombine.high %v724_v62, %v728_v63  ;;  %v912_v62 = vld [vmem:[%s15062_s17 + $0xde8] sm:$0xff] }
 0x344   : > { %4119 = vmatprep.subr.bf16.mxu1 %v13037_v5  ;;  %v732_v5 = vld [vmem:[%s15062_s17 + $0x848] sm:$0xff] }
 0x345   : > { %v12846_v18 = vcombine.low %v732_v5, %v736_v6 }
 0x349   : > { %3956 = vmatpush1.bf16.xpose.msra.mxu0 %v12908_v10  ;;  %v12966_v10 = vcombine.low %v852_v42, %v856_v0 }
 0x34a   : > { %3957 = vmatprep.subr.bf16.mxu0 %v12917_v12  ;;  %v12975_v12 = vcombine.high %v860_v7, %v864_v8 }
 0x34b   : > { %4120 = vmatpush1.bf16.xpose.msra.mxu1 %v13036_v11  ;;  %v12847_v11 = vcombine.high %v732_v5, %v736_v6  ;;  %v920_v5 = vld [vmem:[%s15062_s17 + $0xe28] sm:$0xff] }
 0x34c   : > { %4121 = vmatprep.subr.bf16.mxu1 %v13045_v14  ;;  %v740_v14 = vld [vmem:[%s15062_s17 + $0x888] sm:$0xff] }
 0x34d   : > { %v12854_v27 = vcombine.low %v740_v14, %v744_v34 }
 0x351   : > { %3958 = vmatpush1.bf16.xpose.msra.mxu0 %v12916_v19  ;;  %v12974_v19 = vcombine.low %v860_v7, %v864_v8 }
 0x352   : > { %3959 = vmatprep.subr.bf16.mxu0 %v12925_v31  ;;  %v12983_v31 = vcombine.high %v868_v15, %v872_v17 }
 0x353   : > { %4122 = vmatpush1.bf16.xpose.msra.mxu1 %v13044_v20  ;;  %v12855_v20 = vcombine.high %v740_v14, %v744_v34  ;;  %v928_v14 = vld [vmem:[%s15062_s17 + $0xe68] sm:$0xff] }
 0x354   : > { %4123 = vmatprep.subr.bf16.mxu1 %v13053_v22  ;;  %v752_v22 = vld [vmem:[%s15062_s17 + $0x8e8] sm:$0xff] }
 0x359   : > { %3960 = vmatpush1.bf16.xpose.msra.mxu0 %v12924_v29 }
 0x35a   : > { %3961 = vmatprep.subr.bf16.mxu0 %v12933_v16  ;;  %v760_v16 = vld [vmem:[%s15062_s17 + $0x928] sm:$0xff] }
 0x35b   : > { %4124 = vmatpush1.bf16.xpose.msra.mxu1 %v13052_v30  ;;  %v756_v30 = vld [vmem:[%s15062_s17 + $0x908] sm:$0xff] }
 0x35c   : > { %4125 = vmatprep.subr.bf16.mxu1 %v13061_v33  ;;  %v884_v33 = vld [vmem:[%s15062_s17 + $0xd08] sm:$0xff]  ;;  %v12871_v38 = vcombine.high %v756_v30, %v760_v16  ;;  %v12870_v46 = vcombine.low %v756_v30, %v760_v16 }
 0x35d   : > { %v12998_v26 = vcombine.low %v884_v33, %v888_v35  ;;  %v944_v30 = vld [vmem:[%s15062_s17 + $0xee8] sm:$0xff] }
 0x361   : > { %3962 = vmatpush1.bf16.xpose.msra.mxu0 %v12932_v40  ;;  %v12999_v40 = vcombine.high %v884_v33, %v888_v35 }
 0x362   : > { %3963 = vmatprep.subr.bf16.mxu0 %v12941_v43  ;;  %v768_v43 = vld [vmem:[%s15062_s17 + $0x968] sm:$0xff] }
 0x363   : > { %4126 = vmatpush1.bf16.xpose.msra.mxu1 %v13060_v41  ;;  %v764_v41 = vld [vmem:[%s15062_s17 + $0x948] sm:$0xff] }
 0x364   : > { %4127 = vmatprep.subr.bf16.mxu1 %v13069_v44  ;;  %v892_v44 = vld [vmem:[%s15062_s17 + $0xd48] sm:$0xff]  ;;  %v12879_v48 = vcombine.high %v764_v41, %v768_v43  ;;  %v12878_v54 = vcombine.low %v764_v41, %v768_v43 }
 0x365   : > { %v13006_v55 = vcombine.low %v892_v44, %v896_v45 }
 0x369   : > { %3964 = vmatpush1.bf16.xpose.msra.mxu0 %v12940_v49  ;;  %v13007_v49 = vcombine.high %v892_v44, %v896_v45  ;;  %v948_v44 = vld [vmem:[%s15062_s17 + $0xf08] sm:$0xff] }
 0x36a   : > { %3965 = vmatprep.subr.bf16.mxu0 %v12949_v51  ;;  %v776_v51 = vld [vmem:[%s15062_s17 + $0x9a8] sm:$0xff] }
 0x36b   : > { %4128 = vmatpush1.bf16.xpose.msra.mxu1 %v13068_v50  ;;  %v772_v50 = vld [vmem:[%s15062_s17 + $0x988] sm:$0xff] }
 0x36c   : > { %4129 = vmatprep.subr.bf16.mxu1 %v13077_v52  ;;  %v900_v52 = vld [vmem:[%s15062_s17 + $0xd88] sm:$0xff]  ;;  %v12887_v56 = vcombine.high %v772_v50, %v776_v51  ;;  %v12886_v63 = vcombine.low %v772_v50, %v776_v51 }
 0x36d   : > { %v13014_v42 = vcombine.low %v900_v52, %v904_v53  ;;  %v952_v45 = vld [vmem:[%s15062_s17 + $0xf28] sm:$0xff] }
 0x371   : > { %3966 = vmatpush1.bf16.xpose.msra.mxu0 %v12948_v58  ;;  %v13015_v58 = vcombine.high %v900_v52, %v904_v53 }
 0x372   : > { %3967 = vmatprep.subr.bf16.mxu0 %v12957_v60  ;;  %v784_v60 = vld [vmem:[%s15062_s17 + $0x9e8] sm:$0xff] }
 0x373   : > { %4130 = vmatpush1.bf16.xpose.msra.mxu1 %v13076_v59  ;;  %v780_v59 = vld [vmem:[%s15062_s17 + $0x9c8] sm:$0xff] }
 0x374   : > { %4131 = vmatprep.subr.bf16.mxu1 %v13085_v61  ;;  %v908_v61 = vld [vmem:[%s15062_s17 + $0xdc8] sm:$0xff]  ;;  %v12895_v0 = vcombine.high %v780_v59, %v784_v60  ;;  %v12894_v6 = vcombine.low %v780_v59, %v784_v60 }
 0x375   : > { %v13022_v7 = vcombine.low %v908_v61, %v912_v62  ;;  %v960_v59 = vld [vmem:[%s15062_s17 + $0xf68] sm:$0xff] }
 0x379   : > { %3968 = vmatpush1.bf16.xpose.msra.mxu0 %v12956_v1  ;;  %v13023_v1 = vcombine.high %v908_v61, %v912_v62  ;;  %v13062_v61 = vcombine.low %v948_v44, %v952_v45 }
 0x37a   : > { %3978 = vmatprep.subr.bf16.mxu0 %v12839_v3  ;;  %v792_v3 = vld [vmem:[%s15062_s17 + $0xa28] sm:$0xff] }
 0x37b   : > { %4132 = vmatpush1.bf16.xpose.msra.mxu1 %v13084_v2  ;;  %v788_v2 = vld [vmem:[%s15062_s17 + $0xa08] sm:$0xff] }
 0x37c   : > { %4142 = vmatprep.subr.bf16.mxu1 %v12967_v4  ;;  %v916_v4 = vld [vmem:[%s15062_s17 + $0xe08] sm:$0xff]  ;;  %v12903_v8 = vcombine.high %v788_v2, %v792_v3  ;;  %v12902_v34 = vcombine.low %v788_v2, %v792_v3 }
 0x37d   : > { %v13030_v15 = vcombine.low %v916_v4, %v920_v5  ;;  %v968_v2 = vld [vmem:[%s15062_s17 + $0xfa8] sm:$0xff] }
 0x380   : > { %3970 = vmatmul.mubr.bf16.vlgmr.msra.gmra.mrb[4].mxu0 %v15183_v13 }
 0x381   : > { %3979 = vmatpush1.bf16.xpose.msra.mxu0 %v12838_v9  ;;  %4010 = vmatprep.mubr.bf16.mxu0 %v15194_v21  ;;  %v13031_v9 = vcombine.high %v916_v4, %v920_v5 }
 0x382   : > { %4134 = vmatmul.mubr.bf16.vlgmr.msra.gmra.mrb[4].mxu1 %v15183_v13  ;;  %3980 = vmatprep.subr.bf16.mxu0 %v12847_v11  ;;  %v748_v13 = vld [vmem:[%s15062_s17 + $0x8c8] sm:$0xff] }
 0x383   : > { %4143 = vmatpush1.bf16.xpose.msra.mxu1 %v12966_v10  ;;  %4174 = vmatprep.mubr.bf16.mxu1 %v15194_v21  ;;  %v12863_v29 = vcombine.high %v748_v13, %v752_v22  ;;  %v12991_v21 = vcombine.high %v876_v24, %v880_v25  ;;  %v12862_v36 = vcombine.low %v748_v13, %v752_v22  ;;  %v796_v10 = vld [vmem:[%s15062_s17 + $0xa48] sm:$0xff] }
 0x384   : > { %4144 = vmatprep.subr.bf16.mxu1 %v12975_v12  ;;  %v800_v11 = vld [vmem:[%s15062_s17 + $0xa68] sm:$0xff] }
 0x385   : > { %v924_v12 = vld [vmem:[%s15062_s17 + $0xe48] sm:$0xff]  ;;  %v12911_v17 = vcombine.high %v796_v10, %v800_v11  ;;  %v12910_v22 = vcombine.low %v796_v10, %v800_v11 }
 0x386   : > { %v936_v13 = vld [vmem:[%s15062_s17 + $0xea8] sm:$0xff]  ;;  %v13038_v24 = vcombine.low %v924_v12, %v928_v14 }
 0x387   : > { %v976_v10 = vld [vmem:[%s15062_s17 + $0xfe8] sm:$0xff] }
 0x389   : > { %3981 = vmatpush1.bf16.xpose.msra.mxu0 %v12846_v18  ;;  %v13039_v18 = vcombine.high %v924_v12, %v928_v14 }
 0x38a   : > { %3982 = vmatprep.subr.bf16.mxu0 %v12855_v20  ;;  %v808_v20 = vld [vmem:[%s15062_s17 + $0xaa8] sm:$0xff] }
 0x38b   : > { %4145 = vmatpush1.bf16.xpose.msra.mxu1 %v12974_v19  ;;  %v804_v19 = vld [vmem:[%s15062_s17 + $0xa88] sm:$0xff] }
 0x38c   : > { %4146 = vmatprep.subr.bf16.mxu1 %v12983_v31  ;;  %v932_v31 = vld [vmem:[%s15062_s17 + $0xe88] sm:$0xff]  ;;  %v12919_v25 = vcombine.high %v804_v19, %v808_v20  ;;  %v12918_v16 = vcombine.low %v804_v19, %v808_v20  ;;  %v857_v19 = vld [vmem:[%s15062_s17 + $0xc30] sm:$0xff] }
 0x38d   : > { %v13046_v33 = vcombine.low %v932_v31, %v936_v13 }
 0x391   : > { %3983 = vmatpush1.bf16.xpose.msra.mxu0 %v12854_v27  ;;  %v13047_v27 = vcombine.high %v932_v31, %v936_v13 }
 0x392   : > { %3984 = vmatprep.subr.bf16.mxu0 %v12863_v29  ;;  %v816_v29 = vld [vmem:[%s15062_s17 + $0xae8] sm:$0xff] }
 0x393   : > { %4147 = vmatpush1.bf16.xpose.msra.mxu1 %v12982_v28  ;;  %v812_v28 = vld [vmem:[%s15062_s17 + $0xac8] sm:$0xff] }
 0x394   : > { %4148 = vmatprep.subr.bf16.mxu1 %v12991_v21  ;;  %v940_v21 = vld [vmem:[%s15062_s17 + $0xec8] sm:$0xff]  ;;  %v12927_v35 = vcombine.high %v812_v28, %v816_v29 }
 0x395   : > { %v13054_v51 = vcombine.low %v940_v21, %v944_v30 }
 0x399   : > { %3985 = vmatpush1.bf16.xpose.msra.mxu0 %v12862_v36  ;;  %v13055_v36 = vcombine.high %v940_v21, %v944_v30 }
 0x39a   : > { %3986 = vmatprep.subr.bf16.mxu0 %v12871_v38  ;;  %v820_v38 = vld [vmem:[%s15062_s17 + $0xb08] sm:$0xff] }
 0x39b   : > { %4149 = vmatpush1.bf16.xpose.msra.mxu1 %v12990_v37 }
 0x39c   : > { %4150 = vmatprep.subr.bf16.mxu1 %v12999_v40  ;;  %v824_v40 = vld [vmem:[%s15062_s17 + $0xb28] sm:$0xff] }
 0x39d   : > { %v12935_v52 = vcombine.high %v820_v38, %v824_v40  ;;  %v12934_v60 = vcombine.low %v820_v38, %v824_v40  ;;  %v873_v38 = vld [vmem:[%s15062_s17 + $0xcb0] sm:$0xff] }
 0x3a1   : > { %3987 = vmatpush1.bf16.xpose.msra.mxu0 %v12870_v46 }
 0x3a2   : > { %3988 = vmatprep.subr.bf16.mxu0 %v12879_v48  ;;  %v12926_v48 = vcombine.low %v812_v28, %v816_v29  ;;  %v865_v28 = vld [vmem:[%s15062_s17 + $0xc70] sm:$0xff] }
 0x3a3   : > { %4151 = vmatpush1.bf16.xpose.msra.mxu1 %v12998_v26 }
 0x3a4   : > { %4152 = vmatprep.subr.bf16.mxu1 %v13007_v49 }
 0x3a9   : > { %3989 = vmatpush1.bf16.xpose.msra.mxu0 %v12878_v54  ;;  %v13063_v54 = vcombine.high %v948_v44, %v952_v45 }
 0x3aa   : > { %3990 = vmatprep.subr.bf16.mxu0 %v12887_v56  ;;  %v832_v56 = vld [vmem:[%s15062_s17 + $0xb68] sm:$0xff] }
 0x3ab   : > { %4153 = vmatpush1.bf16.xpose.msra.mxu1 %v13006_v55  ;;  %v828_v55 = vld [vmem:[%s15062_s17 + $0xb48] sm:$0xff] }
 0x3ac   : > { %4154 = vmatprep.subr.bf16.mxu1 %v13015_v58  ;;  %v956_v58 = vld [vmem:[%s15062_s17 + $0xf48] sm:$0xff]  ;;  %v12943_v62 = vcombine.high %v828_v55, %v832_v56  ;;  %v12942_v3 = vcombine.low %v828_v55, %v832_v56  ;;  %v761_v55 = vld [vmem:[%s15062_s17 + $0x930] sm:$0xff] }
 0x3ad   : > { %v13070_v4 = vcombine.low %v956_v58, %v960_v59  ;;  %v885_v56 = vld [vmem:[%s15062_s17 + $0xd10] sm:$0xff] }
 0x3b1   : > { %3991 = vmatpush1.bf16.xpose.msra.mxu0 %v12886_v63  ;;  %v13071_v63 = vcombine.high %v956_v58, %v960_v59  ;;  %v889_v58 = vld [vmem:[%s15062_s17 + $0xd30] sm:$0xff] }
 0x3b2   : > { %3992 = vmatprep.subr.bf16.mxu0 %v12895_v0  ;;  %v840_v0 = vld [vmem:[%s15062_s17 + $0xba8] sm:$0xff] }
 0x3b3   : > { %4155 = vmatpush1.bf16.xpose.msra.mxu1 %v13014_v42  ;;  %v836_v42 = vld [vmem:[%s15062_s17 + $0xb88] sm:$0xff] }
 0x3b4   : > { %4156 = vmatprep.subr.bf16.mxu1 %v13023_v1  ;;  %v964_v1 = vld [vmem:[%s15062_s17 + $0xf88] sm:$0xff]  ;;  %v12951_v5 = vcombine.high %v836_v42, %v840_v0  ;;  %v12950_v11 = vcombine.low %v836_v42, %v840_v0  ;;  %v769_v42 = vld [vmem:[%s15062_s17 + $0x970] sm:$0xff] }
 0x3b5   : > { %v13078_v12 = vcombine.low %v964_v1, %v968_v2  ;;  %v893_v0 = vld [vmem:[%s15062_s17 + $0xd50] sm:$0xff] }
 0x3b9   : > { %3993 = vmatpush1.bf16.xpose.msra.mxu0 %v12894_v6  ;;  %v13079_v6 = vcombine.high %v964_v1, %v968_v2  ;;  %v897_v1 = vld [vmem:[%s15062_s17 + $0xd70] sm:$0xff] }
 0x3ba   : > { %3994 = vmatprep.subr.bf16.mxu0 %v12903_v8  ;;  %v848_v8 = vld [vmem:[%s15062_s17 + $0xbe8] sm:$0xff] }
 0x3bb   : > { %4157 = vmatpush1.bf16.xpose.msra.mxu1 %v13022_v7  ;;  %v844_v7 = vld [vmem:[%s15062_s17 + $0xbc8] sm:$0xff] }
 0x3bc   : > { %4158 = vmatprep.subr.bf16.mxu1 %v13031_v9  ;;  %v972_v9 = vld [vmem:[%s15062_s17 + $0xfc8] sm:$0xff]  ;;  %v12959_v14 = vcombine.high %v844_v7, %v848_v8  ;;  %v12958_v20 = vcombine.low %v844_v7, %v848_v8  ;;  %v777_v7 = vld [vmem:[%s15062_s17 + $0x9b0] sm:$0xff] }
 0x3bd   : > { %v13086_v31 = vcombine.low %v972_v9, %v976_v10  ;;  %v901_v8 = vld [vmem:[%s15062_s17 + $0xd90] sm:$0xff] }
 0x3c1   : > { %3995 = vmatpush1.bf16.xpose.msra.mxu0 %v12902_v34  ;;  %v13087_v34 = vcombine.high %v972_v9, %v976_v10  ;;  %v905_v9 = vld [vmem:[%s15062_s17 + $0xdb0] sm:$0xff] }
 0x3c2   : > { %3996 = vmatprep.subr.bf16.mxu0 %v12911_v17  ;;  %v729_v17 = vld [vmem:[%s15062_s17 + $0x830] sm:$0xff] }
 0x3c3   : > { %4159 = vmatpush1.bf16.xpose.msra.mxu1 %v13030_v15  ;;  %v725_v15 = vld [vmem:[%s15062_s17 + $0x810] sm:$0xff] }
 0x3c4   : > { %4160 = vmatprep.subr.bf16.mxu1 %v13039_v18  ;;  %v853_v18 = vld [vmem:[%s15062_s17 + $0xc10] sm:$0xff]  ;;  %v12841_v13 = vcombine.high %v725_v15, %v729_v17  ;;  %v12840_v29 = vcombine.low %v725_v15, %v729_v17 }
 0x3c5   : > { %v12968_v21 = vcombine.low %v853_v18, %v857_v19  ;;  %v785_v15 = vld [vmem:[%s15062_s17 + $0x9f0] sm:$0xff] }
 0x3c6   : > { %v909_v17 = vld [vmem:[%s15062_s17 + $0xdd0] sm:$0xff] }
 0x3c9   : > { %3997 = vmatpush1.bf16.xpose.msra.mxu0 %v12910_v22  ;;  %v12969_v22 = vcombine.high %v853_v18, %v857_v19  ;;  %v913_v18 = vld [vmem:[%s15062_s17 + $0xdf0] sm:$0xff] }
 0x3ca   : > { %3998 = vmatprep.subr.bf16.mxu0 %v12919_v25  ;;  %v737_v25 = vld [vmem:[%s15062_s17 + $0x870] sm:$0xff] }
 0x3cb   : > { %4161 = vmatpush1.bf16.xpose.msra.mxu1 %v13038_v24  ;;  %v733_v24 = vld [vmem:[%s15062_s17 + $0x850] sm:$0xff] }
 0x3cc   : > { %4162 = vmatprep.subr.bf16.mxu1 %v13047_v27  ;;  %v861_v27 = vld [vmem:[%s15062_s17 + $0xc50] sm:$0xff]  ;;  %v12849_v30 = vcombine.high %v733_v24, %v737_v25  ;;  %v12848_v40 = vcombine.low %v733_v24, %v737_v25 }
 0x3cd   : > { %v12976_v44 = vcombine.low %v861_v27, %v865_v28  ;;  %v793_v24 = vld [vmem:[%s15062_s17 + $0xa30] sm:$0xff] }
 0x3ce   : > { %v917_v25 = vld [vmem:[%s15062_s17 + $0xe10] sm:$0xff] }
 0x3d1   : > { %3999 = vmatpush1.bf16.xpose.msra.mxu0 %v12918_v16  ;;  %v12977_v16 = vcombine.high %v861_v27, %v865_v28  ;;  %v921_v27 = vld [vmem:[%s15062_s17 + $0xe30] sm:$0xff] }
 0x3d2   : > { %4000 = vmatprep.subr.bf16.mxu0 %v12927_v35  ;;  %v745_v35 = vld [vmem:[%s15062_s17 + $0x8b0] sm:$0xff] }
 0x3d3   : > { %4163 = vmatpush1.bf16.xpose.msra.mxu1 %v13046_v33  ;;  %v15542_v37 = vpop.f32.mrb[0].mxu0  ;;  %v741_v33 = vld [vmem:[%s15062_s17 + $0x890] sm:$0xff] }
 0x3d4   : > { %4164 = vmatprep.subr.bf16.mxu1 %v13055_v36  ;;  %v15548_v43 = vpop.f32.mrb[1].mxu0  ;;  %v869_v36 = vld [vmem:[%s15062_s17 + $0xc90] sm:$0xff]  ;;  %v12857_v45 = vcombine.high %v741_v33, %v745_v35 }
 0x3d5   : > { %v15546_v41 = vpop.f32.mrb[0].mxu1  ;;  %v3770_v26 = vpop.f32.mrb[2].mxu0 }
 0x3d6   : > { %v15552_v46 = vpop.f32.mrb[1].mxu1  ;;  %v3771_v50 = vpop.f32.mrb[3].mxu0  ;;  %v12985_v26 = vcombine.high %v869_v36, %v873_v38 }
 0x3d7   : > { %v3934_v49 = vpop.f32.mrb[2].mxu1  ;;  %v881_v50 = vld [vmem:[%s15062_s17 + $0xcf0] sm:$0xff] }
 0x3d8   : > { %v3935_v53 = vpop.f32.mrb[3].mxu1  ;;  %v877_v49 = vld [vmem:[%s15062_s17 + $0xcd0] sm:$0xff] }
 0x3d9   : > { %4001 = vmatpush1.bf16.xpose.msra.mxu0 %v12926_v48  ;;  %v753_v48 = vld [vmem:[%s15062_s17 + $0x8f0] sm:$0xff] }
 0x3da   : > { %4002 = vmatprep.subr.bf16.mxu0 %v12935_v52  ;;  %v12984_v52 = vcombine.low %v869_v36, %v873_v38  ;;  %v929_v36 = vld [vmem:[%s15062_s17 + $0xe70] sm:$0xff] }
 0x3db   : > { %4165 = vmatpush1.bf16.xpose.msra.mxu1 %v13054_v51  ;;  %v12856_v51 = vcombine.low %v741_v33, %v745_v35  ;;  %v801_v33 = vld [vmem:[%s15062_s17 + $0xa70] sm:$0xff] }
 0x3dc   : > { %4166 = vmatprep.subr.bf16.mxu1 %v13063_v54  ;;  %v757_v54 = vld [vmem:[%s15062_s17 + $0x910] sm:$0xff] }
 0x3dd   : > { %v12872_v2 = vcombine.low %v757_v54, %v761_v55  ;;  %v925_v35 = vld [vmem:[%s15062_s17 + $0xe50] sm:$0xff] }
 0x3e1   : > { %4003 = vmatpush1.bf16.xpose.msra.mxu0 %v12934_v60  ;;  %v12992_v60 = vcombine.low %v877_v49, %v881_v50 }
 0x3e2   : > { %4004 = vmatprep.subr.bf16.mxu0 %v12943_v62  ;;  %v13001_v62 = vcombine.high %v885_v56, %v889_v58 }
 0x3e3   : > { %4167 = vmatpush1.bf16.xpose.msra.mxu1 %v13062_v61  ;;  %v12873_v61 = vcombine.high %v757_v54, %v761_v55  ;;  %v817_v54 = vld [vmem:[%s15062_s17 + $0xaf0] sm:$0xff] }
 0x3e4   : > { %4168 = vmatprep.subr.bf16.mxu1 %v13071_v63  ;;  %v765_v63 = vld [vmem:[%s15062_s17 + $0x950] sm:$0xff] }
 0x3e5   : > { %v12880_v10 = vcombine.low %v765_v63, %v769_v42  ;;  %v941_v55 = vld [vmem:[%s15062_s17 + $0xed0] sm:$0xff] }
 0x3e9   : > { %4005 = vmatpush1.bf16.xpose.msra.mxu0 %v12942_v3  ;;  %v13000_v3 = vcombine.low %v885_v56, %v889_v58  ;;  %v945_v56 = vld [vmem:[%s15062_s17 + $0xef0] sm:$0xff] }
 0x3ea   : > { %4006 = vmatprep.subr.bf16.mxu0 %v12951_v5  ;;  %v13009_v5 = vcombine.high %v893_v0, %v897_v1 }
 0x3eb   : > { %4169 = vmatpush1.bf16.xpose.msra.mxu1 %v13070_v4  ;;  %v12881_v4 = vcombine.high %v765_v63, %v769_v42  ;;  %v825_v63 = vld [vmem:[%s15062_s17 + $0xb30] sm:$0xff] }
 0x3ec   : > { %4170 = vmatprep.subr.bf16.mxu1 %v13079_v6  ;;  %v773_v6 = vld [vmem:[%s15062_s17 + $0x990] sm:$0xff] }
 0x3ed   : > { %v12888_v19 = vcombine.low %v773_v6, %v777_v7  ;;  %v949_v42 = vld [vmem:[%s15062_s17 + $0xf10] sm:$0xff] }
 0x3f1   : > { %4007 = vmatpush1.bf16.xpose.msra.mxu0 %v12950_v11  ;;  %v13008_v11 = vcombine.low %v893_v0, %v897_v1  ;;  %v953_v0 = vld [vmem:[%s15062_s17 + $0xf30] sm:$0xff] }
 0x3f2   : > { %4008 = vmatprep.subr.bf16.mxu0 %v12959_v14  ;;  %v13017_v14 = vcombine.high %v901_v8, %v905_v9 }
 0x3f3   : > { %4171 = vmatpush1.bf16.xpose.msra.mxu1 %v13078_v12  ;;  %v12889_v12 = vcombine.high %v773_v6, %v777_v7  ;;  %v833_v6 = vld [vmem:[%s15062_s17 + $0xb70] sm:$0xff] }
 0x3f4   : > { %4172 = vmatprep.subr.bf16.mxu1 %v13087_v34  ;;  %v781_v34 = vld [vmem:[%s15062_s17 + $0x9d0] sm:$0xff] }
 0x3f5   : > { %v12896_v28 = vcombine.low %v781_v34, %v785_v15  ;;  %v957_v7 = vld [vmem:[%s15062_s17 + $0xf50] sm:$0xff] }
 0x3f9   : > { %4009 = vmatpush1.bf16.xpose.msra.mxu0 %v12958_v20  ;;  %v13016_v20 = vcombine.low %v901_v8, %v905_v9  ;;  %v961_v8 = vld [vmem:[%s15062_s17 + $0xf70] sm:$0xff] }
 0x3fa   : > { %4019 = vmatprep.subr.bf16.mxu0 %v12841_v13  ;;  %v13025_v13 = vcombine.high %v909_v17, %v913_v18 }
 0x3fb   : > { %4173 = vmatpush1.bf16.xpose.msra.mxu1 %v13086_v31  ;;  %v12897_v31 = vcombine.high %v781_v34, %v785_v15  ;;  %v841_v34 = vld [vmem:[%s15062_s17 + $0xbb0] sm:$0xff] }
 0x3fc   : > { %4183 = vmatprep.subr.bf16.mxu1 %v12969_v22  ;;  %v789_v22 = vld [vmem:[%s15062_s17 + $0xa10] sm:$0xff] }
 0x3fd   : > { %v12904_v38 = vcombine.low %v789_v22, %v793_v24  ;;  %v965_v15 = vld [vmem:[%s15062_s17 + $0xf90] sm:$0xff] }
 0x400   : > { %4011 = vmatmul.mubr.bf16.vlgmr.msra.gmra.mrb[4].mxu0 %v15264_v23 }
 0x401   : > { %4020 = vmatpush1.bf16.xpose.msra.mxu0 %v12840_v29  ;;  %4051 = vmatprep.mubr.bf16.mxu0 %v15275_v32  ;;  %v13024_v29 = vcombine.low %v909_v17, %v913_v18  ;;  %v969_v17 = vld [vmem:[%s15062_s17 + $0xfb0] sm:$0xff] }
 0x402   : > { %4175 = vmatmul.mubr.bf16.vlgmr.msra.gmra.mrb[4].mxu1 %v15264_v23  ;;  %4021 = vmatprep.subr.bf16.mxu0 %v12849_v30  ;;  %v749_v23 = vld [vmem:[%s15062_s17 + $0x8d0] sm:$0xff]  ;;  %v13033_v30 = vcombine.high %v917_v25, %v921_v27 }
 0x403   : > { %4184 = vmatpush1.bf16.xpose.msra.mxu1 %v12968_v21  ;;  %4215 = vmatprep.mubr.bf16.mxu1 %v15275_v32  ;;  %v12865_v53 = vcombine.high %v749_v23, %v753_v48  ;;  %v12993_v32 = vcombine.high %v877_v49, %v881_v50  ;;  %v12864_v59 = vcombine.low %v749_v23, %v753_v48  ;;  %v809_v23 = vld [vmem:[%s15062_s17 + $0xab0] sm:$0xff] }
 0x404   : > { %4185 = vmatprep.subr.bf16.mxu1 %v12977_v16  ;;  %v12905_v21 = vcombine.high %v789_v22, %v793_v24  ;;  %v797_v16 = vld [vmem:[%s15062_s17 + $0xa50] sm:$0xff] }
 0x405   : > { %v933_v48 = vld [vmem:[%s15062_s17 + $0xe90] sm:$0xff]  ;;  %v12912_v50 = vcombine.low %v797_v16, %v801_v33 }
 0x406   : > { %v937_v49 = vld [vmem:[%s15062_s17 + $0xeb0] sm:$0xff] }
 0x407   : > { %v849_v22 = vld [vmem:[%s15062_s17 + $0xbf0] sm:$0xff] }
 0x408   : > { %v973_v24 = vld [vmem:[%s15062_s17 + $0xfd0] sm:$0xff] }
 0x409   : > { %4022 = vmatpush1.bf16.xpose.msra.mxu0 %v12848_v40  ;;  %v13032_v40 = vcombine.low %v917_v25, %v921_v27  ;;  %v977_v25 = vld [vmem:[%s15062_s17 + $0xff0] sm:$0xff] }
 0x40a   : > { %4023 = vmatprep.subr.bf16.mxu0 %v12857_v45  ;;  %v13041_v45 = vcombine.high %v925_v35, %v929_v36 }
 0x40b   : > { %4186 = vmatpush1.bf16.xpose.msra.mxu1 %v12976_v44  ;;  %v12913_v44 = vcombine.high %v797_v16, %v801_v33  ;;  %v730_v16 = vld [vmem:[%s15062_s17 + $0x838] sm:$0xff] }
 0x40c   : > { %4187 = vmatprep.subr.bf16.mxu1 %v12985_v26  ;;  %v805_v26 = vld [vmem:[%s15062_s17 + $0xa90] sm:$0xff]  ;;  %v854_v33 = vld [vmem:[%s15062_s17 + $0xc18] sm:$0xff] }
 0x40d   : > { %v12920_v58 = vcombine.low %v805_v26, %v809_v23 }
 0x411   : > { %4024 = vmatpush1.bf16.xpose.msra.mxu0 %v12856_v51  ;;  %v13040_v51 = vcombine.low %v925_v35, %v929_v36  ;;  %v858_v35 = vld [vmem:[%s15062_s17 + $0xc38] sm:$0xff] }
 0x412   : > { %4025 = vmatprep.subr.bf16.mxu0 %v12865_v53  ;;  %v13049_v53 = vcombine.high %v933_v48, %v937_v49 }
 0x413   : > { %4188 = vmatpush1.bf16.xpose.msra.mxu1 %v12984_v52  ;;  %v12921_v52 = vcombine.high %v805_v26, %v809_v23  ;;  %v738_v26 = vld [vmem:[%s15062_s17 + $0x878] sm:$0xff] }
 0x414   : > { %4189 = vmatprep.subr.bf16.mxu1 %v12993_v32  ;;  %v813_v32 = vld [vmem:[%s15062_s17 + $0xad0] sm:$0xff]  ;;  %v862_v23 = vld [vmem:[%s15062_s17 + $0xc58] sm:$0xff] }
 0x415   : > { %v12928_v1 = vcombine.low %v813_v32, %v817_v54 }
 0x419   : > { %4026 = vmatpush1.bf16.xpose.msra.mxu0 %v12864_v59  ;;  %v13048_v59 = vcombine.low %v933_v48, %v937_v49  ;;  %v866_v48 = vld [vmem:[%s15062_s17 + $0xc78] sm:$0xff] }
 0x41a   : > { %4027 = vmatprep.subr.bf16.mxu0 %v12873_v61  ;;  %v13057_v61 = vcombine.high %v941_v55, %v945_v56 }
 0x41b   : > { %4190 = vmatpush1.bf16.xpose.msra.mxu1 %v12992_v60  ;;  %v12929_v60 = vcombine.high %v813_v32, %v817_v54  ;;  %v746_v32 = vld [vmem:[%s15062_s17 + $0x8b8] sm:$0xff] }
 0x41c   : > { %4191 = vmatprep.subr.bf16.mxu1 %v13001_v62  ;;  %v821_v62 = vld [vmem:[%s15062_s17 + $0xb10] sm:$0xff]  ;;  %v870_v54 = vld [vmem:[%s15062_s17 + $0xc98] sm:$0xff] }
 0x41d   : > { %v12936_v9 = vcombine.low %v821_v62, %v825_v63 }
 0x421   : > { %4028 = vmatpush1.bf16.xpose.msra.mxu0 %v12872_v2  ;;  %v13056_v2 = vcombine.low %v941_v55, %v945_v56  ;;  %v874_v55 = vld [vmem:[%s15062_s17 + $0xcb8] sm:$0xff] }
 0x422   : > { %4029 = vmatprep.subr.bf16.mxu0 %v12881_v4  ;;  %v13065_v4 = vcombine.high %v949_v42, %v953_v0 }
 0x423   : > { %4192 = vmatpush1.bf16.xpose.msra.mxu1 %v13000_v3  ;;  %v12937_v3 = vcombine.high %v821_v62, %v825_v63  ;;  %v878_v62 = vld [vmem:[%s15062_s17 + $0xcd8] sm:$0xff] }
 0x424   : > { %4193 = vmatprep.subr.bf16.mxu1 %v13009_v5  ;;  %v829_v5 = vld [vmem:[%s15062_s17 + $0xb50] sm:$0xff]  ;;  %v882_v63 = vld [vmem:[%s15062_s17 + $0xcf8] sm:$0xff] }
 0x425   : > { %v12944_v18 = vcombine.low %v829_v5, %v833_v6 }
 0x429   : > { %4030 = vmatpush1.bf16.xpose.msra.mxu0 %v12880_v10  ;;  %v13064_v10 = vcombine.low %v949_v42, %v953_v0  ;;  %v12986_v0 = vcombine.low %v870_v54, %v874_v55 }
 0x42a   : > { %4031 = vmatprep.subr.bf16.mxu0 %v12889_v12  ;;  %v13073_v12 = vcombine.high %v957_v7, %v961_v8 }
 0x42b   : > { %4194 = vmatpush1.bf16.xpose.msra.mxu1 %v13008_v11  ;;  %v12945_v11 = vcombine.high %v829_v5, %v833_v6  ;;  %v890_v5 = vld [vmem:[%s15062_s17 + $0xd38] sm:$0xff] }
 0x42c   : > { %4195 = vmatprep.subr.bf16.mxu1 %v13017_v14  ;;  %v837_v14 = vld [vmem:[%s15062_s17 + $0xb90] sm:$0xff] }
 0x42d   : > { %v12952_v27 = vcombine.low %v837_v14, %v841_v34 }
 0x431   : > { %4032 = vmatpush1.bf16.xpose.msra.mxu0 %v12888_v19  ;;  %v13072_v19 = vcombine.low %v957_v7, %v961_v8  ;;  %v12994_v7 = vcombine.low %v878_v62, %v882_v63 }
 0x432   : > { %4033 = vmatprep.subr.bf16.mxu0 %v12897_v31  ;;  %v13081_v31 = vcombine.high %v965_v15, %v969_v17 }
 0x433   : > { %4196 = vmatpush1.bf16.xpose.msra.mxu1 %v13016_v20  ;;  %v12953_v20 = vcombine.high %v837_v14, %v841_v34  ;;  %v898_v14 = vld [vmem:[%s15062_s17 + $0xd78] sm:$0xff] }
 0x434   : > { %4197 = vmatprep.subr.bf16.mxu1 %v13025_v13  ;;  %v845_v13 = vld [vmem:[%s15062_s17 + $0xbd0] sm:$0xff] }
 0x435   : > { %v12960_v36 = vcombine.low %v845_v13, %v849_v22 }
 0x439   : > { %4034 = vmatpush1.bf16.xpose.msra.mxu0 %v12896_v28  ;;  %v13080_v28 = vcombine.low %v965_v15, %v969_v17 }
 0x43a   : > { %4035 = vmatprep.subr.bf16.mxu0 %v12905_v21  ;;  %v13089_v21 = vcombine.high %v973_v24, %v977_v25 }
 0x43b   : > { %4198 = vmatpush1.bf16.xpose.msra.mxu1 %v13024_v29  ;;  %v12961_v29 = vcombine.high %v845_v13, %v849_v22  ;;  %v906_v13 = vld [vmem:[%s15062_s17 + $0xdb8] sm:$0xff] }
 0x43c   : > { %4199 = vmatprep.subr.bf16.mxu1 %v13033_v30  ;;  %v726_v30 = vld [vmem:[%s15062_s17 + $0x818] sm:$0xff] }
 0x43d   : > { %v12842_v49 = vcombine.low %v726_v30, %v730_v16 }
 0x441   : > { %4036 = vmatpush1.bf16.xpose.msra.mxu0 %v12904_v38  ;;  %v13088_v38 = vcombine.low %v973_v24, %v977_v25 }
 0x442   : > { %4037 = vmatprep.subr.bf16.mxu0 %v12913_v44  ;;  %v12971_v44 = vcombine.high %v854_v33, %v858_v35 }
 0x443   : > { %4200 = vmatpush1.bf16.xpose.msra.mxu1 %v13032_v40  ;;  %v12843_v40 = vcombine.high %v726_v30, %v730_v16  ;;  %v914_v30 = vld [vmem:[%s15062_s17 + $0xdf8] sm:$0xff] }
 0x444   : > { %4201 = vmatprep.subr.bf16.mxu1 %v13041_v45  ;;  %v734_v45 = vld [vmem:[%s15062_s17 + $0x858] sm:$0xff] }
 0x445   : > { %v12850_v56 = vcombine.low %v734_v45, %v738_v26 }
 0x449   : > { %4038 = vmatpush1.bf16.xpose.msra.mxu0 %v12912_v50  ;;  %v12970_v50 = vcombine.low %v854_v33, %v858_v35 }
 0x44a   : > { %4039 = vmatprep.subr.bf16.mxu0 %v12921_v52  ;;  %v12979_v52 = vcombine.high %v862_v23, %v866_v48 }
 0x44b   : > { %4202 = vmatpush1.bf16.xpose.msra.mxu1 %v13040_v51  ;;  %v12851_v51 = vcombine.high %v734_v45, %v738_v26  ;;  %v922_v45 = vld [vmem:[%s15062_s17 + $0xe38] sm:$0xff] }
 0x44c   : > { %4203 = vmatprep.subr.bf16.mxu1 %v13049_v53  ;;  %v742_v53 = vld [vmem:[%s15062_s17 + $0x898] sm:$0xff] }
 0x44d   : > { %v12858_v42 = vcombine.low %v742_v53, %v746_v32 }
 0x451   : > { %4040 = vmatpush1.bf16.xpose.msra.mxu0 %v12920_v58  ;;  %v12978_v58 = vcombine.low %v862_v23, %v866_v48 }
 0x452   : > { %4041 = vmatprep.subr.bf16.mxu0 %v12929_v60  ;;  %v12987_v60 = vcombine.high %v870_v54, %v874_v55 }
 0x453   : > { %4204 = vmatpush1.bf16.xpose.msra.mxu1 %v13048_v59  ;;  %v12859_v59 = vcombine.high %v742_v53, %v746_v32  ;;  %v930_v53 = vld [vmem:[%s15062_s17 + $0xe78] sm:$0xff] }
 0x454   : > { %4205 = vmatprep.subr.bf16.mxu1 %v13057_v61  ;;  %v754_v61 = vld [vmem:[%s15062_s17 + $0x8f8] sm:$0xff] }
 0x459   : > { %4042 = vmatpush1.bf16.xpose.msra.mxu0 %v12928_v1 }
 0x45a   : > { %4043 = vmatprep.subr.bf16.mxu0 %v12937_v3  ;;  %v762_v3 = vld [vmem:[%s15062_s17 + $0x938] sm:$0xff] }
 0x45b   : > { %4206 = vmatpush1.bf16.xpose.msra.mxu1 %v13056_v2  ;;  %v758_v2 = vld [vmem:[%s15062_s17 + $0x918] sm:$0xff] }
 0x45c   : > { %4207 = vmatprep.subr.bf16.mxu1 %v13065_v4  ;;  %v886_v4 = vld [vmem:[%s15062_s17 + $0xd18] sm:$0xff]  ;;  %v12875_v8 = vcombine.high %v758_v2, %v762_v3  ;;  %v12874_v34 = vcombine.low %v758_v2, %v762_v3 }
 0x45d   : > { %v13002_v15 = vcombine.low %v886_v4, %v890_v5  ;;  %v946_v2 = vld [vmem:[%s15062_s17 + $0xef8] sm:$0xff] }
 0x461   : > { %4044 = vmatpush1.bf16.xpose.msra.mxu0 %v12936_v9  ;;  %v13003_v9 = vcombine.high %v886_v4, %v890_v5 }
 0x462   : > { %4045 = vmatprep.subr.bf16.mxu0 %v12945_v11  ;;  %v770_v11 = vld [vmem:[%s15062_s17 + $0x978] sm:$0xff] }
 0x463   : > { %4208 = vmatpush1.bf16.xpose.msra.mxu1 %v13064_v10  ;;  %v766_v10 = vld [vmem:[%s15062_s17 + $0x958] sm:$0xff] }
 0x464   : > { %4209 = vmatprep.subr.bf16.mxu1 %v13073_v12  ;;  %v894_v12 = vld [vmem:[%s15062_s17 + $0xd58] sm:$0xff]  ;;  %v12883_v17 = vcombine.high %v766_v10, %v770_v11  ;;  %v12882_v22 = vcombine.low %v766_v10, %v770_v11 }
 0x465   : > { %v13010_v24 = vcombine.low %v894_v12, %v898_v14  ;;  %v954_v10 = vld [vmem:[%s15062_s17 + $0xf38] sm:$0xff] }
 0x469   : > { %4046 = vmatpush1.bf16.xpose.msra.mxu0 %v12944_v18  ;;  %v13011_v18 = vcombine.high %v894_v12, %v898_v14 }
 0x46a   : > { %4047 = vmatprep.subr.bf16.mxu0 %v12953_v20  ;;  %v778_v20 = vld [vmem:[%s15062_s17 + $0x9b8] sm:$0xff] }
 0x46b   : > { %4210 = vmatpush1.bf16.xpose.msra.mxu1 %v13072_v19  ;;  %v774_v19 = vld [vmem:[%s15062_s17 + $0x998] sm:$0xff] }
 0x46c   : > { %4211 = vmatprep.subr.bf16.mxu1 %v13081_v31  ;;  %v902_v31 = vld [vmem:[%s15062_s17 + $0xd98] sm:$0xff]  ;;  %v12891_v25 = vcombine.high %v774_v19, %v778_v20  ;;  %v12890_v16 = vcombine.low %v774_v19, %v778_v20 }
 0x46d   : > { %v13018_v33 = vcombine.low %v902_v31, %v906_v13  ;;  %v962_v19 = vld [vmem:[%s15062_s17 + $0xf78] sm:$0xff] }
 0x471   : > { %4048 = vmatpush1.bf16.xpose.msra.mxu0 %v12952_v27  ;;  %v13019_v27 = vcombine.high %v902_v31, %v906_v13 }
 0x472   : > { %4049 = vmatprep.subr.bf16.mxu0 %v12961_v29  ;;  %v786_v29 = vld [vmem:[%s15062_s17 + $0x9f8] sm:$0xff] }
 0x473   : > { %4212 = vmatpush1.bf16.xpose.msra.mxu1 %v13080_v28  ;;  %v782_v28 = vld [vmem:[%s15062_s17 + $0x9d8] sm:$0xff] }
 0x474   : > { %4213 = vmatprep.subr.bf16.mxu1 %v13089_v21  ;;  %v910_v21 = vld [vmem:[%s15062_s17 + $0xdd8] sm:$0xff]  ;;  %v12899_v35 = vcombine.high %v782_v28, %v786_v29  ;;  %v12898_v26 = vcombine.low %v782_v28, %v786_v29 }
 0x475   : > { %v13026_v23 = vcombine.low %v910_v21, %v914_v30  ;;  %v970_v28 = vld [vmem:[%s15062_s17 + $0xfb8] sm:$0xff] }
 0x479   : > { %4050 = vmatpush1.bf16.xpose.msra.mxu0 %v12960_v36  ;;  %v13027_v36 = vcombine.high %v910_v21, %v914_v30 }
 0x47a   : > { %4060 = vmatprep.subr.bf16.mxu0 %v12843_v40  ;;  %v794_v40 = vld [vmem:[%s15062_s17 + $0xa38] sm:$0xff] }
 0x47b   : > { %4214 = vmatpush1.bf16.xpose.msra.mxu1 %v13088_v38  ;;  %v790_v38 = vld [vmem:[%s15062_s17 + $0xa18] sm:$0xff] }
 0x47c   : > { %4224 = vmatprep.subr.bf16.mxu1 %v12971_v44  ;;  %v918_v44 = vld [vmem:[%s15062_s17 + $0xe18] sm:$0xff]  ;;  %v12907_v48 = vcombine.high %v790_v38, %v794_v40  ;;  %v12906_v32 = vcombine.low %v790_v38, %v794_v40 }
 0x47d   : > { %v13034_v54 = vcombine.low %v918_v44, %v922_v45  ;;  %v974_v40 = vld [vmem:[%s15062_s17 + $0xfd8] sm:$0xff] }
 0x480   : > { %4052 = vmatmul.mubr.bf16.vlgmr.msra.gmra.mrb[4].mxu0 %v15345_v39 }
 0x481   : > { %4061 = vmatpush1.bf16.xpose.msra.mxu0 %v12842_v49  ;;  %4092 = vmatprep.mubr.bf16.mxu0 %v15356_v47  ;;  %v13035_v49 = vcombine.high %v918_v44, %v922_v45  ;;  %v978_v44 = vld [vmem:[%s15062_s17 + $0xff8] sm:$0xff] }
 0x482   : > { %4216 = vmatmul.mubr.bf16.vlgmr.msra.gmra.mrb[4].mxu1 %v15345_v39  ;;  %4062 = vmatprep.subr.bf16.mxu0 %v12851_v51  ;;  %v750_v39 = vld [vmem:[%s15062_s17 + $0x8d8] sm:$0xff] }
 0x483   : > { %4225 = vmatpush1.bf16.xpose.msra.mxu1 %v12970_v50  ;;  %4256 = vmatprep.mubr.bf16.mxu1 %v15356_v47  ;;  %v12867_v1 = vcombine.high %v750_v39, %v754_v61  ;;  %v12995_v47 = vcombine.high %v878_v62, %v882_v63  ;;  %v12866_v6 = vcombine.low %v750_v39, %v754_v61  ;;  %v798_v50 = vld [vmem:[%s15062_s17 + $0xa58] sm:$0xff] }
 0x484   : > { %4226 = vmatprep.subr.bf16.mxu1 %v12979_v52  ;;  %v802_v51 = vld [vmem:[%s15062_s17 + $0xa78] sm:$0xff] }
 0x485   : > { %v926_v52 = vld [vmem:[%s15062_s17 + $0xe58] sm:$0xff]  ;;  %v12915_v55 = vcombine.high %v798_v50, %v802_v51  ;;  %v12914_v61 = vcombine.low %v798_v50, %v802_v51  ;;  %v15708_v50 = vld [vmem:[%s15070_s19] sm:$0xff] }
 0x486   : > { %v938_v39 = vld [vmem:[%s15062_s17 + $0xeb8] sm:$0xff]  ;;  %v13042_v62 = vcombine.low %v926_v52, %v930_v53 }
 0x489   : > { %4063 = vmatpush1.bf16.xpose.msra.mxu0 %v12850_v56  ;;  %v13043_v56 = vcombine.high %v926_v52, %v930_v53  ;;  %v4297_v52 = vld [vmem:[%s15077_s13] sm:$0xff] }
 0x48a   : > { %4064 = vmatprep.subr.bf16.mxu0 %v12859_v59  ;;  %v810_v59 = vld [vmem:[%s15062_s17 + $0xab8] sm:$0xff]  ;;  %v4305_v53 = vld [vmem:[%s15077_s13 + $0x40] sm:$0xff] }
 0x48b   : > { %4227 = vmatpush1.bf16.xpose.msra.mxu1 %v12978_v58  ;;  %v806_v58 = vld [vmem:[%s15062_s17 + $0xa98] sm:$0xff] }
 0x48c   : > { %4228 = vmatprep.subr.bf16.mxu1 %v12987_v60  ;;  %v934_v60 = vld [vmem:[%s15062_s17 + $0xe98] sm:$0xff]  ;;  %v12923_v63 = vcombine.high %v806_v58, %v810_v59  ;;  %v12922_v3 = vcombine.low %v806_v58, %v810_v59  ;;  %v13090_v59 = vcombine.low %v974_v40, %v978_v44 }
 0x48d   : > { %v13050_v4 = vcombine.low %v934_v60, %v938_v39 }
 0x491   : > { %4065 = vmatpush1.bf16.xpose.msra.mxu0 %v12858_v42  ;;  %v13051_v42 = vcombine.high %v934_v60, %v938_v39  ;;  %v13093_v60 = vcombine.high %v4297_v52, %v4305_v53 }
 0x492   : > { %4066 = vmatprep.subr.bf16.mxu0 %v12867_v1  ;;  %v818_v1 = vld [vmem:[%s15062_s17 + $0xaf8] sm:$0xff] }
 0x493   : > { %4229 = vmatpush1.bf16.xpose.msra.mxu1 %v12986_v0  ;;  %v814_v0 = vld [vmem:[%s15062_s17 + $0xad8] sm:$0xff] }
 0x494   : > { %4230 = vmatprep.subr.bf16.mxu1 %v12995_v47  ;;  %v942_v47 = vld [vmem:[%s15062_s17 + $0xed8] sm:$0xff]  ;;  %v12931_v5 = vcombine.high %v814_v0, %v818_v1  ;;  %v12930_v11 = vcombine.low %v814_v0, %v818_v1  ;;  %v4321_v0 = vld [vmem:[%s15077_s13 + $0xc0] sm:$0xff] }
 0x495   : > { %v13058_v12 = vcombine.low %v942_v47, %v946_v2 }
 0x499   : > { %4067 = vmatpush1.bf16.xpose.msra.mxu0 %v12866_v6  ;;  %v13059_v6 = vcombine.high %v942_v47, %v946_v2  ;;  %v13092_v47 = vcombine.low %v4297_v52, %v4305_v53  ;;  %v4569_v2 = vld [vmem:[%s15077_s13 + $0x880] sm:$0xff] }
 0x49a   : > { %4068 = vmatprep.subr.bf16.mxu0 %v12875_v8  ;;  %v826_v8 = vld [vmem:[%s15062_s17 + $0xb38] sm:$0xff]  ;;  %v4649_v52 = vld [vmem:[%s15077_s13 + $0xb00] sm:$0xff] }
 0x49b   : > { %4231 = vmatpush1.bf16.xpose.msra.mxu1 %v12994_v7  ;;  %v822_v7 = vld [vmem:[%s15062_s17 + $0xb18] sm:$0xff]  ;;  %v4657_v53 = vld [vmem:[%s15077_s13 + $0xb40] sm:$0xff] }
 0x49c   : > { %4232 = vmatprep.subr.bf16.mxu1 %v13003_v9  ;;  %v950_v9 = vld [vmem:[%s15062_s17 + $0xf18] sm:$0xff]  ;;  %v12939_v14 = vcombine.high %v822_v7, %v826_v8  ;;  %v12938_v20 = vcombine.low %v822_v7, %v826_v8  ;;  %v4585_v8 = vld [vmem:[%s15077_s13 + $0x900] sm:$0xff] }
 0x49d   : > { %v13066_v31 = vcombine.low %v950_v9, %v954_v10 }
 0x4a1   : > { %4069 = vmatpush1.bf16.xpose.msra.mxu0 %v12874_v34  ;;  %v13067_v34 = vcombine.high %v950_v9, %v954_v10  ;;  %v4593_v9 = vld [vmem:[%s15077_s13 + $0x940] sm:$0xff] }
 0x4a2   : > { %4070 = vmatprep.subr.bf16.mxu0 %v12883_v17  ;;  %v834_v17 = vld [vmem:[%s15062_s17 + $0xb78] sm:$0xff] }
 0x4a3   : > { %4233 = vmatpush1.bf16.xpose.msra.mxu1 %v13002_v15  ;;  %v830_v15 = vld [vmem:[%s15062_s17 + $0xb58] sm:$0xff] }
 0x4a4   : > { %4234 = vmatprep.subr.bf16.mxu1 %v13011_v18  ;;  %v958_v18 = vld [vmem:[%s15062_s17 + $0xf58] sm:$0xff]  ;;  %v12947_v13 = vcombine.high %v830_v15, %v834_v17  ;;  %v12946_v29 = vcombine.low %v830_v15, %v834_v17  ;;  %v4345_v15 = vld [vmem:[%s15077_s13 + $0x180] sm:$0xff] }
 0x4a5   : > { %v13074_v21 = vcombine.low %v958_v18, %v962_v19  ;;  %v4353_v17 = vld [vmem:[%s15077_s13 + $0x1c0] sm:$0xff] }
 0x4a9   : > { %4071 = vmatpush1.bf16.xpose.msra.mxu0 %v12882_v22  ;;  %v13075_v22 = vcombine.high %v958_v18, %v962_v19  ;;  %v4601_v18 = vld [vmem:[%s15077_s13 + $0x980] sm:$0xff] }
 0x4aa   : > { %4072 = vmatprep.subr.bf16.mxu0 %v12891_v25  ;;  %v842_v25 = vld [vmem:[%s15062_s17 + $0xbb8] sm:$0xff] }
 0x4ab   : > { %4235 = vmatpush1.bf16.xpose.msra.mxu1 %v13010_v24  ;;  %v838_v24 = vld [vmem:[%s15062_s17 + $0xb98] sm:$0xff] }
 0x4ac   : > { %4236 = vmatprep.subr.bf16.mxu1 %v13019_v27  ;;  %v966_v27 = vld [vmem:[%s15062_s17 + $0xf98] sm:$0xff]  ;;  %v12955_v30 = vcombine.high %v838_v24, %v842_v25  ;;  %v12954_v45 = vcombine.low %v838_v24, %v842_v25  ;;  %v4369_v24 = vld [vmem:[%s15077_s13 + $0x240] sm:$0xff] }
 0x4ad   : > { %v4617_v25 = vld [vmem:[%s15077_s13 + $0xa00] sm:$0xff] }
 0x4b1   : > { %4073 = vmatpush1.bf16.xpose.msra.mxu0 %v12890_v16  ;;  %v13083_v16 = vcombine.high %v966_v27, %v970_v28 }
 0x4b2   : > { %4074 = vmatprep.subr.bf16.mxu0 %v12899_v35  ;;  %v846_v35 = vld [vmem:[%s15062_s17 + $0xbd8] sm:$0xff] }
 0x4b3   : > { %4237 = vmatpush1.bf16.xpose.msra.mxu1 %v13018_v33  ;;  %v981_v33 = vlaneseq }
 0x4b4   : > { %4238 = vmatprep.subr.bf16.mxu1 %v13027_v36  ;;  %v850_v36 = vld [vmem:[%s15062_s17 + $0xbf8] sm:$0xff]  ;;  %s17122_s17 = sld [smem:[#allocation20_spill]] }
 0x4b5   : > { %v15700_v38 = vshrl.u32 %v981_v33, 7  ;;  %v12962_v58 = vcombine.low %v846_v35, %v850_v36  ;;  %v4385_v33 = vld [vmem:[%s15077_s13 + $0x2c0] sm:$0xff] }
 0x4b7   : > { %v15711_v51 = vsub.s32 3, %v15700_v38 }
 0x4b9   : > { %4075 = vmatpush1.bf16.xpose.msra.mxu0 %v12898_v26  ;;  %v13082_v26 = vcombine.low %v966_v27, %v970_v28  ;;  %v4625_v27 = vld [vmem:[%s15077_s13 + $0xa40] sm:$0xff]  ;;  %v13140_v28 = vcombine.low %v4345_v15, %v4353_v17 }
 0x4ba   : > { %4076 = vmatprep.subr.bf16.mxu0 %v12907_v48  ;;  %v13091_v48 = vcombine.high %v974_v40, %v978_v44  ;;  %v13412_v44 = vcombine.low %v4617_v25, %v4625_v27  ;;  %p14116_p8 = scmp.ne.s32.totalorder %s17122_s17, 1 }
 0x4bb   : > { %4239 = vmatpush1.bf16.xpose.msra.mxu1 %v13026_v23  ;;  %v12963_v23 = vcombine.high %v846_v35, %v850_v36  ;;  %v4633_v35 = vld [vmem:[%s15077_s13 + $0xa80] sm:$0xff]  ;;  %vm12375_vm0 = vcmask (!%p14116_p8), 15360  }
 0x4bc   : > { %4240 = vmatprep.subr.bf16.mxu1 %v13035_v49  ;;  %v15705_v49 = vsub.s32 1, %v15700_v38  ;;  %v4641_v36 = vld [vmem:[%s15077_s13 + $0xac0] sm:$0xff] }
 0x4c1   : > { %4077 = vmatpush1.bf16.xpose.msra.mxu0 %v12906_v32  ;;  %v988_v32 = vrot.slane %v15708_v50, %v15705_v49 }
 0x4c2   : > { %4078 = vmatprep.subr.bf16.mxu0 %v12915_v55  ;;  %v4561_v55 = vld [vmem:[%s15077_s13 + $0x840] sm:$0xff] }
 0x4c3   : > { %4241 = vmatpush1.bf16.xpose.msra.mxu1 %v13034_v54  ;;  %v4553_v54 = vld [vmem:[%s15077_s13 + $0x800] sm:$0xff] }
 0x4c4   : > { %4242 = vmatprep.subr.bf16.mxu1 %v13043_v56  ;;  %v996_v56 = vrot.slane %v15708_v50, %v15711_v51  ;;  %v13349_v39 = vcombine.high %v4553_v54, %v4561_v55 }
 0x4c9   : > { %4079 = vmatpush1.bf16.xpose.msra.mxu0 %v12914_v61  ;;  %v14126_v61 = vadd.f32 %v15548_v43, %v988_v32  ;;  %v4337_v43 = vld [vmem:[%s15077_s13 + $0x140] sm:$0xff] }
 0x4ca   : > { %4080 = vmatprep.subr.bf16.mxu0 %v12923_v63 }
 0x4cb   : > { %4243 = vmatpush1.bf16.xpose.msra.mxu1 %v13042_v62  ;;  %v14128_v62 = vadd.f32 %v15552_v46, %v996_v56  ;;  %v4266_v63 = vmax.f32 %v14126_v61, 0.0  ;;  %v13445_v56 = vcombine.high %v4649_v52, %v4657_v53 }
 0x4cc   : > { %4244 = vmatprep.subr.bf16.mxu1 %v13051_v42  ;;  %v4313_v42 = vld [vmem:[%s15077_s13 + $0x80] sm:$0xff] }
 0x4cd   : > { %v4268_v1 = vmax.f32 %v14128_v62, 0.0  ;;  %v15729_v7 = vpack.c.bf16 %v4266_v63, %v4266_v63  ;;  %v13444_v62 = vcombine.low %v4649_v52, %v4657_v53  ;;  %v4761_v52 = vld [vmem:[%s15077_s13 + $0xe80] sm:$0xff] }
 0x4ce   : > { %v4769_v53 = vld [vmem:[%s15077_s13 + $0xec0] sm:$0xff] }
 0x4cf   : > { %v15734_v10 = vpack.c.bf16 %v4268_v1, %v4268_v1  ;;  %v4433_v1 = vld [vmem:[%s15077_s13 + $0x440] sm:$0xff] }
 0x4d1   : > { %4081 = vmatpush1.bf16.xpose.msra.mxu0 %v12922_v3  ;;  %v4577_v3 = vld [vmem:[%s15077_s13 + $0x8c0] sm:$0xff] }
 0x4d2   : > { %4082 = vmatprep.subr.bf16.mxu0 %v12931_v5  ;;  %v13109_v5 = vcombine.high %v4313_v42, %v4321_v0  ;;  %v13365_v46 = vcombine.high %v4569_v2, %v4577_v3 }
 0x4d3   : > { %4245 = vmatpush1.bf16.xpose.msra.mxu1 %v13050_v4  ;;  %v13348_v4 = vcombine.low %v4553_v54, %v4561_v55  ;;  %v13428_v54 = vcombine.low %v4633_v35, %v4641_v36 }
 0x4d4   : > { %4246 = vmatprep.subr.bf16.mxu1 %v13059_v6  ;;  %v4329_v6 = vld [vmem:[%s15077_s13 + $0x100] sm:$0xff] }
 0x4d5   : > { %v13124_v19 = vcombine.low %v4329_v6, %v4337_v43 }
 0x4d9   : > { %4083 = vmatpush1.bf16.xpose.msra.mxu0 %v12930_v11  ;;  %v13108_v11 = vcombine.low %v4313_v42, %v4321_v0  ;;  %v4425_v0 = vld [vmem:[%s15077_s13 + $0x400] sm:$0xff] }
 0x4da   : > { %4084 = vmatprep.subr.bf16.mxu0 %v12939_v14  ;;  %v13125_v14 = vcombine.high %v4329_v6, %v4337_v43  ;;  %v4441_v43 = vld [vmem:[%s15077_s13 + $0x480] sm:$0xff] }
 0x4db   : > { %4247 = vmatpush1.bf16.xpose.msra.mxu1 %v13058_v12  ;;  %v13364_v12 = vcombine.low %v4569_v2, %v4577_v3  ;;  %v4689_v2 = vld [vmem:[%s15077_s13 + $0xc40] sm:$0xff] }
 0x4dc   : > { %4248 = vmatprep.subr.bf16.mxu1 %v13067_v34  ;;  %v13381_v34 = vcombine.high %v4585_v8, %v4593_v9 }
 0x4e1   : > { %4085 = vmatpush1.bf16.xpose.msra.mxu0 %v12938_v20  ;;  %v13380_v20 = vcombine.low %v4585_v8, %v4593_v9  ;;  %v4697_v8 = vld [vmem:[%s15077_s13 + $0xc80] sm:$0xff] }
 0x4e2   : > { %4086 = vmatprep.subr.bf16.mxu0 %v12947_v13  ;;  %v4705_v9 = vld [vmem:[%s15077_s13 + $0xcc0] sm:$0xff] }
 0x4e3   : > { %4249 = vmatpush1.bf16.xpose.msra.mxu1 %v13066_v31  ;;  %v13141_v31 = vcombine.high %v4345_v15, %v4353_v17  ;;  %v4457_v15 = vld [vmem:[%s15077_s13 + $0x500] sm:$0xff] }
 0x4e4   : > { %4250 = vmatprep.subr.bf16.mxu1 %v13075_v22  ;;  %v4361_v22 = vld [vmem:[%s15077_s13 + $0x200] sm:$0xff] }
 0x4e5   : > { %v13156_v40 = vcombine.low %v4361_v22, %v4369_v24  ;;  %v4465_v17 = vld [vmem:[%s15077_s13 + $0x540] sm:$0xff] }
 0x4e9   : > { %4087 = vmatpush1.bf16.xpose.msra.mxu0 %v12946_v29 }
 0x4ea   : > { %4088 = vmatprep.subr.bf16.mxu0 %v12955_v30  ;;  %v13413_v30 = vcombine.high %v4617_v25, %v4625_v27  ;;  %v4729_v25 = vld [vmem:[%s15077_s13 + $0xd80] sm:$0xff] }
 0x4eb   : > { %4251 = vmatpush1.bf16.xpose.msra.mxu1 %v13074_v21  ;;  %v13157_v21 = vcombine.high %v4361_v22, %v4369_v24  ;;  %v4473_v22 = vld [vmem:[%s15077_s13 + $0x580] sm:$0xff] }
 0x4ec   : > { %4252 = vmatprep.subr.bf16.mxu1 %v13083_v16  ;;  %v4377_v16 = vld [vmem:[%s15077_s13 + $0x280] sm:$0xff] }
 0x4ed   : > { %v13172_v32 = vcombine.low %v4377_v16, %v4385_v33  ;;  %v4481_v24 = vld [vmem:[%s15077_s13 + $0x5c0] sm:$0xff] }
 0x4ee   : > { %v4737_v27 = vld [vmem:[%s15077_s13 + $0xdc0] sm:$0xff] }
 0x4f1   : > { %4089 = vmatpush1.bf16.xpose.msra.mxu0 %v12954_v45  ;;  %v13173_v45 = vcombine.high %v4377_v16, %v4385_v33  ;;  %v4489_v16 = vld [vmem:[%s15077_s13 + $0x600] sm:$0xff] }
 0x4f2   : > { %4090 = vmatprep.subr.bf16.mxu0 %v12963_v23  ;;  %v4393_v23 = vld [vmem:[%s15077_s13 + $0x300] sm:$0xff] }
 0x4f3   : > { %4253 = vmatpush1.bf16.xpose.msra.mxu1 %v13082_v26  ;;  %v13429_v26 = vcombine.high %v4633_v35, %v4641_v36  ;;  %v4497_v33 = vld [vmem:[%s15077_s13 + $0x640] sm:$0xff] }
 0x4f4   : > { %4254 = vmatprep.subr.bf16.mxu1 %v13091_v48  ;;  %v4401_v48 = vld [vmem:[%s15077_s13 + $0x340] sm:$0xff] }
 0x4f5   : > { %v13189_v55 = vcombine.high %v4393_v23, %v4401_v48  ;;  %v13188_v61 = vcombine.low %v4393_v23, %v4401_v48  ;;  %v4745_v35 = vld [vmem:[%s15077_s13 + $0xe00] sm:$0xff] }
 0x4f6   : > { %v4753_v36 = vld [vmem:[%s15077_s13 + $0xe40] sm:$0xff] }
 0x4f7   : > { %v4505_v23 = vld [vmem:[%s15077_s13 + $0x680] sm:$0xff] }
 0x4f8   : > { %v4513_v48 = vld [vmem:[%s15077_s13 + $0x6c0] sm:$0xff] }
 0x4f9   : > { %4091 = vmatpush1.bf16.xpose.msra.mxu0 %v12962_v58  ;;  %v4409_v58 = vld [vmem:[%s15077_s13 + $0x380] sm:$0xff] }
 0x4fa   : > { %10441 = vmatprep.subr.bf16.mxu0 %v13093_v60  ;;  %v4665_v60 = vld [vmem:[%s15077_s13 + $0xb80] sm:$0xff] }
 0x4fb   : > { %4255 = vmatpush1.bf16.xpose.msra.mxu1 %v13090_v59  ;;  %v4417_v59 = vld [vmem:[%s15077_s13 + $0x3c0] sm:$0xff] }
 0x4fc   : > { %10482 = vmatprep.subr.bf16.mxu1 %v13349_v39  ;;  %v4673_v39 = vld [vmem:[%s15077_s13 + $0xbc0] sm:$0xff]  ;;  %v13205_v63 = vcombine.high %v4409_v58, %v4417_v59  ;;  %v13204_v3 = vcombine.low %v4409_v58, %v4417_v59  ;;  %v15787_v58 = vsub.s32 2, %v15700_v38  ;;  %v13557_v59 = vcombine.high %v4761_v52, %v4769_v53 }
 0x4fd   : > { %v13461_v42 = vcombine.high %v4665_v60, %v4673_v39 }
 0x500   : > { %4093 = vmatmul.mubr.bf16.vlgmr.msra.gmra.mrb[4].mxu0 %v15426_v57 }
 0x501   : > { %10442 = vmatpush1.bf16.msra.mxu0 %v13092_v47  ;;  %10473 = vmatprep.mubr.bf16.mxu0 %v15729_v7  ;;  %v4681_v47 = vld [vmem:[%s15077_s13 + $0xc00] sm:$0xff] }
 0x502   : > { %4257 = vmatmul.mubr.bf16.vlgmr.msra.gmra.mrb[4].mxu1 %v15426_v57  ;;  %10443 = vmatprep.subr.bf16.mxu0 %v13109_v5  ;;  %v4609_v57 = vld [vmem:[%s15077_s13 + $0x9c0] sm:$0xff]  ;;  %v13221_v5 = vcombine.high %v4425_v0, %v4433_v1  ;;  %v13477_v6 = vcombine.high %v4681_v47, %v4689_v2 }
 0x503   : > { %10483 = vmatpush1.bf16.msra.mxu1 %v13348_v4  ;;  %10514 = vmatprep.mubr.bf16.mxu1 %v15734_v10  ;;  %v13397_v13 = vcombine.high %v4601_v18, %v4609_v57  ;;  %v13396_v29 = vcombine.low %v4601_v18, %v4609_v57  ;;  %v13460_v4 = vcombine.low %v4665_v60, %v4673_v39  ;;  %v4713_v18 = vld [vmem:[%s15077_s13 + $0xd00] sm:$0xff] }
 0x504   : > { %10484 = vmatprep.subr.bf16.mxu1 %v13365_v46  ;;  %v4449_v46 = vld [vmem:[%s15077_s13 + $0x4c0] sm:$0xff] }
 0x505   : > { %10444 = vmatpush1.bf16.msra.mxu0 %v13108_v11  ;;  %v13220_v11 = vcombine.low %v4425_v0, %v4433_v1  ;;  %v4721_v57 = vld [vmem:[%s15077_s13 + $0xd40] sm:$0xff]  ;;  %v13556_v0 = vcombine.low %v4761_v52, %v4769_v53 }
 0x506   : > { %10445 = vmatprep.subr.bf16.mxu0 %v13125_v14  ;;  %v13237_v14 = vcombine.high %v4441_v43, %v4449_v46  ;;  %v4521_v60 = vld [vmem:[%s15077_s13 + $0x700] sm:$0xff] }
 0x507   : > { %10485 = vmatpush1.bf16.msra.mxu1 %v13364_v12  ;;  %v13476_v12 = vcombine.low %v4681_v47, %v4689_v2  ;;  %v4529_v39 = vld [vmem:[%s15077_s13 + $0x740] sm:$0xff]  ;;  %v992_v47 = vrot.slane %v15708_v50, %v15787_v58 }
 0x508   : > { %10486 = vmatprep.subr.bf16.mxu1 %v13381_v34  ;;  %v13493_v34 = vcombine.high %v4697_v8, %v4705_v9  ;;  %v13317_v1 = vcombine.high %v4521_v60, %v4529_v39  ;;  %v5113_v52 = vld [vmem:[%s15077_s13 + $0x1980] sm:$0xff] }
 0x509   : > { %10446 = vmatpush1.bf16.msra.mxu0 %v13124_v19  ;;  %v13236_v19 = vcombine.low %v4441_v43, %v4449_v46  ;;  %v13316_v43 = vcombine.low %v4521_v60, %v4529_v39  ;;  %v5121_v53 = vld [vmem:[%s15077_s13 + $0x19c0] sm:$0xff] }
 0x50a   : > { %10447 = vmatprep.subr.bf16.mxu0 %v13141_v31  ;;  %v13253_v31 = vcombine.high %v4457_v15, %v4465_v17  ;;  %v4873_v60 = vld [vmem:[%s15077_s13 + $0x1200] sm:$0xff] }
 0x50b   : > { %10487 = vmatpush1.bf16.msra.mxu1 %v13380_v20  ;;  %v13492_v20 = vcombine.low %v4697_v8, %v4705_v9  ;;  %v4881_v39 = vld [vmem:[%s15077_s13 + $0x1240] sm:$0xff] }
 0x50c   : > { %10488 = vmatprep.subr.bf16.mxu1 %v13397_v13  ;;  %v13509_v13 = vcombine.high %v4713_v18, %v4721_v57 }
 0x50d   : > { %10448 = vmatpush1.bf16.msra.mxu0 %v13140_v28  ;;  %v13252_v28 = vcombine.low %v4457_v15, %v4465_v17  ;;  %v5065_v15 = vld [vmem:[%s15077_s13 + $0x1800] sm:$0xff] }
 0x50e   : > { %10449 = vmatprep.subr.bf16.mxu0 %v13157_v21  ;;  %v13269_v21 = vcombine.high %v4473_v22, %v4481_v24  ;;  %v5073_v17 = vld [vmem:[%s15077_s13 + $0x1840] sm:$0xff] }
 0x50f   : > { %10489 = vmatpush1.bf16.msra.mxu1 %v13396_v29  ;;  %v13508_v29 = vcombine.low %v4713_v18, %v4721_v57 }
 0x510   : > { %10490 = vmatprep.subr.bf16.mxu1 %v13413_v30  ;;  %v13525_v30 = vcombine.high %v4729_v25, %v4737_v27 }
 0x511   : > { %10450 = vmatpush1.bf16.msra.mxu0 %v13156_v40  ;;  %v13268_v40 = vcombine.low %v4473_v22, %v4481_v24  ;;  %v5081_v22 = vld [vmem:[%s15077_s13 + $0x1880] sm:$0xff] }
 0x512   : > { %10451 = vmatprep.subr.bf16.mxu0 %v13173_v45  ;;  %v13285_v45 = vcombine.high %v4489_v16, %v4497_v33  ;;  %v5089_v24 = vld [vmem:[%s15077_s13 + $0x18c0] sm:$0xff] }
 0x513   : > { %10491 = vmatpush1.bf16.msra.mxu1 %v13412_v44  ;;  %v13524_v44 = vcombine.low %v4729_v25, %v4737_v27 }
 0x514   : > { %10492 = vmatprep.subr.bf16.mxu1 %v13429_v26  ;;  %v13541_v26 = vcombine.high %v4745_v35, %v4753_v36 }
 0x515   : > { %10452 = vmatpush1.bf16.msra.mxu0 %v13172_v32  ;;  %v13284_v32 = vcombine.low %v4489_v16, %v4497_v33  ;;  %v4841_v16 = vld [vmem:[%s15077_s13 + $0x1100] sm:$0xff] }
 0x516   : > { %10453 = vmatprep.subr.bf16.mxu0 %v13189_v55  ;;  %v13540_v55 = vcombine.low %v4745_v35, %v4753_v36  ;;  %v4849_v33 = vld [vmem:[%s15077_s13 + $0x1140] sm:$0xff] }
 0x517   : > { %10493 = vmatpush1.bf16.msra.mxu1 %v13428_v54  ;;  %v15784_v54 = vsub.s32 0, %v15700_v38  ;;  %v5097_v35 = vld [vmem:[%s15077_s13 + $0x1900] sm:$0xff] }
 0x518   : > { %10494 = vmatprep.subr.bf16.mxu1 %v13445_v56  ;;  %v13301_v56 = vcombine.high %v4505_v23, %v4513_v48  ;;  %v5105_v36 = vld [vmem:[%s15077_s13 + $0x1940] sm:$0xff] }
 0x519   : > { %10454 = vmatpush1.bf16.msra.mxu0 %v13188_v61  ;;  %v4777_v61 = vld [vmem:[%s15077_s13 + $0xf00] sm:$0xff] }
 0x51a   : > { %10455 = vmatprep.subr.bf16.mxu0 %v13205_v63  ;;  %v13300_v63 = vcombine.low %v4505_v23, %v4513_v48  ;;  %v4857_v23 = vld [vmem:[%s15077_s13 + $0x1180] sm:$0xff] }
 0x51b   : > { %10495 = vmatpush1.bf16.msra.mxu1 %v13444_v62  ;;  %v4785_v62 = vld [vmem:[%s15077_s13 + $0xf40] sm:$0xff] }
 0x51c   : > { %10496 = vmatprep.subr.bf16.mxu1 %v13461_v42  ;;  %v984_v42 = vrot.slane %v15708_v50, %v15784_v54  ;;  %v13573_v2 = vcombine.high %v4777_v61, %v4785_v62  ;;  %v13572_v8 = vcombine.low %v4777_v61, %v4785_v62  ;;  %v4865_v48 = vld [vmem:[%s15077_s13 + $0x11c0] sm:$0xff] }
 0x51d   : > { %10456 = vmatpush1.bf16.msra.mxu0 %v13204_v3  ;;  %v4537_v3 = vld [vmem:[%s15077_s13 + $0x780] sm:$0xff] }
 0x51e   : > { %10457 = vmatprep.subr.bf16.mxu0 %v13221_v5  ;;  %v4793_v5 = vld [vmem:[%s15077_s13 + $0xf80] sm:$0xff]  ;;  %v14125_v46 = vadd.f32 %v15542_v37, %v984_v42  ;;  %v13908_v42 = vcombine.low %v5113_v52, %v5121_v53 }
 0x51f   : > { %10497 = vmatpush1.bf16.msra.mxu1 %v13460_v4  ;;  %v4545_v4 = vld [vmem:[%s15077_s13 + $0x7c0] sm:$0xff] }
 0x520   : > { %10498 = vmatprep.subr.bf16.mxu1 %v13477_v6  ;;  %v4801_v6 = vld [vmem:[%s15077_s13 + $0xfc0] sm:$0xff]  ;;  %v13333_v9 = vcombine.high %v4537_v3, %v4545_v4  ;;  %v13332_v18 = vcombine.low %v4537_v3, %v4545_v4  ;;  %v4265_v57 = vmax.f32 %v14125_v46, 0.0 }
 0x521   : > { %10458 = vmatpush1.bf16.msra.mxu0 %v13220_v11  ;;  %v14127_v11 = vadd.f32 %v15546_v41, %v992_v47  ;;  %v13588_v37 = vcombine.low %v4793_v5, %v4801_v6  ;;  %v13861_v41 = vcombine.high %v5065_v15, %v5073_v17  ;;  %v5129_v61 = vld [vmem:[%s15077_s13 + $0x1a00] sm:$0xff] }
 0x522   : > { %10459 = vmatprep.subr.bf16.mxu0 %v13237_v14  ;;  %v4809_v14 = vld [vmem:[%s15077_s13 + $0x1000] sm:$0xff]  ;;  %v15811_v27 = vpack.c.bf16 %v4265_v57, %v4265_v57 }
 0x523   : > { %10499 = vmatpush1.bf16.msra.mxu1 %v13476_v12  ;;  %v13589_v12 = vcombine.high %v4793_v5, %v4801_v6  ;;  %v5137_v62 = vld [vmem:[%s15077_s13 + $0x1a40] sm:$0xff]  ;;  %v13668_v5 = vcombine.low %v4873_v60, %v4881_v39 }
 0x524   : > { %10500 = vmatprep.subr.bf16.mxu1 %v13493_v34  ;;  %v4817_v34 = vld [vmem:[%s15077_s13 + $0x1040] sm:$0xff]  ;;  %v13924_v6 = vcombine.low %v5129_v61, %v5137_v62 }
 0x525   : > { %10460 = vmatpush1.bf16.msra.mxu0 %v13236_v19  ;;  %v13605_v19 = vcombine.high %v4809_v14, %v4817_v34  ;;  %v13604_v25 = vcombine.low %v4809_v14, %v4817_v34  ;;  %v4889_v47 = vld [vmem:[%s15077_s13 + $0x1280] sm:$0xff] }
 0x526   : > { %10461 = vmatprep.subr.bf16.mxu0 %v13253_v31  ;;  %v4825_v31 = vld [vmem:[%s15077_s13 + $0x1080] sm:$0xff] }
 0x527   : > { %10501 = vmatpush1.bf16.msra.mxu1 %v13492_v20  ;;  %v4267_v20 = vmax.f32 %v14127_v11, 0.0  ;;  %v5145_v3 = vld [vmem:[%s15077_s13 + $0x1a80] sm:$0xff] }
 0x528   : > { %10502 = vmatprep.subr.bf16.mxu1 %v13509_v13  ;;  %v4833_v13 = vld [vmem:[%s15077_s13 + $0x10c0] sm:$0xff] }
 0x529   : > { %10462 = vmatpush1.bf16.msra.mxu0 %v13252_v28  ;;  %v13860_v28 = vcombine.low %v5065_v15, %v5073_v17  ;;  %v5153_v4 = vld [vmem:[%s15077_s13 + $0x1ac0] sm:$0xff] }
 0x52a   : > { %10463 = vmatprep.subr.bf16.mxu0 %v13269_v21  ;;  %v15813_v21 = vpack.c.bf16 %v4267_v20, %v4267_v20  ;;  %v13941_v46 = vcombine.high %v5145_v3, %v5153_v4  ;;  %v5161_v11 = vld [vmem:[%s15077_s13 + $0x1b00] sm:$0xff]  ;;  %v13940_v34 = vcombine.low %v5145_v3, %v5153_v4 }
 0x52b   : > { %10503 = vmatpush1.bf16.msra.mxu1 %v13508_v29  ;;  %v13621_v29 = vcombine.high %v4825_v31, %v4833_v13  ;;  %v4929_v57 = vld [vmem:[%s15077_s13 + $0x13c0] sm:$0xff] }
 0x52c   : > { %10504 = vmatprep.subr.bf16.mxu1 %v13525_v30  ;;  %v13877_v30 = vcombine.high %v5081_v22, %v5089_v24  ;;  %v5241_v3 = vld [vmem:[%s15077_s13 + $0x1d80] sm:$0xff] }
 0x52d   : > { %10464 = vmatpush1.bf16.msra.mxu0 %v13268_v40  ;;  %v13620_v40 = vcombine.low %v4825_v31, %v4833_v13  ;;  %v5249_v4 = vld [vmem:[%s15077_s13 + $0x1dc0] sm:$0xff] }
 0x52e   : > { %10465 = vmatprep.subr.bf16.mxu0 %v13285_v45  ;;  %v13637_v45 = vcombine.high %v4841_v16, %v4849_v33 }
 0x52f   : > { %10505 = vmatpush1.bf16.msra.mxu1 %v13524_v44  ;;  %v13876_v44 = vcombine.low %v5081_v22, %v5089_v24  ;;  %v4937_v22 = vld [vmem:[%s15077_s13 + $0x1400] sm:$0xff] }
 0x530   : > { %10506 = vmatprep.subr.bf16.mxu1 %v13541_v26  ;;  %v13893_v26 = vcombine.high %v5097_v35, %v5105_v36  ;;  %v4945_v24 = vld [vmem:[%s15077_s13 + $0x1440] sm:$0xff] }
 0x531   : > { %10466 = vmatpush1.bf16.msra.mxu0 %v13284_v32  ;;  %v13636_v32 = vcombine.low %v4841_v16, %v4849_v33  ;;  %v13733_v16 = vcombine.high %v4937_v22, %v4945_v24  ;;  %v15846_v33 = vld [vmem:[%s15077_s13 + $0x8] sm:$0xff] }
 0x532   : > { %10467 = vmatprep.subr.bf16.mxu0 %v13301_v56  ;;  %v13653_v56 = vcombine.high %v4857_v23, %v4865_v48 }
 0x533   : > { %10507 = vmatpush1.bf16.msra.mxu1 %v13540_v55  ;;  %v13892_v55 = vcombine.low %v5097_v35, %v5105_v36  ;;  %v15849_v35 = vld [vmem:[%s15077_s13 + $0x48] sm:$0xff] }
 0x534   : > { %10508 = vmatprep.subr.bf16.mxu1 %v13557_v59  ;;  %v13909_v59 = vcombine.high %v5113_v52, %v5121_v53  ;;  %v15852_v36 = vld [vmem:[%s15077_s13 + $0x808] sm:$0xff]  ;;  %v13094_v52 = vcombine.low %v15846_v33, %v15849_v35 }
 0x535   : > { %10468 = vmatpush1.bf16.msra.mxu0 %v13300_v63  ;;  %v13652_v63 = vcombine.low %v4857_v23, %v4865_v48  ;;  %v5209_v23 = vld [vmem:[%s15077_s13 + $0x1c80] sm:$0xff] }
 0x536   : > { %10469 = vmatprep.subr.bf16.mxu0 %v13317_v1  ;;  %v13925_v1 = vcombine.high %v5129_v61, %v5137_v62  ;;  %v5217_v48 = vld [vmem:[%s15077_s13 + $0x1cc0] sm:$0xff] }
 0x537   : > { %10509 = vmatpush1.bf16.msra.mxu1 %v13556_v0  ;;  %v13669_v0 = vcombine.high %v4873_v60, %v4881_v39  ;;  %v4969_v60 = vld [vmem:[%s15077_s13 + $0x1500] sm:$0xff] }
 0x538   : > { %10510 = vmatprep.subr.bf16.mxu1 %v13573_v2  ;;  %v4897_v2 = vld [vmem:[%s15077_s13 + $0x12c0] sm:$0xff] }
 0x539   : > { %10470 = vmatpush1.bf16.msra.mxu0 %v13316_v43  ;;  %v13685_v43 = vcombine.high %v4889_v47, %v4897_v2  ;;  %v13684_v14 = vcombine.low %v4889_v47, %v4897_v2  ;;  %v4977_v39 = vld [vmem:[%s15077_s13 + $0x1540] sm:$0xff] }
 0x53a   : > { %10471 = vmatprep.subr.bf16.mxu0 %v13333_v9  ;;  %v4913_v9 = vld [vmem:[%s15077_s13 + $0x1340] sm:$0xff] }
 0x53b   : > { %10511 = vmatpush1.bf16.msra.mxu1 %v13572_v8  ;;  %v4905_v8 = vld [vmem:[%s15077_s13 + $0x1300] sm:$0xff] }
 0x53c   : > { %10512 = vmatprep.subr.bf16.mxu1 %v13589_v12  ;;  %v5169_v12 = vld [vmem:[%s15077_s13 + $0x1b40] sm:$0xff]  ;;  %v13701_v15 = vcombine.high %v4905_v8, %v4913_v9  ;;  %v13700_v20 = vcombine.low %v4905_v8, %v4913_v9 }
 0x53d   : > { %10472 = vmatpush1.bf16.msra.mxu0 %v13332_v18  ;;  %v13957_v17 = vcombine.high %v5161_v11, %v5169_v12  ;;  %v4921_v18 = vld [vmem:[%s15077_s13 + $0x1380] sm:$0xff] }
 0x53e   : > { %10523 = vmatprep.subr.bf16.mxu0 %v13605_v19  ;;  %v5185_v19 = vld [vmem:[%s15077_s13 + $0x1bc0] sm:$0xff]  ;;  %v13717_v31 = vcombine.high %v4921_v18, %v4929_v57 }
 0x53f   : > { %10513 = vmatpush1.bf16.msra.mxu1 %v13588_v37  ;;  %v5177_v37 = vld [vmem:[%s15077_s13 + $0x1b80] sm:$0xff] }
 0x540   : > { %10564 = vmatprep.subr.bf16.mxu1 %v13861_v41  ;;  %10474 = vmatmul.mubr.bf16.vlgmr.msra.gmra.mrb[8].mxu0 %v15811_v27  ;;  %v13956_v41 = vcombine.low %v5161_v11, %v5169_v12  ;;  %v13973_v13 = vcombine.high %v5177_v37, %v5185_v19  ;;  %v5225_v61 = vld [vmem:[%s15077_s13 + $0x1d00] sm:$0xff] }
 0x541   : > { %10524 = vmatpush1.bf16.msra.mxu0 %v13604_v25  ;;  %v5193_v25 = vld [vmem:[%s15077_s13 + $0x1c00] sm:$0xff] }
 0x542   : > { %10515 = vmatmul.mubr.bf16.vlgmr.msra.gmra.mrb[8].mxu1 %v15813_v21  ;;  %10525 = vmatprep.subr.bf16.mxu0 %v13621_v29  ;;  %v13716_v29 = vcombine.low %v4921_v18, %v4929_v57  ;;  %v5233_v62 = vld [vmem:[%s15077_s13 + $0x1d40] sm:$0xff] }
 0x543   : > { %10565 = vmatpush1.bf16.msra.mxu1 %v13860_v28  ;;  %v5201_v28 = vld [vmem:[%s15077_s13 + $0x1c40] sm:$0xff] }
 0x544   : > { %10566 = vmatprep.subr.bf16.mxu1 %v13877_v30  ;;  %v13972_v30 = vcombine.low %v5177_v37, %v5185_v19  ;;  %v4985_v47 = vld [vmem:[%s15077_s13 + $0x1580] sm:$0xff] }
 0x545   : > { %10526 = vmatpush1.bf16.msra.mxu0 %v13620_v40  ;;  %v13989_v40 = vcombine.high %v5193_v25, %v5201_v28  ;;  %v4993_v2 = vld [vmem:[%s15077_s13 + $0x15c0] sm:$0xff] }
 0x546   : > { %10527 = vmatprep.subr.bf16.mxu0 %v13637_v45  ;;  %v4961_v45 = vld [vmem:[%s15077_s13 + $0x14c0] sm:$0xff] }
 0x547   : > { %10567 = vmatpush1.bf16.msra.mxu1 %v13876_v44  ;;  %v4953_v44 = vld [vmem:[%s15077_s13 + $0x1480] sm:$0xff] }
 0x548   : > { %10568 = vmatprep.subr.bf16.mxu1 %v13893_v26  ;;  %v15857_v26 = vld [vmem:[%s15077_s13 + $0x848] sm:$0xff]  ;;  %v5001_v8 = vld [vmem:[%s15077_s13 + $0x1600] sm:$0xff] }
 0x549   : > { %10528 = vmatpush1.bf16.msra.mxu0 %v13636_v32  ;;  %v13350_v53 = vcombine.low %v15852_v36, %v15857_v26  ;;  %v13732_v32 = vcombine.low %v4937_v22, %v4945_v24  ;;  %v5009_v9 = vld [vmem:[%s15077_s13 + $0x1640] sm:$0xff] }
 0x54a   : > { %10529 = vmatprep.subr.bf16.mxu0 %v13653_v56  ;;  %v13749_v56 = vcombine.high %v4953_v44, %v4961_v45  ;;  %v5257_v11 = vld [vmem:[%s15077_s13 + $0x1e00] sm:$0xff] }
 0x54b   : > { %10569 = vmatpush1.bf16.msra.mxu1 %v13892_v55  ;;  %v13988_v55 = vcombine.low %v5193_v25, %v5201_v28  ;;  %v5265_v12 = vld [vmem:[%s15077_s13 + $0x1e40] sm:$0xff] }
 0x54c   : > { %10570 = vmatprep.subr.bf16.mxu1 %v13909_v59  ;;  %v14005_v59 = vcombine.high %v5209_v23, %v5217_v48  ;;  %v5017_v18 = vld [vmem:[%s15077_s13 + $0x1680] sm:$0xff] }
 0x54d   : > { %10530 = vmatpush1.bf16.msra.mxu0 %v13652_v63  ;;  %v13748_v63 = vcombine.low %v4953_v44, %v4961_v45  ;;  %v5025_v57 = vld [vmem:[%s15077_s13 + $0x16c0] sm:$0xff] }
 0x54e   : > { %10531 = vmatprep.subr.bf16.mxu0 %v13669_v0  ;;  %v13765_v0 = vcombine.high %v4969_v60, %v4977_v39  ;;  %v5273_v37 = vld [vmem:[%s15077_s13 + $0x1e80] sm:$0xff] }
 0x54f   : > { %10571 = vmatpush1.bf16.msra.mxu1 %v13908_v42  ;;  %v14004_v42 = vcombine.low %v5209_v23, %v5217_v48  ;;  %v5281_v19 = vld [vmem:[%s15077_s13 + $0x1ec0] sm:$0xff] }
 0x550   : > { %10572 = vmatprep.subr.bf16.mxu1 %v13925_v1  ;;  %v14021_v1 = vcombine.high %v5225_v61, %v5233_v62  ;;  %v5033_v22 = vld [vmem:[%s15077_s13 + $0x1700] sm:$0xff] }
 0x551   : > { %10532 = vmatpush1.bf16.msra.mxu0 %v13668_v5  ;;  %v13764_v5 = vcombine.low %v4969_v60, %v4977_v39  ;;  %v5041_v24 = vld [vmem:[%s15077_s13 + $0x1740] sm:$0xff] }
 0x552   : > { %10533 = vmatprep.subr.bf16.mxu0 %v13685_v43  ;;  %v13781_v43 = vcombine.high %v4985_v47, %v4993_v2  ;;  %v5289_v25 = vld [vmem:[%s15077_s13 + $0x1f00] sm:$0xff] }
 0x553   : > { %10573 = vmatpush1.bf16.msra.mxu1 %v13924_v6  ;;  %v14020_v6 = vcombine.low %v5225_v61, %v5233_v62  ;;  %v5297_v28 = vld [vmem:[%s15077_s13 + $0x1f40] sm:$0xff]  ;;  %v13095_v61 = vcombine.high %v15846_v33, %v15849_v35  ;;  %v13351_v62 = vcombine.high %v15852_v36, %v15857_v26  ;;  %v4354_v33 = vld [vmem:[%s15077_s13 + $0x1c8] sm:$0xff] }
 0x554   : > { %10574 = vmatprep.subr.bf16.mxu1 %v13941_v46  ;;  %v14037_v46 = vcombine.high %v5241_v3, %v5249_v4  ;;  %v5049_v44 = vld [vmem:[%s15077_s13 + $0x1780] sm:$0xff]  ;;  %v4602_v35 = vld [vmem:[%s15077_s13 + $0x988] sm:$0xff] }
 0x555   : > { %10534 = vmatpush1.bf16.msra.mxu0 %v13684_v14  ;;  %v13780_v14 = vcombine.low %v4985_v47, %v4993_v2  ;;  %v5057_v45 = vld [vmem:[%s15077_s13 + $0x17c0] sm:$0xff] }
 0x556   : > { %10535 = vmatprep.subr.bf16.mxu0 %v13701_v15  ;;  %v13797_v15 = vcombine.high %v5001_v8, %v5009_v9  ;;  %v5305_v23 = vld [vmem:[%s15077_s13 + $0x1f80] sm:$0xff]  ;;  %v13844_v60 = vcombine.low %v5049_v44, %v5057_v45 }
 0x557   : > { %10575 = vmatpush1.bf16.msra.mxu1 %v13940_v34  ;;  %v14036_v34 = vcombine.low %v5241_v3, %v5249_v4  ;;  %v5313_v48 = vld [vmem:[%s15077_s13 + $0x1fc0] sm:$0xff] }
 0x558   : > { %10576 = vmatprep.subr.bf16.mxu1 %v13957_v17  ;;  %v14053_v17 = vcombine.high %v5257_v11, %v5265_v12  ;;  %v14100_v39 = vcombine.low %v5305_v23, %v5313_v48 }
 0x559   : > { %10536 = vmatpush1.bf16.msra.mxu0 %v13700_v20  ;;  %v13796_v20 = vcombine.low %v5001_v8, %v5009_v9 }
 0x55a   : > { %10537 = vmatprep.subr.bf16.mxu0 %v13717_v31  ;;  %v13813_v31 = vcombine.high %v5017_v18, %v5025_v57 }
 0x55b   : > { %10577 = vmatpush1.bf16.msra.mxu1 %v13956_v41  ;;  %v14052_v41 = vcombine.low %v5257_v11, %v5265_v12 }
 0x55c   : > { %10578 = vmatprep.subr.bf16.mxu1 %v13973_v13  ;;  %v14069_v13 = vcombine.high %v5273_v37, %v5281_v19 }
 0x55d   : > { %10538 = vmatpush1.bf16.msra.mxu0 %v13716_v29  ;;  %v13812_v29 = vcombine.low %v5017_v18, %v5025_v57 }
 0x55e   : > { %10539 = vmatprep.subr.bf16.mxu0 %v13733_v16  ;;  %v13829_v16 = vcombine.high %v5033_v22, %v5041_v24 }
 0x55f   : > { %10579 = vmatpush1.bf16.msra.mxu1 %v13972_v30  ;;  %v14068_v30 = vcombine.low %v5273_v37, %v5281_v19  ;;  %v4314_v19 = vld [vmem:[%s15077_s13 + $0x88] sm:$0xff] }
 0x560   : > { %10580 = vmatprep.subr.bf16.mxu1 %v13989_v40  ;;  %v14085_v40 = vcombine.high %v5289_v25, %v5297_v28 }
 0x561   : > { %10540 = vmatpush1.bf16.msra.mxu0 %v13732_v32  ;;  %v13828_v32 = vcombine.low %v5033_v22, %v5041_v24 }
 0x562   : > { %10541 = vmatprep.subr.bf16.mxu0 %v13749_v56  ;;  %v13845_v56 = vcombine.high %v5049_v44, %v5057_v45  ;;  %v4594_v44 = vld [vmem:[%s15077_s13 + $0x948] sm:$0xff] }
 0x563   : > { %10581 = vmatpush1.bf16.msra.mxu1 %v13988_v55  ;;  %v14084_v55 = vcombine.low %v5289_v25, %v5297_v28 }
 0x564   : > { %10582 = vmatprep.subr.bf16.mxu1 %v14005_v59  ;;  %v14101_v59 = vcombine.high %v5305_v23, %v5313_v48 }
 0x565   : > { %10542 = vmatpush1.bf16.msra.mxu0 %v13748_v63  ;;  %v15894_v63 = vsub.s32 4, %v15700_v38 }
 0x566   : > { %10543 = vmatprep.subr.bf16.mxu0 %v13765_v0  ;;  %v15900_v0 = vsub.s32 5, %v15700_v38 }
 0x567   : > { %10583 = vmatpush1.bf16.msra.mxu1 %v14004_v42  ;;  %v15897_v42 = vsub.s32 6, %v15700_v38  ;;  %v1000_v47 = vrot.slane %v15708_v50, %v15894_v63 }
 0x568   : > { %10584 = vmatprep.subr.bf16.mxu1 %v14021_v1  ;;  %v15903_v1 = vsub.s32 7, %v15700_v38  ;;  %v1004_v3 = vrot.slane %v15708_v50, %v15900_v0 }
 0x569   : > { %10544 = vmatpush1.bf16.msra.mxu0 %v13764_v5  ;;  %v1008_v2 = vrot.slane %v15708_v50, %v15897_v42 }
 0x56a   : > { %10545 = vmatprep.subr.bf16.mxu0 %v13781_v43  ;;  %v1012_v4 = vrot.slane %v15708_v50, %v15903_v1 }
 0x56b   : > { %10585 = vmatpush1.bf16.msra.mxu1 %v14020_v6 }
 0x56c   : > { %10586 = vmatprep.subr.bf16.mxu1 %v14037_v46 }
 0x56d   : > { %10546 = vmatpush1.bf16.msra.mxu0 %v13780_v14 }
 0x56e   : > { %10547 = vmatprep.subr.bf16.mxu0 %v13797_v15 }
 0x56f   : > { %10587 = vmatpush1.bf16.msra.mxu1 %v14036_v34 }
 0x570   : > { %10588 = vmatprep.subr.bf16.mxu1 %v14053_v17 }
 0x571   : > { %10548 = vmatpush1.bf16.msra.mxu0 %v13796_v20  ;;  %v4322_v20 = vld [vmem:[%s15077_s13 + $0xc8] sm:$0xff] }
 0x572   : > { %10549 = vmatprep.subr.bf16.mxu0 %v13813_v31  ;;  %v4570_v31 = vld [vmem:[%s15077_s13 + $0x888] sm:$0xff]  ;;  %v13111_v28 = vcombine.high %v4314_v19, %v4322_v20  ;;  %v13110_v45 = vcombine.low %v4314_v19, %v4322_v20 }
 0x573   : > { %10589 = vmatpush1.bf16.msra.mxu1 %v14052_v41  ;;  %v4418_v19 = vld [vmem:[%s15077_s13 + $0x3c8] sm:$0xff] }
 0x574   : > { %10590 = vmatprep.subr.bf16.mxu1 %v14069_v13  ;;  %v4578_v13 = vld [vmem:[%s15077_s13 + $0x8c8] sm:$0xff] }
 0x575   : > { %10550 = vmatpush1.bf16.msra.mxu0 %v13812_v29  ;;  %v4330_v29 = vld [vmem:[%s15077_s13 + $0x108] sm:$0xff]  ;;  %v13366_v23 = vcombine.low %v4570_v31, %v4578_v13 }
 0x576   : > { %10551 = vmatprep.subr.bf16.mxu0 %v13829_v16  ;;  %v13367_v16 = vcombine.high %v4570_v31, %v4578_v13  ;;  %v4666_v20 = vld [vmem:[%s15077_s13 + $0xb88] sm:$0xff] }
 0x577   : > { %10591 = vmatpush1.bf16.msra.mxu1 %v14068_v30  ;;  %v4338_v30 = vld [vmem:[%s15077_s13 + $0x148] sm:$0xff] }
 0x578   : > { %10592 = vmatprep.subr.bf16.mxu1 %v14085_v40  ;;  %v4586_v40 = vld [vmem:[%s15077_s13 + $0x908] sm:$0xff]  ;;  %v13127_v48 = vcombine.high %v4330_v29, %v4338_v30  ;;  %v13126_v36 = vcombine.low %v4330_v29, %v4338_v30 }
 0x579   : > { %10552 = vmatpush1.bf16.msra.mxu0 %v13828_v32  ;;  %v13383_v32 = vcombine.high %v4586_v40, %v4594_v44  ;;  %v13382_v26 = vcombine.low %v4586_v40, %v4594_v44  ;;  %v4674_v31 = vld [vmem:[%s15077_s13 + $0xbc8] sm:$0xff] }
 0x57a   : > { %10553 = vmatprep.subr.bf16.mxu0 %v13845_v56  ;;  %v13463_v30 = vcombine.high %v4666_v20, %v4674_v31  ;;  %v4434_v40 = vld [vmem:[%s15077_s13 + $0x448] sm:$0xff] }
 0x57b   : > { %10593 = vmatpush1.bf16.msra.mxu1 %v14084_v55  ;;  %v4346_v55 = vld [vmem:[%s15077_s13 + $0x188] sm:$0xff] }
 0x57c   : > { %10594 = vmatprep.subr.bf16.mxu1 %v14101_v59  ;;  %v4362_v59 = vld [vmem:[%s15077_s13 + $0x208] sm:$0xff] }
 0x57d   : > { %10554 = vmatpush1.bf16.msra.mxu0 %v13844_v60  ;;  %v4370_v60 = vld [vmem:[%s15077_s13 + $0x248] sm:$0xff] }
 0x57e   : > { %10605 = vmatprep.subr.bf16.mxu0 %v13095_v61  ;;  %v4626_v61 = vld [vmem:[%s15077_s13 + $0xa48] sm:$0xff] }
 0x57f   : > { %10595 = vmatpush1.bf16.msra.mxu1 %v14100_v39  ;;  %v4618_v39 = vld [vmem:[%s15077_s13 + $0xa08] sm:$0xff] }
 0x580   : > { %10646 = vmatprep.subr.bf16.mxu1 %v13351_v62  ;;  %v13142_v62 = vcombine.low %v4346_v55, %v4354_v33  ;;  %v4682_v44 = vld [vmem:[%s15077_s13 + $0xc08] sm:$0xff] }
 0x5d3   : > { %v4094_v5 = vpop.f32.mrb[4].mxu0 }
 0x5d4   : > { %v14129_v6 = vadd.f32 %v4094_v5, %v1000_v47  ;;  %v4096_v46 = vpop.f32.mrb[5].mxu0  ;;  %v4386_v5 = vld [vmem:[%s15077_s13 + $0x2c8] sm:$0xff] }
 0x5d5   : > { %v4258_v43 = vpop.f32.mrb[4].mxu1  ;;  %v14130_v9 = vadd.f32 %v4096_v46, %v1004_v3  ;;  %v4098_v12 = vpop.f32.mrb[6].mxu0  ;;  %v13415_v3 = vcombine.high %v4618_v39, %v4626_v61  ;;  %v13158_v46 = vcombine.low %v4362_v59, %v4370_v60 }
 0x5d6   : > { %v14131_v8 = vadd.f32 %v4258_v43, %v1008_v2  ;;  %v4260_v11 = vpop.f32.mrb[5].mxu1  ;;  %v4269_v14 = vmax.f32 %v14129_v6, 0.0  ;;  %v4099_v17 = vpop.f32.mrb[7].mxu0  ;;  %v13159_v2 = vcombine.high %v4362_v59, %v4370_v60  ;;  %v4634_v6 = vld [vmem:[%s15077_s13 + $0xa88] sm:$0xff] }
 0x5d7   : > { %v14132_v34 = vadd.f32 %v4260_v11, %v1012_v4  ;;  %v4262_v15 = vpop.f32.mrb[6].mxu1  ;;  %v4270_v50 = vmax.f32 %v14130_v9, 0.0  ;;  %v4378_v4 = vld [vmem:[%s15077_s13 + $0x288] sm:$0xff] }
 0x5d8   : > { %v4271_v18 = vmax.f32 %v14131_v8, 0.0  ;;  %v4263_v57 = vpop.f32.mrb[7].mxu1  ;;  %v15919_v22 = vpack.c.bf16 %v4269_v14, %v4269_v14  ;;  %v4642_v43 = vld [vmem:[%s15077_s13 + $0xac8] sm:$0xff]  ;;  %v13414_v8 = vcombine.low %v4618_v39, %v4626_v61  ;;  %v13175_v9 = vcombine.high %v4378_v4, %v4386_v5 }
 0x5d9   : > { %v4272_v37 = vmax.f32 %v14132_v34, 0.0  ;;  %v15915_v41 = vpack.c.bf16 %v4270_v50, %v4270_v50  ;;  %v13431_v11 = vcombine.high %v4634_v6, %v4642_v43  ;;  %v4394_v12 = vld [vmem:[%s15077_s13 + $0x308] sm:$0xff]  ;;  %v13174_v17 = vcombine.low %v4378_v4, %v4386_v5 }
 0x5da   : > { %v15923_v25 = vpack.c.bf16 %v4271_v18, %v4271_v18  ;;  %v4402_v14 = vld [vmem:[%s15077_s13 + $0x348] sm:$0xff]  ;;  %v13430_v18 = vcombine.low %v4634_v6, %v4642_v43 }
 0x5db   : > { %v15921_v24 = vpack.c.bf16 %v4272_v37, %v4272_v37  ;;  %10555 = vmatprep.mubr.bf16.mxu0 %v15915_v41  ;;  %v4650_v34 = vld [vmem:[%s15077_s13 + $0xb08] sm:$0xff]  ;;  %v13191_v50 = vcombine.high %v4394_v12, %v4402_v14  ;;  %v13190_v13 = vcombine.low %v4394_v12, %v4402_v14 }
 0x5dc   : > { %10556 = vmatmul.mubr.bf16.vlgmr.msra.gmra.mrb[12].mxu0 %v15919_v22  ;;  %v4658_v15 = vld [vmem:[%s15077_s13 + $0xb48] sm:$0xff] }
 0x5dd   : > { %10596 = vmatprep.mubr.bf16.mxu1 %v15921_v24  ;;  %10606 = vmatpush1.bf16.msra.mxu0 %v13094_v52  ;;  %v4610_v52 = vld [vmem:[%s15077_s13 + $0x9c8] sm:$0xff]  ;;  %v13447_v57 = vcombine.high %v4650_v34, %v4658_v15 }
 0x5de   : > { %10597 = vmatmul.mubr.bf16.vlgmr.msra.gmra.mrb[12].mxu1 %v15923_v25  ;;  %10637 = vmatprep.mubr.bf16.mxu0 %v15729_v7  ;;  %v13399_v56 = vcombine.high %v4602_v35, %v4610_v52  ;;  %v13398_v47 = vcombine.low %v4602_v35, %v4610_v52  ;;  %v4410_v37 = vld [vmem:[%s15077_s13 + $0x388] sm:$0xff] }
 0x5df   : > { %10647 = vmatpush1.bf16.msra.mxu1 %v13350_v53  ;;  %10678 = vmatprep.mubr.bf16.mxu1 %v15734_v10  ;;  %v13143_v53 = vcombine.high %v4346_v55, %v4354_v33  ;;  %v13207_v29 = vcombine.high %v4410_v37, %v4418_v19  ;;  %v4442_v33 = vld [vmem:[%s15077_s13 + $0x488] sm:$0xff] }
 0x5e0   : > { %10607 = vmatprep.subr.bf16.mxu0 %v13111_v28  ;;  %10648 = vmatprep.subr.bf16.mxu1 %v13367_v16  ;;  %v13446_v28 = vcombine.low %v4650_v34, %v4658_v15  ;;  %v4426_v16 = vld [vmem:[%s15077_s13 + $0x408] sm:$0xff] }
 0x5e1   : > { %10608 = vmatpush1.bf16.msra.mxu0 %v13110_v45  ;;  %v4690_v45 = vld [vmem:[%s15077_s13 + $0xc48] sm:$0xff] }
 0x5e2   : > { %10609 = vmatprep.subr.bf16.mxu0 %v13127_v48  ;;  %v13462_v48 = vcombine.low %v4666_v20, %v4674_v31  ;;  %v13479_v55 = vcombine.high %v4682_v44, %v4690_v45  ;;  %v4450_v35 = vld [vmem:[%s15077_s13 + $0x4c8] sm:$0xff] }
 0x5e3   : > { %10649 = vmatpush1.bf16.msra.mxu1 %v13366_v23  ;;  %v13206_v23 = vcombine.low %v4410_v37, %v4418_v19  ;;  %v4698_v52 = vld [vmem:[%s15077_s13 + $0xc88] sm:$0xff] }
 0x5e4   : > { %10650 = vmatprep.subr.bf16.mxu1 %v13383_v32  ;;  %v13223_v32 = vcombine.high %v4426_v16, %v4434_v40  ;;  %v4458_v60 = vld [vmem:[%s15077_s13 + $0x508] sm:$0xff] }
 0x5e5   : > { %10610 = vmatpush1.bf16.msra.mxu0 %v13126_v36  ;;  %v4706_v36 = vld [vmem:[%s15077_s13 + $0xcc8] sm:$0xff] }
 0x5e6   : > { %10611 = vmatprep.subr.bf16.mxu0 %v13143_v53  ;;  %v13478_v53 = vcombine.low %v4682_v44, %v4690_v45  ;;  %v13495_v59 = vcombine.high %v4698_v52, %v4706_v36  ;;  %v4466_v39 = vld [vmem:[%s15077_s13 + $0x548] sm:$0xff] }
 0x5e7   : > { %10651 = vmatpush1.bf16.msra.mxu1 %v13382_v26  ;;  %v13222_v26 = vcombine.low %v4426_v16, %v4434_v40  ;;  %v4714_v61 = vld [vmem:[%s15077_s13 + $0xd08] sm:$0xff] }
 0x5e8   : > { %10652 = vmatprep.subr.bf16.mxu1 %v13399_v56  ;;  %v13239_v56 = vcombine.high %v4442_v33, %v4450_v35  ;;  %v4474_v5 = vld [vmem:[%s15077_s13 + $0x588] sm:$0xff] }
 0x5e9   : > { %10612 = vmatpush1.bf16.msra.mxu0 %v13142_v62  ;;  %v4722_v62 = vld [vmem:[%s15077_s13 + $0xd48] sm:$0xff] }
 0x5ea   : > { %10613 = vmatprep.subr.bf16.mxu0 %v13159_v2  ;;  %v13494_v2 = vcombine.low %v4698_v52, %v4706_v36  ;;  %v13511_v4 = vcombine.high %v4714_v61, %v4722_v62  ;;  %v4482_v6 = vld [vmem:[%s15077_s13 + $0x5c8] sm:$0xff] }
 0x5eb   : > { %10653 = vmatpush1.bf16.msra.mxu1 %v13398_v47  ;;  %v13238_v47 = vcombine.low %v4442_v33, %v4450_v35  ;;  %v4730_v43 = vld [vmem:[%s15077_s13 + $0xd88] sm:$0xff] }
 0x5ec   : > { %10654 = vmatprep.subr.bf16.mxu1 %v13415_v3  ;;  %v13255_v3 = vcombine.high %v4458_v60, %v4466_v39  ;;  %v4490_v14 = vld [vmem:[%s15077_s13 + $0x608] sm:$0xff] }
 0x5ed   : > { %10614 = vmatpush1.bf16.msra.mxu0 %v13158_v46  ;;  %v4738_v46 = vld [vmem:[%s15077_s13 + $0xdc8] sm:$0xff] }
 0x5ee   : > { %10615 = vmatprep.subr.bf16.mxu0 %v13175_v9  ;;  %v13510_v9 = vcombine.low %v4714_v61, %v4722_v62  ;;  %v13527_v12 = vcombine.high %v4730_v43, %v4738_v46  ;;  %v4498_v34 = vld [vmem:[%s15077_s13 + $0x648] sm:$0xff] }
 0x5ef   : > { %10655 = vmatpush1.bf16.msra.mxu1 %v13414_v8  ;;  %v13254_v8 = vcombine.low %v4458_v60, %v4466_v39  ;;  %v4746_v15 = vld [vmem:[%s15077_s13 + $0xe08] sm:$0xff] }
 0x5f0   : > { %10656 = vmatprep.subr.bf16.mxu1 %v13431_v11  ;;  %v13271_v11 = vcombine.high %v4474_v5, %v4482_v6  ;;  %v4506_v19 = vld [vmem:[%s15077_s13 + $0x688] sm:$0xff] }
 0x5f1   : > { %10616 = vmatpush1.bf16.msra.mxu0 %v13174_v17  ;;  %v4754_v17 = vld [vmem:[%s15077_s13 + $0xe48] sm:$0xff] }
 0x5f2   : > { %10617 = vmatprep.subr.bf16.mxu0 %v13191_v50  ;;  %v13526_v50 = vcombine.low %v4730_v43, %v4738_v46  ;;  %v13543_v37 = vcombine.high %v4746_v15, %v4754_v17  ;;  %v4514_v20 = vld [vmem:[%s15077_s13 + $0x6c8] sm:$0xff] }
 0x5f3   : > { %10657 = vmatpush1.bf16.msra.mxu1 %v13430_v18  ;;  %v13270_v18 = vcombine.low %v4474_v5, %v4482_v6  ;;  %v4762_v31 = vld [vmem:[%s15077_s13 + $0xe88] sm:$0xff] }
 0x5f4   : > { %10658 = vmatprep.subr.bf16.mxu1 %v13447_v57  ;;  %v13287_v57 = vcombine.high %v4490_v14, %v4498_v34  ;;  %v4522_v40 = vld [vmem:[%s15077_s13 + $0x708] sm:$0xff] }
 0x5f5   : > { %10618 = vmatpush1.bf16.msra.mxu0 %v13190_v13  ;;  %v4770_v13 = vld [vmem:[%s15077_s13 + $0xec8] sm:$0xff] }
 0x5f6   : > { %10619 = vmatprep.subr.bf16.mxu0 %v13207_v29  ;;  %v13542_v29 = vcombine.low %v4746_v15, %v4754_v17  ;;  %v13559_v16 = vcombine.high %v4762_v31, %v4770_v13  ;;  %v4530_v44 = vld [vmem:[%s15077_s13 + $0x748] sm:$0xff] }
 0x5f7   : > { %10659 = vmatpush1.bf16.msra.mxu1 %v13446_v28  ;;  %v13286_v28 = vcombine.low %v4490_v14, %v4498_v34  ;;  %v4778_v45 = vld [vmem:[%s15077_s13 + $0xf08] sm:$0xff] }
 0x5f8   : > { %10660 = vmatprep.subr.bf16.mxu1 %v13463_v30  ;;  %v13303_v30 = vcombine.high %v4506_v19, %v4514_v20  ;;  %v4538_v35 = vld [vmem:[%s15077_s13 + $0x788] sm:$0xff] }
 0x5f9   : > { %10620 = vmatpush1.bf16.msra.mxu0 %v13206_v23  ;;  %v4786_v23 = vld [vmem:[%s15077_s13 + $0xf48] sm:$0xff] }
 0x5fa   : > { %10621 = vmatprep.subr.bf16.mxu0 %v13223_v32  ;;  %v13558_v32 = vcombine.low %v4762_v31, %v4770_v13  ;;  %v13575_v33 = vcombine.high %v4778_v45, %v4786_v23  ;;  %v4546_v52 = vld [vmem:[%s15077_s13 + $0x7c8] sm:$0xff] }
 0x5fb   : > { %10661 = vmatpush1.bf16.msra.mxu1 %v13462_v48  ;;  %v13302_v48 = vcombine.low %v4506_v19, %v4514_v20  ;;  %v4794_v36 = vld [vmem:[%s15077_s13 + $0xf88] sm:$0xff]  ;;  %v13334_v46 = vcombine.low %v4538_v35, %v4546_v52 }
 0x5fc   : > { %10662 = vmatprep.subr.bf16.mxu1 %v13479_v55  ;;  %v13319_v55 = vcombine.high %v4522_v40, %v4530_v44  ;;  %v4810_v61 = vld [vmem:[%s15077_s13 + $0x1008] sm:$0xff] }
 0x5fd   : > { %10622 = vmatpush1.bf16.msra.mxu0 %v13222_v26  ;;  %v4802_v26 = vld [vmem:[%s15077_s13 + $0xfc8] sm:$0xff] }
 0x5fe   : > { %10623 = vmatprep.subr.bf16.mxu0 %v13239_v56  ;;  %v13574_v56 = vcombine.low %v4778_v45, %v4786_v23  ;;  %v13591_v39 = vcombine.high %v4794_v36, %v4802_v26  ;;  %v4818_v62 = vld [vmem:[%s15077_s13 + $0x1048] sm:$0xff] }
 0x5ff   : > { %10663 = vmatpush1.bf16.msra.mxu1 %v13478_v53  ;;  %v13318_v53 = vcombine.low %v4522_v40, %v4530_v44  ;;  %v13607_v14 = vcombine.high %v4810_v61, %v4818_v62  ;;  %v4826_v17 = vld [vmem:[%s15077_s13 + $0x1088] sm:$0xff] }
 0x600   : > { %10664 = vmatprep.subr.bf16.mxu1 %v13495_v59  ;;  %v13335_v59 = vcombine.high %v4538_v35, %v4546_v52  ;;  %v4842_v31 = vld [vmem:[%s15077_s13 + $0x1108] sm:$0xff] }
 0x601   : > { %10624 = vmatpush1.bf16.msra.mxu0 %v13238_v47  ;;  %v4850_v13 = vld [vmem:[%s15077_s13 + $0x1148] sm:$0xff] }
 0x602   : > { %10625 = vmatprep.subr.bf16.mxu0 %v13255_v3  ;;  %v5066_v3 = vld [vmem:[%s15077_s13 + $0x1808] sm:$0xff]  ;;  %v13639_v44 = vcombine.high %v4842_v31, %v4850_v13 }
 0x603   : > { %10665 = vmatpush1.bf16.msra.mxu1 %v13494_v2  ;;  %v4858_v23 = vld [vmem:[%s15077_s13 + $0x1188] sm:$0xff] }
 0x604   : > { %10666 = vmatprep.subr.bf16.mxu1 %v13511_v4  ;;  %v5074_v4 = vld [vmem:[%s15077_s13 + $0x1848] sm:$0xff] }
 0x605   : > { %10626 = vmatpush1.bf16.msra.mxu0 %v13254_v8  ;;  %v13863_v15 = vcombine.high %v5066_v3, %v5074_v4  ;;  %v13862_v19 = vcombine.low %v5066_v3, %v5074_v4  ;;  %v5146_v3 = vld [vmem:[%s15077_s13 + $0x1a88] sm:$0xff] }
 0x606   : > { %10627 = vmatprep.subr.bf16.mxu0 %v13271_v11  ;;  %v5154_v4 = vld [vmem:[%s15077_s13 + $0x1ac8] sm:$0xff] }
 0x607   : > { %10667 = vmatpush1.bf16.msra.mxu1 %v13510_v9 }
 0x608   : > { %10668 = vmatprep.subr.bf16.mxu1 %v13527_v12  ;;  %v13590_v12 = vcombine.low %v4794_v36, %v4802_v26  ;;  %v4874_v26 = vld [vmem:[%s15077_s13 + $0x1208] sm:$0xff] }
 0x609   : > { %10628 = vmatpush1.bf16.msra.mxu0 %v13270_v18  ;;  %v4834_v18 = vld [vmem:[%s15077_s13 + $0x10c8] sm:$0xff] }
 0x60a   : > { %10629 = vmatprep.subr.bf16.mxu0 %v13287_v57  ;;  %v5082_v57 = vld [vmem:[%s15077_s13 + $0x1888] sm:$0xff]  ;;  %v13623_v20 = vcombine.high %v4826_v17, %v4834_v18 }
 0x60b   : > { %10669 = vmatpush1.bf16.msra.mxu1 %v13526_v50  ;;  %v13606_v50 = vcombine.low %v4810_v61, %v4818_v62 }
 0x60c   : > { %10670 = vmatprep.subr.bf16.mxu1 %v13543_v37  ;;  %v5090_v37 = vld [vmem:[%s15077_s13 + $0x18c8] sm:$0xff] }
 0x60d   : > { %10630 = vmatpush1.bf16.msra.mxu0 %v13286_v28  ;;  %v13879_v28 = vcombine.high %v5082_v57, %v5090_v37  ;;  %v13878_v40 = vcombine.low %v5082_v57, %v5090_v37  ;;  %v4922_v57 = vld [vmem:[%s15077_s13 + $0x1388] sm:$0xff] }
 0x60e   : > { %10631 = vmatprep.subr.bf16.mxu0 %v13303_v30  ;;  %v5106_v30 = vld [vmem:[%s15077_s13 + $0x1948] sm:$0xff] }
 0x60f   : > { %10671 = vmatpush1.bf16.msra.mxu1 %v13542_v29  ;;  %v5098_v29 = vld [vmem:[%s15077_s13 + $0x1908] sm:$0xff] }
 0x610   : > { %10672 = vmatprep.subr.bf16.mxu1 %v13559_v16  ;;  %v13622_v16 = vcombine.low %v4826_v17, %v4834_v18  ;;  %v13895_v45 = vcombine.high %v5098_v29, %v5106_v30  ;;  %v13894_v35 = vcombine.low %v5098_v29, %v5106_v30  ;;  %v13942_v17 = vcombine.low %v5146_v3, %v5154_v4  ;;  %v4930_v37 = vld [vmem:[%s15077_s13 + $0x13c8] sm:$0xff] }
 0x611   : > { %10632 = vmatpush1.bf16.msra.mxu0 %v13302_v48  ;;  %v4866_v48 = vld [vmem:[%s15077_s13 + $0x11c8] sm:$0xff] }
 0x612   : > { %10633 = vmatprep.subr.bf16.mxu0 %v13319_v55  ;;  %v5122_v55 = vld [vmem:[%s15077_s13 + $0x19c8] sm:$0xff]  ;;  %v13655_v52 = vcombine.high %v4858_v23, %v4866_v48 }
 0x613   : > { %10673 = vmatpush1.bf16.msra.mxu1 %v13558_v32  ;;  %v10475_v60 = vpop.f32.mrb[8].mxu0  ;;  %v5114_v32 = vld [vmem:[%s15077_s13 + $0x1988] sm:$0xff] }
 0x614   : > { %10674 = vmatprep.subr.bf16.mxu1 %v13575_v33  ;;  %v10477_v2 = vpop.f32.mrb[9].mxu0  ;;  %v13638_v33 = vcombine.low %v4842_v31, %v4850_v13  ;;  %v13911_v36 = vcombine.high %v5114_v32, %v5122_v55  ;;  %v4938_v30 = vld [vmem:[%s15077_s13 + $0x1408] sm:$0xff] }
 0x615   : > { %v10516_v47 = vpop.f32.mrb[8].mxu1  ;;  %10634 = vmatpush1.bf16.msra.mxu0 %v13318_v53  ;;  %v10479_v43 = vpop.f32.mrb[10].mxu0  ;;  %v4882_v53 = vld [vmem:[%s15077_s13 + $0x1248] sm:$0xff] }
 0x616   : > { %v15997_v5 = vadd.f32 %v10516_v47, %v10475_v60  ;;  %v10518_v6 = vpop.f32.mrb[9].mxu1  ;;  %v10480_v11 = vpop.f32.mrb[11].mxu0  ;;  %10635 = vmatprep.subr.bf16.mxu0 %v13335_v59  ;;  %v5138_v59 = vld [vmem:[%s15077_s13 + $0x1a48] sm:$0xff]  ;;  %v13654_v60 = vcombine.low %v4858_v23, %v4866_v48  ;;  %v13671_v61 = vcombine.high %v4874_v26, %v4882_v53 }
 0x617   : > { %v15999_v8 = vadd.f32 %v10518_v6, %v10477_v2  ;;  %10675 = vmatpush1.bf16.msra.mxu1 %v13574_v56  ;;  %v10520_v9 = vpop.f32.mrb[10].mxu1  ;;  %v5130_v56 = vld [vmem:[%s15077_s13 + $0x1a08] sm:$0xff]  ;;  %v13670_v6 = vcombine.low %v4874_v26, %v4882_v53 }
 0x618   : > { %v10521_v34 = vpop.f32.mrb[11].mxu1  ;;  %10676 = vmatprep.subr.bf16.mxu1 %v13591_v39  ;;  %v13910_v39 = vcombine.low %v5114_v32, %v5122_v55  ;;  %v13927_v62 = vcombine.high %v5130_v56, %v5138_v59  ;;  %v4890_v47 = vld [vmem:[%s15077_s13 + $0x1288] sm:$0xff]  ;;  %v13926_v43 = vcombine.low %v5130_v56, %v5138_v59  ;;  %v13943_v9 = vcombine.high %v5146_v3, %v5154_v4 }
 0x619   : > { %10636 = vmatpush1.bf16.msra.mxu0 %v13334_v46  ;;  %v4898_v2 = vld [vmem:[%s15077_s13 + $0x12c8] sm:$0xff] }
 0x61a   : > { %10687 = vmatprep.subr.bf16.mxu0 %v13607_v14  ;;  %v13687_v46 = vcombine.high %v4890_v47, %v4898_v2  ;;  %v4906_v11 = vld [vmem:[%s15077_s13 + $0x1308] sm:$0xff] }
 0x61b   : > { %10677 = vmatpush1.bf16.msra.mxu1 %v13590_v12  ;;  %v4914_v12 = vld [vmem:[%s15077_s13 + $0x1348] sm:$0xff] }
 0x61c   : > { %10728 = vmatprep.subr.bf16.mxu1 %v13863_v15  ;;  %10638 = vmatmul.mubr.bf16.vlgmr.msra.gmra.mrb[16].mxu0 %v15811_v27  ;;  %v5162_v14 = vld [vmem:[%s15077_s13 + $0x1b08] sm:$0xff]  ;;  %v13686_v15 = vcombine.low %v4890_v47, %v4898_v2  ;;  %v13703_v18 = vcombine.high %v4906_v11, %v4914_v12  ;;  %v13702_v31 = vcombine.low %v4906_v11, %v4914_v12 }
 0x61d   : > { %10688 = vmatpush1.bf16.msra.mxu0 %v13606_v50  ;;  %10719 = vmatprep.mubr.bf16.mxu0 %v15915_v41  ;;  %v5170_v34 = vld [vmem:[%s15077_s13 + $0x1b48] sm:$0xff] }
 0x61e   : > { %10679 = vmatmul.mubr.bf16.vlgmr.msra.gmra.mrb[16].mxu1 %v15813_v21  ;;  %10689 = vmatprep.subr.bf16.mxu0 %v13623_v20  ;;  %v13959_v50 = vcombine.high %v5162_v14, %v5170_v34  ;;  %v5186_v20 = vld [vmem:[%s15077_s13 + $0x1bc8] sm:$0xff]  ;;  %v13958_v13 = vcombine.low %v5162_v14, %v5170_v34 }
 0x61f   : > { %10729 = vmatpush1.bf16.msra.mxu1 %v13862_v19  ;;  %10760 = vmatprep.mubr.bf16.mxu1 %v15921_v24  ;;  %v5178_v19 = vld [vmem:[%s15077_s13 + $0x1b88] sm:$0xff] }
 0x620   : > { %10730 = vmatprep.subr.bf16.mxu1 %v13879_v28  ;;  %v13719_v28 = vcombine.high %v4922_v57, %v4930_v37  ;;  %v13975_v29 = vcombine.high %v5178_v19, %v5186_v20  ;;  %v13974_v23 = vcombine.low %v5178_v19, %v5186_v20  ;;  %v4954_v55 = vld [vmem:[%s15077_s13 + $0x1488] sm:$0xff] }
 0x621   : > { %10690 = vmatpush1.bf16.msra.mxu0 %v13622_v16  ;;  %v4946_v16 = vld [vmem:[%s15077_s13 + $0x1448] sm:$0xff] }
 0x622   : > { %10691 = vmatprep.subr.bf16.mxu0 %v13639_v44  ;;  %v5202_v44 = vld [vmem:[%s15077_s13 + $0x1c48] sm:$0xff]  ;;  %v13735_v48 = vcombine.high %v4938_v30, %v4946_v16 }
 0x623   : > { %10731 = vmatpush1.bf16.msra.mxu1 %v13878_v40  ;;  %v5194_v40 = vld [vmem:[%s15077_s13 + $0x1c08] sm:$0xff] }
 0x624   : > { %10732 = vmatprep.subr.bf16.mxu1 %v13895_v45  ;;  %v13718_v45 = vcombine.low %v4922_v57, %v4930_v37  ;;  %v13991_v32 = vcombine.high %v5194_v40, %v5202_v44  ;;  %v13990_v26 = vcombine.low %v5194_v40, %v5202_v44  ;;  %v4970_v59 = vld [vmem:[%s15077_s13 + $0x1508] sm:$0xff] }
 0x625   : > { %10692 = vmatpush1.bf16.msra.mxu0 %v13638_v33  ;;  %v4962_v33 = vld [vmem:[%s15077_s13 + $0x14c8] sm:$0xff] }
 0x626   : > { %10693 = vmatprep.subr.bf16.mxu0 %v13655_v52  ;;  %v5218_v52 = vld [vmem:[%s15077_s13 + $0x1cc8] sm:$0xff]  ;;  %v13751_v53 = vcombine.high %v4954_v55, %v4962_v33 }
 0x627   : > { %10733 = vmatpush1.bf16.msra.mxu1 %v13894_v35  ;;  %v5210_v35 = vld [vmem:[%s15077_s13 + $0x1c88] sm:$0xff] }
 0x628   : > { %10734 = vmatprep.subr.bf16.mxu1 %v13911_v36  ;;  %v13734_v36 = vcombine.low %v4938_v30, %v4946_v16  ;;  %v14007_v56 = vcombine.high %v5210_v35, %v5218_v52  ;;  %v14006_v47 = vcombine.low %v5210_v35, %v5218_v52  ;;  %v4986_v4 = vld [vmem:[%s15077_s13 + $0x1588] sm:$0xff] }
 0x629   : > { %10694 = vmatpush1.bf16.msra.mxu0 %v13654_v60  ;;  %v4978_v60 = vld [vmem:[%s15077_s13 + $0x1548] sm:$0xff] }
 0x62a   : > { %10695 = vmatprep.subr.bf16.mxu0 %v13671_v61  ;;  %v5234_v61 = vld [vmem:[%s15077_s13 + $0x1d48] sm:$0xff]  ;;  %v13767_v2 = vcombine.high %v4970_v59, %v4978_v60 }
 0x62b   : > { %10735 = vmatpush1.bf16.msra.mxu1 %v13910_v39  ;;  %v5226_v39 = vld [vmem:[%s15077_s13 + $0x1d08] sm:$0xff] }
 0x62c   : > { %10736 = vmatprep.subr.bf16.mxu1 %v13927_v62  ;;  %v13750_v62 = vcombine.low %v4954_v55, %v4962_v33  ;;  %v14023_v3 = vcombine.high %v5226_v39, %v5234_v61  ;;  %v14022_v11 = vcombine.low %v5226_v39, %v5234_v61  ;;  %v5002_v34 = vld [vmem:[%s15077_s13 + $0x1608] sm:$0xff]  ;;  %v4299_v61 = vld [vmem:[%s15077_s13 + $0x10] sm:$0xff] }
 0x62d   : > { %10696 = vmatpush1.bf16.msra.mxu0 %v13670_v6  ;;  %v4994_v6 = vld [vmem:[%s15077_s13 + $0x15c8] sm:$0xff] }
 0x62e   : > { %10697 = vmatprep.subr.bf16.mxu0 %v13687_v46  ;;  %v5250_v46 = vld [vmem:[%s15077_s13 + $0x1dc8] sm:$0xff]  ;;  %v13783_v12 = vcombine.high %v4986_v4, %v4994_v6 }
 0x62f   : > { %10737 = vmatpush1.bf16.msra.mxu1 %v13926_v43  ;;  %v5242_v43 = vld [vmem:[%s15077_s13 + $0x1d88] sm:$0xff] }
 0x630   : > { %10738 = vmatprep.subr.bf16.mxu1 %v13943_v9  ;;  %v13766_v9 = vcombine.low %v4970_v59, %v4978_v60  ;;  %v14039_v14 = vcombine.high %v5242_v43, %v5250_v46  ;;  %v14038_v57 = vcombine.low %v5242_v43, %v5250_v46  ;;  %v5018_v20 = vld [vmem:[%s15077_s13 + $0x1688] sm:$0xff]  ;;  %v4315_v46 = vld [vmem:[%s15077_s13 + $0x90] sm:$0xff] }
 0x631   : > { %10698 = vmatpush1.bf16.msra.mxu0 %v13686_v15  ;;  %v5010_v15 = vld [vmem:[%s15077_s13 + $0x1648] sm:$0xff] }
 0x632   : > { %10699 = vmatprep.subr.bf16.mxu0 %v13703_v18  ;;  %v5266_v18 = vld [vmem:[%s15077_s13 + $0x1e48] sm:$0xff]  ;;  %v13799_v37 = vcombine.high %v5002_v34, %v5010_v15 }
 0x633   : > { %10739 = vmatpush1.bf16.msra.mxu1 %v13942_v17  ;;  %v5258_v17 = vld [vmem:[%s15077_s13 + $0x1e08] sm:$0xff] }
 0x634   : > { %10740 = vmatprep.subr.bf16.mxu1 %v13959_v50  ;;  %v13782_v50 = vcombine.low %v4986_v4, %v4994_v6  ;;  %v14055_v19 = vcombine.high %v5258_v17, %v5266_v18  ;;  %v14054_v30 = vcombine.low %v5258_v17, %v5266_v18  ;;  %v5034_v44 = vld [vmem:[%s15077_s13 + $0x1708] sm:$0xff]  ;;  %v4331_v17 = vld [vmem:[%s15077_s13 + $0x110] sm:$0xff] }
 0x635   : > { %10700 = vmatpush1.bf16.msra.mxu0 %v13702_v31  ;;  %v5026_v31 = vld [vmem:[%s15077_s13 + $0x16c8] sm:$0xff]  ;;  %v4339_v18 = vld [vmem:[%s15077_s13 + $0x150] sm:$0xff] }
 0x636   : > { %10701 = vmatprep.subr.bf16.mxu0 %v13719_v28  ;;  %v5282_v28 = vld [vmem:[%s15077_s13 + $0x1ec8] sm:$0xff]  ;;  %v13815_v16 = vcombine.high %v5018_v20, %v5026_v31 }
 0x637   : > { %10741 = vmatpush1.bf16.msra.mxu1 %v13958_v13  ;;  %v5274_v13 = vld [vmem:[%s15077_s13 + $0x1e88] sm:$0xff] }
 0x638   : > { %10742 = vmatprep.subr.bf16.mxu1 %v13975_v29  ;;  %v13798_v29 = vcombine.low %v5002_v34, %v5010_v15  ;;  %v14071_v40 = vcombine.high %v5274_v13, %v5282_v28  ;;  %v14070_v55 = vcombine.low %v5274_v13, %v5282_v28  ;;  %v5050_v52 = vld [vmem:[%s15077_s13 + $0x1788] sm:$0xff]  ;;  %v4347_v28 = vld [vmem:[%s15077_s13 + $0x190] sm:$0xff] }
 0x639   : > { %10702 = vmatpush1.bf16.msra.mxu0 %v13718_v45  ;;  %v5042_v45 = vld [vmem:[%s15077_s13 + $0x1748] sm:$0xff] }
 0x63a   : > { %10703 = vmatprep.subr.bf16.mxu0 %v13735_v48  ;;  %v5298_v48 = vld [vmem:[%s15077_s13 + $0x1f48] sm:$0xff]  ;;  %v13831_v33 = vcombine.high %v5034_v44, %v5042_v45 }
 0x63b   : > { %10743 = vmatpush1.bf16.msra.mxu1 %v13974_v23  ;;  %v5290_v23 = vld [vmem:[%s15077_s13 + $0x1f08] sm:$0xff] }
 0x63c   : > { %10744 = vmatprep.subr.bf16.mxu1 %v13991_v32  ;;  %v13814_v32 = vcombine.low %v5018_v20, %v5026_v31  ;;  %v14087_v35 = vcombine.high %v5290_v23, %v5298_v48  ;;  %v14086_v59 = vcombine.low %v5290_v23, %v5298_v48  ;;  %v13129_v31 = vcombine.high %v4331_v17, %v4339_v18  ;;  %v4363_v48 = vld [vmem:[%s15077_s13 + $0x210] sm:$0xff] }
 0x63d   : > { %10704 = vmatpush1.bf16.msra.mxu0 %v13734_v36  ;;  %v5058_v36 = vld [vmem:[%s15077_s13 + $0x17c8] sm:$0xff] }
 0x63e   : > { %10705 = vmatprep.subr.bf16.mxu0 %v13751_v53  ;;  %v5314_v53 = vld [vmem:[%s15077_s13 + $0x1fc8] sm:$0xff]  ;;  %v13847_v60 = vcombine.high %v5050_v52, %v5058_v36 }
 0x63f   : > { %10745 = vmatpush1.bf16.msra.mxu1 %v13990_v26  ;;  %v5306_v26 = vld [vmem:[%s15077_s13 + $0x1f88] sm:$0xff] }
 0x640   : > { %10746 = vmatprep.subr.bf16.mxu1 %v14007_v56  ;;  %v13830_v56 = vcombine.low %v5034_v44, %v5042_v45  ;;  %v14103_v39 = vcombine.high %v5306_v26, %v5314_v53  ;;  %v14102_v4 = vcombine.low %v5306_v26, %v5314_v53  ;;  %v4379_v53 = vld [vmem:[%s15077_s13 + $0x290] sm:$0xff] }
 0x641   : > { %10706 = vmatpush1.bf16.msra.mxu0 %v13750_v62  ;;  %v4307_v62 = vld [vmem:[%s15077_s13 + $0x50] sm:$0xff] }
 0x642   : > { %10707 = vmatprep.subr.bf16.mxu0 %v13767_v2  ;;  %v4563_v2 = vld [vmem:[%s15077_s13 + $0x850] sm:$0xff]  ;;  %v13097_v6 = vcombine.high %v4299_v61, %v4307_v62 }
 0x643   : > { %10747 = vmatpush1.bf16.msra.mxu1 %v14006_v47  ;;  %v4555_v47 = vld [vmem:[%s15077_s13 + $0x810] sm:$0xff] }
 0x644   : > { %10748 = vmatprep.subr.bf16.mxu1 %v14023_v3  ;;  %v13846_v3 = vcombine.low %v5050_v52, %v5058_v36  ;;  %v13353_v43 = vcombine.high %v4555_v47, %v4563_v2  ;;  %v13352_v34 = vcombine.low %v4555_v47, %v4563_v2  ;;  %v4395_v2 = vld [vmem:[%s15077_s13 + $0x310] sm:$0xff] }
 0x645   : > { %10708 = vmatpush1.bf16.msra.mxu0 %v13766_v9  ;;  %v4323_v9 = vld [vmem:[%s15077_s13 + $0xd0] sm:$0xff] }
 0x646   : > { %10709 = vmatprep.subr.bf16.mxu0 %v13783_v12  ;;  %v4571_v12 = vld [vmem:[%s15077_s13 + $0x890] sm:$0xff]  ;;  %v13113_v15 = vcombine.high %v4315_v46, %v4323_v9 }
 0x647   : > { %10749 = vmatpush1.bf16.msra.mxu1 %v14022_v11  ;;  %v13096_v11 = vcombine.low %v4299_v61, %v4307_v62 }
 0x648   : > { %10750 = vmatprep.subr.bf16.mxu1 %v14039_v14  ;;  %v4579_v14 = vld [vmem:[%s15077_s13 + $0x8d0] sm:$0xff] }
 0x649   : > { %10710 = vmatpush1.bf16.msra.mxu0 %v13782_v50  ;;  %v13369_v50 = vcombine.high %v4571_v12, %v4579_v14  ;;  %v13368_v20 = vcombine.low %v4571_v12, %v4579_v14  ;;  %v4411_v12 = vld [vmem:[%s15077_s13 + $0x390] sm:$0xff] }
 0x64a   : > { %10711 = vmatprep.subr.bf16.mxu0 %v13799_v37  ;;  %v4595_v37 = vld [vmem:[%s15077_s13 + $0x950] sm:$0xff] }
 0x64b   : > { %10751 = vmatpush1.bf16.msra.mxu1 %v14038_v57  ;;  %v4587_v57 = vld [vmem:[%s15077_s13 + $0x910] sm:$0xff] }
 0x64c   : > { %10752 = vmatprep.subr.bf16.mxu1 %v14055_v19  ;;  %v13112_v19 = vcombine.low %v4315_v46, %v4323_v9  ;;  %v13385_v13 = vcombine.high %v4587_v57, %v4595_v37  ;;  %v13384_v44 = vcombine.low %v4587_v57, %v4595_v37  ;;  %v4419_v14 = vld [vmem:[%s15077_s13 + $0x3d0] sm:$0xff] }
 0x64d   : > { %10712 = vmatpush1.bf16.msra.mxu0 %v13798_v29  ;;  %v4355_v29 = vld [vmem:[%s15077_s13 + $0x1d0] sm:$0xff] }
 0x64e   : > { %10713 = vmatprep.subr.bf16.mxu0 %v13815_v16  ;;  %v4611_v16 = vld [vmem:[%s15077_s13 + $0x9d0] sm:$0xff]  ;;  %v13145_v45 = vcombine.high %v4347_v28, %v4355_v29 }
 0x64f   : > { %10753 = vmatpush1.bf16.msra.mxu1 %v14054_v30  ;;  %v4603_v30 = vld [vmem:[%s15077_s13 + $0x990] sm:$0xff] }
 0x650   : > { %10754 = vmatprep.subr.bf16.mxu1 %v14071_v40  ;;  %v13128_v40 = vcombine.low %v4331_v17, %v4339_v18  ;;  %v13401_v23 = vcombine.high %v4603_v30, %v4611_v16  ;;  %v13400_v52 = vcombine.low %v4603_v30, %v4611_v16  ;;  %v4427_v37 = vld [vmem:[%s15077_s13 + $0x410] sm:$0xff] }
 0x651   : > { %10714 = vmatpush1.bf16.msra.mxu0 %v13814_v32  ;;  %v4371_v32 = vld [vmem:[%s15077_s13 + $0x250] sm:$0xff] }
 0x652   : > { %10715 = vmatprep.subr.bf16.mxu0 %v13831_v33  ;;  %v4627_v33 = vld [vmem:[%s15077_s13 + $0xa50] sm:$0xff]  ;;  %v13161_v36 = vcombine.high %v4363_v48, %v4371_v32 }
 0x653   : > { %10755 = vmatpush1.bf16.msra.mxu1 %v14070_v55  ;;  %v4619_v55 = vld [vmem:[%s15077_s13 + $0xa10] sm:$0xff] }
 0x654   : > { %10756 = vmatprep.subr.bf16.mxu1 %v14087_v35  ;;  %v13144_v35 = vcombine.low %v4347_v28, %v4355_v29  ;;  %v13417_v26 = vcombine.high %v4619_v55, %v4627_v33  ;;  %v13416_v61 = vcombine.low %v4619_v55, %v4627_v33  ;;  %v4443_v16 = vld [vmem:[%s15077_s13 + $0x490] sm:$0xff] }
 0x655   : > { %10716 = vmatpush1.bf16.msra.mxu0 %v13830_v56  ;;  %v4387_v56 = vld [vmem:[%s15077_s13 + $0x2d0] sm:$0xff] }
 0x656   : > { %10717 = vmatprep.subr.bf16.mxu0 %v13847_v60  ;;  %v4643_v60 = vld [vmem:[%s15077_s13 + $0xad0] sm:$0xff]  ;;  %v13177_v62 = vcombine.high %v4379_v53, %v4387_v56 }
 0x657   : > { %10757 = vmatpush1.bf16.msra.mxu1 %v14086_v59  ;;  %v4635_v59 = vld [vmem:[%s15077_s13 + $0xa90] sm:$0xff] }
 0x658   : > { %10758 = vmatprep.subr.bf16.mxu1 %v14103_v39  ;;  %v13160_v39 = vcombine.low %v4363_v48, %v4371_v32  ;;  %v13433_v47 = vcombine.high %v4635_v59, %v4643_v60  ;;  %v13432_v46 = vcombine.low %v4635_v59, %v4643_v60  ;;  %v4459_v33 = vld [vmem:[%s15077_s13 + $0x510] sm:$0xff] }
 0x659   : > { %10718 = vmatpush1.bf16.msra.mxu0 %v13846_v3  ;;  %v4403_v3 = vld [vmem:[%s15077_s13 + $0x350] sm:$0xff] }
 0x65a   : > { %10769 = vmatprep.subr.bf16.mxu0 %v13097_v6  ;;  %v4659_v6 = vld [vmem:[%s15077_s13 + $0xb50] sm:$0xff]  ;;  %v13193_v9 = vcombine.high %v4395_v2, %v4403_v3  ;;  %v13192_v17 = vcombine.low %v4395_v2, %v4403_v3 }
 0x65b   : > { %10759 = vmatpush1.bf16.msra.mxu1 %v14102_v4  ;;  %v4651_v4 = vld [vmem:[%s15077_s13 + $0xb10] sm:$0xff] }
 0x65c   : > { %10810 = vmatprep.subr.bf16.mxu1 %v13353_v43  ;;  %10720 = vmatmul.mubr.bf16.vlgmr.msra.gmra.mrb[20].mxu0 %v15919_v22  ;;  %v13176_v43 = vcombine.low %v4379_v53, %v4387_v56  ;;  %v13448_v18 = vcombine.low %v4651_v4, %v4659_v6  ;;  %v4475_v60 = vld [vmem:[%s15077_s13 + $0x590] sm:$0xff] }
 0x65d   : > { %10770 = vmatpush1.bf16.msra.mxu0 %v13096_v11  ;;  %10801 = vmatprep.mubr.bf16.mxu0 %v15729_v7  ;;  %v13449_v11 = vcombine.high %v4651_v4, %v4659_v6  ;;  %v4491_v6 = vld [vmem:[%s15077_s13 + $0x610] sm:$0xff] }
 0x65e   : > { %10761 = vmatmul.mubr.bf16.vlgmr.msra.gmra.mrb[20].mxu1 %v15923_v25  ;;  %10771 = vmatprep.subr.bf16.mxu0 %v13113_v15  ;;  %v4675_v15 = vld [vmem:[%s15077_s13 + $0xbd0] sm:$0xff] }
 0x65f   : > { %10811 = vmatpush1.bf16.msra.mxu1 %v13352_v34  ;;  %10842 = vmatprep.mubr.bf16.mxu1 %v15734_v10  ;;  %v4667_v34 = vld [vmem:[%s15077_s13 + $0xb90] sm:$0xff] }
 0x660   : > { %10812 = vmatprep.subr.bf16.mxu1 %v13369_v50  ;;  %v13209_v50 = vcombine.high %v4411_v12, %v4419_v14  ;;  %v13465_v57 = vcombine.high %v4667_v34, %v4675_v15  ;;  %v13464_v28 = vcombine.low %v4667_v34, %v4675_v15  ;;  %v4507_v15 = vld [vmem:[%s15077_s13 + $0x690] sm:$0xff] }
 0x661   : > { %10772 = vmatpush1.bf16.msra.mxu0 %v13112_v19  ;;  %v4435_v19 = vld [vmem:[%s15077_s13 + $0x450] sm:$0xff] }
 0x662   : > { %10773 = vmatprep.subr.bf16.mxu0 %v13129_v31  ;;  %v4691_v31 = vld [vmem:[%s15077_s13 + $0xc50] sm:$0xff]  ;;  %v13225_v29 = vcombine.high %v4427_v37, %v4435_v19 }
 0x663   : > { %10813 = vmatpush1.bf16.msra.mxu1 %v13368_v20  ;;  %v4683_v20 = vld [vmem:[%s15077_s13 + $0xc10] sm:$0xff] }
 0x664   : > { %10814 = vmatprep.subr.bf16.mxu1 %v13385_v13  ;;  %v13208_v13 = vcombine.low %v4411_v12, %v4419_v14  ;;  %v13481_v30 = vcombine.high %v4683_v20, %v4691_v31  ;;  %v13480_v48 = vcombine.low %v4683_v20, %v4691_v31  ;;  %v4523_v31 = vld [vmem:[%s15077_s13 + $0x710] sm:$0xff] }
 0x665   : > { %10774 = vmatpush1.bf16.msra.mxu0 %v13128_v40  ;;  %v4451_v40 = vld [vmem:[%s15077_s13 + $0x4d0] sm:$0xff] }
 0x666   : > { %10775 = vmatprep.subr.bf16.mxu0 %v13145_v45  ;;  %v4707_v45 = vld [vmem:[%s15077_s13 + $0xcd0] sm:$0xff]  ;;  %v13241_v32 = vcombine.high %v4443_v16, %v4451_v40 }
 0x667   : > { %10815 = vmatpush1.bf16.msra.mxu1 %v13384_v44  ;;  %v4699_v44 = vld [vmem:[%s15077_s13 + $0xc90] sm:$0xff] }
 0x668   : > { %10816 = vmatprep.subr.bf16.mxu1 %v13401_v23  ;;  %v13224_v23 = vcombine.low %v4427_v37, %v4435_v19  ;;  %v13497_v55 = vcombine.high %v4699_v44, %v4707_v45  ;;  %v13496_v53 = vcombine.low %v4699_v44, %v4707_v45  ;;  %v4539_v45 = vld [vmem:[%s15077_s13 + $0x790] sm:$0xff] }
 0x669   : > { %10776 = vmatpush1.bf16.msra.mxu0 %v13144_v35  ;;  %v4467_v35 = vld [vmem:[%s15077_s13 + $0x550] sm:$0xff] }
 0x66a   : > { %10777 = vmatprep.subr.bf16.mxu0 %v13161_v36  ;;  %v4723_v36 = vld [vmem:[%s15077_s13 + $0xd50] sm:$0xff]  ;;  %v13257_v56 = vcombine.high %v4459_v33, %v4467_v35 }
 0x66b   : > { %10817 = vmatpush1.bf16.msra.mxu1 %v13400_v52  ;;  %v4715_v52 = vld [vmem:[%s15077_s13 + $0xd10] sm:$0xff] }
 0x66c   : > { %10818 = vmatprep.subr.bf16.mxu1 %v13417_v26  ;;  %v13240_v26 = vcombine.low %v4443_v16, %v4451_v40  ;;  %v13513_v59 = vcombine.high %v4715_v52, %v4723_v36  ;;  %v13512_v2 = vcombine.low %v4715_v52, %v4723_v36  ;;  %v4811_v36 = vld [vmem:[%s15077_s13 + $0x1010] sm:$0xff] }
 0x66d   : > { %10778 = vmatpush1.bf16.msra.mxu0 %v13160_v39  ;;  %v4483_v39 = vld [vmem:[%s15077_s13 + $0x5d0] sm:$0xff] }
 0x66e   : > { %10779 = vmatprep.subr.bf16.mxu0 %v13177_v62  ;;  %v4739_v62 = vld [vmem:[%s15077_s13 + $0xdd0] sm:$0xff]  ;;  %v13273_v3 = vcombine.high %v4475_v60, %v4483_v39 }
 0x66f   : > { %10819 = vmatpush1.bf16.msra.mxu1 %v13416_v61  ;;  %v4731_v61 = vld [vmem:[%s15077_s13 + $0xd90] sm:$0xff] }
 0x670   : > { %10820 = vmatprep.subr.bf16.mxu1 %v13433_v47  ;;  %v13256_v47 = vcombine.low %v4459_v33, %v4467_v35  ;;  %v13529_v4 = vcombine.high %v4731_v61, %v4739_v62  ;;  %v13528_v12 = vcombine.low %v4731_v61, %v4739_v62  ;;  %v4827_v62 = vld [vmem:[%s15077_s13 + $0x1090] sm:$0xff] }
 0x671   : > { %10780 = vmatpush1.bf16.msra.mxu0 %v13176_v43  ;;  %v4499_v43 = vld [vmem:[%s15077_s13 + $0x650] sm:$0xff] }
 0x672   : > { %10781 = vmatprep.subr.bf16.mxu0 %v13193_v9  ;;  %v4755_v9 = vld [vmem:[%s15077_s13 + $0xe50] sm:$0xff]  ;;  %v13289_v14 = vcombine.high %v4491_v6, %v4499_v43 }
 0x673   : > { %10821 = vmatpush1.bf16.msra.mxu1 %v13432_v46  ;;  %v4747_v46 = vld [vmem:[%s15077_s13 + $0xe10] sm:$0xff] }
 0x674   : > { %10822 = vmatprep.subr.bf16.mxu1 %v13449_v11  ;;  %v13272_v11 = vcombine.low %v4475_v60, %v4483_v39  ;;  %v13545_v34 = vcombine.high %v4747_v46, %v4755_v9  ;;  %v13544_v37 = vcombine.low %v4747_v46, %v4755_v9  ;;  %v4843_v46 = vld [vmem:[%s15077_s13 + $0x1110] sm:$0xff] }
 0x675   : > { %10782 = vmatpush1.bf16.msra.mxu0 %v13192_v17  ;;  %v4515_v17 = vld [vmem:[%s15077_s13 + $0x6d0] sm:$0xff] }
 0x676   : > { %10783 = vmatprep.subr.bf16.mxu0 %v13209_v50  ;;  %v4771_v50 = vld [vmem:[%s15077_s13 + $0xed0] sm:$0xff]  ;;  %v13305_v19 = vcombine.high %v4507_v15, %v4515_v17 }
 0x677   : > { %10823 = vmatpush1.bf16.msra.mxu1 %v13448_v18  ;;  %v4763_v18 = vld [vmem:[%s15077_s13 + $0xe90] sm:$0xff] }
 0x678   : > { %10824 = vmatprep.subr.bf16.mxu1 %v13465_v57  ;;  %v13288_v57 = vcombine.low %v4491_v6, %v4499_v43  ;;  %v13561_v20 = vcombine.high %v4763_v18, %v4771_v50  ;;  %v13560_v16 = vcombine.low %v4763_v18, %v4771_v50  ;;  %v4851_v9 = vld [vmem:[%s15077_s13 + $0x1150] sm:$0xff] }
 0x679   : > { %10784 = vmatpush1.bf16.msra.mxu0 %v13208_v13  ;;  %v4531_v13 = vld [vmem:[%s15077_s13 + $0x750] sm:$0xff] }
 0x67a   : > { %10785 = vmatprep.subr.bf16.mxu0 %v13225_v29  ;;  %v4787_v29 = vld [vmem:[%s15077_s13 + $0xf50] sm:$0xff]  ;;  %v13321_v40 = vcombine.high %v4523_v31, %v4531_v13 }
 0x67b   : > { %10825 = vmatpush1.bf16.msra.mxu1 %v13464_v28  ;;  %v4779_v28 = vld [vmem:[%s15077_s13 + $0xf10] sm:$0xff] }
 0x67c   : > { %10826 = vmatprep.subr.bf16.mxu1 %v13481_v30  ;;  %v13304_v30 = vcombine.low %v4507_v15, %v4515_v17  ;;  %v13577_v44 = vcombine.high %v4779_v28, %v4787_v29  ;;  %v13576_v33 = vcombine.low %v4779_v28, %v4787_v29  ;;  %v13641_v17 = vcombine.high %v4843_v46, %v4851_v9  ;;  %v4859_v50 = vld [vmem:[%s15077_s13 + $0x1190] sm:$0xff] }
 0x67d   : > { %10786 = vmatpush1.bf16.msra.mxu0 %v13224_v23  ;;  %v4547_v23 = vld [vmem:[%s15077_s13 + $0x7d0] sm:$0xff] }
 0x67e   : > { %10787 = vmatprep.subr.bf16.mxu0 %v13241_v32  ;;  %v4803_v32 = vld [vmem:[%s15077_s13 + $0xfd0] sm:$0xff]  ;;  %v13337_v35 = vcombine.high %v4539_v45, %v4547_v23 }
 0x67f   : > { %10827 = vmatpush1.bf16.msra.mxu1 %v13480_v48  ;;  %v4795_v48 = vld [vmem:[%s15077_s13 + $0xf90] sm:$0xff] }
 0x680   : > { %10828 = vmatprep.subr.bf16.mxu1 %v13497_v55  ;;  %v13320_v55 = vcombine.low %v4523_v31, %v4531_v13  ;;  %v13593_v52 = vcombine.high %v4795_v48, %v4803_v32  ;;  %v13592_v60 = vcombine.low %v4795_v48, %v4803_v32  ;;  %v4875_v29 = vld [vmem:[%s15077_s13 + $0x1210] sm:$0xff] }
 0x681   : > { %10788 = vmatpush1.bf16.msra.mxu0 %v13240_v26  ;;  %v4819_v26 = vld [vmem:[%s15077_s13 + $0x1050] sm:$0xff] }
 0x682   : > { %10789 = vmatprep.subr.bf16.mxu0 %v13257_v56  ;;  %v5075_v56 = vld [vmem:[%s15077_s13 + $0x1850] sm:$0xff]  ;;  %v13609_v39 = vcombine.high %v4811_v36, %v4819_v26 }
 0x683   : > { %10829 = vmatpush1.bf16.msra.mxu1 %v13496_v53  ;;  %v5067_v53 = vld [vmem:[%s15077_s13 + $0x1810] sm:$0xff] }
 0x684   : > { %10830 = vmatprep.subr.bf16.mxu1 %v13513_v59  ;;  %v13336_v59 = vcombine.low %v4539_v45, %v4547_v23  ;;  %v13865_v61 = vcombine.high %v5067_v53, %v5075_v56  ;;  %v13864_v6 = vcombine.low %v5067_v53, %v5075_v56  ;;  %v4891_v32 = vld [vmem:[%s15077_s13 + $0x1290] sm:$0xff] }
 0x685   : > { %10790 = vmatpush1.bf16.msra.mxu0 %v13256_v47  ;;  %v4835_v47 = vld [vmem:[%s15077_s13 + $0x10d0] sm:$0xff] }
 0x686   : > { %10791 = vmatprep.subr.bf16.mxu0 %v13273_v3  ;;  %v5083_v3 = vld [vmem:[%s15077_s13 + $0x1890] sm:$0xff]  ;;  %v13625_v43 = vcombine.high %v4827_v62, %v4835_v47 }
 0x687   : > { %10831 = vmatpush1.bf16.msra.mxu1 %v13512_v2  ;;  %v13608_v2 = vcombine.low %v4811_v36, %v4819_v26  ;;  %v4907_v56 = vld [vmem:[%s15077_s13 + $0x1310] sm:$0xff] }
 0x688   : > { %10832 = vmatprep.subr.bf16.mxu1 %v13529_v4  ;;  %v5091_v4 = vld [vmem:[%s15077_s13 + $0x18d0] sm:$0xff] }
 0x689   : > { %10792 = vmatpush1.bf16.msra.mxu0 %v13272_v11  ;;  %v13881_v11 = vcombine.high %v5083_v3, %v5091_v4  ;;  %v13880_v15 = vcombine.low %v5083_v3, %v5091_v4  ;;  %v4923_v4 = vld [vmem:[%s15077_s13 + $0x1390] sm:$0xff] }
 0x68a   : > { %10793 = vmatprep.subr.bf16.mxu0 %v13289_v14  ;;  %v5107_v14 = vld [vmem:[%s15077_s13 + $0x1950] sm:$0xff] }
 0x68b   : > { %10833 = vmatpush1.bf16.msra.mxu1 %v13528_v12  ;;  %v5099_v12 = vld [vmem:[%s15077_s13 + $0x1910] sm:$0xff] }
 0x68c   : > { %10834 = vmatprep.subr.bf16.mxu1 %v13545_v34  ;;  %v13624_v34 = vcombine.low %v4827_v62, %v4835_v47  ;;  %v13897_v18 = vcombine.high %v5099_v12, %v5107_v14  ;;  %v13896_v31 = vcombine.low %v5099_v12, %v5107_v14  ;;  %v5187_v12 = vld [vmem:[%s15077_s13 + $0x1bd0] sm:$0xff] }
 0x68d   : > { %10794 = vmatpush1.bf16.msra.mxu0 %v13288_v57  ;;  %v4867_v57 = vld [vmem:[%s15077_s13 + $0x11d0] sm:$0xff] }
 0x68e   : > { %10795 = vmatprep.subr.bf16.mxu0 %v13305_v19  ;;  %v5123_v19 = vld [vmem:[%s15077_s13 + $0x19d0] sm:$0xff]  ;;  %v13657_v13 = vcombine.high %v4859_v50, %v4867_v57 }
 0x68f   : > { %10835 = vmatpush1.bf16.msra.mxu1 %v13544_v37  ;;  %v5115_v37 = vld [vmem:[%s15077_s13 + $0x1990] sm:$0xff] }
 0x690   : > { %10836 = vmatprep.subr.bf16.mxu1 %v13561_v20  ;;  %v13640_v20 = vcombine.low %v4843_v46, %v4851_v9  ;;  %v13913_v28 = vcombine.high %v5115_v37, %v5123_v19  ;;  %v13912_v45 = vcombine.low %v5115_v37, %v5123_v19  ;;  %v4273_v14 = vld [vmem:[#allocation2] sm:$0xff] }
 0x691   : > { %10796 = vmatpush1.bf16.msra.mxu0 %v13304_v30  ;;  %v4883_v30 = vld [vmem:[%s15077_s13 + $0x1250] sm:$0xff] }
 0x692   : > { %10797 = vmatprep.subr.bf16.mxu0 %v13321_v40  ;;  %v5139_v40 = vld [vmem:[%s15077_s13 + $0x1a50] sm:$0xff]  ;;  %v13673_v23 = vcombine.high %v4875_v29, %v4883_v30 }
 0x693   : > { %10837 = vmatpush1.bf16.msra.mxu1 %v13560_v16  ;;  %v5131_v16 = vld [vmem:[%s15077_s13 + $0x1a10] sm:$0xff] }
 0x694   : > { %10838 = vmatprep.subr.bf16.mxu1 %v13577_v44  ;;  %v13656_v44 = vcombine.low %v4859_v50, %v4867_v57  ;;  %v13929_v48 = vcombine.high %v5131_v16, %v5139_v40  ;;  %v13928_v36 = vcombine.low %v5131_v16, %v5139_v40  ;;  %v4274_v57 = vld [vmem:[#allocation2 + $0x8] sm:$0xff]  ;;  %v5195_v16 = vld [vmem:[%s15077_s13 + $0x1c10] sm:$0xff] }
 0x695   : > { %10798 = vmatpush1.bf16.msra.mxu0 %v13320_v55  ;;  %v4899_v55 = vld [vmem:[%s15077_s13 + $0x12d0] sm:$0xff] }
 0x696   : > { %10799 = vmatprep.subr.bf16.mxu0 %v13337_v35  ;;  %v5155_v35 = vld [vmem:[%s15077_s13 + $0x1ad0] sm:$0xff]  ;;  %v13689_v26 = vcombine.high %v4891_v32, %v4899_v55 }
 0x697   : > { %10839 = vmatpush1.bf16.msra.mxu1 %v13576_v33  ;;  %v5147_v33 = vld [vmem:[%s15077_s13 + $0x1a90] sm:$0xff] }
 0x698   : > { %10840 = vmatprep.subr.bf16.mxu1 %v13593_v52  ;;  %v13672_v52 = vcombine.low %v4875_v29, %v4883_v30  ;;  %v13945_v53 = vcombine.high %v5147_v33, %v5155_v35  ;;  %v13944_v62 = vcombine.low %v5147_v33, %v5155_v35  ;;  %v4947_v29 = vld [vmem:[%s15077_s13 + $0x1450] sm:$0xff] }
 0x699   : > { %10800 = vmatpush1.bf16.msra.mxu0 %v13336_v59  ;;  %v4915_v59 = vld [vmem:[%s15077_s13 + $0x1350] sm:$0xff] }
 0x69a   : > { %10851 = vmatprep.subr.bf16.mxu0 %v13609_v39  ;;  %v5171_v39 = vld [vmem:[%s15077_s13 + $0x1b50] sm:$0xff]  ;;  %v13705_v47 = vcombine.high %v4907_v56, %v4915_v59 }
 0x69b   : > { %10841 = vmatpush1.bf16.msra.mxu1 %v13592_v60  ;;  %v5163_v60 = vld [vmem:[%s15077_s13 + $0x1b10] sm:$0xff] }
 0x69c   : > { %10892 = vmatprep.subr.bf16.mxu1 %v13865_v61  ;;  %10802 = vmatmul.mubr.bf16.vlgmr.msra.gmra.mrb[24].mxu0 %v15811_v27  ;;  %v13688_v61 = vcombine.low %v4891_v32, %v4899_v55  ;;  %v13961_v3 = vcombine.high %v5163_v60, %v5171_v39  ;;  %v13960_v19 = vcombine.low %v5163_v60, %v5171_v39  ;;  %v5203_v40 = vld [vmem:[%s15077_s13 + $0x1c50] sm:$0xff] }
 0x69d   : > { %10852 = vmatpush1.bf16.msra.mxu0 %v13608_v2  ;;  %10883 = vmatprep.mubr.bf16.mxu0 %v15915_v41  ;;  %v13993_v32 = vcombine.high %v5195_v16, %v5203_v40  ;;  %v4955_v55 = vld [vmem:[%s15077_s13 + $0x1490] sm:$0xff] }
 0x69e   : > { %10843 = vmatmul.mubr.bf16.vlgmr.msra.gmra.mrb[24].mxu1 %v15813_v21  ;;  %10853 = vmatprep.subr.bf16.mxu0 %v13625_v43  ;;  %v4963_v33 = vld [vmem:[%s15077_s13 + $0x14d0] sm:$0xff] }
 0x69f   : > { %10893 = vmatpush1.bf16.msra.mxu1 %v13864_v6  ;;  %10924 = vmatprep.mubr.bf16.mxu1 %v15921_v24  ;;  %v4931_v6 = vld [vmem:[%s15077_s13 + $0x13d0] sm:$0xff] }
 0x6a0   : > { %10894 = vmatprep.subr.bf16.mxu1 %v13881_v11  ;;  %v5179_v11 = vld [vmem:[%s15077_s13 + $0x1b90] sm:$0xff] }
 0x6a1   : > { %10854 = vmatpush1.bf16.msra.mxu0 %v13624_v34  ;;  %v5211_v35 = vld [vmem:[%s15077_s13 + $0x1c90] sm:$0xff] }
 0x6a2   : > { %10855 = vmatprep.subr.bf16.mxu0 %v13641_v17  ;;  %v4979_v60 = vld [vmem:[%s15077_s13 + $0x1550] sm:$0xff] }
 0x6a3   : > { %10895 = vmatpush1.bf16.msra.mxu1 %v13880_v15  ;;  %v5227_v39 = vld [vmem:[%s15077_s13 + $0x1d10] sm:$0xff] }
 0x6a4   : > { %10896 = vmatprep.subr.bf16.mxu1 %v13897_v18  ;;  %v13704_v18 = vcombine.low %v4907_v56, %v4915_v59  ;;  %v4971_v59 = vld [vmem:[%s15077_s13 + $0x1510] sm:$0xff] }
 0x6a5   : > { %10856 = vmatpush1.bf16.msra.mxu0 %v13640_v20  ;;  %v13721_v20 = vcombine.high %v4923_v4, %v4931_v6 }
 0x6a6   : > { %10857 = vmatprep.subr.bf16.mxu0 %v13657_v13 }
 0x6a7   : > { %10897 = vmatpush1.bf16.msra.mxu1 %v13896_v31 }
 0x6a8   : > { %10898 = vmatprep.subr.bf16.mxu1 %v13913_v28  ;;  %v4939_v28 = vld [vmem:[%s15077_s13 + $0x1410] sm:$0xff] }
 0x6a9   : > { %10858 = vmatpush1.bf16.msra.mxu0 %v13656_v44 }
 0x6aa   : > { %10859 = vmatprep.subr.bf16.mxu0 %v13673_v23  ;;  %v13976_v23 = vcombine.low %v5179_v11, %v5187_v12 }
 0x6ab   : > { %10899 = vmatpush1.bf16.msra.mxu1 %v13912_v45  ;;  %v13720_v45 = vcombine.low %v4923_v4, %v4931_v6  ;;  %v4987_v4 = vld [vmem:[%s15077_s13 + $0x1590] sm:$0xff] }
 0x6ac   : > { %10900 = vmatprep.subr.bf16.mxu1 %v13929_v48  ;;  %v13737_v48 = vcombine.high %v4939_v28, %v4947_v29  ;;  %v4995_v6 = vld [vmem:[%s15077_s13 + $0x15d0] sm:$0xff] }
 0x6ad   : > { %10860 = vmatpush1.bf16.msra.mxu0 %v13672_v52  ;;  %v5219_v52 = vld [vmem:[%s15077_s13 + $0x1cd0] sm:$0xff] }
 0x6ae   : > { %10861 = vmatprep.subr.bf16.mxu0 %v13689_v26  ;;  %v13992_v26 = vcombine.low %v5195_v16, %v5203_v40  ;;  %v14009_v56 = vcombine.high %v5211_v35, %v5219_v52  ;;  %v5035_v16 = vld [vmem:[%s15077_s13 + $0x1710] sm:$0xff] }
 0x6af   : > { %10901 = vmatpush1.bf16.msra.mxu1 %v13928_v36  ;;  %v10557_v2 = vpop.f32.mrb[12].mxu0  ;;  %v13736_v36 = vcombine.low %v4939_v28, %v4947_v29  ;;  %v5043_v40 = vld [vmem:[%s15077_s13 + $0x1750] sm:$0xff] }
 0x6b0   : > { %10902 = vmatprep.subr.bf16.mxu1 %v13945_v53  ;;  %v10558_v43 = vadd.f32 %v10557_v2, %v15997_v5  ;;  %v10559_v9 = vpop.f32.mrb[13].mxu0  ;;  %v13753_v53 = vcombine.high %v4955_v55, %v4963_v33  ;;  %v13769_v2 = vcombine.high %v4971_v59, %v4979_v60 }
 0x6b1   : > { %v10598_v46 = vpop.f32.mrb[12].mxu1  ;;  %v10560_v34 = vadd.f32 %v10559_v9, %v15999_v8  ;;  %10862 = vmatpush1.bf16.msra.mxu0 %v13688_v61  ;;  %v10561_v17 = vpop.f32.mrb[14].mxu0  ;;  %v13977_v8 = vcombine.high %v5179_v11, %v5187_v12  ;;  %v5235_v61 = vld [vmem:[%s15077_s13 + $0x1d50] sm:$0xff]  ;;  %v13768_v9 = vcombine.low %v4971_v59, %v4979_v60  ;;  %v13785_v12 = vcombine.high %v4987_v4, %v4995_v6  ;;  %v4300_v60 = vld [vmem:[%s15077_s13 + $0x18] sm:$0xff] }
 0x6b2   : > { %v10600_v15 = vpop.f32.mrb[13].mxu1  ;;  %v10599_v50 = vadd.f32 %v10598_v46, %v10558_v43  ;;  %v10562_v5 = vpop.f32.mrb[15].mxu0  ;;  %10863 = vmatprep.subr.bf16.mxu0 %v13705_v47  ;;  %v14008_v47 = vcombine.low %v5211_v35, %v5219_v52  ;;  %v5243_v43 = vld [vmem:[%s15077_s13 + $0x1d90] sm:$0xff]  ;;  %v14024_v11 = vcombine.low %v5227_v39, %v5235_v61 }
 0x6b3   : > { %10903 = vmatpush1.bf16.msra.mxu1 %v13944_v62  ;;  %v10602_v37 = vpop.f32.mrb[14].mxu1  ;;  %v10601_v31 = vadd.f32 %v10600_v15, %v10560_v34  ;;  %v13752_v62 = vcombine.low %v4955_v55, %v4963_v33  ;;  %v5251_v46 = vld [vmem:[%s15077_s13 + $0x1dd0] sm:$0xff] }
 0x6b4   : > { %v10603_v13 = vpop.f32.mrb[15].mxu1  ;;  %10904 = vmatprep.subr.bf16.mxu1 %v13961_v3  ;;  %v11753_v30 = vadd.f32 %v10599_v50, %v4273_v14  ;;  %v14025_v3 = vcombine.high %v5227_v39, %v5235_v61  ;;  %v14041_v14 = vcombine.high %v5243_v43, %v5251_v46  ;;  %v5003_v34 = vld [vmem:[%s15077_s13 + $0x1610] sm:$0xff]  ;;  %v13784_v50 = vcombine.low %v4987_v4, %v4995_v6  ;;  %v4308_v39 = vld [vmem:[%s15077_s13 + $0x58] sm:$0xff] }
 0x6b5   : > { %v11754_v44 = vadd.f32 %v10601_v31, %v4274_v57  ;;  %10864 = vmatpush1.bf16.msra.mxu0 %v13704_v18  ;;  %v5011_v15 = vld [vmem:[%s15077_s13 + $0x1650] sm:$0xff]  ;;  %v14040_v57 = vcombine.low %v5243_v43, %v5251_v46  ;;  %v4556_v61 = vld [vmem:[%s15077_s13 + $0x818] sm:$0xff]  ;;  %v13098_v46 = vcombine.low %v4300_v60, %v4308_v39 }
 0x6b6   : > { %11769 = vst [vmem:[#allocation2] sm:$0xff] %v11753_v30  ;;  %10865 = vmatprep.subr.bf16.mxu0 %v13721_v20  ;;  %v5259_v17 = vld [vmem:[%s15077_s13 + $0x1e10] sm:$0xff]  ;;  %v13801_v37 = vcombine.high %v5003_v34, %v5011_v15  ;;  %v4316_v6 = vld [vmem:[%s15077_s13 + $0x98] sm:$0xff] }
 0x6b7   : > { %10905 = vmatpush1.bf16.msra.mxu1 %v13960_v19  ;;  %11770 = vst [vmem:[#allocation2 + $0x8] sm:$0xff] %v11754_v44  ;;  %v5267_v18 = vld [vmem:[%s15077_s13 + $0x1e50] sm:$0xff]  ;;  %v4324_v43 = vld [vmem:[%s15077_s13 + $0xd8] sm:$0xff] }
 0x6b8   : > { %10906 = vmatprep.subr.bf16.mxu1 %v13977_v8  ;;  %v14057_v5 = vcombine.high %v5259_v17, %v5267_v18  ;;  %v5019_v19 = vld [vmem:[%s15077_s13 + $0x1690] sm:$0xff]  ;;  %v13800_v8 = vcombine.low %v5003_v34, %v5011_v15  ;;  %v14056_v28 = vcombine.low %v5259_v17, %v5267_v18  ;;  %v4332_v34 = vld [vmem:[%s15077_s13 + $0x118] sm:$0xff] }
 0x6b9   : > { %10866 = vmatpush1.bf16.msra.mxu0 %v13720_v45  ;;  %v5027_v20 = vld [vmem:[%s15077_s13 + $0x16d0] sm:$0xff]  ;;  %v4340_v15 = vld [vmem:[%s15077_s13 + $0x158] sm:$0xff] }
 0x6ba   : > { %10867 = vmatprep.subr.bf16.mxu0 %v13737_v48  ;;  %v5275_v31 = vld [vmem:[%s15077_s13 + $0x1e90] sm:$0xff]  ;;  %v13817_v29 = vcombine.high %v5019_v19, %v5027_v20  ;;  %v4588_v18 = vld [vmem:[%s15077_s13 + $0x918] sm:$0xff] }
 0x6bb   : > { %10907 = vmatpush1.bf16.msra.mxu1 %v13976_v23  ;;  %v5283_v13 = vld [vmem:[%s15077_s13 + $0x1ed0] sm:$0xff]  ;;  %v13816_v23 = vcombine.low %v5019_v19, %v5027_v20  ;;  %v4348_v20 = vld [vmem:[%s15077_s13 + $0x198] sm:$0xff] }
 0x6bc   : > { %10908 = vmatprep.subr.bf16.mxu1 %v13993_v32  ;;  %v14073_v30 = vcombine.high %v5275_v31, %v5283_v13  ;;  %v5291_v44 = vld [vmem:[%s15077_s13 + $0x1f10] sm:$0xff]  ;;  %v14072_v48 = vcombine.low %v5275_v31, %v5283_v13  ;;  %v13833_v32 = vcombine.high %v5035_v16, %v5043_v40  ;;  %v4356_v31 = vld [vmem:[%s15077_s13 + $0x1d8] sm:$0xff] }
 0x6bd   : > { %10868 = vmatpush1.bf16.msra.mxu0 %v13736_v36  ;;  %v5299_v45 = vld [vmem:[%s15077_s13 + $0x1f50] sm:$0xff]  ;;  %v4604_v13 = vld [vmem:[%s15077_s13 + $0x998] sm:$0xff] }
 0x6be   : > { %10869 = vmatprep.subr.bf16.mxu0 %v13753_v53  ;;  %v14089_v55 = vcombine.high %v5291_v44, %v5299_v45  ;;  %v5051_v33 = vld [vmem:[%s15077_s13 + $0x1790] sm:$0xff]  ;;  %v14088_v53 = vcombine.low %v5291_v44, %v5299_v45  ;;  %v4372_v44 = vld [vmem:[%s15077_s13 + $0x258] sm:$0xff] }
 0x6bf   : > { %10909 = vmatpush1.bf16.msra.mxu1 %v13992_v26  ;;  %v5059_v35 = vld [vmem:[%s15077_s13 + $0x17d0] sm:$0xff]  ;;  %v13832_v26 = vcombine.low %v5035_v16, %v5043_v40  ;;  %v4364_v40 = vld [vmem:[%s15077_s13 + $0x218] sm:$0xff] }
 0x6c0   : > { %10910 = vmatprep.subr.bf16.mxu1 %v14009_v56  ;;  %v5307_v52 = vld [vmem:[%s15077_s13 + $0x1f90] sm:$0xff]  ;;  %v13849_v56 = vcombine.high %v5051_v33, %v5059_v35  ;;  %v4620_v45 = vld [vmem:[%s15077_s13 + $0xa18] sm:$0xff] }
 0x6c1   : > { %10870 = vmatpush1.bf16.msra.mxu0 %v13752_v62  ;;  %v5315_v36 = vld [vmem:[%s15077_s13 + $0x1fd0] sm:$0xff]  ;;  %v4564_v62 = vld [vmem:[%s15077_s13 + $0x858] sm:$0xff] }
 0x6c2   : > { %10871 = vmatprep.subr.bf16.mxu0 %v13769_v2  ;;  %v14105_v59 = vcombine.high %v5307_v52, %v5315_v36  ;;  %v14104_v2 = vcombine.low %v5307_v52, %v5315_v36  ;;  %v13355_v4 = vcombine.high %v4556_v61, %v4564_v62  ;;  %v4388_v52 = vld [vmem:[%s15077_s13 + $0x2d8] sm:$0xff] }
 0x6c3   : > { %10911 = vmatpush1.bf16.msra.mxu1 %v14008_v47  ;;  %v13848_v47 = vcombine.low %v5051_v33, %v5059_v35  ;;  %v4380_v35 = vld [vmem:[%s15077_s13 + $0x298] sm:$0xff] }
 0x6c4   : > { %10912 = vmatprep.subr.bf16.mxu1 %v14025_v3  ;;  %v13099_v3 = vcombine.high %v4300_v60, %v4308_v39  ;;  %v4636_v36 = vld [vmem:[%s15077_s13 + $0xa98] sm:$0xff] }
 0x6c5   : > { %10872 = vmatpush1.bf16.msra.mxu0 %v13768_v9  ;;  %v4572_v9 = vld [vmem:[%s15077_s13 + $0x898] sm:$0xff] }
 0x6c6   : > { %10873 = vmatprep.subr.bf16.mxu0 %v13785_v12  ;;  %v13354_v12 = vcombine.low %v4556_v61, %v4564_v62  ;;  %v4396_v39 = vld [vmem:[%s15077_s13 + $0x318] sm:$0xff] }
 0x6c7   : > { %10913 = vmatpush1.bf16.msra.mxu1 %v14024_v11  ;;  %v4580_v11 = vld [vmem:[%s15077_s13 + $0x8d8] sm:$0xff] }
 0x6c8   : > { %10914 = vmatprep.subr.bf16.mxu1 %v14041_v14  ;;  %v13115_v14 = vcombine.high %v4316_v6, %v4324_v43  ;;  %v13371_v17 = vcombine.high %v4572_v9, %v4580_v11  ;;  %v4404_v61 = vld [vmem:[%s15077_s13 + $0x358] sm:$0xff] }
 0x6c9   : > { %10874 = vmatpush1.bf16.msra.mxu0 %v13784_v50  ;;  %v4596_v50 = vld [vmem:[%s15077_s13 + $0x958] sm:$0xff] }
 0x6ca   : > { %10875 = vmatprep.subr.bf16.mxu0 %v13801_v37  ;;  %v13370_v37 = vcombine.low %v4572_v9, %v4580_v11  ;;  %v13387_v19 = vcombine.high %v4588_v18, %v4596_v50  ;;  %v4652_v62 = vld [vmem:[%s15077_s13 + $0xb18] sm:$0xff] }
 0x6cb   : > { %10915 = vmatpush1.bf16.msra.mxu1 %v14040_v57  ;;  %v13114_v57 = vcombine.low %v4316_v6, %v4324_v43  ;;  %v4420_v9 = vld [vmem:[%s15077_s13 + $0x3d8] sm:$0xff] }
 0x6cc   : > { %10916 = vmatprep.subr.bf16.mxu1 %v14057_v5  ;;  %v13131_v5 = vcombine.high %v4332_v34, %v4340_v15 }
 0x6cd   : > { %10876 = vmatpush1.bf16.msra.mxu0 %v13800_v8  ;;  %v4612_v8 = vld [vmem:[%s15077_s13 + $0x9d8] sm:$0xff] }
 0x6ce   : > { %10877 = vmatprep.subr.bf16.mxu0 %v13817_v29  ;;  %v13386_v29 = vcombine.low %v4588_v18, %v4596_v50  ;;  %v13403_v16 = vcombine.high %v4604_v13, %v4612_v8  ;;  %v13194_v50 = vcombine.low %v4396_v39, %v4404_v61 }
 0x6cf   : > { %10917 = vmatpush1.bf16.msra.mxu1 %v14056_v28  ;;  %v13130_v28 = vcombine.low %v4332_v34, %v4340_v15  ;;  %v4676_v34 = vld [vmem:[%s15077_s13 + $0xbd8] sm:$0xff] }
 0x6d0   : > { %10918 = vmatprep.subr.bf16.mxu1 %v14073_v30  ;;  %v13147_v30 = vcombine.high %v4348_v20, %v4356_v31 }
 0x6d1   : > { %10878 = vmatpush1.bf16.msra.mxu0 %v13816_v23  ;;  %v4628_v23 = vld [vmem:[%s15077_s13 + $0xa58] sm:$0xff] }
 0x6d2   : > { %10879 = vmatprep.subr.bf16.mxu0 %v13833_v32  ;;  %v13402_v32 = vcombine.low %v4604_v13, %v4612_v8  ;;  %v13419_v33 = vcombine.high %v4620_v45, %v4628_v23  ;;  %v4428_v8 = vld [vmem:[%s15077_s13 + $0x418] sm:$0xff] }
 0x6d3   : > { %10919 = vmatpush1.bf16.msra.mxu1 %v14072_v48  ;;  %v13146_v48 = vcombine.low %v4348_v20, %v4356_v31 }
 0x6d4   : > { %10920 = vmatprep.subr.bf16.mxu1 %v14089_v55  ;;  %v13163_v55 = vcombine.high %v4364_v40, %v4372_v44 }
 0x6d5   : > { %10880 = vmatpush1.bf16.msra.mxu0 %v13832_v26  ;;  %v4644_v26 = vld [vmem:[%s15077_s13 + $0xad8] sm:$0xff] }
 0x6d6   : > { %10881 = vmatprep.subr.bf16.mxu0 %v13849_v56  ;;  %v13418_v56 = vcombine.low %v4620_v45, %v4628_v23  ;;  %v13435_v60 = vcombine.high %v4636_v36, %v4644_v26  ;;  %v4444_v23 = vld [vmem:[%s15077_s13 + $0x498] sm:$0xff] }
 0x6d7   : > { %10921 = vmatpush1.bf16.msra.mxu1 %v14088_v53  ;;  %v13162_v53 = vcombine.low %v4364_v40, %v4372_v44 }
 0x6d8   : > { %10922 = vmatprep.subr.bf16.mxu1 %v14105_v59  ;;  %v13179_v59 = vcombine.high %v4380_v35, %v4388_v52 }
 0x6d9   : > { %10882 = vmatpush1.bf16.msra.mxu0 %v13848_v47  ;;  %v4660_v47 = vld [vmem:[%s15077_s13 + $0xb58] sm:$0xff] }
 0x6da   : > { %10933 = vmatprep.subr.bf16.mxu0 %v13099_v3  ;;  %v13434_v3 = vcombine.low %v4636_v36, %v4644_v26  ;;  %v13451_v43 = vcombine.high %v4652_v62, %v4660_v47  ;;  %v4460_v26 = vld [vmem:[%s15077_s13 + $0x518] sm:$0xff] }
 0x6db   : > { %10923 = vmatpush1.bf16.msra.mxu1 %v14104_v2  ;;  %v13178_v2 = vcombine.low %v4380_v35, %v4388_v52 }
 0x6dc   : > { %10974 = vmatprep.subr.bf16.mxu1 %v13355_v4  ;;  %10884 = vmatmul.mubr.bf16.vlgmr.msra.gmra.mrb[28].mxu0 %v15919_v22  ;;  %v13195_v4 = vcombine.high %v4396_v39, %v4404_v61 }
 0x6dd   : > { %10934 = vmatpush1.bf16.msra.mxu0 %v13098_v46  ;;  %10965 = vmatprep.mubr.bf16.mxu0 %v15729_v7  ;;  %v4412_v46 = vld [vmem:[%s15077_s13 + $0x398] sm:$0xff] }
 0x6de   : > { %10925 = vmatmul.mubr.bf16.vlgmr.msra.gmra.mrb[28].mxu1 %v15923_v25  ;;  %10935 = vmatprep.subr.bf16.mxu0 %v13115_v14  ;;  %v4668_v14 = vld [vmem:[%s15077_s13 + $0xb98] sm:$0xff]  ;;  %v13211_v20 = vcombine.high %v4412_v46, %v4420_v9 }
 0x6df   : > { %10975 = vmatpush1.bf16.msra.mxu1 %v13354_v12  ;;  %11006 = vmatprep.mubr.bf16.mxu1 %v15734_v10  ;;  %v13467_v13 = vcombine.high %v4668_v14, %v4676_v34  ;;  %v13466_v40 = vcombine.low %v4668_v14, %v4676_v34  ;;  %v4748_v14 = vld [vmem:[%s15077_s13 + $0xe18] sm:$0xff] }
 0x6e0   : > { %10976 = vmatprep.subr.bf16.mxu1 %v13371_v17  ;;  %v4756_v34 = vld [vmem:[%s15077_s13 + $0xe58] sm:$0xff] }
 0x6e1   : > { %10936 = vmatpush1.bf16.msra.mxu0 %v13114_v57 }
 0x6e2   : > { %10937 = vmatprep.subr.bf16.mxu0 %v13131_v5 }
 0x6e3   : > { %10977 = vmatpush1.bf16.msra.mxu1 %v13370_v37 }
 0x6e4   : > { %10978 = vmatprep.subr.bf16.mxu1 %v13387_v19  ;;  %v13450_v19 = vcombine.low %v4652_v62, %v4660_v47  ;;  %v4476_v47 = vld [vmem:[%s15077_s13 + $0x598] sm:$0xff] }
 0x6e5   : > { %10938 = vmatpush1.bf16.msra.mxu0 %v13130_v28  ;;  %v4436_v28 = vld [vmem:[%s15077_s13 + $0x458] sm:$0xff] }
 0x6e6   : > { %10939 = vmatprep.subr.bf16.mxu0 %v13147_v30  ;;  %v4692_v30 = vld [vmem:[%s15077_s13 + $0xc58] sm:$0xff]  ;;  %v13227_v44 = vcombine.high %v4428_v8, %v4436_v28 }
 0x6e7   : > { %10979 = vmatpush1.bf16.msra.mxu1 %v13386_v29  ;;  %v4684_v29 = vld [vmem:[%s15077_s13 + $0xc18] sm:$0xff] }
 0x6e8   : > { %10980 = vmatprep.subr.bf16.mxu1 %v13403_v16  ;;  %v13210_v16 = vcombine.low %v4412_v46, %v4420_v9  ;;  %v13483_v45 = vcombine.high %v4684_v29, %v4692_v30  ;;  %v13482_v35 = vcombine.low %v4684_v29, %v4692_v30  ;;  %v4524_v30 = vld [vmem:[%s15077_s13 + $0x718] sm:$0xff] }
 0x6e9   : > { %10940 = vmatpush1.bf16.msra.mxu0 %v13146_v48  ;;  %v4452_v48 = vld [vmem:[%s15077_s13 + $0x4d8] sm:$0xff] }
 0x6ea   : > { %10941 = vmatprep.subr.bf16.mxu0 %v13163_v55  ;;  %v4708_v55 = vld [vmem:[%s15077_s13 + $0xcd8] sm:$0xff]  ;;  %v13243_v52 = vcombine.high %v4444_v23, %v4452_v48 }
 0x6eb   : > { %10981 = vmatpush1.bf16.msra.mxu1 %v13402_v32  ;;  %v4700_v32 = vld [vmem:[%s15077_s13 + $0xc98] sm:$0xff] }
 0x6ec   : > { %10982 = vmatprep.subr.bf16.mxu1 %v13419_v33  ;;  %v13226_v33 = vcombine.low %v4428_v8, %v4436_v28  ;;  %v13499_v36 = vcombine.high %v4700_v32, %v4708_v55  ;;  %v13498_v39 = vcombine.low %v4700_v32, %v4708_v55  ;;  %v13546_v8 = vcombine.low %v4748_v14, %v4756_v34  ;;  %v4540_v55 = vld [vmem:[%s15077_s13 + $0x798] sm:$0xff] }
 0x6ed   : > { %10942 = vmatpush1.bf16.msra.mxu0 %v13162_v53  ;;  %v4468_v53 = vld [vmem:[%s15077_s13 + $0x558] sm:$0xff] }
 0x6ee   : > { %10943 = vmatprep.subr.bf16.mxu0 %v13179_v59  ;;  %v4724_v59 = vld [vmem:[%s15077_s13 + $0xd58] sm:$0xff]  ;;  %v13259_v61 = vcombine.high %v4460_v26, %v4468_v53 }
 0x6ef   : > { %10983 = vmatpush1.bf16.msra.mxu1 %v13418_v56  ;;  %v10639_v6 = vpop.f32.mrb[16].mxu0  ;;  %v4716_v56 = vld [vmem:[%s15077_s13 + $0xd18] sm:$0xff] }
 0x6f0   : > { %10984 = vmatprep.subr.bf16.mxu1 %v13435_v60  ;;  %v10641_v12 = vpop.f32.mrb[17].mxu0  ;;  %v13242_v60 = vcombine.low %v4444_v23, %v4452_v48  ;;  %v13515_v62 = vcombine.high %v4716_v56, %v4724_v59 }
 0x6f1   : > { %v10680_v11 = vpop.f32.mrb[16].mxu1  ;;  %v10643_v18 = vpop.f32.mrb[18].mxu0  ;;  %10944 = vmatpush1.bf16.msra.mxu0 %v13178_v2  ;;  %v4484_v2 = vld [vmem:[%s15077_s13 + $0x5d8] sm:$0xff] }
 0x6f2   : > { %v16239_v15 = vadd.f32 %v10680_v11, %v10639_v6  ;;  %v10682_v17 = vpop.f32.mrb[17].mxu1  ;;  %v10644_v5 = vpop.f32.mrb[19].mxu0  ;;  %10945 = vmatprep.subr.bf16.mxu0 %v13195_v4  ;;  %v4740_v4 = vld [vmem:[%s15077_s13 + $0xdd8] sm:$0xff]  ;;  %v13258_v6 = vcombine.low %v4460_v26, %v4468_v53  ;;  %v13275_v46 = vcombine.high %v4476_v47, %v4484_v2 }
 0x6f3   : > { %v16241_v57 = vadd.f32 %v10682_v17, %v10641_v12  ;;  %v10684_v37 = vpop.f32.mrb[18].mxu1  ;;  %10985 = vmatpush1.bf16.msra.mxu1 %v13434_v3  ;;  %v4732_v3 = vld [vmem:[%s15077_s13 + $0xd98] sm:$0xff]  ;;  %v13274_v17 = vcombine.low %v4476_v47, %v4484_v2 }
 0x6f4   : > { %v10685_v31 = vpop.f32.mrb[19].mxu1  ;;  %10986 = vmatprep.subr.bf16.mxu1 %v13451_v43  ;;  %v13514_v43 = vcombine.low %v4716_v56, %v4724_v59  ;;  %v13531_v9 = vcombine.high %v4732_v3, %v4740_v4  ;;  %v4492_v11 = vld [vmem:[%s15077_s13 + $0x618] sm:$0xff]  ;;  %v13530_v18 = vcombine.low %v4732_v3, %v4740_v4  ;;  %v13547_v37 = vcombine.high %v4748_v14, %v4756_v34 }
 0x6f5   : > { %10946 = vmatpush1.bf16.msra.mxu0 %v13194_v50  ;;  %v4500_v12 = vld [vmem:[%s15077_s13 + $0x658] sm:$0xff] }
 0x6f6   : > { %10947 = vmatprep.subr.bf16.mxu0 %v13211_v20  ;;  %v13291_v50 = vcombine.high %v4492_v11, %v4500_v12  ;;  %v4508_v5 = vld [vmem:[%s15077_s13 + $0x698] sm:$0xff] }
 0x6f7   : > { %10987 = vmatpush1.bf16.msra.mxu1 %v13450_v19  ;;  %v4516_v19 = vld [vmem:[%s15077_s13 + $0x6d8] sm:$0xff] }
 0x6f8   : > { %10988 = vmatprep.subr.bf16.mxu1 %v13467_v13  ;;  %v4764_v20 = vld [vmem:[%s15077_s13 + $0xe98] sm:$0xff]  ;;  %v13290_v13 = vcombine.low %v4492_v11, %v4500_v12  ;;  %v13307_v28 = vcombine.high %v4508_v5, %v4516_v19 }
 0x6f9   : > { %10948 = vmatpush1.bf16.msra.mxu0 %v13210_v16  ;;  %v4772_v31 = vld [vmem:[%s15077_s13 + $0xed8] sm:$0xff] }
 0x6fa   : > { %10949 = vmatprep.subr.bf16.mxu0 %v13227_v44  ;;  %v13563_v29 = vcombine.high %v4764_v20, %v4772_v31  ;;  %v4532_v16 = vld [vmem:[%s15077_s13 + $0x758] sm:$0xff]  ;;  %v13562_v23 = vcombine.low %v4764_v20, %v4772_v31 }
 0x6fb   : > { %10989 = vmatpush1.bf16.msra.mxu1 %v13466_v40  ;;  %v4780_v40 = vld [vmem:[%s15077_s13 + $0xf18] sm:$0xff]  ;;  %v13323_v48 = vcombine.high %v4524_v30, %v4532_v16 }
 0x6fc   : > { %10990 = vmatprep.subr.bf16.mxu1 %v13483_v45  ;;  %v4788_v44 = vld [vmem:[%s15077_s13 + $0xf58] sm:$0xff]  ;;  %v13306_v45 = vcombine.low %v4508_v5, %v4516_v19 }
 0x6fd   : > { %10950 = vmatpush1.bf16.msra.mxu0 %v13226_v33  ;;  %v13579_v32 = vcombine.high %v4780_v40, %v4788_v44  ;;  %v4548_v33 = vld [vmem:[%s15077_s13 + $0x7d8] sm:$0xff]  ;;  %v13578_v26 = vcombine.low %v4780_v40, %v4788_v44 }
 0x6fe   : > { %10951 = vmatprep.subr.bf16.mxu0 %v13243_v52  ;;  %v4804_v52 = vld [vmem:[%s15077_s13 + $0xfd8] sm:$0xff]  ;;  %v13339_v53 = vcombine.high %v4540_v55, %v4548_v33 }
 0x6ff   : > { %10991 = vmatpush1.bf16.msra.mxu1 %v13482_v35  ;;  %v4796_v35 = vld [vmem:[%s15077_s13 + $0xf98] sm:$0xff] }
 0x700   : > { %10992 = vmatprep.subr.bf16.mxu1 %v13499_v36  ;;  %v13322_v36 = vcombine.low %v4524_v30, %v4532_v16  ;;  %v13595_v56 = vcombine.high %v4796_v35, %v4804_v52  ;;  %v4812_v59 = vld [vmem:[%s15077_s13 + $0x1018] sm:$0xff]  ;;  %v13594_v47 = vcombine.low %v4796_v35, %v4804_v52 }
 0x701   : > { %10952 = vmatpush1.bf16.msra.mxu0 %v13242_v60  ;;  %v4820_v60 = vld [vmem:[%s15077_s13 + $0x1058] sm:$0xff] }
 0x702   : > { %10953 = vmatprep.subr.bf16.mxu0 %v13259_v61  ;;  %v5076_v61 = vld [vmem:[%s15077_s13 + $0x1858] sm:$0xff]  ;;  %v13611_v2 = vcombine.high %v4812_v59, %v4820_v60 }
 0x703   : > { %10993 = vmatpush1.bf16.msra.mxu1 %v13498_v39  ;;  %v5068_v39 = vld [vmem:[%s15077_s13 + $0x1818] sm:$0xff] }
 0x704   : > { %10994 = vmatprep.subr.bf16.mxu1 %v13515_v62  ;;  %v13338_v62 = vcombine.low %v4540_v55, %v4548_v33  ;;  %v13867_v3 = vcombine.high %v5068_v39, %v5076_v61  ;;  %v4828_v4 = vld [vmem:[%s15077_s13 + $0x1098] sm:$0xff]  ;;  %v13866_v11 = vcombine.low %v5068_v39, %v5076_v61 }
 0x705   : > { %10954 = vmatpush1.bf16.msra.mxu0 %v13258_v6  ;;  %v4836_v6 = vld [vmem:[%s15077_s13 + $0x10d8] sm:$0xff] }
 0x706   : > { %10955 = vmatprep.subr.bf16.mxu0 %v13275_v46  ;;  %v5084_v46 = vld [vmem:[%s15077_s13 + $0x1898] sm:$0xff]  ;;  %v13627_v12 = vcombine.high %v4828_v4, %v4836_v6 }
 0x707   : > { %10995 = vmatpush1.bf16.msra.mxu1 %v13514_v43  ;;  %v13610_v43 = vcombine.low %v4812_v59, %v4820_v60  ;;  %v4844_v14 = vld [vmem:[%s15077_s13 + $0x1118] sm:$0xff] }
 0x708   : > { %10996 = vmatprep.subr.bf16.mxu1 %v13531_v9  ;;  %v5092_v9 = vld [vmem:[%s15077_s13 + $0x18d8] sm:$0xff] }
 0x709   : > { %10956 = vmatpush1.bf16.msra.mxu0 %v13274_v17  ;;  %v4852_v34 = vld [vmem:[%s15077_s13 + $0x1158] sm:$0xff]  ;;  %v13883_v17 = vcombine.high %v5084_v46, %v5092_v9  ;;  %v13882_v5 = vcombine.low %v5084_v46, %v5092_v9 }
 0x70a   : > { %10957 = vmatprep.subr.bf16.mxu0 %v13291_v50  ;;  %v5108_v50 = vld [vmem:[%s15077_s13 + $0x1958] sm:$0xff]  ;;  %v13643_v19 = vcombine.high %v4844_v14, %v4852_v34 }
 0x70b   : > { %10997 = vmatpush1.bf16.msra.mxu1 %v13530_v18  ;;  %v5100_v18 = vld [vmem:[%s15077_s13 + $0x1918] sm:$0xff] }
 0x70c   : > { %10998 = vmatprep.subr.bf16.mxu1 %v13547_v37  ;;  %v13626_v37 = vcombine.low %v4828_v4, %v4836_v6  ;;  %v13899_v20 = vcombine.high %v5100_v18, %v5108_v50  ;;  %v4860_v31 = vld [vmem:[%s15077_s13 + $0x1198] sm:$0xff]  ;;  %v13898_v30 = vcombine.low %v5100_v18, %v5108_v50  ;;  %v4275_v50 = vld [vmem:[#allocation2 + $0x10] sm:$0xff] }
 0x70d   : > { %10958 = vmatpush1.bf16.msra.mxu0 %v13290_v13  ;;  %v4868_v13 = vld [vmem:[%s15077_s13 + $0x11d8] sm:$0xff] }
 0x70e   : > { %10959 = vmatprep.subr.bf16.mxu0 %v13307_v28  ;;  %v5124_v28 = vld [vmem:[%s15077_s13 + $0x19d8] sm:$0xff]  ;;  %v13659_v16 = vcombine.high %v4860_v31, %v4868_v13 }
 0x70f   : > { %10999 = vmatpush1.bf16.msra.mxu1 %v13546_v8  ;;  %v5116_v8 = vld [vmem:[%s15077_s13 + $0x1998] sm:$0xff] }
 0x710   : > { %11000 = vmatprep.subr.bf16.mxu1 %v13563_v29  ;;  %v13642_v29 = vcombine.low %v4844_v14, %v4852_v34  ;;  %v13915_v40 = vcombine.high %v5116_v8, %v5124_v28  ;;  %v4876_v44 = vld [vmem:[%s15077_s13 + $0x1218] sm:$0xff]  ;;  %v13914_v55 = vcombine.low %v5116_v8, %v5124_v28 }
 0x711   : > { %10960 = vmatpush1.bf16.msra.mxu0 %v13306_v45  ;;  %v4884_v45 = vld [vmem:[%s15077_s13 + $0x1258] sm:$0xff] }
 0x712   : > { %10961 = vmatprep.subr.bf16.mxu0 %v13323_v48  ;;  %v5140_v48 = vld [vmem:[%s15077_s13 + $0x1a58] sm:$0xff]  ;;  %v13675_v33 = vcombine.high %v4876_v44, %v4884_v45 }
 0x713   : > { %11001 = vmatpush1.bf16.msra.mxu1 %v13562_v23  ;;  %v5132_v23 = vld [vmem:[%s15077_s13 + $0x1a18] sm:$0xff] }
 0x714   : > { %11002 = vmatprep.subr.bf16.mxu1 %v13579_v32  ;;  %v13658_v32 = vcombine.low %v4860_v31, %v4868_v13  ;;  %v13931_v35 = vcombine.high %v5132_v23, %v5140_v48  ;;  %v4892_v52 = vld [vmem:[%s15077_s13 + $0x1298] sm:$0xff]  ;;  %v13930_v59 = vcombine.low %v5132_v23, %v5140_v48  ;;  %v4276_v13 = vld [vmem:[#allocation2 + $0x18] sm:$0xff] }
 0x715   : > { %10962 = vmatpush1.bf16.msra.mxu0 %v13322_v36  ;;  %v4900_v36 = vld [vmem:[%s15077_s13 + $0x12d8] sm:$0xff] }
 0x716   : > { %10963 = vmatprep.subr.bf16.mxu0 %v13339_v53  ;;  %v5156_v53 = vld [vmem:[%s15077_s13 + $0x1ad8] sm:$0xff]  ;;  %v13691_v60 = vcombine.high %v4892_v52, %v4900_v36 }
 0x717   : > { %11003 = vmatpush1.bf16.msra.mxu1 %v13578_v26  ;;  %v5148_v26 = vld [vmem:[%s15077_s13 + $0x1a98] sm:$0xff] }
 0x718   : > { %11004 = vmatprep.subr.bf16.mxu1 %v13595_v56  ;;  %v13674_v56 = vcombine.low %v4876_v44, %v4884_v45  ;;  %v13947_v39 = vcombine.high %v5148_v26, %v5156_v53  ;;  %v4908_v61 = vld [vmem:[%s15077_s13 + $0x1318] sm:$0xff]  ;;  %v13946_v4 = vcombine.low %v5148_v26, %v5156_v53 }
 0x719   : > { %10964 = vmatpush1.bf16.msra.mxu0 %v13338_v62  ;;  %v4916_v62 = vld [vmem:[%s15077_s13 + $0x1358] sm:$0xff] }
 0x71a   : > { %11015 = vmatprep.subr.bf16.mxu0 %v13611_v2  ;;  %v5172_v2 = vld [vmem:[%s15077_s13 + $0x1b58] sm:$0xff]  ;;  %v13707_v6 = vcombine.high %v4908_v61, %v4916_v62 }
 0x71b   : > { %11005 = vmatpush1.bf16.msra.mxu1 %v13594_v47  ;;  %v5164_v47 = vld [vmem:[%s15077_s13 + $0x1b18] sm:$0xff] }
 0x71c   : > { %11056 = vmatprep.subr.bf16.mxu1 %v13867_v3  ;;  %10966 = vmatmul.mubr.bf16.vlgmr.msra.gmra.mrb[32].mxu0 %v15811_v27  ;;  %v13690_v3 = vcombine.low %v4892_v52, %v4900_v36  ;;  %v13963_v46 = vcombine.high %v5164_v47, %v5172_v2  ;;  %v4924_v9 = vld [vmem:[%s15077_s13 + $0x1398] sm:$0xff]  ;;  %v13962_v28 = vcombine.low %v5164_v47, %v5172_v2 }
 0x71d   : > { %11016 = vmatpush1.bf16.msra.mxu0 %v13610_v43  ;;  %11047 = vmatprep.mubr.bf16.mxu0 %v15915_v41  ;;  %v5188_v18 = vld [vmem:[%s15077_s13 + $0x1bd8] sm:$0xff] }
 0x71e   : > { %11007 = vmatmul.mubr.bf16.vlgmr.msra.gmra.mrb[32].mxu1 %v15813_v21  ;;  %11017 = vmatprep.subr.bf16.mxu0 %v13627_v12  ;;  %v4948_v44 = vld [vmem:[%s15077_s13 + $0x1458] sm:$0xff] }
 0x71f   : > { %11057 = vmatpush1.bf16.msra.mxu1 %v13866_v11  ;;  %11088 = vmatprep.mubr.bf16.mxu1 %v15921_v24  ;;  %v4932_v11 = vld [vmem:[%s15077_s13 + $0x13d8] sm:$0xff] }
 0x720   : > { %11058 = vmatprep.subr.bf16.mxu1 %v13883_v17  ;;  %v5180_v17 = vld [vmem:[%s15077_s13 + $0x1b98] sm:$0xff] }
 0x721   : > { %11018 = vmatpush1.bf16.msra.mxu0 %v13626_v37  ;;  %v5196_v23 = vld [vmem:[%s15077_s13 + $0x1c18] sm:$0xff] }
 0x722   : > { %11019 = vmatprep.subr.bf16.mxu0 %v13643_v19  ;;  %v5204_v48 = vld [vmem:[%s15077_s13 + $0x1c58] sm:$0xff] }
 0x723   : > { %11059 = vmatpush1.bf16.msra.mxu1 %v13882_v5  ;;  %v13995_v52 = vcombine.high %v5196_v23, %v5204_v48  ;;  %v4956_v36 = vld [vmem:[%s15077_s13 + $0x1498] sm:$0xff] }
 0x724   : > { %11060 = vmatprep.subr.bf16.mxu1 %v13899_v20  ;;  %v13706_v20 = vcombine.low %v4908_v61, %v4916_v62  ;;  %v4964_v26 = vld [vmem:[%s15077_s13 + $0x14d8] sm:$0xff] }
 0x725   : > { %11020 = vmatpush1.bf16.msra.mxu0 %v13642_v29  ;;  %v13723_v29 = vcombine.high %v4924_v9, %v4932_v11  ;;  %v5212_v53 = vld [vmem:[%s15077_s13 + $0x1c98] sm:$0xff] }
 0x726   : > { %11021 = vmatprep.subr.bf16.mxu0 %v13659_v16  ;;  %v4972_v62 = vld [vmem:[%s15077_s13 + $0x1518] sm:$0xff] }
 0x727   : > { %11061 = vmatpush1.bf16.msra.mxu1 %v13898_v30  ;;  %v4980_v47 = vld [vmem:[%s15077_s13 + $0x1558] sm:$0xff] }
 0x728   : > { %11062 = vmatprep.subr.bf16.mxu1 %v13915_v40  ;;  %v4940_v40 = vld [vmem:[%s15077_s13 + $0x1418] sm:$0xff] }
 0x729   : > { %11022 = vmatpush1.bf16.msra.mxu0 %v13658_v32  ;;  %v5228_v2 = vld [vmem:[%s15077_s13 + $0x1d18] sm:$0xff] }
 0x72a   : > { %11023 = vmatprep.subr.bf16.mxu0 %v13675_v33  ;;  %v13978_v33 = vcombine.low %v5180_v17, %v5188_v18 }
 0x72b   : > { %11063 = vmatpush1.bf16.msra.mxu1 %v13914_v55  ;;  %v13722_v55 = vcombine.low %v4924_v9, %v4932_v11  ;;  %v4988_v9 = vld [vmem:[%s15077_s13 + $0x1598] sm:$0xff] }
 0x72c   : > { %11064 = vmatprep.subr.bf16.mxu1 %v13931_v35  ;;  %v13739_v35 = vcombine.high %v4940_v40, %v4948_v44  ;;  %v4996_v11 = vld [vmem:[%s15077_s13 + $0x15d8] sm:$0xff] }
 0x72d   : > { %11024 = vmatpush1.bf16.msra.mxu0 %v13674_v56  ;;  %v5220_v56 = vld [vmem:[%s15077_s13 + $0x1cd8] sm:$0xff] }
 0x72e   : > { %11025 = vmatprep.subr.bf16.mxu0 %v13691_v60  ;;  %v13994_v60 = vcombine.low %v5196_v23, %v5204_v48  ;;  %v14011_v61 = vcombine.high %v5212_v53, %v5220_v56  ;;  %v5036_v23 = vld [vmem:[%s15077_s13 + $0x1718] sm:$0xff] }
 0x72f   : > { %11065 = vmatpush1.bf16.msra.mxu1 %v13930_v59  ;;  %v10721_v43 = vpop.f32.mrb[20].mxu0  ;;  %v13738_v59 = vcombine.low %v4940_v40, %v4948_v44  ;;  %v5044_v48 = vld [vmem:[%s15077_s13 + $0x1758] sm:$0xff] }
 0x730   : > { %11066 = vmatprep.subr.bf16.mxu1 %v13947_v39  ;;  %v10722_v12 = vadd.f32 %v10721_v43, %v16239_v15  ;;  %v10723_v34 = vpop.f32.mrb[21].mxu0  ;;  %v13755_v39 = vcombine.high %v4956_v36, %v4964_v26  ;;  %v13771_v43 = vcombine.high %v4972_v62, %v4980_v47 }
 0x731   : > { %v10762_v14 = vpop.f32.mrb[20].mxu1  ;;  %v10724_v37 = vadd.f32 %v10723_v34, %v16241_v57  ;;  %v10725_v19 = vpop.f32.mrb[22].mxu0  ;;  %11026 = vmatpush1.bf16.msra.mxu0 %v13690_v3  ;;  %v13979_v57 = vcombine.high %v5180_v17, %v5188_v18  ;;  %v5236_v3 = vld [vmem:[%s15077_s13 + $0x1d58] sm:$0xff]  ;;  %v13770_v34 = vcombine.low %v4972_v62, %v4980_v47  ;;  %v13787_v18 = vcombine.high %v4988_v9, %v4996_v11  ;;  %v4301_v47 = vld [vmem:[%s15077_s13 + $0x20] sm:$0xff] }
 0x732   : > { %v10764_v5 = vpop.f32.mrb[21].mxu1  ;;  %v10763_v31 = vadd.f32 %v10762_v14, %v10722_v12  ;;  %v10726_v15 = vpop.f32.mrb[23].mxu0  ;;  %11027 = vmatprep.subr.bf16.mxu0 %v13707_v6  ;;  %v14010_v6 = vcombine.low %v5212_v53, %v5220_v56  ;;  %v5244_v12 = vld [vmem:[%s15077_s13 + $0x1d98] sm:$0xff]  ;;  %v14026_v17 = vcombine.low %v5228_v2, %v5236_v3 }
 0x733   : > { %v10766_v8 = vpop.f32.mrb[22].mxu1  ;;  %11067 = vmatpush1.bf16.msra.mxu1 %v13946_v4  ;;  %v10765_v30 = vadd.f32 %v10764_v5, %v10724_v37  ;;  %v13754_v4 = vcombine.low %v4956_v36, %v4964_v26  ;;  %v5252_v14 = vld [vmem:[%s15077_s13 + $0x1dd8] sm:$0xff] }
 0x734   : > { %v10767_v16 = vpop.f32.mrb[23].mxu1  ;;  %11068 = vmatprep.subr.bf16.mxu1 %v13963_v46  ;;  %v11755_v45 = vadd.f32 %v10763_v31, %v4275_v50  ;;  %v14027_v46 = vcombine.high %v5228_v2, %v5236_v3  ;;  %v14043_v50 = vcombine.high %v5244_v12, %v5252_v14  ;;  %v5004_v37 = vld [vmem:[%s15077_s13 + $0x1618] sm:$0xff]  ;;  %v13786_v31 = vcombine.low %v4988_v9, %v4996_v11  ;;  %v4309_v2 = vld [vmem:[%s15077_s13 + $0x60] sm:$0xff] }
 0x735   : > { %v11756_v32 = vadd.f32 %v10765_v30, %v4276_v13  ;;  %11028 = vmatpush1.bf16.msra.mxu0 %v13706_v20  ;;  %v5012_v5 = vld [vmem:[%s15077_s13 + $0x1658] sm:$0xff]  ;;  %v14042_v13 = vcombine.low %v5244_v12, %v5252_v14  ;;  %v4557_v3 = vld [vmem:[%s15077_s13 + $0x820] sm:$0xff]  ;;  %v13100_v14 = vcombine.low %v4301_v47, %v4309_v2 }
 0x736   : > { %11771 = vst [vmem:[#allocation2 + $0x10] sm:$0xff] %v11755_v45  ;;  %11029 = vmatprep.subr.bf16.mxu0 %v13723_v29  ;;  %v5260_v19 = vld [vmem:[%s15077_s13 + $0x1e18] sm:$0xff]  ;;  %v13803_v8 = vcombine.high %v5004_v37, %v5012_v5  ;;  %v4317_v11 = vld [vmem:[%s15077_s13 + $0xa0] sm:$0xff] }
 0x737   : > { %11069 = vmatpush1.bf16.msra.mxu1 %v13962_v28  ;;  %11772 = vst [vmem:[#allocation2 + $0x18] sm:$0xff] %v11756_v32  ;;  %v5268_v20 = vld [vmem:[%s15077_s13 + $0x1e58] sm:$0xff]  ;;  %v4325_v12 = vld [vmem:[%s15077_s13 + $0xe0] sm:$0xff] }
 0x738   : > { %11070 = vmatprep.subr.bf16.mxu1 %v13979_v57  ;;  %v14059_v15 = vcombine.high %v5260_v19, %v5268_v20  ;;  %v5020_v28 = vld [vmem:[%s15077_s13 + $0x1698] sm:$0xff]  ;;  %v13802_v57 = vcombine.low %v5004_v37, %v5012_v5  ;;  %v14058_v40 = vcombine.low %v5260_v19, %v5268_v20  ;;  %v4333_v37 = vld [vmem:[%s15077_s13 + $0x120] sm:$0xff] }
 0x739   : > { %11030 = vmatpush1.bf16.msra.mxu0 %v13722_v55  ;;  %v5028_v29 = vld [vmem:[%s15077_s13 + $0x16d8] sm:$0xff]  ;;  %v4341_v5 = vld [vmem:[%s15077_s13 + $0x160] sm:$0xff] }
 0x73a   : > { %11031 = vmatprep.subr.bf16.mxu0 %v13739_v35  ;;  %v5276_v30 = vld [vmem:[%s15077_s13 + $0x1e98] sm:$0xff]  ;;  %v13819_v44 = vcombine.high %v5020_v28, %v5028_v29  ;;  %v4589_v20 = vld [vmem:[%s15077_s13 + $0x920] sm:$0xff] }
 0x73b   : > { %11071 = vmatpush1.bf16.msra.mxu1 %v13978_v33  ;;  %v5284_v16 = vld [vmem:[%s15077_s13 + $0x1ed8] sm:$0xff]  ;;  %v13818_v33 = vcombine.low %v5020_v28, %v5028_v29  ;;  %v4349_v29 = vld [vmem:[%s15077_s13 + $0x1a0] sm:$0xff] }
 0x73c   : > { %11072 = vmatprep.subr.bf16.mxu1 %v13995_v52  ;;  %v14075_v45 = vcombine.high %v5276_v30, %v5284_v16  ;;  %v5292_v32 = vld [vmem:[%s15077_s13 + $0x1f18] sm:$0xff]  ;;  %v14074_v35 = vcombine.low %v5276_v30, %v5284_v16  ;;  %v13835_v52 = vcombine.high %v5036_v23, %v5044_v48  ;;  %v4357_v30 = vld [vmem:[%s15077_s13 + $0x1e0] sm:$0xff] }
 0x73d   : > { %11032 = vmatpush1.bf16.msra.mxu0 %v13738_v59  ;;  %v5300_v55 = vld [vmem:[%s15077_s13 + $0x1f58] sm:$0xff]  ;;  %v4605_v16 = vld [vmem:[%s15077_s13 + $0x9a0] sm:$0xff] }
 0x73e   : > { %11033 = vmatprep.subr.bf16.mxu0 %v13755_v39  ;;  %v14091_v36 = vcombine.high %v5292_v32, %v5300_v55  ;;  %v5052_v26 = vld [vmem:[%s15077_s13 + $0x1798] sm:$0xff]  ;;  %v14090_v39 = vcombine.low %v5292_v32, %v5300_v55  ;;  %v4373_v32 = vld [vmem:[%s15077_s13 + $0x260] sm:$0xff] }
 0x73f   : > { %11073 = vmatpush1.bf16.msra.mxu1 %v13994_v60  ;;  %v5060_v53 = vld [vmem:[%s15077_s13 + $0x17d8] sm:$0xff]  ;;  %v13834_v60 = vcombine.low %v5036_v23, %v5044_v48  ;;  %v4365_v48 = vld [vmem:[%s15077_s13 + $0x220] sm:$0xff] }
 0x740   : > { %11074 = vmatprep.subr.bf16.mxu1 %v14011_v61  ;;  %v5308_v56 = vld [vmem:[%s15077_s13 + $0x1f98] sm:$0xff]  ;;  %v13851_v61 = vcombine.high %v5052_v26, %v5060_v53  ;;  %v4621_v55 = vld [vmem:[%s15077_s13 + $0xa20] sm:$0xff] }
 0x741   : > { %11034 = vmatpush1.bf16.msra.mxu0 %v13754_v4  ;;  %v5316_v59 = vld [vmem:[%s15077_s13 + $0x1fd8] sm:$0xff]  ;;  %v4565_v4 = vld [vmem:[%s15077_s13 + $0x860] sm:$0xff] }
 0x742   : > { %11035 = vmatprep.subr.bf16.mxu0 %v13771_v43  ;;  %v14107_v62 = vcombine.high %v5308_v56, %v5316_v59  ;;  %v14106_v43 = vcombine.low %v5308_v56, %v5316_v59  ;;  %v13357_v9 = vcombine.high %v4557_v3, %v4565_v4  ;;  %v4389_v56 = vld [vmem:[%s15077_s13 + $0x2e0] sm:$0xff] }
 0x743   : > { %11075 = vmatpush1.bf16.msra.mxu1 %v14010_v6  ;;  %v13850_v6 = vcombine.low %v5052_v26, %v5060_v53  ;;  %v4381_v53 = vld [vmem:[%s15077_s13 + $0x2a0] sm:$0xff] }
 0x744   : > { %11076 = vmatprep.subr.bf16.mxu1 %v14027_v46  ;;  %v13101_v46 = vcombine.high %v4301_v47, %v4309_v2  ;;  %v4637_v59 = vld [vmem:[%s15077_s13 + $0xaa0] sm:$0xff] }
 0x745   : > { %11036 = vmatpush1.bf16.msra.mxu0 %v13770_v34  ;;  %v4573_v34 = vld [vmem:[%s15077_s13 + $0x8a0] sm:$0xff] }
 0x746   : > { %11037 = vmatprep.subr.bf16.mxu0 %v13787_v18  ;;  %v13356_v18 = vcombine.low %v4557_v3, %v4565_v4  ;;  %v4397_v2 = vld [vmem:[%s15077_s13 + $0x320] sm:$0xff] }
 0x747   : > { %11077 = vmatpush1.bf16.msra.mxu1 %v14026_v17  ;;  %v4581_v17 = vld [vmem:[%s15077_s13 + $0x8e0] sm:$0xff] }
 0x748   : > { %11078 = vmatprep.subr.bf16.mxu1 %v14043_v50  ;;  %v13117_v50 = vcombine.high %v4317_v11, %v4325_v12  ;;  %v13373_v19 = vcombine.high %v4573_v34, %v4581_v17  ;;  %v4405_v3 = vld [vmem:[%s15077_s13 + $0x360] sm:$0xff] }
 0x749   : > { %11038 = vmatpush1.bf16.msra.mxu0 %v13786_v31  ;;  %v4597_v31 = vld [vmem:[%s15077_s13 + $0x960] sm:$0xff] }
 0x74a   : > { %11039 = vmatprep.subr.bf16.mxu0 %v13803_v8  ;;  %v13372_v8 = vcombine.low %v4573_v34, %v4581_v17  ;;  %v13389_v28 = vcombine.high %v4589_v20, %v4597_v31  ;;  %v4653_v4 = vld [vmem:[%s15077_s13 + $0xb20] sm:$0xff] }
 0x74b   : > { %11079 = vmatpush1.bf16.msra.mxu1 %v14042_v13  ;;  %v13116_v13 = vcombine.low %v4317_v11, %v4325_v12  ;;  %v4421_v34 = vld [vmem:[%s15077_s13 + $0x3e0] sm:$0xff] }
 0x74c   : > { %11080 = vmatprep.subr.bf16.mxu1 %v14059_v15  ;;  %v13133_v15 = vcombine.high %v4333_v37, %v4341_v5 }
 0x74d   : > { %11040 = vmatpush1.bf16.msra.mxu0 %v13802_v57  ;;  %v4613_v57 = vld [vmem:[%s15077_s13 + $0x9e0] sm:$0xff] }
 0x74e   : > { %11041 = vmatprep.subr.bf16.mxu0 %v13819_v44  ;;  %v13388_v44 = vcombine.low %v4589_v20, %v4597_v31  ;;  %v13405_v23 = vcombine.high %v4605_v16, %v4613_v57  ;;  %v13196_v31 = vcombine.low %v4397_v2, %v4405_v3 }
 0x74f   : > { %11081 = vmatpush1.bf16.msra.mxu1 %v14058_v40  ;;  %v13132_v40 = vcombine.low %v4333_v37, %v4341_v5  ;;  %v4677_v37 = vld [vmem:[%s15077_s13 + $0xbe0] sm:$0xff] }
 0x750   : > { %11082 = vmatprep.subr.bf16.mxu1 %v14075_v45  ;;  %v13149_v45 = vcombine.high %v4349_v29, %v4357_v30 }
 0x751   : > { %11042 = vmatpush1.bf16.msra.mxu0 %v13818_v33  ;;  %v4629_v33 = vld [vmem:[%s15077_s13 + $0xa60] sm:$0xff] }
 0x752   : > { %11043 = vmatprep.subr.bf16.mxu0 %v13835_v52  ;;  %v13404_v52 = vcombine.low %v4605_v16, %v4613_v57  ;;  %v13421_v26 = vcombine.high %v4621_v55, %v4629_v33  ;;  %v4429_v57 = vld [vmem:[%s15077_s13 + $0x420] sm:$0xff] }
 0x753   : > { %11083 = vmatpush1.bf16.msra.mxu1 %v14074_v35  ;;  %v13148_v35 = vcombine.low %v4349_v29, %v4357_v30 }
 0x754   : > { %11084 = vmatprep.subr.bf16.mxu1 %v14091_v36  ;;  %v13165_v36 = vcombine.high %v4365_v48, %v4373_v32 }
 0x755   : > { %11044 = vmatpush1.bf16.msra.mxu0 %v13834_v60  ;;  %v4645_v60 = vld [vmem:[%s15077_s13 + $0xae0] sm:$0xff] }
 0x756   : > { %11045 = vmatprep.subr.bf16.mxu0 %v13851_v61  ;;  %v13420_v61 = vcombine.low %v4621_v55, %v4629_v33  ;;  %v13437_v47 = vcombine.high %v4637_v59, %v4645_v60  ;;  %v4445_v33 = vld [vmem:[%s15077_s13 + $0x4a0] sm:$0xff] }
 0x757   : > { %11085 = vmatpush1.bf16.msra.mxu1 %v14090_v39  ;;  %v13164_v39 = vcombine.low %v4365_v48, %v4373_v32 }
 0x758   : > { %11086 = vmatprep.subr.bf16.mxu1 %v14107_v62  ;;  %v13181_v62 = vcombine.high %v4381_v53, %v4389_v56 }
 0x759   : > { %11046 = vmatpush1.bf16.msra.mxu0 %v13850_v6  ;;  %v4661_v6 = vld [vmem:[%s15077_s13 + $0xb60] sm:$0xff] }
 0x75a   : > { %11097 = vmatprep.subr.bf16.mxu0 %v13101_v46  ;;  %v13436_v46 = vcombine.low %v4637_v59, %v4645_v60  ;;  %v13453_v12 = vcombine.high %v4653_v4, %v4661_v6  ;;  %v4461_v60 = vld [vmem:[%s15077_s13 + $0x520] sm:$0xff] }
 0x75b   : > { %11087 = vmatpush1.bf16.msra.mxu1 %v14106_v43  ;;  %v13180_v43 = vcombine.low %v4381_v53, %v4389_v56 }
 0x75c   : > { %11138 = vmatprep.subr.bf16.mxu1 %v13357_v9  ;;  %11048 = vmatmul.mubr.bf16.vlgmr.msra.gmra.mrb[36].mxu0 %v15919_v22  ;;  %v13197_v9 = vcombine.high %v4397_v2, %v4405_v3 }
 0x75d   : > { %11098 = vmatpush1.bf16.msra.mxu0 %v13100_v14  ;;  %11129 = vmatprep.mubr.bf16.mxu0 %v15729_v7  ;;  %v4413_v14 = vld [vmem:[%s15077_s13 + $0x3a0] sm:$0xff] }
 0x75e   : > { %11089 = vmatmul.mubr.bf16.vlgmr.msra.gmra.mrb[36].mxu1 %v15923_v25  ;;  %11099 = vmatprep.subr.bf16.mxu0 %v13117_v50  ;;  %v4669_v50 = vld [vmem:[%s15077_s13 + $0xba0] sm:$0xff]  ;;  %v13213_v29 = vcombine.high %v4413_v14, %v4421_v34 }
 0x75f   : > { %11139 = vmatpush1.bf16.msra.mxu1 %v13356_v18  ;;  %11170 = vmatprep.mubr.bf16.mxu1 %v15734_v10  ;;  %v13469_v16 = vcombine.high %v4669_v50, %v4677_v37  ;;  %v13468_v48 = vcombine.low %v4669_v50, %v4677_v37  ;;  %v4749_v50 = vld [vmem:[%s15077_s13 + $0xe20] sm:$0xff] }
 0x760   : > { %11140 = vmatprep.subr.bf16.mxu1 %v13373_v19  ;;  %v4757_v37 = vld [vmem:[%s15077_s13 + $0xe60] sm:$0xff] }
 0x761   : > { %11100 = vmatpush1.bf16.msra.mxu0 %v13116_v13 }
 0x762   : > { %11101 = vmatprep.subr.bf16.mxu0 %v13133_v15 }
 0x763   : > { %11141 = vmatpush1.bf16.msra.mxu1 %v13372_v8 }
 0x764   : > { %11142 = vmatprep.subr.bf16.mxu1 %v13389_v28  ;;  %v13452_v28 = vcombine.low %v4653_v4, %v4661_v6  ;;  %v4477_v6 = vld [vmem:[%s15077_s13 + $0x5a0] sm:$0xff] }
 0x765   : > { %11102 = vmatpush1.bf16.msra.mxu0 %v13132_v40  ;;  %v4437_v40 = vld [vmem:[%s15077_s13 + $0x460] sm:$0xff] }
 0x766   : > { %11103 = vmatprep.subr.bf16.mxu0 %v13149_v45  ;;  %v4693_v45 = vld [vmem:[%s15077_s13 + $0xc60] sm:$0xff]  ;;  %v13229_v32 = vcombine.high %v4429_v57, %v4437_v40 }
 0x767   : > { %11143 = vmatpush1.bf16.msra.mxu1 %v13388_v44  ;;  %v4685_v44 = vld [vmem:[%s15077_s13 + $0xc20] sm:$0xff] }
 0x768   : > { %11144 = vmatprep.subr.bf16.mxu1 %v13405_v23  ;;  %v13212_v23 = vcombine.low %v4413_v14, %v4421_v34  ;;  %v13485_v55 = vcombine.high %v4685_v44, %v4693_v45  ;;  %v13484_v53 = vcombine.low %v4685_v44, %v4693_v45  ;;  %v4525_v45 = vld [vmem:[%s15077_s13 + $0x720] sm:$0xff] }
 0x769   : > { %11104 = vmatpush1.bf16.msra.mxu0 %v13148_v35  ;;  %v4453_v35 = vld [vmem:[%s15077_s13 + $0x4e0] sm:$0xff] }
 0x76a   : > { %11105 = vmatprep.subr.bf16.mxu0 %v13165_v36  ;;  %v4709_v36 = vld [vmem:[%s15077_s13 + $0xce0] sm:$0xff]  ;;  %v13245_v56 = vcombine.high %v4445_v33, %v4453_v35 }
 0x76b   : > { %11145 = vmatpush1.bf16.msra.mxu1 %v13404_v52  ;;  %v4701_v52 = vld [vmem:[%s15077_s13 + $0xca0] sm:$0xff] }
 0x76c   : > { %11146 = vmatprep.subr.bf16.mxu1 %v13421_v26  ;;  %v13228_v26 = vcombine.low %v4429_v57, %v4437_v40  ;;  %v13501_v59 = vcombine.high %v4701_v52, %v4709_v36  ;;  %v13500_v2 = vcombine.low %v4701_v52, %v4709_v36  ;;  %v13548_v57 = vcombine.low %v4749_v50, %v4757_v37  ;;  %v4541_v36 = vld [vmem:[%s15077_s13 + $0x7a0] sm:$0xff] }
 0x76d   : > { %11106 = vmatpush1.bf16.msra.mxu0 %v13164_v39  ;;  %v4469_v39 = vld [vmem:[%s15077_s13 + $0x560] sm:$0xff] }
 0x76e   : > { %11107 = vmatprep.subr.bf16.mxu0 %v13181_v62  ;;  %v4725_v62 = vld [vmem:[%s15077_s13 + $0xd60] sm:$0xff]  ;;  %v13261_v3 = vcombine.high %v4461_v60, %v4469_v39 }
 0x76f   : > { %11147 = vmatpush1.bf16.msra.mxu1 %v13420_v61  ;;  %v10803_v11 = vpop.f32.mrb[24].mxu0  ;;  %v4717_v61 = vld [vmem:[%s15077_s13 + $0xd20] sm:$0xff] }
 0x770   : > { %11148 = vmatprep.subr.bf16.mxu1 %v13437_v47  ;;  %v10805_v18 = vpop.f32.mrb[25].mxu0  ;;  %v13244_v47 = vcombine.low %v4445_v33, %v4453_v35  ;;  %v13517_v4 = vcombine.high %v4717_v61, %v4725_v62 }
 0x771   : > { %v10844_v17 = vpop.f32.mrb[24].mxu1  ;;  %v10807_v20 = vpop.f32.mrb[26].mxu0  ;;  %11108 = vmatpush1.bf16.msra.mxu0 %v13180_v43  ;;  %v4485_v43 = vld [vmem:[%s15077_s13 + $0x5e0] sm:$0xff] }
 0x772   : > { %v16381_v5 = vadd.f32 %v10844_v17, %v10803_v11  ;;  %v10846_v19 = vpop.f32.mrb[25].mxu1  ;;  %v10808_v15 = vpop.f32.mrb[27].mxu0  ;;  %11109 = vmatprep.subr.bf16.mxu0 %v13197_v9  ;;  %v4741_v9 = vld [vmem:[%s15077_s13 + $0xde0] sm:$0xff]  ;;  %v13260_v11 = vcombine.low %v4461_v60, %v4469_v39  ;;  %v13277_v14 = vcombine.high %v4477_v6, %v4485_v43 }
 0x773   : > { %v16383_v13 = vadd.f32 %v10846_v19, %v10805_v18  ;;  %v10848_v8 = vpop.f32.mrb[26].mxu1  ;;  %11149 = vmatpush1.bf16.msra.mxu1 %v13436_v46  ;;  %v4733_v46 = vld [vmem:[%s15077_s13 + $0xda0] sm:$0xff]  ;;  %v13276_v19 = vcombine.low %v4477_v6, %v4485_v43 }
 0x774   : > { %v10849_v30 = vpop.f32.mrb[27].mxu1  ;;  %11150 = vmatprep.subr.bf16.mxu1 %v13453_v12  ;;  %v13516_v12 = vcombine.low %v4717_v61, %v4725_v62  ;;  %v13533_v34 = vcombine.high %v4733_v46, %v4741_v9  ;;  %v4493_v17 = vld [vmem:[%s15077_s13 + $0x620] sm:$0xff]  ;;  %v13532_v20 = vcombine.low %v4733_v46, %v4741_v9  ;;  %v13549_v8 = vcombine.high %v4749_v50, %v4757_v37 }
 0x775   : > { %11110 = vmatpush1.bf16.msra.mxu0 %v13196_v31  ;;  %v4501_v18 = vld [vmem:[%s15077_s13 + $0x660] sm:$0xff] }
 0x776   : > { %11111 = vmatprep.subr.bf16.mxu0 %v13213_v29  ;;  %v13293_v31 = vcombine.high %v4493_v17, %v4501_v18  ;;  %v4509_v15 = vld [vmem:[%s15077_s13 + $0x6a0] sm:$0xff] }
 0x777   : > { %11151 = vmatpush1.bf16.msra.mxu1 %v13452_v28  ;;  %v4517_v28 = vld [vmem:[%s15077_s13 + $0x6e0] sm:$0xff] }
 0x778   : > { %11152 = vmatprep.subr.bf16.mxu1 %v13469_v16  ;;  %v4765_v29 = vld [vmem:[%s15077_s13 + $0xea0] sm:$0xff]  ;;  %v13292_v16 = vcombine.low %v4493_v17, %v4501_v18  ;;  %v13309_v40 = vcombine.high %v4509_v15, %v4517_v28 }
 0x779   : > { %11112 = vmatpush1.bf16.msra.mxu0 %v13212_v23  ;;  %v4773_v30 = vld [vmem:[%s15077_s13 + $0xee0] sm:$0xff] }
 0x77a   : > { %11113 = vmatprep.subr.bf16.mxu0 %v13229_v32  ;;  %v13565_v44 = vcombine.high %v4765_v29, %v4773_v30  ;;  %v4533_v23 = vld [vmem:[%s15077_s13 + $0x760] sm:$0xff]  ;;  %v13564_v33 = vcombine.low %v4765_v29, %v4773_v30 }
 0x77b   : > { %11153 = vmatpush1.bf16.msra.mxu1 %v13468_v48  ;;  %v4781_v48 = vld [vmem:[%s15077_s13 + $0xf20] sm:$0xff]  ;;  %v13325_v35 = vcombine.high %v4525_v45, %v4533_v23 }
 0x77c   : > { %11154 = vmatprep.subr.bf16.mxu1 %v13485_v55  ;;  %v4789_v32 = vld [vmem:[%s15077_s13 + $0xf60] sm:$0xff]  ;;  %v13308_v55 = vcombine.low %v4509_v15, %v4517_v28 }
 0x77d   : > { %11114 = vmatpush1.bf16.msra.mxu0 %v13228_v26  ;;  %v13581_v52 = vcombine.high %v4781_v48, %v4789_v32  ;;  %v4549_v26 = vld [vmem:[%s15077_s13 + $0x7e0] sm:$0xff]  ;;  %v13580_v60 = vcombine.low %v4781_v48, %v4789_v32 }
 0x77e   : > { %11115 = vmatprep.subr.bf16.mxu0 %v13245_v56  ;;  %v4805_v56 = vld [vmem:[%s15077_s13 + $0xfe0] sm:$0xff]  ;;  %v13341_v39 = vcombine.high %v4541_v36, %v4549_v26 }
 0x77f   : > { %11155 = vmatpush1.bf16.msra.mxu1 %v13484_v53  ;;  %v4797_v53 = vld [vmem:[%s15077_s13 + $0xfa0] sm:$0xff] }
 0x780   : > { %11156 = vmatprep.subr.bf16.mxu1 %v13501_v59  ;;  %v13324_v59 = vcombine.low %v4525_v45, %v4533_v23  ;;  %v13597_v61 = vcombine.high %v4797_v53, %v4805_v56  ;;  %v4813_v62 = vld [vmem:[%s15077_s13 + $0x1020] sm:$0xff]  ;;  %v13596_v6 = vcombine.low %v4797_v53, %v4805_v56 }
 0x781   : > { %11116 = vmatpush1.bf16.msra.mxu0 %v13244_v47  ;;  %v4821_v47 = vld [vmem:[%s15077_s13 + $0x1060] sm:$0xff] }
 0x782   : > { %11117 = vmatprep.subr.bf16.mxu0 %v13261_v3  ;;  %v5077_v3 = vld [vmem:[%s15077_s13 + $0x1860] sm:$0xff]  ;;  %v13613_v43 = vcombine.high %v4813_v62, %v4821_v47 }
 0x783   : > { %11157 = vmatpush1.bf16.msra.mxu1 %v13500_v2  ;;  %v5069_v2 = vld [vmem:[%s15077_s13 + $0x1820] sm:$0xff] }
 0x784   : > { %11158 = vmatprep.subr.bf16.mxu1 %v13517_v4  ;;  %v13340_v4 = vcombine.low %v4541_v36, %v4549_v26  ;;  %v13869_v46 = vcombine.high %v5069_v2, %v5077_v3  ;;  %v4829_v9 = vld [vmem:[%s15077_s13 + $0x10a0] sm:$0xff]  ;;  %v13868_v17 = vcombine.low %v5069_v2, %v5077_v3 }
 0x785   : > { %11118 = vmatpush1.bf16.msra.mxu0 %v13260_v11  ;;  %v4837_v11 = vld [vmem:[%s15077_s13 + $0x10e0] sm:$0xff] }
 0x786   : > { %11119 = vmatprep.subr.bf16.mxu0 %v13277_v14  ;;  %v5085_v14 = vld [vmem:[%s15077_s13 + $0x18a0] sm:$0xff]  ;;  %v13629_v18 = vcombine.high %v4829_v9, %v4837_v11 }
 0x787   : > { %11159 = vmatpush1.bf16.msra.mxu1 %v13516_v12  ;;  %v13612_v12 = vcombine.low %v4813_v62, %v4821_v47  ;;  %v4845_v50 = vld [vmem:[%s15077_s13 + $0x1120] sm:$0xff] }
 0x788   : > { %11160 = vmatprep.subr.bf16.mxu1 %v13533_v34  ;;  %v5093_v34 = vld [vmem:[%s15077_s13 + $0x18e0] sm:$0xff] }
 0x789   : > { %11120 = vmatpush1.bf16.msra.mxu0 %v13276_v19  ;;  %v4853_v37 = vld [vmem:[%s15077_s13 + $0x1160] sm:$0xff]  ;;  %v13885_v19 = vcombine.high %v5085_v14, %v5093_v34  ;;  %v13884_v15 = vcombine.low %v5085_v14, %v5093_v34 }
 0x78a   : > { %11121 = vmatprep.subr.bf16.mxu0 %v13293_v31  ;;  %v5109_v31 = vld [vmem:[%s15077_s13 + $0x1960] sm:$0xff]  ;;  %v13645_v28 = vcombine.high %v4845_v50, %v4853_v37 }
 0x78b   : > { %11161 = vmatpush1.bf16.msra.mxu1 %v13532_v20  ;;  %v5101_v20 = vld [vmem:[%s15077_s13 + $0x1920] sm:$0xff] }
 0x78c   : > { %11162 = vmatprep.subr.bf16.mxu1 %v13549_v8  ;;  %v13628_v8 = vcombine.low %v4829_v9, %v4837_v11  ;;  %v13901_v29 = vcombine.high %v5101_v20, %v5109_v31  ;;  %v4861_v30 = vld [vmem:[%s15077_s13 + $0x11a0] sm:$0xff]  ;;  %v13900_v45 = vcombine.low %v5101_v20, %v5109_v31  ;;  %v4277_v31 = vld [vmem:[#allocation2 + $0x20] sm:$0xff] }
 0x78d   : > { %11122 = vmatpush1.bf16.msra.mxu0 %v13292_v16  ;;  %v4869_v16 = vld [vmem:[%s15077_s13 + $0x11e0] sm:$0xff] }
 0x78e   : > { %11123 = vmatprep.subr.bf16.mxu0 %v13309_v40  ;;  %v5125_v40 = vld [vmem:[%s15077_s13 + $0x19e0] sm:$0xff]  ;;  %v13661_v23 = vcombine.high %v4861_v30, %v4869_v16 }
 0x78f   : > { %11163 = vmatpush1.bf16.msra.mxu1 %v13548_v57  ;;  %v5117_v57 = vld [vmem:[%s15077_s13 + $0x19a0] sm:$0xff] }
 0x790   : > { %11164 = vmatprep.subr.bf16.mxu1 %v13565_v44  ;;  %v13644_v44 = vcombine.low %v4845_v50, %v4853_v37  ;;  %v13917_v48 = vcombine.high %v5117_v57, %v5125_v40  ;;  %v4877_v32 = vld [vmem:[%s15077_s13 + $0x1220] sm:$0xff]  ;;  %v13916_v36 = vcombine.low %v5117_v57, %v5125_v40 }
 0x791   : > { %11124 = vmatpush1.bf16.msra.mxu0 %v13308_v55  ;;  %v4885_v55 = vld [vmem:[%s15077_s13 + $0x1260] sm:$0xff] }
 0x792   : > { %11125 = vmatprep.subr.bf16.mxu0 %v13325_v35  ;;  %v5141_v35 = vld [vmem:[%s15077_s13 + $0x1a60] sm:$0xff]  ;;  %v13677_v26 = vcombine.high %v4877_v32, %v4885_v55 }
 0x793   : > { %11165 = vmatpush1.bf16.msra.mxu1 %v13564_v33  ;;  %v5133_v33 = vld [vmem:[%s15077_s13 + $0x1a20] sm:$0xff] }
 0x794   : > { %11166 = vmatprep.subr.bf16.mxu1 %v13581_v52  ;;  %v13660_v52 = vcombine.low %v4861_v30, %v4869_v16  ;;  %v13933_v53 = vcombine.high %v5133_v33, %v5141_v35  ;;  %v4893_v56 = vld [vmem:[%s15077_s13 + $0x12a0] sm:$0xff]  ;;  %v13932_v62 = vcombine.low %v5133_v33, %v5141_v35  ;;  %v4278_v16 = vld [vmem:[#allocation2 + $0x28] sm:$0xff] }
 0x795   : > { %11126 = vmatpush1.bf16.msra.mxu0 %v13324_v59  ;;  %v4901_v59 = vld [vmem:[%s15077_s13 + $0x12e0] sm:$0xff] }
 0x796   : > { %11127 = vmatprep.subr.bf16.mxu0 %v13341_v39  ;;  %v5157_v39 = vld [vmem:[%s15077_s13 + $0x1ae0] sm:$0xff]  ;;  %v13693_v47 = vcombine.high %v4893_v56, %v4901_v59 }
 0x797   : > { %11167 = vmatpush1.bf16.msra.mxu1 %v13580_v60  ;;  %v5149_v60 = vld [vmem:[%s15077_s13 + $0x1aa0] sm:$0xff] }
 0x798   : > { %11168 = vmatprep.subr.bf16.mxu1 %v13597_v61  ;;  %v13676_v61 = vcombine.low %v4877_v32, %v4885_v55  ;;  %v13949_v2 = vcombine.high %v5149_v60, %v5157_v39  ;;  %v4909_v3 = vld [vmem:[%s15077_s13 + $0x1320] sm:$0xff]  ;;  %v13948_v9 = vcombine.low %v5149_v60, %v5157_v39 }
 0x799   : > { %11128 = vmatpush1.bf16.msra.mxu0 %v13340_v4  ;;  %v4917_v4 = vld [vmem:[%s15077_s13 + $0x1360] sm:$0xff] }
 0x79a   : > { %11179 = vmatprep.subr.bf16.mxu0 %v13613_v43  ;;  %v5173_v43 = vld [vmem:[%s15077_s13 + $0x1b60] sm:$0xff]  ;;  %v13709_v11 = vcombine.high %v4909_v3, %v4917_v4 }
 0x79b   : > { %11169 = vmatpush1.bf16.msra.mxu1 %v13596_v6  ;;  %v5165_v6 = vld [vmem:[%s15077_s13 + $0x1b20] sm:$0xff] }
 0x79c   : > { %11220 = vmatprep.subr.bf16.mxu1 %v13869_v46  ;;  %11130 = vmatmul.mubr.bf16.vlgmr.msra.gmra.mrb[40].mxu0 %v15811_v27  ;;  %v13692_v46 = vcombine.low %v4893_v56, %v4901_v59  ;;  %v13965_v14 = vcombine.high %v5165_v6, %v5173_v43  ;;  %v4925_v34 = vld [vmem:[%s15077_s13 + $0x13a0] sm:$0xff]  ;;  %v13964_v40 = vcombine.low %v5165_v6, %v5173_v43 }
 0x79d   : > { %11180 = vmatpush1.bf16.msra.mxu0 %v13612_v12  ;;  %11211 = vmatprep.mubr.bf16.mxu0 %v15915_v41  ;;  %v5189_v20 = vld [vmem:[%s15077_s13 + $0x1be0] sm:$0xff] }
 0x79e   : > { %11171 = vmatmul.mubr.bf16.vlgmr.msra.gmra.mrb[40].mxu1 %v15813_v21  ;;  %11181 = vmatprep.subr.bf16.mxu0 %v13629_v18  ;;  %v4949_v32 = vld [vmem:[%s15077_s13 + $0x1460] sm:$0xff] }
 0x79f   : > { %11221 = vmatpush1.bf16.msra.mxu1 %v13868_v17  ;;  %11252 = vmatprep.mubr.bf16.mxu1 %v15921_v24  ;;  %v4933_v17 = vld [vmem:[%s15077_s13 + $0x13e0] sm:$0xff] }
 0x7a0   : > { %11222 = vmatprep.subr.bf16.mxu1 %v13885_v19  ;;  %v5181_v19 = vld [vmem:[%s15077_s13 + $0x1ba0] sm:$0xff] }
 0x7a1   : > { %11182 = vmatpush1.bf16.msra.mxu0 %v13628_v8  ;;  %v5197_v33 = vld [vmem:[%s15077_s13 + $0x1c20] sm:$0xff] }
 0x7a2   : > { %11183 = vmatprep.subr.bf16.mxu0 %v13645_v28  ;;  %v5205_v35 = vld [vmem:[%s15077_s13 + $0x1c60] sm:$0xff] }
 0x7a3   : > { %11223 = vmatpush1.bf16.msra.mxu1 %v13884_v15  ;;  %v13997_v56 = vcombine.high %v5197_v33, %v5205_v35  ;;  %v4957_v59 = vld [vmem:[%s15077_s13 + $0x14a0] sm:$0xff] }
 0x7a4   : > { %11224 = vmatprep.subr.bf16.mxu1 %v13901_v29  ;;  %v13708_v29 = vcombine.low %v4909_v3, %v4917_v4  ;;  %v4965_v60 = vld [vmem:[%s15077_s13 + $0x14e0] sm:$0xff] }
 0x7a5   : > { %11184 = vmatpush1.bf16.msra.mxu0 %v13644_v44  ;;  %v13725_v44 = vcombine.high %v4925_v34, %v4933_v17  ;;  %v5213_v39 = vld [vmem:[%s15077_s13 + $0x1ca0] sm:$0xff] }
 0x7a6   : > { %11185 = vmatprep.subr.bf16.mxu0 %v13661_v23  ;;  %v4973_v4 = vld [vmem:[%s15077_s13 + $0x1520] sm:$0xff] }
 0x7a7   : > { %11225 = vmatpush1.bf16.msra.mxu1 %v13900_v45  ;;  %v4981_v6 = vld [vmem:[%s15077_s13 + $0x1560] sm:$0xff] }
 0x7a8   : > { %11226 = vmatprep.subr.bf16.mxu1 %v13917_v48  ;;  %v4941_v48 = vld [vmem:[%s15077_s13 + $0x1420] sm:$0xff] }
 0x7a9   : > { %11186 = vmatpush1.bf16.msra.mxu0 %v13660_v52  ;;  %v5229_v43 = vld [vmem:[%s15077_s13 + $0x1d20] sm:$0xff] }
 0x7aa   : > { %11187 = vmatprep.subr.bf16.mxu0 %v13677_v26  ;;  %v13980_v26 = vcombine.low %v5181_v19, %v5189_v20 }
 0x7ab   : > { %11227 = vmatpush1.bf16.msra.mxu1 %v13916_v36  ;;  %v13724_v36 = vcombine.low %v4925_v34, %v4933_v17  ;;  %v4989_v34 = vld [vmem:[%s15077_s13 + $0x15a0] sm:$0xff] }
 0x7ac   : > { %11228 = vmatprep.subr.bf16.mxu1 %v13933_v53  ;;  %v13741_v53 = vcombine.high %v4941_v48, %v4949_v32  ;;  %v4997_v17 = vld [vmem:[%s15077_s13 + $0x15e0] sm:$0xff] }
 0x7ad   : > { %11188 = vmatpush1.bf16.msra.mxu0 %v13676_v61  ;;  %v5221_v61 = vld [vmem:[%s15077_s13 + $0x1ce0] sm:$0xff] }
 0x7ae   : > { %11189 = vmatprep.subr.bf16.mxu0 %v13693_v47  ;;  %v13996_v47 = vcombine.low %v5197_v33, %v5205_v35  ;;  %v14013_v3 = vcombine.high %v5213_v39, %v5221_v61  ;;  %v5037_v33 = vld [vmem:[%s15077_s13 + $0x1720] sm:$0xff] }
 0x7af   : > { %11229 = vmatpush1.bf16.msra.mxu1 %v13932_v62  ;;  %v10885_v12 = vpop.f32.mrb[28].mxu0  ;;  %v13740_v62 = vcombine.low %v4941_v48, %v4949_v32  ;;  %v5045_v35 = vld [vmem:[%s15077_s13 + $0x1760] sm:$0xff] }
 0x7b0   : > { %11230 = vmatprep.subr.bf16.mxu1 %v13949_v2  ;;  %v10886_v18 = vadd.f32 %v10885_v12, %v16381_v5  ;;  %v10887_v37 = vpop.f32.mrb[29].mxu0  ;;  %v13757_v2 = vcombine.high %v4957_v59, %v4965_v60  ;;  %v13773_v12 = vcombine.high %v4973_v4, %v4981_v6 }
 0x7b1   : > { %v10926_v50 = vpop.f32.mrb[28].mxu1  ;;  %v10888_v8 = vadd.f32 %v10887_v37, %v16383_v13  ;;  %v10889_v28 = vpop.f32.mrb[30].mxu0  ;;  %11190 = vmatpush1.bf16.msra.mxu0 %v13692_v46  ;;  %v13981_v13 = vcombine.high %v5181_v19, %v5189_v20  ;;  %v5237_v46 = vld [vmem:[%s15077_s13 + $0x1d60] sm:$0xff]  ;;  %v13772_v37 = vcombine.low %v4973_v4, %v4981_v6  ;;  %v13789_v20 = vcombine.high %v4989_v34, %v4997_v17  ;;  %v4302_v6 = vld [vmem:[%s15077_s13 + $0x28] sm:$0xff] }
 0x7b2   : > { %v10928_v15 = vpop.f32.mrb[29].mxu1  ;;  %v10927_v30 = vadd.f32 %v10926_v50, %v10886_v18  ;;  %v10890_v5 = vpop.f32.mrb[31].mxu0  ;;  %11191 = vmatprep.subr.bf16.mxu0 %v13709_v11  ;;  %v14012_v11 = vcombine.low %v5213_v39, %v5221_v61  ;;  %v5245_v18 = vld [vmem:[%s15077_s13 + $0x1da0] sm:$0xff]  ;;  %v14028_v19 = vcombine.low %v5229_v43, %v5237_v46 }
 0x7b3   : > { %v10930_v57 = vpop.f32.mrb[30].mxu1  ;;  %11231 = vmatpush1.bf16.msra.mxu1 %v13948_v9  ;;  %v10929_v45 = vadd.f32 %v10928_v15, %v10888_v8  ;;  %v13756_v9 = vcombine.low %v4957_v59, %v4965_v60  ;;  %v5253_v50 = vld [vmem:[%s15077_s13 + $0x1de0] sm:$0xff] }
 0x7b4   : > { %v10931_v23 = vpop.f32.mrb[31].mxu1  ;;  %11232 = vmatprep.subr.bf16.mxu1 %v13965_v14  ;;  %v11757_v55 = vadd.f32 %v10927_v30, %v4277_v31  ;;  %v14029_v14 = vcombine.high %v5229_v43, %v5237_v46  ;;  %v14045_v31 = vcombine.high %v5245_v18, %v5253_v50  ;;  %v5005_v8 = vld [vmem:[%s15077_s13 + $0x1620] sm:$0xff]  ;;  %v13788_v30 = vcombine.low %v4989_v34, %v4997_v17  ;;  %v4310_v43 = vld [vmem:[%s15077_s13 + $0x68] sm:$0xff] }
 0x7b5   : > { %v11758_v52 = vadd.f32 %v10929_v45, %v4278_v16  ;;  %11192 = vmatpush1.bf16.msra.mxu0 %v13708_v29  ;;  %v5013_v15 = vld [vmem:[%s15077_s13 + $0x1660] sm:$0xff]  ;;  %v14044_v16 = vcombine.low %v5245_v18, %v5253_v50  ;;  %v4558_v46 = vld [vmem:[%s15077_s13 + $0x828] sm:$0xff]  ;;  %v13102_v50 = vcombine.low %v4302_v6, %v4310_v43 }
 0x7b6   : > { %11773 = vst [vmem:[#allocation2 + $0x20] sm:$0xff] %v11757_v55  ;;  %11193 = vmatprep.subr.bf16.mxu0 %v13725_v44  ;;  %v5261_v28 = vld [vmem:[%s15077_s13 + $0x1e20] sm:$0xff]  ;;  %v13805_v57 = vcombine.high %v5005_v8, %v5013_v15  ;;  %v4318_v17 = vld [vmem:[%s15077_s13 + $0xa8] sm:$0xff] }
 0x7b7   : > { %11233 = vmatpush1.bf16.msra.mxu1 %v13964_v40  ;;  %11774 = vst [vmem:[#allocation2 + $0x28] sm:$0xff] %v11758_v52  ;;  %v5269_v29 = vld [vmem:[%s15077_s13 + $0x1e60] sm:$0xff]  ;;  %v4326_v18 = vld [vmem:[%s15077_s13 + $0xe8] sm:$0xff] }
 0x7b8   : > { %11234 = vmatprep.subr.bf16.mxu1 %v13981_v13  ;;  %v14061_v5 = vcombine.high %v5261_v28, %v5269_v29  ;;  %v5021_v40 = vld [vmem:[%s15077_s13 + $0x16a0] sm:$0xff]  ;;  %v13804_v13 = vcombine.low %v5005_v8, %v5013_v15  ;;  %v14060_v48 = vcombine.low %v5261_v28, %v5269_v29  ;;  %v4334_v8 = vld [vmem:[%s15077_s13 + $0x128] sm:$0xff] }
 0x7b9   : > { %11194 = vmatpush1.bf16.msra.mxu0 %v13724_v36  ;;  %v5029_v44 = vld [vmem:[%s15077_s13 + $0x16e0] sm:$0xff]  ;;  %v4342_v15 = vld [vmem:[%s15077_s13 + $0x168] sm:$0xff] }
 0x7ba   : > { %11195 = vmatprep.subr.bf16.mxu0 %v13741_v53  ;;  %v5277_v45 = vld [vmem:[%s15077_s13 + $0x1ea0] sm:$0xff]  ;;  %v13821_v32 = vcombine.high %v5021_v40, %v5029_v44  ;;  %v4590_v29 = vld [vmem:[%s15077_s13 + $0x928] sm:$0xff] }
 0x7bb   : > { %11235 = vmatpush1.bf16.msra.mxu1 %v13980_v26  ;;  %v5285_v23 = vld [vmem:[%s15077_s13 + $0x1ee0] sm:$0xff]  ;;  %v13820_v26 = vcombine.low %v5021_v40, %v5029_v44  ;;  %v4350_v44 = vld [vmem:[%s15077_s13 + $0x1a8] sm:$0xff] }
 0x7bc   : > { %11236 = vmatprep.subr.bf16.mxu1 %v13997_v56  ;;  %v14077_v55 = vcombine.high %v5277_v45, %v5285_v23  ;;  %v5293_v52 = vld [vmem:[%s15077_s13 + $0x1f20] sm:$0xff]  ;;  %v14076_v53 = vcombine.low %v5277_v45, %v5285_v23  ;;  %v13837_v56 = vcombine.high %v5037_v33, %v5045_v35  ;;  %v4358_v45 = vld [vmem:[%s15077_s13 + $0x1e8] sm:$0xff] }
 0x7bd   : > { %11196 = vmatpush1.bf16.msra.mxu0 %v13740_v62  ;;  %v5301_v36 = vld [vmem:[%s15077_s13 + $0x1f60] sm:$0xff]  ;;  %v4606_v23 = vld [vmem:[%s15077_s13 + $0x9a8] sm:$0xff] }
 0x7be   : > { %11197 = vmatprep.subr.bf16.mxu0 %v13757_v2  ;;  %v14093_v59 = vcombine.high %v5293_v52, %v5301_v36  ;;  %v5053_v60 = vld [vmem:[%s15077_s13 + $0x17a0] sm:$0xff]  ;;  %v14092_v2 = vcombine.low %v5293_v52, %v5301_v36  ;;  %v4374_v52 = vld [vmem:[%s15077_s13 + $0x268] sm:$0xff] }
 0x7bf   : > { %11237 = vmatpush1.bf16.msra.mxu1 %v13996_v47  ;;  %v5061_v39 = vld [vmem:[%s15077_s13 + $0x17e0] sm:$0xff]  ;;  %v13836_v47 = vcombine.low %v5037_v33, %v5045_v35  ;;  %v4366_v35 = vld [vmem:[%s15077_s13 + $0x228] sm:$0xff] }
 0x7c0   : > { %11238 = vmatprep.subr.bf16.mxu1 %v14013_v3  ;;  %v5309_v61 = vld [vmem:[%s15077_s13 + $0x1fa0] sm:$0xff]  ;;  %v13853_v3 = vcombine.high %v5053_v60, %v5061_v39  ;;  %v4622_v36 = vld [vmem:[%s15077_s13 + $0xa28] sm:$0xff] }
 0x7c1   : > { %11198 = vmatpush1.bf16.msra.mxu0 %v13756_v9  ;;  %v5317_v62 = vld [vmem:[%s15077_s13 + $0x1fe0] sm:$0xff]  ;;  %v4566_v9 = vld [vmem:[%s15077_s13 + $0x868] sm:$0xff] }
 0x7c2   : > { %11199 = vmatprep.subr.bf16.mxu0 %v13773_v12  ;;  %v14109_v4 = vcombine.high %v5309_v61, %v5317_v62  ;;  %v14108_v12 = vcombine.low %v5309_v61, %v5317_v62  ;;  %v13359_v34 = vcombine.high %v4558_v46, %v4566_v9  ;;  %v4390_v61 = vld [vmem:[%s15077_s13 + $0x2e8] sm:$0xff] }
 0x7c3   : > { %11239 = vmatpush1.bf16.msra.mxu1 %v14012_v11  ;;  %v13852_v11 = vcombine.low %v5053_v60, %v5061_v39  ;;  %v4382_v39 = vld [vmem:[%s15077_s13 + $0x2a8] sm:$0xff] }
 0x7c4   : > { %11240 = vmatprep.subr.bf16.mxu1 %v14029_v14  ;;  %v13103_v14 = vcombine.high %v4302_v6, %v4310_v43  ;;  %v4638_v62 = vld [vmem:[%s15077_s13 + $0xaa8] sm:$0xff] }
 0x7c5   : > { %11200 = vmatpush1.bf16.msra.mxu0 %v13772_v37  ;;  %v4574_v37 = vld [vmem:[%s15077_s13 + $0x8a8] sm:$0xff] }
 0x7c6   : > { %11201 = vmatprep.subr.bf16.mxu0 %v13789_v20  ;;  %v13358_v20 = vcombine.low %v4558_v46, %v4566_v9  ;;  %v4398_v43 = vld [vmem:[%s15077_s13 + $0x328] sm:$0xff] }
 0x7c7   : > { %11241 = vmatpush1.bf16.msra.mxu1 %v14028_v19  ;;  %v4582_v19 = vld [vmem:[%s15077_s13 + $0x8e8] sm:$0xff] }
 0x7c8   : > { %11242 = vmatprep.subr.bf16.mxu1 %v14045_v31  ;;  %v13119_v31 = vcombine.high %v4318_v17, %v4326_v18  ;;  %v13375_v28 = vcombine.high %v4574_v37, %v4582_v19  ;;  %v4406_v46 = vld [vmem:[%s15077_s13 + $0x368] sm:$0xff] }
 0x7c9   : > { %11202 = vmatpush1.bf16.msra.mxu0 %v13788_v30  ;;  %v4598_v30 = vld [vmem:[%s15077_s13 + $0x968] sm:$0xff] }
 0x7ca   : > { %11203 = vmatprep.subr.bf16.mxu0 %v13805_v57  ;;  %v13374_v57 = vcombine.low %v4574_v37, %v4582_v19  ;;  %v13391_v40 = vcombine.high %v4590_v29, %v4598_v30  ;;  %v4654_v9 = vld [vmem:[%s15077_s13 + $0xb28] sm:$0xff] }
 0x7cb   : > { %11243 = vmatpush1.bf16.msra.mxu1 %v14044_v16  ;;  %v13118_v16 = vcombine.low %v4318_v17, %v4326_v18  ;;  %v4422_v37 = vld [vmem:[%s15077_s13 + $0x3e8] sm:$0xff] }
 0x7cc   : > { %11244 = vmatprep.subr.bf16.mxu1 %v14061_v5  ;;  %v13135_v5 = vcombine.high %v4334_v8, %v4342_v15 }
 0x7cd   : > { %11204 = vmatpush1.bf16.msra.mxu0 %v13804_v13  ;;  %v4614_v13 = vld [vmem:[%s15077_s13 + $0x9e8] sm:$0xff] }
 0x7ce   : > { %11205 = vmatprep.subr.bf16.mxu0 %v13821_v32  ;;  %v13390_v32 = vcombine.low %v4590_v29, %v4598_v30  ;;  %v13407_v33 = vcombine.high %v4606_v23, %v4614_v13  ;;  %v13198_v30 = vcombine.low %v4398_v43, %v4406_v46 }
 0x7cf   : > { %11245 = vmatpush1.bf16.msra.mxu1 %v14060_v48  ;;  %v13134_v48 = vcombine.low %v4334_v8, %v4342_v15  ;;  %v4678_v8 = vld [vmem:[%s15077_s13 + $0xbe8] sm:$0xff] }
 0x7d0   : > { %11246 = vmatprep.subr.bf16.mxu1 %v14077_v55  ;;  %v13151_v55 = vcombine.high %v4350_v44, %v4358_v45 }
 0x7d1   : > { %11206 = vmatpush1.bf16.msra.mxu0 %v13820_v26  ;;  %v4630_v26 = vld [vmem:[%s15077_s13 + $0xa68] sm:$0xff] }
 0x7d2   : > { %11207 = vmatprep.subr.bf16.mxu0 %v13837_v56  ;;  %v13406_v56 = vcombine.low %v4606_v23, %v4614_v13  ;;  %v13423_v60 = vcombine.high %v4622_v36, %v4630_v26  ;;  %v4430_v13 = vld [vmem:[%s15077_s13 + $0x428] sm:$0xff] }
 0x7d3   : > { %11247 = vmatpush1.bf16.msra.mxu1 %v14076_v53  ;;  %v13150_v53 = vcombine.low %v4350_v44, %v4358_v45 }
 0x7d4   : > { %11248 = vmatprep.subr.bf16.mxu1 %v14093_v59  ;;  %v13167_v59 = vcombine.high %v4366_v35, %v4374_v52 }
 0x7d5   : > { %11208 = vmatpush1.bf16.msra.mxu0 %v13836_v47  ;;  %v4646_v47 = vld [vmem:[%s15077_s13 + $0xae8] sm:$0xff] }
 0x7d6   : > { %11209 = vmatprep.subr.bf16.mxu0 %v13853_v3  ;;  %v13422_v3 = vcombine.low %v4622_v36, %v4630_v26  ;;  %v13439_v6 = vcombine.high %v4638_v62, %v4646_v47  ;;  %v4446_v26 = vld [vmem:[%s15077_s13 + $0x4a8] sm:$0xff] }
 0x7d7   : > { %11249 = vmatpush1.bf16.msra.mxu1 %v14092_v2  ;;  %v13166_v2 = vcombine.low %v4366_v35, %v4374_v52 }
 0x7d8   : > { %11250 = vmatprep.subr.bf16.mxu1 %v14109_v4  ;;  %v13183_v4 = vcombine.high %v4382_v39, %v4390_v61 }
 0x7d9   : > { %11210 = vmatpush1.bf16.msra.mxu0 %v13852_v11  ;;  %v4662_v11 = vld [vmem:[%s15077_s13 + $0xb68] sm:$0xff] }
 0x7da   : > { %11261 = vmatprep.subr.bf16.mxu0 %v13103_v14  ;;  %v13438_v14 = vcombine.low %v4638_v62, %v4646_v47  ;;  %v13455_v18 = vcombine.high %v4654_v9, %v4662_v11  ;;  %v4462_v47 = vld [vmem:[%s15077_s13 + $0x528] sm:$0xff] }
 0x7db   : > { %11251 = vmatpush1.bf16.msra.mxu1 %v14108_v12  ;;  %v13182_v12 = vcombine.low %v4382_v39, %v4390_v61 }
 0x7dc   : > { %11302 = vmatprep.subr.bf16.mxu1 %v13359_v34  ;;  %11212 = vmatmul.mubr.bf16.vlgmr.msra.gmra.mrb[44].mxu0 %v15919_v22  ;;  %v13199_v34 = vcombine.high %v4398_v43, %v4406_v46 }
 0x7dd   : > { %11262 = vmatpush1.bf16.msra.mxu0 %v13102_v50  ;;  %11293 = vmatprep.mubr.bf16.mxu0 %v15729_v7  ;;  %v4414_v50 = vld [vmem:[%s15077_s13 + $0x3a8] sm:$0xff] }
 0x7de   : > { %11253 = vmatmul.mubr.bf16.vlgmr.msra.gmra.mrb[44].mxu1 %v15923_v25  ;;  %11263 = vmatprep.subr.bf16.mxu0 %v13119_v31  ;;  %v4670_v31 = vld [vmem:[%s15077_s13 + $0xba8] sm:$0xff]  ;;  %v13215_v44 = vcombine.high %v4414_v50, %v4422_v37 }
 0x7df   : > { %11303 = vmatpush1.bf16.msra.mxu1 %v13358_v20  ;;  %11334 = vmatprep.mubr.bf16.mxu1 %v15734_v10  ;;  %v13471_v23 = vcombine.high %v4670_v31, %v4678_v8  ;;  %v13470_v35 = vcombine.low %v4670_v31, %v4678_v8  ;;  %v4750_v31 = vld [vmem:[%s15077_s13 + $0xe28] sm:$0xff] }
 0x7e0   : > { %11304 = vmatprep.subr.bf16.mxu1 %v13375_v28  ;;  %v4758_v8 = vld [vmem:[%s15077_s13 + $0xe68] sm:$0xff] }
 0x7e1   : > { %11264 = vmatpush1.bf16.msra.mxu0 %v13118_v16 }
 0x7e2   : > { %11265 = vmatprep.subr.bf16.mxu0 %v13135_v5 }
 0x7e3   : > { %11305 = vmatpush1.bf16.msra.mxu1 %v13374_v57 }
 0x7e4   : > { %11306 = vmatprep.subr.bf16.mxu1 %v13391_v40  ;;  %v13454_v40 = vcombine.low %v4654_v9, %v4662_v11  ;;  %v4478_v11 = vld [vmem:[%s15077_s13 + $0x5a8] sm:$0xff] }
 0x7e5   : > { %11266 = vmatpush1.bf16.msra.mxu0 %v13134_v48  ;;  %v4438_v48 = vld [vmem:[%s15077_s13 + $0x468] sm:$0xff] }
 0x7e6   : > { %11267 = vmatprep.subr.bf16.mxu0 %v13151_v55  ;;  %v4694_v55 = vld [vmem:[%s15077_s13 + $0xc68] sm:$0xff]  ;;  %v13231_v52 = vcombine.high %v4430_v13, %v4438_v48 }
 0x7e7   : > { %11307 = vmatpush1.bf16.msra.mxu1 %v13390_v32  ;;  %v4686_v32 = vld [vmem:[%s15077_s13 + $0xc28] sm:$0xff] }
 0x7e8   : > { %11308 = vmatprep.subr.bf16.mxu1 %v13407_v33  ;;  %v13214_v33 = vcombine.low %v4414_v50, %v4422_v37  ;;  %v13487_v36 = vcombine.high %v4686_v32, %v4694_v55  ;;  %v13486_v39 = vcombine.low %v4686_v32, %v4694_v55  ;;  %v4526_v55 = vld [vmem:[%s15077_s13 + $0x728] sm:$0xff] }
 0x7e9   : > { %11268 = vmatpush1.bf16.msra.mxu0 %v13150_v53  ;;  %v4454_v53 = vld [vmem:[%s15077_s13 + $0x4e8] sm:$0xff] }
 0x7ea   : > { %11269 = vmatprep.subr.bf16.mxu0 %v13167_v59  ;;  %v4710_v59 = vld [vmem:[%s15077_s13 + $0xce8] sm:$0xff]  ;;  %v13247_v61 = vcombine.high %v4446_v26, %v4454_v53 }
 0x7eb   : > { %11309 = vmatpush1.bf16.msra.mxu1 %v13406_v56  ;;  %v4702_v56 = vld [vmem:[%s15077_s13 + $0xca8] sm:$0xff] }
 0x7ec   : > { %11310 = vmatprep.subr.bf16.mxu1 %v13423_v60  ;;  %v13230_v60 = vcombine.low %v4430_v13, %v4438_v48  ;;  %v13503_v62 = vcombine.high %v4702_v56, %v4710_v59  ;;  %v13502_v43 = vcombine.low %v4702_v56, %v4710_v59  ;;  %v13550_v13 = vcombine.low %v4750_v31, %v4758_v8  ;;  %v4542_v59 = vld [vmem:[%s15077_s13 + $0x7a8] sm:$0xff] }
 0x7ed   : > { %11270 = vmatpush1.bf16.msra.mxu0 %v13166_v2  ;;  %v4470_v2 = vld [vmem:[%s15077_s13 + $0x568] sm:$0xff] }
 0x7ee   : > { %11271 = vmatprep.subr.bf16.mxu0 %v13183_v4  ;;  %v4726_v4 = vld [vmem:[%s15077_s13 + $0xd68] sm:$0xff]  ;;  %v13263_v46 = vcombine.high %v4462_v47, %v4470_v2 }
 0x7ef   : > { %11311 = vmatpush1.bf16.msra.mxu1 %v13422_v3  ;;  %v10967_v17 = vpop.f32.mrb[32].mxu0  ;;  %v4718_v3 = vld [vmem:[%s15077_s13 + $0xd28] sm:$0xff] }
 0x7f0   : > { %11312 = vmatprep.subr.bf16.mxu1 %v13439_v6  ;;  %v10969_v20 = vpop.f32.mrb[33].mxu0  ;;  %v13246_v6 = vcombine.low %v4446_v26, %v4454_v53  ;;  %v13519_v9 = vcombine.high %v4718_v3, %v4726_v4 }
 0x7f1   : > { %v11008_v19 = vpop.f32.mrb[32].mxu1  ;;  %v10971_v29 = vpop.f32.mrb[34].mxu0  ;;  %11272 = vmatpush1.bf16.msra.mxu0 %v13182_v12  ;;  %v4486_v12 = vld [vmem:[%s15077_s13 + $0x5e8] sm:$0xff] }
 0x7f2   : > { %v16523_v15 = vadd.f32 %v11008_v19, %v10967_v17  ;;  %v11010_v28 = vpop.f32.mrb[33].mxu1  ;;  %v10972_v5 = vpop.f32.mrb[35].mxu0  ;;  %11273 = vmatprep.subr.bf16.mxu0 %v13199_v34  ;;  %v4742_v34 = vld [vmem:[%s15077_s13 + $0xde8] sm:$0xff]  ;;  %v13262_v17 = vcombine.low %v4462_v47, %v4470_v2  ;;  %v13279_v50 = vcombine.high %v4478_v11, %v4486_v12 }
 0x7f3   : > { %v16525_v16 = vadd.f32 %v11010_v28, %v10969_v20  ;;  %v11012_v57 = vpop.f32.mrb[34].mxu1  ;;  %11313 = vmatpush1.bf16.msra.mxu1 %v13438_v14  ;;  %v4734_v14 = vld [vmem:[%s15077_s13 + $0xda8] sm:$0xff]  ;;  %v13278_v28 = vcombine.low %v4478_v11, %v4486_v12 }
 0x7f4   : > { %v11013_v45 = vpop.f32.mrb[35].mxu1  ;;  %11314 = vmatprep.subr.bf16.mxu1 %v13455_v18  ;;  %v13518_v18 = vcombine.low %v4718_v3, %v4726_v4  ;;  %v13535_v37 = vcombine.high %v4734_v14, %v4742_v34  ;;  %v4494_v19 = vld [vmem:[%s15077_s13 + $0x628] sm:$0xff]  ;;  %v13534_v29 = vcombine.low %v4734_v14, %v4742_v34  ;;  %v13551_v57 = vcombine.high %v4750_v31, %v4758_v8 }
 0x7f5   : > { %11274 = vmatpush1.bf16.msra.mxu0 %v13198_v30  ;;  %v4502_v20 = vld [vmem:[%s15077_s13 + $0x668] sm:$0xff] }
 0x7f6   : > { %11275 = vmatprep.subr.bf16.mxu0 %v13215_v44  ;;  %v13295_v30 = vcombine.high %v4494_v19, %v4502_v20  ;;  %v4510_v5 = vld [vmem:[%s15077_s13 + $0x6a8] sm:$0xff] }
 0x7f7   : > { %11315 = vmatpush1.bf16.msra.mxu1 %v13454_v40  ;;  %v4518_v40 = vld [vmem:[%s15077_s13 + $0x6e8] sm:$0xff] }
 0x7f8   : > { %11316 = vmatprep.subr.bf16.mxu1 %v13471_v23  ;;  %v4766_v44 = vld [vmem:[%s15077_s13 + $0xea8] sm:$0xff]  ;;  %v13294_v23 = vcombine.low %v4494_v19, %v4502_v20  ;;  %v13311_v48 = vcombine.high %v4510_v5, %v4518_v40 }
 0x7f9   : > { %11276 = vmatpush1.bf16.msra.mxu0 %v13214_v33  ;;  %v4774_v45 = vld [vmem:[%s15077_s13 + $0xee8] sm:$0xff] }
 0x7fa   : > { %11277 = vmatprep.subr.bf16.mxu0 %v13231_v52  ;;  %v13567_v32 = vcombine.high %v4766_v44, %v4774_v45  ;;  %v4534_v33 = vld [vmem:[%s15077_s13 + $0x768] sm:$0xff]  ;;  %v13566_v26 = vcombine.low %v4766_v44, %v4774_v45 }
 0x7fb   : > { %11317 = vmatpush1.bf16.msra.mxu1 %v13470_v35  ;;  %v4782_v35 = vld [vmem:[%s15077_s13 + $0xf28] sm:$0xff]  ;;  %v13327_v53 = vcombine.high %v4526_v55, %v4534_v33 }
 0x7fc   : > { %11318 = vmatprep.subr.bf16.mxu1 %v13487_v36  ;;  %v4790_v52 = vld [vmem:[%s15077_s13 + $0xf68] sm:$0xff]  ;;  %v13310_v36 = vcombine.low %v4510_v5, %v4518_v40 }
 0x7fd   : > { %11278 = vmatpush1.bf16.msra.mxu0 %v13230_v60  ;;  %v13583_v56 = vcombine.high %v4782_v35, %v4790_v52  ;;  %v4550_v60 = vld [vmem:[%s15077_s13 + $0x7e8] sm:$0xff]  ;;  %v13582_v47 = vcombine.low %v4782_v35, %v4790_v52 }
 0x7fe   : > { %11279 = vmatprep.subr.bf16.mxu0 %v13247_v61  ;;  %v4806_v61 = vld [vmem:[%s15077_s13 + $0xfe8] sm:$0xff]  ;;  %v13343_v2 = vcombine.high %v4542_v59, %v4550_v60 }
 0x7ff   : > { %11319 = vmatpush1.bf16.msra.mxu1 %v13486_v39  ;;  %v4798_v39 = vld [vmem:[%s15077_s13 + $0xfa8] sm:$0xff] }
 0x800   : > { %11320 = vmatprep.subr.bf16.mxu1 %v13503_v62  ;;  %v13326_v62 = vcombine.low %v4526_v55, %v4534_v33  ;;  %v13599_v3 = vcombine.high %v4798_v39, %v4806_v61  ;;  %v4814_v4 = vld [vmem:[%s15077_s13 + $0x1028] sm:$0xff]  ;;  %v13598_v11 = vcombine.low %v4798_v39, %v4806_v61 }
 0x801   : > { %11280 = vmatpush1.bf16.msra.mxu0 %v13246_v6  ;;  %v4822_v6 = vld [vmem:[%s15077_s13 + $0x1068] sm:$0xff] }
 0x802   : > { %11281 = vmatprep.subr.bf16.mxu0 %v13263_v46  ;;  %v5078_v46 = vld [vmem:[%s15077_s13 + $0x1868] sm:$0xff]  ;;  %v13615_v12 = vcombine.high %v4814_v4, %v4822_v6 }
 0x803   : > { %11321 = vmatpush1.bf16.msra.mxu1 %v13502_v43  ;;  %v5070_v43 = vld [vmem:[%s15077_s13 + $0x1828] sm:$0xff] }
 0x804   : > { %11322 = vmatprep.subr.bf16.mxu1 %v13519_v9  ;;  %v13342_v9 = vcombine.low %v4542_v59, %v4550_v60  ;;  %v13871_v14 = vcombine.high %v5070_v43, %v5078_v46  ;;  %v4830_v34 = vld [vmem:[%s15077_s13 + $0x10a8] sm:$0xff]  ;;  %v13870_v19 = vcombine.low %v5070_v43, %v5078_v46 }
 0x805   : > { %11282 = vmatpush1.bf16.msra.mxu0 %v13262_v17  ;;  %v4838_v17 = vld [vmem:[%s15077_s13 + $0x10e8] sm:$0xff] }
 0x806   : > { %11283 = vmatprep.subr.bf16.mxu0 %v13279_v50  ;;  %v5086_v50 = vld [vmem:[%s15077_s13 + $0x18a8] sm:$0xff]  ;;  %v13631_v20 = vcombine.high %v4830_v34, %v4838_v17 }
 0x807   : > { %11323 = vmatpush1.bf16.msra.mxu1 %v13518_v18  ;;  %v13614_v18 = vcombine.low %v4814_v4, %v4822_v6  ;;  %v4846_v31 = vld [vmem:[%s15077_s13 + $0x1128] sm:$0xff] }
 0x808   : > { %11324 = vmatprep.subr.bf16.mxu1 %v13535_v37  ;;  %v5094_v37 = vld [vmem:[%s15077_s13 + $0x18e8] sm:$0xff] }
 0x809   : > { %11284 = vmatpush1.bf16.msra.mxu0 %v13278_v28  ;;  %v4854_v8 = vld [vmem:[%s15077_s13 + $0x1168] sm:$0xff]  ;;  %v13887_v28 = vcombine.high %v5086_v50, %v5094_v37  ;;  %v13886_v5 = vcombine.low %v5086_v50, %v5094_v37 }
 0x80a   : > { %11285 = vmatprep.subr.bf16.mxu0 %v13295_v30  ;;  %v5110_v30 = vld [vmem:[%s15077_s13 + $0x1968] sm:$0xff]  ;;  %v13647_v40 = vcombine.high %v4846_v31, %v4854_v8 }
 0x80b   : > { %11325 = vmatpush1.bf16.msra.mxu1 %v13534_v29  ;;  %v5102_v29 = vld [vmem:[%s15077_s13 + $0x1928] sm:$0xff] }
 0x80c   : > { %11326 = vmatprep.subr.bf16.mxu1 %v13551_v57  ;;  %v13630_v57 = vcombine.low %v4830_v34, %v4838_v17  ;;  %v13903_v44 = vcombine.high %v5102_v29, %v5110_v30  ;;  %v4862_v45 = vld [vmem:[%s15077_s13 + $0x11a8] sm:$0xff]  ;;  %v13902_v55 = vcombine.low %v5102_v29, %v5110_v30  ;;  %v4279_v30 = vld [vmem:[#allocation2 + $0x30] sm:$0xff] }
 0x80d   : > { %11286 = vmatpush1.bf16.msra.mxu0 %v13294_v23  ;;  %v4870_v23 = vld [vmem:[%s15077_s13 + $0x11e8] sm:$0xff] }
 0x80e   : > { %11287 = vmatprep.subr.bf16.mxu0 %v13311_v48  ;;  %v5126_v48 = vld [vmem:[%s15077_s13 + $0x19e8] sm:$0xff]  ;;  %v13663_v33 = vcombine.high %v4862_v45, %v4870_v23 }
 0x80f   : > { %11327 = vmatpush1.bf16.msra.mxu1 %v13550_v13  ;;  %v5118_v13 = vld [vmem:[%s15077_s13 + $0x19a8] sm:$0xff] }
 0x810   : > { %11328 = vmatprep.subr.bf16.mxu1 %v13567_v32  ;;  %v13646_v32 = vcombine.low %v4846_v31, %v4854_v8  ;;  %v13919_v35 = vcombine.high %v5118_v13, %v5126_v48  ;;  %v4878_v52 = vld [vmem:[%s15077_s13 + $0x1228] sm:$0xff]  ;;  %v13918_v59 = vcombine.low %v5118_v13, %v5126_v48 }
 0x811   : > { %11288 = vmatpush1.bf16.msra.mxu0 %v13310_v36  ;;  %v4886_v36 = vld [vmem:[%s15077_s13 + $0x1268] sm:$0xff] }
 0x812   : > { %11289 = vmatprep.subr.bf16.mxu0 %v13327_v53  ;;  %v5142_v53 = vld [vmem:[%s15077_s13 + $0x1a68] sm:$0xff]  ;;  %v13679_v60 = vcombine.high %v4878_v52, %v4886_v36 }
 0x813   : > { %11329 = vmatpush1.bf16.msra.mxu1 %v13566_v26  ;;  %v5134_v26 = vld [vmem:[%s15077_s13 + $0x1a28] sm:$0xff] }
 0x814   : > { %11330 = vmatprep.subr.bf16.mxu1 %v13583_v56  ;;  %v13662_v56 = vcombine.low %v4862_v45, %v4870_v23  ;;  %v13935_v39 = vcombine.high %v5134_v26, %v5142_v53  ;;  %v4894_v61 = vld [vmem:[%s15077_s13 + $0x12a8] sm:$0xff]  ;;  %v13934_v4 = vcombine.low %v5134_v26, %v5142_v53 }
 0x815   : > { %11290 = vmatpush1.bf16.msra.mxu0 %v13326_v62  ;;  %v4902_v62 = vld [vmem:[%s15077_s13 + $0x12e8] sm:$0xff] }
 0x816   : > { %11291 = vmatprep.subr.bf16.mxu0 %v13343_v2  ;;  %v5158_v2 = vld [vmem:[%s15077_s13 + $0x1ae8] sm:$0xff]  ;;  %v13695_v6 = vcombine.high %v4894_v61, %v4902_v62 }
 0x817   : > { %11331 = vmatpush1.bf16.msra.mxu1 %v13582_v47  ;;  %v5150_v47 = vld [vmem:[%s15077_s13 + $0x1aa8] sm:$0xff] }
 0x818   : > { %11332 = vmatprep.subr.bf16.mxu1 %v13599_v3  ;;  %v13678_v3 = vcombine.low %v4878_v52, %v4886_v36  ;;  %v13951_v43 = vcombine.high %v5150_v47, %v5158_v2  ;;  %v4910_v46 = vld [vmem:[%s15077_s13 + $0x1328] sm:$0xff]  ;;  %v13950_v34 = vcombine.low %v5150_v47, %v5158_v2 }
 0x819   : > { %11292 = vmatpush1.bf16.msra.mxu0 %v13342_v9  ;;  %v4918_v9 = vld [vmem:[%s15077_s13 + $0x1368] sm:$0xff] }
 0x81a   : > { %11343 = vmatprep.subr.bf16.mxu0 %v13615_v12  ;;  %v5174_v12 = vld [vmem:[%s15077_s13 + $0x1b68] sm:$0xff]  ;;  %v13711_v17 = vcombine.high %v4910_v46, %v4918_v9 }
 0x81b   : > { %11333 = vmatpush1.bf16.msra.mxu1 %v13598_v11  ;;  %v5166_v11 = vld [vmem:[%s15077_s13 + $0x1b28] sm:$0xff] }
 0x81c   : > { %11384 = vmatprep.subr.bf16.mxu1 %v13871_v14  ;;  %11294 = vmatmul.mubr.bf16.vlgmr.msra.gmra.mrb[48].mxu0 %v15811_v27  ;;  %v13694_v14 = vcombine.low %v4894_v61, %v4902_v62  ;;  %v13967_v50 = vcombine.high %v5166_v11, %v5174_v12  ;;  %v4926_v37 = vld [vmem:[%s15077_s13 + $0x13a8] sm:$0xff]  ;;  %v13966_v48 = vcombine.low %v5166_v11, %v5174_v12 }
 0x81d   : > { %11344 = vmatpush1.bf16.msra.mxu0 %v13614_v18  ;;  %11375 = vmatprep.mubr.bf16.mxu0 %v15915_v41  ;;  %v5190_v29 = vld [vmem:[%s15077_s13 + $0x1be8] sm:$0xff] }
 0x81e   : > { %11335 = vmatmul.mubr.bf16.vlgmr.msra.gmra.mrb[48].mxu1 %v15813_v21  ;;  %11345 = vmatprep.subr.bf16.mxu0 %v13631_v20  ;;  %v4280_v23 = vld [vmem:[#allocation2 + $0x38] sm:$0xff] }
 0x81f   : > { %11385 = vmatpush1.bf16.msra.mxu1 %v13870_v19  ;;  %11416 = vmatprep.mubr.bf16.mxu1 %v15921_v24  ;;  %v4934_v19 = vld [vmem:[%s15077_s13 + $0x13e8] sm:$0xff] }
 0x820   : > { %11386 = vmatprep.subr.bf16.mxu1 %v13887_v28  ;;  %v5182_v28 = vld [vmem:[%s15077_s13 + $0x1ba8] sm:$0xff] }
 0x821   : > { %11346 = vmatpush1.bf16.msra.mxu0 %v13630_v57  ;;  %v4950_v52 = vld [vmem:[%s15077_s13 + $0x1468] sm:$0xff] }
 0x822   : > { %11347 = vmatprep.subr.bf16.mxu0 %v13647_v40  ;;  %v5198_v26 = vld [vmem:[%s15077_s13 + $0x1c28] sm:$0xff] }
 0x823   : > { %11387 = vmatpush1.bf16.msra.mxu1 %v13886_v5  ;;  %v5206_v53 = vld [vmem:[%s15077_s13 + $0x1c68] sm:$0xff] }
 0x824   : > { %11388 = vmatprep.subr.bf16.mxu1 %v13903_v44  ;;  %v13710_v44 = vcombine.low %v4910_v46, %v4918_v9  ;;  %v13999_v61 = vcombine.high %v5198_v26, %v5206_v53  ;;  %v4958_v62 = vld [vmem:[%s15077_s13 + $0x14a8] sm:$0xff] }
 0x825   : > { %11348 = vmatpush1.bf16.msra.mxu0 %v13646_v32  ;;  %v13727_v32 = vcombine.high %v4926_v37, %v4934_v19  ;;  %v4966_v47 = vld [vmem:[%s15077_s13 + $0x14e8] sm:$0xff] }
 0x826   : > { %11349 = vmatprep.subr.bf16.mxu0 %v13663_v33  ;;  %v5214_v2 = vld [vmem:[%s15077_s13 + $0x1ca8] sm:$0xff] }
 0x827   : > { %11389 = vmatpush1.bf16.msra.mxu1 %v13902_v55  ;;  %v4974_v9 = vld [vmem:[%s15077_s13 + $0x1528] sm:$0xff] }
 0x828   : > { %11390 = vmatprep.subr.bf16.mxu1 %v13919_v35  ;;  %v4942_v35 = vld [vmem:[%s15077_s13 + $0x1428] sm:$0xff] }
 0x829   : > { %11350 = vmatpush1.bf16.msra.mxu0 %v13662_v56  ;;  %v4982_v11 = vld [vmem:[%s15077_s13 + $0x1568] sm:$0xff] }
 0x82a   : > { %11351 = vmatprep.subr.bf16.mxu0 %v13679_v60  ;;  %v13982_v60 = vcombine.low %v5182_v28, %v5190_v29  ;;  %v5230_v12 = vld [vmem:[%s15077_s13 + $0x1d28] sm:$0xff] }
 0x82b   : > { %11391 = vmatpush1.bf16.msra.mxu1 %v13918_v59  ;;  %v13726_v59 = vcombine.low %v4926_v37, %v4934_v19  ;;  %v4990_v37 = vld [vmem:[%s15077_s13 + $0x15a8] sm:$0xff] }
 0x82c   : > { %11392 = vmatprep.subr.bf16.mxu1 %v13935_v39  ;;  %v13743_v39 = vcombine.high %v4942_v35, %v4950_v52  ;;  %v4998_v19 = vld [vmem:[%s15077_s13 + $0x15e8] sm:$0xff] }
 0x82d   : > { %11352 = vmatpush1.bf16.msra.mxu0 %v13678_v3  ;;  %v5222_v3 = vld [vmem:[%s15077_s13 + $0x1ce8] sm:$0xff] }
 0x82e   : > { %11353 = vmatprep.subr.bf16.mxu0 %v13695_v6  ;;  %v13998_v6 = vcombine.low %v5198_v26, %v5206_v53  ;;  %v14015_v46 = vcombine.high %v5214_v2, %v5222_v3  ;;  %v5038_v26 = vld [vmem:[%s15077_s13 + $0x1728] sm:$0xff] }
 0x82f   : > { %11393 = vmatpush1.bf16.msra.mxu1 %v13934_v4  ;;  %v11049_v18 = vpop.f32.mrb[36].mxu0  ;;  %v13742_v4 = vcombine.low %v4942_v35, %v4950_v52  ;;  %v5046_v53 = vld [vmem:[%s15077_s13 + $0x1768] sm:$0xff] }
 0x830   : > { %11394 = vmatprep.subr.bf16.mxu1 %v13951_v43  ;;  %v11050_v20 = vadd.f32 %v11049_v18, %v16523_v15  ;;  %v11051_v8 = vpop.f32.mrb[37].mxu0  ;;  %v13759_v43 = vcombine.high %v4958_v62, %v4966_v47  ;;  %v13775_v18 = vcombine.high %v4974_v9, %v4982_v11 }
 0x831   : > { %v11090_v31 = vpop.f32.mrb[36].mxu1  ;;  %v11052_v57 = vadd.f32 %v11051_v8, %v16525_v16  ;;  %v11053_v40 = vpop.f32.mrb[38].mxu0  ;;  %11354 = vmatpush1.bf16.msra.mxu0 %v13694_v14  ;;  %v13983_v16 = vcombine.high %v5182_v28, %v5190_v29  ;;  %v5238_v14 = vld [vmem:[%s15077_s13 + $0x1d68] sm:$0xff]  ;;  %v13774_v8 = vcombine.low %v4974_v9, %v4982_v11  ;;  %v13791_v29 = vcombine.high %v4990_v37, %v4998_v19  ;;  %v4303_v11 = vld [vmem:[%s15077_s13 + $0x30] sm:$0xff] }
 0x832   : > { %v11092_v5 = vpop.f32.mrb[37].mxu1  ;;  %v11091_v45 = vadd.f32 %v11090_v31, %v11050_v20  ;;  %v11054_v15 = vpop.f32.mrb[39].mxu0  ;;  %11355 = vmatprep.subr.bf16.mxu0 %v13711_v17  ;;  %v14014_v17 = vcombine.low %v5214_v2, %v5222_v3  ;;  %v5246_v20 = vld [vmem:[%s15077_s13 + $0x1da8] sm:$0xff]  ;;  %v14030_v28 = vcombine.low %v5230_v12, %v5238_v14 }
 0x833   : > { %v11094_v13 = vpop.f32.mrb[38].mxu1  ;;  %11395 = vmatpush1.bf16.msra.mxu1 %v13950_v34  ;;  %v11093_v55 = vadd.f32 %v11092_v5, %v11052_v57  ;;  %v13758_v34 = vcombine.low %v4958_v62, %v4966_v47  ;;  %v5254_v31 = vld [vmem:[%s15077_s13 + $0x1de8] sm:$0xff] }
 0x834   : > { %v11095_v33 = vpop.f32.mrb[39].mxu1  ;;  %11396 = vmatprep.subr.bf16.mxu1 %v13967_v50  ;;  %v11759_v36 = vadd.f32 %v11091_v45, %v4279_v30  ;;  %v14031_v50 = vcombine.high %v5230_v12, %v5238_v14  ;;  %v14047_v30 = vcombine.high %v5246_v20, %v5254_v31  ;;  %v5006_v57 = vld [vmem:[%s15077_s13 + $0x1628] sm:$0xff]  ;;  %v13790_v45 = vcombine.low %v4990_v37, %v4998_v19  ;;  %v4311_v12 = vld [vmem:[%s15077_s13 + $0x70] sm:$0xff] }
 0x835   : > { %v11760_v56 = vadd.f32 %v11093_v55, %v4280_v23  ;;  %11356 = vmatpush1.bf16.msra.mxu0 %v13710_v44  ;;  %v5014_v5 = vld [vmem:[%s15077_s13 + $0x1668] sm:$0xff]  ;;  %v14046_v23 = vcombine.low %v5246_v20, %v5254_v31  ;;  %v4559_v14 = vld [vmem:[%s15077_s13 + $0x830] sm:$0xff]  ;;  %v13104_v31 = vcombine.low %v4303_v11, %v4311_v12 }
 0x836   : > { %11775 = vst [vmem:[#allocation2 + $0x30] sm:$0xff] %v11759_v36  ;;  %11357 = vmatprep.subr.bf16.mxu0 %v13727_v32  ;;  %v5262_v40 = vld [vmem:[%s15077_s13 + $0x1e28] sm:$0xff]  ;;  %v13807_v13 = vcombine.high %v5006_v57, %v5014_v5  ;;  %v4319_v19 = vld [vmem:[%s15077_s13 + $0xb0] sm:$0xff] }
 0x837   : > { %11397 = vmatpush1.bf16.msra.mxu1 %v13966_v48  ;;  %11776 = vst [vmem:[#allocation2 + $0x38] sm:$0xff] %v11760_v56  ;;  %v5270_v44 = vld [vmem:[%s15077_s13 + $0x1e68] sm:$0xff]  ;;  %v4327_v20 = vld [vmem:[%s15077_s13 + $0xf0] sm:$0xff] }
 0x838   : > { %11398 = vmatprep.subr.bf16.mxu1 %v13983_v16  ;;  %v14063_v15 = vcombine.high %v5262_v40, %v5270_v44  ;;  %v5022_v48 = vld [vmem:[%s15077_s13 + $0x16a8] sm:$0xff]  ;;  %v13806_v16 = vcombine.low %v5006_v57, %v5014_v5  ;;  %v14062_v35 = vcombine.low %v5262_v40, %v5270_v44  ;;  %v4335_v57 = vld [vmem:[%s15077_s13 + $0x130] sm:$0xff] }
 0x839   : > { %11358 = vmatpush1.bf16.msra.mxu0 %v13726_v59  ;;  %v5030_v32 = vld [vmem:[%s15077_s13 + $0x16e8] sm:$0xff]  ;;  %v4343_v5 = vld [vmem:[%s15077_s13 + $0x170] sm:$0xff] }
 0x83a   : > { %11359 = vmatprep.subr.bf16.mxu0 %v13743_v39  ;;  %v5278_v55 = vld [vmem:[%s15077_s13 + $0x1ea8] sm:$0xff]  ;;  %v13823_v52 = vcombine.high %v5022_v48, %v5030_v32  ;;  %v4591_v44 = vld [vmem:[%s15077_s13 + $0x930] sm:$0xff] }
 0x83b   : > { %11399 = vmatpush1.bf16.msra.mxu1 %v13982_v60  ;;  %v5286_v33 = vld [vmem:[%s15077_s13 + $0x1ee8] sm:$0xff]  ;;  %v13822_v60 = vcombine.low %v5022_v48, %v5030_v32  ;;  %v4351_v32 = vld [vmem:[%s15077_s13 + $0x1b0] sm:$0xff] }
 0x83c   : > { %11400 = vmatprep.subr.bf16.mxu1 %v13999_v61  ;;  %v14079_v36 = vcombine.high %v5278_v55, %v5286_v33  ;;  %v5294_v56 = vld [vmem:[%s15077_s13 + $0x1f28] sm:$0xff]  ;;  %v14078_v39 = vcombine.low %v5278_v55, %v5286_v33  ;;  %v13839_v61 = vcombine.high %v5038_v26, %v5046_v53  ;;  %v4359_v55 = vld [vmem:[%s15077_s13 + $0x1f0] sm:$0xff] }
 0x83d   : > { %11360 = vmatpush1.bf16.msra.mxu0 %v13742_v4  ;;  %v5302_v59 = vld [vmem:[%s15077_s13 + $0x1f68] sm:$0xff]  ;;  %v4607_v33 = vld [vmem:[%s15077_s13 + $0x9b0] sm:$0xff] }
 0x83e   : > { %11361 = vmatprep.subr.bf16.mxu0 %v13759_v43  ;;  %v14095_v62 = vcombine.high %v5294_v56, %v5302_v59  ;;  %v5054_v47 = vld [vmem:[%s15077_s13 + $0x17a8] sm:$0xff]  ;;  %v14094_v43 = vcombine.low %v5294_v56, %v5302_v59  ;;  %v4375_v56 = vld [vmem:[%s15077_s13 + $0x270] sm:$0xff] }
 0x83f   : > { %11401 = vmatpush1.bf16.msra.mxu1 %v13998_v6  ;;  %v5062_v2 = vld [vmem:[%s15077_s13 + $0x17e8] sm:$0xff]  ;;  %v13838_v6 = vcombine.low %v5038_v26, %v5046_v53  ;;  %v4367_v53 = vld [vmem:[%s15077_s13 + $0x230] sm:$0xff] }
 0x840   : > { %11402 = vmatprep.subr.bf16.mxu1 %v14015_v46  ;;  %v5310_v3 = vld [vmem:[%s15077_s13 + $0x1fa8] sm:$0xff]  ;;  %v13855_v46 = vcombine.high %v5054_v47, %v5062_v2  ;;  %v4623_v59 = vld [vmem:[%s15077_s13 + $0xa30] sm:$0xff] }
 0x841   : > { %11362 = vmatpush1.bf16.msra.mxu0 %v13758_v34  ;;  %v5318_v4 = vld [vmem:[%s15077_s13 + $0x1fe8] sm:$0xff]  ;;  %v4567_v34 = vld [vmem:[%s15077_s13 + $0x870] sm:$0xff] }
 0x842   : > { %11363 = vmatprep.subr.bf16.mxu0 %v13775_v18  ;;  %v14111_v9 = vcombine.high %v5310_v3, %v5318_v4  ;;  %v14110_v18 = vcombine.low %v5310_v3, %v5318_v4  ;;  %v13361_v37 = vcombine.high %v4559_v14, %v4567_v34  ;;  %v4391_v3 = vld [vmem:[%s15077_s13 + $0x2f0] sm:$0xff] }
 0x843   : > { %11403 = vmatpush1.bf16.msra.mxu1 %v14014_v17  ;;  %v13854_v17 = vcombine.low %v5054_v47, %v5062_v2  ;;  %v4383_v2 = vld [vmem:[%s15077_s13 + $0x2b0] sm:$0xff] }
 0x844   : > { %11404 = vmatprep.subr.bf16.mxu1 %v14031_v50  ;;  %v13105_v50 = vcombine.high %v4303_v11, %v4311_v12  ;;  %v4639_v4 = vld [vmem:[%s15077_s13 + $0xab0] sm:$0xff] }
 0x845   : > { %11364 = vmatpush1.bf16.msra.mxu0 %v13774_v8  ;;  %v4575_v8 = vld [vmem:[%s15077_s13 + $0x8b0] sm:$0xff] }
 0x846   : > { %11365 = vmatprep.subr.bf16.mxu0 %v13791_v29  ;;  %v13360_v29 = vcombine.low %v4559_v14, %v4567_v34  ;;  %v4399_v12 = vld [vmem:[%s15077_s13 + $0x330] sm:$0xff] }
 0x847   : > { %11405 = vmatpush1.bf16.msra.mxu1 %v14030_v28  ;;  %v4583_v28 = vld [vmem:[%s15077_s13 + $0x8f0] sm:$0xff] }
 0x848   : > { %11406 = vmatprep.subr.bf16.mxu1 %v14047_v30  ;;  %v13121_v30 = vcombine.high %v4319_v19, %v4327_v20  ;;  %v13377_v40 = vcombine.high %v4575_v8, %v4583_v28  ;;  %v4407_v14 = vld [vmem:[%s15077_s13 + $0x370] sm:$0xff] }
 0x849   : > { %11366 = vmatpush1.bf16.msra.mxu0 %v13790_v45  ;;  %v4599_v45 = vld [vmem:[%s15077_s13 + $0x970] sm:$0xff] }
 0x84a   : > { %11367 = vmatprep.subr.bf16.mxu0 %v13807_v13  ;;  %v13376_v13 = vcombine.low %v4575_v8, %v4583_v28  ;;  %v13393_v48 = vcombine.high %v4591_v44, %v4599_v45  ;;  %v4655_v34 = vld [vmem:[%s15077_s13 + $0xb30] sm:$0xff] }
 0x84b   : > { %11407 = vmatpush1.bf16.msra.mxu1 %v14046_v23  ;;  %v13120_v23 = vcombine.low %v4319_v19, %v4327_v20  ;;  %v4423_v8 = vld [vmem:[%s15077_s13 + $0x3f0] sm:$0xff] }
 0x84c   : > { %11408 = vmatprep.subr.bf16.mxu1 %v14063_v15  ;;  %v13137_v15 = vcombine.high %v4335_v57, %v4343_v5 }
 0x84d   : > { %11368 = vmatpush1.bf16.msra.mxu0 %v13806_v16  ;;  %v4615_v16 = vld [vmem:[%s15077_s13 + $0x9f0] sm:$0xff] }
 0x84e   : > { %11369 = vmatprep.subr.bf16.mxu0 %v13823_v52  ;;  %v13392_v52 = vcombine.low %v4591_v44, %v4599_v45  ;;  %v13409_v26 = vcombine.high %v4607_v33, %v4615_v16  ;;  %v13200_v45 = vcombine.low %v4399_v12, %v4407_v14 }
 0x84f   : > { %11409 = vmatpush1.bf16.msra.mxu1 %v14062_v35  ;;  %v13136_v35 = vcombine.low %v4335_v57, %v4343_v5  ;;  %v4679_v57 = vld [vmem:[%s15077_s13 + $0xbf0] sm:$0xff] }
 0x850   : > { %11410 = vmatprep.subr.bf16.mxu1 %v14079_v36  ;;  %v13153_v36 = vcombine.high %v4351_v32, %v4359_v55 }
 0x851   : > { %11370 = vmatpush1.bf16.msra.mxu0 %v13822_v60  ;;  %v4631_v60 = vld [vmem:[%s15077_s13 + $0xa70] sm:$0xff] }
 0x852   : > { %11371 = vmatprep.subr.bf16.mxu0 %v13839_v61  ;;  %v13408_v61 = vcombine.low %v4607_v33, %v4615_v16  ;;  %v13425_v47 = vcombine.high %v4623_v59, %v4631_v60  ;;  %v4431_v16 = vld [vmem:[%s15077_s13 + $0x430] sm:$0xff] }
 0x853   : > { %11411 = vmatpush1.bf16.msra.mxu1 %v14078_v39  ;;  %v13152_v39 = vcombine.low %v4351_v32, %v4359_v55 }
 0x854   : > { %11412 = vmatprep.subr.bf16.mxu1 %v14095_v62  ;;  %v13169_v62 = vcombine.high %v4367_v53, %v4375_v56 }
 0x855   : > { %11372 = vmatpush1.bf16.msra.mxu0 %v13838_v6  ;;  %v4647_v6 = vld [vmem:[%s15077_s13 + $0xaf0] sm:$0xff] }
 0x856   : > { %11373 = vmatprep.subr.bf16.mxu0 %v13855_v46  ;;  %v13424_v46 = vcombine.low %v4623_v59, %v4631_v60  ;;  %v13441_v11 = vcombine.high %v4639_v4, %v4647_v6  ;;  %v4447_v60 = vld [vmem:[%s15077_s13 + $0x4b0] sm:$0xff] }
 0x857   : > { %11413 = vmatpush1.bf16.msra.mxu1 %v14094_v43  ;;  %v13168_v43 = vcombine.low %v4367_v53, %v4375_v56 }
 0x858   : > { %11414 = vmatprep.subr.bf16.mxu1 %v14111_v9  ;;  %v13185_v9 = vcombine.high %v4383_v2, %v4391_v3 }
 0x859   : > { %11374 = vmatpush1.bf16.msra.mxu0 %v13854_v17  ;;  %v4663_v17 = vld [vmem:[%s15077_s13 + $0xb70] sm:$0xff] }
 0x85a   : > { %11425 = vmatprep.subr.bf16.mxu0 %v13105_v50  ;;  %v13440_v50 = vcombine.low %v4639_v4, %v4647_v6  ;;  %v13457_v20 = vcombine.high %v4655_v34, %v4663_v17  ;;  %v4463_v6 = vld [vmem:[%s15077_s13 + $0x530] sm:$0xff] }
 0x85b   : > { %11415 = vmatpush1.bf16.msra.mxu1 %v14110_v18  ;;  %v13184_v18 = vcombine.low %v4383_v2, %v4391_v3 }
 0x85c   : > { %11466 = vmatprep.subr.bf16.mxu1 %v13361_v37  ;;  %11376 = vmatmul.mubr.bf16.vlgmr.msra.gmra.mrb[52].mxu0 %v15919_v22  ;;  %v13201_v37 = vcombine.high %v4399_v12, %v4407_v14 }
 0x85d   : > { %11426 = vmatpush1.bf16.msra.mxu0 %v13104_v31  ;;  %11457 = vmatprep.mubr.bf16.mxu0 %v15729_v7  ;;  %v4415_v31 = vld [vmem:[%s15077_s13 + $0x3b0] sm:$0xff] }
 0x85e   : > { %11417 = vmatmul.mubr.bf16.vlgmr.msra.gmra.mrb[52].mxu1 %v15923_v25  ;;  %11427 = vmatprep.subr.bf16.mxu0 %v13121_v30  ;;  %v4671_v30 = vld [vmem:[%s15077_s13 + $0xbb0] sm:$0xff]  ;;  %v13217_v32 = vcombine.high %v4415_v31, %v4423_v8 }
 0x85f   : > { %11467 = vmatpush1.bf16.msra.mxu1 %v13360_v29  ;;  %11498 = vmatprep.mubr.bf16.mxu1 %v15734_v10  ;;  %v13473_v33 = vcombine.high %v4671_v30, %v4679_v57  ;;  %v13472_v53 = vcombine.low %v4671_v30, %v4679_v57  ;;  %v4751_v30 = vld [vmem:[%s15077_s13 + $0xe30] sm:$0xff] }
 0x860   : > { %11468 = vmatprep.subr.bf16.mxu1 %v13377_v40  ;;  %v4759_v57 = vld [vmem:[%s15077_s13 + $0xe70] sm:$0xff] }
 0x861   : > { %11428 = vmatpush1.bf16.msra.mxu0 %v13120_v23 }
 0x862   : > { %11429 = vmatprep.subr.bf16.mxu0 %v13137_v15 }
 0x863   : > { %11469 = vmatpush1.bf16.msra.mxu1 %v13376_v13 }
 0x864   : > { %11470 = vmatprep.subr.bf16.mxu1 %v13393_v48  ;;  %v13456_v48 = vcombine.low %v4655_v34, %v4663_v17  ;;  %v4479_v17 = vld [vmem:[%s15077_s13 + $0x5b0] sm:$0xff] }
 0x865   : > { %11430 = vmatpush1.bf16.msra.mxu0 %v13136_v35  ;;  %v4439_v35 = vld [vmem:[%s15077_s13 + $0x470] sm:$0xff] }
 0x866   : > { %11431 = vmatprep.subr.bf16.mxu0 %v13153_v36  ;;  %v4695_v36 = vld [vmem:[%s15077_s13 + $0xc70] sm:$0xff]  ;;  %v13233_v56 = vcombine.high %v4431_v16, %v4439_v35 }
 0x867   : > { %11471 = vmatpush1.bf16.msra.mxu1 %v13392_v52  ;;  %v4687_v52 = vld [vmem:[%s15077_s13 + $0xc30] sm:$0xff] }
 0x868   : > { %11472 = vmatprep.subr.bf16.mxu1 %v13409_v26  ;;  %v13216_v26 = vcombine.low %v4415_v31, %v4423_v8  ;;  %v13489_v59 = vcombine.high %v4687_v52, %v4695_v36  ;;  %v13488_v2 = vcombine.low %v4687_v52, %v4695_v36  ;;  %v4527_v36 = vld [vmem:[%s15077_s13 + $0x730] sm:$0xff] }
 0x869   : > { %11432 = vmatpush1.bf16.msra.mxu0 %v13152_v39  ;;  %v4455_v39 = vld [vmem:[%s15077_s13 + $0x4f0] sm:$0xff] }
 0x86a   : > { %11433 = vmatprep.subr.bf16.mxu0 %v13169_v62  ;;  %v4711_v62 = vld [vmem:[%s15077_s13 + $0xcf0] sm:$0xff]  ;;  %v13249_v3 = vcombine.high %v4447_v60, %v4455_v39 }
 0x86b   : > { %11473 = vmatpush1.bf16.msra.mxu1 %v13408_v61  ;;  %v4703_v61 = vld [vmem:[%s15077_s13 + $0xcb0] sm:$0xff] }
 0x86c   : > { %11474 = vmatprep.subr.bf16.mxu1 %v13425_v47  ;;  %v13232_v47 = vcombine.low %v4431_v16, %v4439_v35  ;;  %v13505_v4 = vcombine.high %v4703_v61, %v4711_v62  ;;  %v13504_v12 = vcombine.low %v4703_v61, %v4711_v62  ;;  %v13552_v16 = vcombine.low %v4751_v30, %v4759_v57  ;;  %v4543_v62 = vld [vmem:[%s15077_s13 + $0x7b0] sm:$0xff] }
 0x86d   : > { %11434 = vmatpush1.bf16.msra.mxu0 %v13168_v43  ;;  %v4471_v43 = vld [vmem:[%s15077_s13 + $0x570] sm:$0xff] }
 0x86e   : > { %11435 = vmatprep.subr.bf16.mxu0 %v13185_v9  ;;  %v4727_v9 = vld [vmem:[%s15077_s13 + $0xd70] sm:$0xff]  ;;  %v13265_v14 = vcombine.high %v4463_v6, %v4471_v43 }
 0x86f   : > { %11475 = vmatpush1.bf16.msra.mxu1 %v13424_v46  ;;  %v11131_v19 = vpop.f32.mrb[40].mxu0  ;;  %v4719_v46 = vld [vmem:[%s15077_s13 + $0xd30] sm:$0xff] }
 0x870   : > { %11476 = vmatprep.subr.bf16.mxu1 %v13441_v11  ;;  %v11133_v29 = vpop.f32.mrb[41].mxu0  ;;  %v13248_v11 = vcombine.low %v4447_v60, %v4455_v39  ;;  %v13521_v34 = vcombine.high %v4719_v46, %v4727_v9 }
 0x871   : > { %v11172_v28 = vpop.f32.mrb[40].mxu1  ;;  %v11135_v44 = vpop.f32.mrb[42].mxu0  ;;  %11436 = vmatpush1.bf16.msra.mxu0 %v13184_v18  ;;  %v4487_v18 = vld [vmem:[%s15077_s13 + $0x5f0] sm:$0xff] }
 0x872   : > { %v16665_v5 = vadd.f32 %v11172_v28, %v11131_v19  ;;  %v11174_v40 = vpop.f32.mrb[41].mxu1  ;;  %v11136_v15 = vpop.f32.mrb[43].mxu0  ;;  %11437 = vmatprep.subr.bf16.mxu0 %v13201_v37  ;;  %v4743_v37 = vld [vmem:[%s15077_s13 + $0xdf0] sm:$0xff]  ;;  %v13264_v19 = vcombine.low %v4463_v6, %v4471_v43  ;;  %v13281_v31 = vcombine.high %v4479_v17, %v4487_v18 }
 0x873   : > { %v16667_v23 = vadd.f32 %v11174_v40, %v11133_v29  ;;  %v11176_v13 = vpop.f32.mrb[42].mxu1  ;;  %11477 = vmatpush1.bf16.msra.mxu1 %v13440_v50  ;;  %v4735_v50 = vld [vmem:[%s15077_s13 + $0xdb0] sm:$0xff]  ;;  %v13280_v40 = vcombine.low %v4479_v17, %v4487_v18 }
 0x874   : > { %v11177_v55 = vpop.f32.mrb[43].mxu1  ;;  %11478 = vmatprep.subr.bf16.mxu1 %v13457_v20  ;;  %v13520_v20 = vcombine.low %v4719_v46, %v4727_v9  ;;  %v13537_v8 = vcombine.high %v4735_v50, %v4743_v37  ;;  %v4495_v28 = vld [vmem:[%s15077_s13 + $0x630] sm:$0xff]  ;;  %v13536_v44 = vcombine.low %v4735_v50, %v4743_v37  ;;  %v13553_v13 = vcombine.high %v4751_v30, %v4759_v57 }
 0x875   : > { %11438 = vmatpush1.bf16.msra.mxu0 %v13200_v45  ;;  %v4503_v29 = vld [vmem:[%s15077_s13 + $0x670] sm:$0xff] }
 0x876   : > { %11439 = vmatprep.subr.bf16.mxu0 %v13217_v32  ;;  %v13297_v45 = vcombine.high %v4495_v28, %v4503_v29  ;;  %v4511_v15 = vld [vmem:[%s15077_s13 + $0x6b0] sm:$0xff] }
 0x877   : > { %11479 = vmatpush1.bf16.msra.mxu1 %v13456_v48  ;;  %v4519_v48 = vld [vmem:[%s15077_s13 + $0x6f0] sm:$0xff] }
 0x878   : > { %11480 = vmatprep.subr.bf16.mxu1 %v13473_v33  ;;  %v4767_v32 = vld [vmem:[%s15077_s13 + $0xeb0] sm:$0xff]  ;;  %v13296_v33 = vcombine.low %v4495_v28, %v4503_v29  ;;  %v13313_v35 = vcombine.high %v4511_v15, %v4519_v48 }
 0x879   : > { %11440 = vmatpush1.bf16.msra.mxu0 %v13216_v26  ;;  %v4775_v55 = vld [vmem:[%s15077_s13 + $0xef0] sm:$0xff] }
 0x87a   : > { %11441 = vmatprep.subr.bf16.mxu0 %v13233_v56  ;;  %v13569_v52 = vcombine.high %v4767_v32, %v4775_v55  ;;  %v4535_v26 = vld [vmem:[%s15077_s13 + $0x770] sm:$0xff]  ;;  %v13568_v60 = vcombine.low %v4767_v32, %v4775_v55 }
 0x87b   : > { %11481 = vmatpush1.bf16.msra.mxu1 %v13472_v53  ;;  %v4783_v53 = vld [vmem:[%s15077_s13 + $0xf30] sm:$0xff]  ;;  %v13329_v39 = vcombine.high %v4527_v36, %v4535_v26 }
 0x87c   : > { %11482 = vmatprep.subr.bf16.mxu1 %v13489_v59  ;;  %v4791_v56 = vld [vmem:[%s15077_s13 + $0xf70] sm:$0xff]  ;;  %v13312_v59 = vcombine.low %v4511_v15, %v4519_v48 }
 0x87d   : > { %11442 = vmatpush1.bf16.msra.mxu0 %v13232_v47  ;;  %v13585_v61 = vcombine.high %v4783_v53, %v4791_v56  ;;  %v4551_v47 = vld [vmem:[%s15077_s13 + $0x7f0] sm:$0xff]  ;;  %v13584_v6 = vcombine.low %v4783_v53, %v4791_v56 }
 0x87e   : > { %11443 = vmatprep.subr.bf16.mxu0 %v13249_v3  ;;  %v4807_v3 = vld [vmem:[%s15077_s13 + $0xff0] sm:$0xff]  ;;  %v13345_v43 = vcombine.high %v4543_v62, %v4551_v47 }
 0x87f   : > { %11483 = vmatpush1.bf16.msra.mxu1 %v13488_v2  ;;  %v4799_v2 = vld [vmem:[%s15077_s13 + $0xfb0] sm:$0xff] }
 0x880   : > { %11484 = vmatprep.subr.bf16.mxu1 %v13505_v4  ;;  %v13328_v4 = vcombine.low %v4527_v36, %v4535_v26  ;;  %v13601_v46 = vcombine.high %v4799_v2, %v4807_v3  ;;  %v4815_v9 = vld [vmem:[%s15077_s13 + $0x1030] sm:$0xff]  ;;  %v13600_v17 = vcombine.low %v4799_v2, %v4807_v3 }
 0x881   : > { %11444 = vmatpush1.bf16.msra.mxu0 %v13248_v11  ;;  %v4823_v11 = vld [vmem:[%s15077_s13 + $0x1070] sm:$0xff] }
 0x882   : > { %11445 = vmatprep.subr.bf16.mxu0 %v13265_v14  ;;  %v5079_v14 = vld [vmem:[%s15077_s13 + $0x1870] sm:$0xff]  ;;  %v13617_v18 = vcombine.high %v4815_v9, %v4823_v11 }
 0x883   : > { %11485 = vmatpush1.bf16.msra.mxu1 %v13504_v12  ;;  %v5071_v12 = vld [vmem:[%s15077_s13 + $0x1830] sm:$0xff] }
 0x884   : > { %11486 = vmatprep.subr.bf16.mxu1 %v13521_v34  ;;  %v13344_v34 = vcombine.low %v4543_v62, %v4551_v47  ;;  %v13873_v50 = vcombine.high %v5071_v12, %v5079_v14  ;;  %v4831_v37 = vld [vmem:[%s15077_s13 + $0x10b0] sm:$0xff]  ;;  %v13872_v28 = vcombine.low %v5071_v12, %v5079_v14 }
 0x885   : > { %11446 = vmatpush1.bf16.msra.mxu0 %v13264_v19  ;;  %v4839_v19 = vld [vmem:[%s15077_s13 + $0x10f0] sm:$0xff] }
 0x886   : > { %11447 = vmatprep.subr.bf16.mxu0 %v13281_v31  ;;  %v5087_v31 = vld [vmem:[%s15077_s13 + $0x18b0] sm:$0xff]  ;;  %v13633_v29 = vcombine.high %v4831_v37, %v4839_v19 }
 0x887   : > { %11487 = vmatpush1.bf16.msra.mxu1 %v13520_v20  ;;  %v13616_v20 = vcombine.low %v4815_v9, %v4823_v11  ;;  %v4847_v30 = vld [vmem:[%s15077_s13 + $0x1130] sm:$0xff] }
 0x888   : > { %11488 = vmatprep.subr.bf16.mxu1 %v13537_v8  ;;  %v5095_v8 = vld [vmem:[%s15077_s13 + $0x18f0] sm:$0xff] }
 0x889   : > { %11448 = vmatpush1.bf16.msra.mxu0 %v13280_v40  ;;  %v4855_v57 = vld [vmem:[%s15077_s13 + $0x1170] sm:$0xff]  ;;  %v13889_v40 = vcombine.high %v5087_v31, %v5095_v8  ;;  %v13888_v15 = vcombine.low %v5087_v31, %v5095_v8 }
 0x88a   : > { %11449 = vmatprep.subr.bf16.mxu0 %v13297_v45  ;;  %v5111_v45 = vld [vmem:[%s15077_s13 + $0x1970] sm:$0xff]  ;;  %v13649_v48 = vcombine.high %v4847_v30, %v4855_v57 }
 0x88b   : > { %11489 = vmatpush1.bf16.msra.mxu1 %v13536_v44  ;;  %v5103_v44 = vld [vmem:[%s15077_s13 + $0x1930] sm:$0xff] }
 0x88c   : > { %11490 = vmatprep.subr.bf16.mxu1 %v13553_v13  ;;  %v13632_v13 = vcombine.low %v4831_v37, %v4839_v19  ;;  %v13905_v32 = vcombine.high %v5103_v44, %v5111_v45  ;;  %v4863_v55 = vld [vmem:[%s15077_s13 + $0x11b0] sm:$0xff]  ;;  %v13904_v36 = vcombine.low %v5103_v44, %v5111_v45 }
 0x88d   : > { %11450 = vmatpush1.bf16.msra.mxu0 %v13296_v33  ;;  %v4871_v33 = vld [vmem:[%s15077_s13 + $0x11f0] sm:$0xff] }
 0x88e   : > { %11451 = vmatprep.subr.bf16.mxu0 %v13313_v35  ;;  %v5127_v35 = vld [vmem:[%s15077_s13 + $0x19f0] sm:$0xff]  ;;  %v13665_v26 = vcombine.high %v4863_v55, %v4871_v33 }
 0x88f   : > { %11491 = vmatpush1.bf16.msra.mxu1 %v13552_v16  ;;  %v5119_v16 = vld [vmem:[%s15077_s13 + $0x19b0] sm:$0xff] }
 0x890   : > { %11492 = vmatprep.subr.bf16.mxu1 %v13569_v52  ;;  %v13648_v52 = vcombine.low %v4847_v30, %v4855_v57  ;;  %v13921_v53 = vcombine.high %v5119_v16, %v5127_v35  ;;  %v4879_v56 = vld [vmem:[%s15077_s13 + $0x1230] sm:$0xff]  ;;  %v13920_v62 = vcombine.low %v5119_v16, %v5127_v35 }
 0x891   : > { %11452 = vmatpush1.bf16.msra.mxu0 %v13312_v59  ;;  %v4887_v59 = vld [vmem:[%s15077_s13 + $0x1270] sm:$0xff] }
 0x892   : > { %11453 = vmatprep.subr.bf16.mxu0 %v13329_v39  ;;  %v5143_v39 = vld [vmem:[%s15077_s13 + $0x1a70] sm:$0xff]  ;;  %v13681_v47 = vcombine.high %v4879_v56, %v4887_v59 }
 0x893   : > { %11493 = vmatpush1.bf16.msra.mxu1 %v13568_v60  ;;  %v5135_v60 = vld [vmem:[%s15077_s13 + $0x1a30] sm:$0xff] }
 0x894   : > { %11494 = vmatprep.subr.bf16.mxu1 %v13585_v61  ;;  %v13664_v61 = vcombine.low %v4863_v55, %v4871_v33  ;;  %v13937_v2 = vcombine.high %v5135_v60, %v5143_v39  ;;  %v4895_v3 = vld [vmem:[%s15077_s13 + $0x12b0] sm:$0xff]  ;;  %v13936_v9 = vcombine.low %v5135_v60, %v5143_v39  ;;  %v4282_v33 = vld [vmem:[#allocation2 + $0x48] sm:$0xff] }
 0x895   : > { %11454 = vmatpush1.bf16.msra.mxu0 %v13328_v4  ;;  %v4903_v4 = vld [vmem:[%s15077_s13 + $0x12f0] sm:$0xff] }
 0x896   : > { %11455 = vmatprep.subr.bf16.mxu0 %v13345_v43  ;;  %v5159_v43 = vld [vmem:[%s15077_s13 + $0x1af0] sm:$0xff]  ;;  %v13697_v11 = vcombine.high %v4895_v3, %v4903_v4 }
 0x897   : > { %11495 = vmatpush1.bf16.msra.mxu1 %v13584_v6  ;;  %v5151_v6 = vld [vmem:[%s15077_s13 + $0x1ab0] sm:$0xff] }
 0x898   : > { %11496 = vmatprep.subr.bf16.mxu1 %v13601_v46  ;;  %v13680_v46 = vcombine.low %v4879_v56, %v4887_v59  ;;  %v13953_v12 = vcombine.high %v5151_v6, %v5159_v43  ;;  %v4911_v14 = vld [vmem:[%s15077_s13 + $0x1330] sm:$0xff]  ;;  %v13952_v37 = vcombine.low %v5151_v6, %v5159_v43 }
 0x899   : > { %11456 = vmatpush1.bf16.msra.mxu0 %v13344_v34  ;;  %v4919_v34 = vld [vmem:[%s15077_s13 + $0x1370] sm:$0xff] }
 0x89a   : > { %11507 = vmatprep.subr.bf16.mxu0 %v13617_v18  ;;  %v5175_v18 = vld [vmem:[%s15077_s13 + $0x1b70] sm:$0xff]  ;;  %v13713_v19 = vcombine.high %v4911_v14, %v4919_v34 }
 0x89b   : > { %11497 = vmatpush1.bf16.msra.mxu1 %v13600_v17  ;;  %v5167_v17 = vld [vmem:[%s15077_s13 + $0x1b30] sm:$0xff] }
 0x89c   : > { %11548 = vmatprep.subr.bf16.mxu1 %v13873_v50  ;;  %11458 = vmatmul.mubr.bf16.vlgmr.msra.gmra.mrb[56].mxu0 %v15811_v27  ;;  %v13696_v50 = vcombine.low %v4895_v3, %v4903_v4  ;;  %v13969_v31 = vcombine.high %v5167_v17, %v5175_v18  ;;  %v4927_v8 = vld [vmem:[%s15077_s13 + $0x13b0] sm:$0xff]  ;;  %v13968_v35 = vcombine.low %v5167_v17, %v5175_v18 }
 0x89d   : > { %11508 = vmatpush1.bf16.msra.mxu0 %v13616_v20  ;;  %11539 = vmatprep.mubr.bf16.mxu0 %v15915_v41  ;;  %v5191_v44 = vld [vmem:[%s15077_s13 + $0x1bf0] sm:$0xff] }
 0x89e   : > { %11499 = vmatmul.mubr.bf16.vlgmr.msra.gmra.mrb[56].mxu1 %v15813_v21  ;;  %11509 = vmatprep.subr.bf16.mxu0 %v13633_v29  ;;  %v4281_v45 = vld [vmem:[#allocation2 + $0x40] sm:$0xff] }
 0x89f   : > { %11549 = vmatpush1.bf16.msra.mxu1 %v13872_v28  ;;  %11580 = vmatprep.mubr.bf16.mxu1 %v15921_v24  ;;  %v4935_v28 = vld [vmem:[%s15077_s13 + $0x13f0] sm:$0xff] }
 0x8a0   : > { %11550 = vmatprep.subr.bf16.mxu1 %v13889_v40  ;;  %v5183_v40 = vld [vmem:[%s15077_s13 + $0x1bb0] sm:$0xff] }
 0x8a1   : > { %11510 = vmatpush1.bf16.msra.mxu0 %v13632_v13  ;;  %v4951_v56 = vld [vmem:[%s15077_s13 + $0x1470] sm:$0xff] }
 0x8a2   : > { %11511 = vmatprep.subr.bf16.mxu0 %v13649_v48  ;;  %v5199_v60 = vld [vmem:[%s15077_s13 + $0x1c30] sm:$0xff] }
 0x8a3   : > { %11551 = vmatpush1.bf16.msra.mxu1 %v13888_v15  ;;  %v5207_v39 = vld [vmem:[%s15077_s13 + $0x1c70] sm:$0xff] }
 0x8a4   : > { %11552 = vmatprep.subr.bf16.mxu1 %v13905_v32  ;;  %v13712_v32 = vcombine.low %v4911_v14, %v4919_v34  ;;  %v14001_v3 = vcombine.high %v5199_v60, %v5207_v39  ;;  %v4959_v4 = vld [vmem:[%s15077_s13 + $0x14b0] sm:$0xff] }
 0x8a5   : > { %11512 = vmatpush1.bf16.msra.mxu0 %v13648_v52  ;;  %v13729_v52 = vcombine.high %v4927_v8, %v4935_v28  ;;  %v4967_v6 = vld [vmem:[%s15077_s13 + $0x14f0] sm:$0xff] }
 0x8a6   : > { %11513 = vmatprep.subr.bf16.mxu0 %v13665_v26  ;;  %v5215_v43 = vld [vmem:[%s15077_s13 + $0x1cb0] sm:$0xff] }
 0x8a7   : > { %11553 = vmatpush1.bf16.msra.mxu1 %v13904_v36  ;;  %v4975_v34 = vld [vmem:[%s15077_s13 + $0x1530] sm:$0xff] }
 0x8a8   : > { %11554 = vmatprep.subr.bf16.mxu1 %v13921_v53  ;;  %v4943_v53 = vld [vmem:[%s15077_s13 + $0x1430] sm:$0xff] }
 0x8a9   : > { %11514 = vmatpush1.bf16.msra.mxu0 %v13664_v61  ;;  %v4983_v17 = vld [vmem:[%s15077_s13 + $0x1570] sm:$0xff] }
 0x8aa   : > { %11515 = vmatprep.subr.bf16.mxu0 %v13681_v47  ;;  %v13984_v47 = vcombine.low %v5183_v40, %v5191_v44  ;;  %v5231_v18 = vld [vmem:[%s15077_s13 + $0x1d30] sm:$0xff] }
 0x8ab   : > { %11555 = vmatpush1.bf16.msra.mxu1 %v13920_v62  ;;  %v13728_v62 = vcombine.low %v4927_v8, %v4935_v28  ;;  %v4991_v8 = vld [vmem:[%s15077_s13 + $0x15b0] sm:$0xff] }
 0x8ac   : > { %11556 = vmatprep.subr.bf16.mxu1 %v13937_v2  ;;  %v13745_v2 = vcombine.high %v4943_v53, %v4951_v56  ;;  %v4999_v28 = vld [vmem:[%s15077_s13 + $0x15f0] sm:$0xff] }
 0x8ad   : > { %11516 = vmatpush1.bf16.msra.mxu0 %v13680_v46  ;;  %v5223_v46 = vld [vmem:[%s15077_s13 + $0x1cf0] sm:$0xff] }
 0x8ae   : > { %11517 = vmatprep.subr.bf16.mxu0 %v13697_v11  ;;  %v14000_v11 = vcombine.low %v5199_v60, %v5207_v39  ;;  %v14017_v14 = vcombine.high %v5215_v43, %v5223_v46  ;;  %v5039_v60 = vld [vmem:[%s15077_s13 + $0x1730] sm:$0xff] }
 0x8af   : > { %11557 = vmatpush1.bf16.msra.mxu1 %v13936_v9  ;;  %v11213_v20 = vpop.f32.mrb[44].mxu0  ;;  %v13744_v9 = vcombine.low %v4943_v53, %v4951_v56  ;;  %v5047_v39 = vld [vmem:[%s15077_s13 + $0x1770] sm:$0xff] }
 0x8b0   : > { %11558 = vmatprep.subr.bf16.mxu1 %v13953_v12  ;;  %v11214_v29 = vadd.f32 %v11213_v20, %v16665_v5  ;;  %v11215_v57 = vpop.f32.mrb[45].mxu0  ;;  %v13761_v12 = vcombine.high %v4959_v4, %v4967_v6  ;;  %v13777_v20 = vcombine.high %v4975_v34, %v4983_v17 }
 0x8b1   : > { %v11254_v30 = vpop.f32.mrb[44].mxu1  ;;  %v11216_v13 = vadd.f32 %v11215_v57, %v16667_v23  ;;  %v11217_v48 = vpop.f32.mrb[46].mxu0  ;;  %11518 = vmatpush1.bf16.msra.mxu0 %v13696_v50  ;;  %v13985_v23 = vcombine.high %v5183_v40, %v5191_v44  ;;  %v5239_v50 = vld [vmem:[%s15077_s13 + $0x1d70] sm:$0xff]  ;;  %v13776_v57 = vcombine.low %v4975_v34, %v4983_v17  ;;  %v13793_v44 = vcombine.high %v4991_v8, %v4999_v28  ;;  %v4304_v17 = vld [vmem:[%s15077_s13 + $0x38] sm:$0xff] }
 0x8b2   : > { %v11256_v15 = vpop.f32.mrb[45].mxu1  ;;  %v11255_v55 = vadd.f32 %v11254_v30, %v11214_v29  ;;  %v11218_v5 = vpop.f32.mrb[47].mxu0  ;;  %11519 = vmatprep.subr.bf16.mxu0 %v13713_v19  ;;  %v14016_v19 = vcombine.low %v5215_v43, %v5223_v46  ;;  %v5247_v29 = vld [vmem:[%s15077_s13 + $0x1db0] sm:$0xff]  ;;  %v14032_v40 = vcombine.low %v5231_v18, %v5239_v50 }
 0x8b3   : > { %v11258_v16 = vpop.f32.mrb[46].mxu1  ;;  %11559 = vmatpush1.bf16.msra.mxu1 %v13952_v37  ;;  %v11257_v36 = vadd.f32 %v11256_v15, %v11216_v13  ;;  %v13760_v37 = vcombine.low %v4959_v4, %v4967_v6  ;;  %v5255_v30 = vld [vmem:[%s15077_s13 + $0x1df0] sm:$0xff] }
 0x8b4   : > { %v11259_v26 = vpop.f32.mrb[47].mxu1  ;;  %11560 = vmatprep.subr.bf16.mxu1 %v13969_v31  ;;  %v11761_v59 = vadd.f32 %v11255_v55, %v4281_v45  ;;  %v14033_v31 = vcombine.high %v5231_v18, %v5239_v50  ;;  %v14049_v45 = vcombine.high %v5247_v29, %v5255_v30  ;;  %v5007_v13 = vld [vmem:[%s15077_s13 + $0x1630] sm:$0xff]  ;;  %v13792_v55 = vcombine.low %v4991_v8, %v4999_v28  ;;  %v4312_v18 = vld [vmem:[%s15077_s13 + $0x78] sm:$0xff] }
 0x8b5   : > { %v11762_v61 = vadd.f32 %v11257_v36, %v4282_v33  ;;  %11520 = vmatpush1.bf16.msra.mxu0 %v13712_v32  ;;  %v5015_v15 = vld [vmem:[%s15077_s13 + $0x1670] sm:$0xff]  ;;  %v14048_v33 = vcombine.low %v5247_v29, %v5255_v30  ;;  %v4560_v50 = vld [vmem:[%s15077_s13 + $0x838] sm:$0xff]  ;;  %v13106_v30 = vcombine.low %v4304_v17, %v4312_v18 }
 0x8b6   : > { %11777 = vst [vmem:[#allocation2 + $0x40] sm:$0xff] %v11761_v59  ;;  %11521 = vmatprep.subr.bf16.mxu0 %v13729_v52  ;;  %v5263_v48 = vld [vmem:[%s15077_s13 + $0x1e30] sm:$0xff]  ;;  %v13809_v16 = vcombine.high %v5007_v13, %v5015_v15  ;;  %v4320_v28 = vld [vmem:[%s15077_s13 + $0xb8] sm:$0xff] }
 0x8b7   : > { %11561 = vmatpush1.bf16.msra.mxu1 %v13968_v35  ;;  %11778 = vst [vmem:[#allocation2 + $0x48] sm:$0xff] %v11762_v61  ;;  %v5271_v32 = vld [vmem:[%s15077_s13 + $0x1e70] sm:$0xff]  ;;  %v4328_v29 = vld [vmem:[%s15077_s13 + $0xf8] sm:$0xff] }
 0x8b8   : > { %11562 = vmatprep.subr.bf16.mxu1 %v13985_v23  ;;  %v14065_v5 = vcombine.high %v5263_v48, %v5271_v32  ;;  %v5023_v35 = vld [vmem:[%s15077_s13 + $0x16b0] sm:$0xff]  ;;  %v13808_v23 = vcombine.low %v5007_v13, %v5015_v15  ;;  %v14064_v53 = vcombine.low %v5263_v48, %v5271_v32  ;;  %v4336_v13 = vld [vmem:[%s15077_s13 + $0x138] sm:$0xff] }
 0x8b9   : > { %11522 = vmatpush1.bf16.msra.mxu0 %v13728_v62  ;;  %v5031_v52 = vld [vmem:[%s15077_s13 + $0x16f0] sm:$0xff]  ;;  %v4344_v15 = vld [vmem:[%s15077_s13 + $0x178] sm:$0xff] }
 0x8ba   : > { %11523 = vmatprep.subr.bf16.mxu0 %v13745_v2  ;;  %v5279_v36 = vld [vmem:[%s15077_s13 + $0x1eb0] sm:$0xff]  ;;  %v13825_v56 = vcombine.high %v5023_v35, %v5031_v52  ;;  %v4592_v32 = vld [vmem:[%s15077_s13 + $0x938] sm:$0xff] }
 0x8bb   : > { %11563 = vmatpush1.bf16.msra.mxu1 %v13984_v47  ;;  %v5287_v26 = vld [vmem:[%s15077_s13 + $0x1ef0] sm:$0xff]  ;;  %v13824_v47 = vcombine.low %v5023_v35, %v5031_v52  ;;  %v4352_v52 = vld [vmem:[%s15077_s13 + $0x1b8] sm:$0xff] }
 0x8bc   : > { %11564 = vmatprep.subr.bf16.mxu1 %v14001_v3  ;;  %v14081_v59 = vcombine.high %v5279_v36, %v5287_v26  ;;  %v5295_v61 = vld [vmem:[%s15077_s13 + $0x1f30] sm:$0xff]  ;;  %v14080_v2 = vcombine.low %v5279_v36, %v5287_v26  ;;  %v13841_v3 = vcombine.high %v5039_v60, %v5047_v39  ;;  %v4360_v36 = vld [vmem:[%s15077_s13 + $0x1f8] sm:$0xff] }
 0x8bd   : > { %11524 = vmatpush1.bf16.msra.mxu0 %v13744_v9  ;;  %v5303_v62 = vld [vmem:[%s15077_s13 + $0x1f70] sm:$0xff]  ;;  %v4608_v26 = vld [vmem:[%s15077_s13 + $0x9b8] sm:$0xff] }
 0x8be   : > { %11525 = vmatprep.subr.bf16.mxu0 %v13761_v12  ;;  %v14097_v4 = vcombine.high %v5295_v61, %v5303_v62  ;;  %v5055_v6 = vld [vmem:[%s15077_s13 + $0x17b0] sm:$0xff]  ;;  %v14096_v12 = vcombine.low %v5295_v61, %v5303_v62  ;;  %v4632_v61 = vld [vmem:[%s15077_s13 + $0xa78] sm:$0xff]  ;;  %v13154_v62 = vcombine.low %v4352_v52, %v4360_v36 }
 0x8bf   : > { %11565 = vmatpush1.bf16.msra.mxu1 %v14000_v11  ;;  %v5063_v43 = vld [vmem:[%s15077_s13 + $0x17f0] sm:$0xff]  ;;  %v13840_v11 = vcombine.low %v5039_v60, %v5047_v39  ;;  %v4376_v60 = vld [vmem:[%s15077_s13 + $0x278] sm:$0xff] }
 0x8c0   : > { %11566 = vmatprep.subr.bf16.mxu1 %v14017_v14  ;;  %v5311_v46 = vld [vmem:[%s15077_s13 + $0x1fb0] sm:$0xff]  ;;  %v13857_v14 = vcombine.high %v5055_v6, %v5063_v43  ;;  %v4624_v39 = vld [vmem:[%s15077_s13 + $0xa38] sm:$0xff] }
 0x8c1   : > { %11526 = vmatpush1.bf16.msra.mxu0 %v13760_v37  ;;  %v5319_v9 = vld [vmem:[%s15077_s13 + $0x1ff0] sm:$0xff]  ;;  %v4568_v37 = vld [vmem:[%s15077_s13 + $0x878] sm:$0xff] }
 0x8c2   : > { %11527 = vmatprep.subr.bf16.mxu0 %v13777_v20  ;;  %v14113_v34 = vcombine.high %v5311_v46, %v5319_v9  ;;  %v14112_v20 = vcombine.low %v5311_v46, %v5319_v9  ;;  %v13363_v8 = vcombine.high %v4560_v50, %v4568_v37  ;;  %v4648_v46 = vld [vmem:[%s15077_s13 + $0xaf8] sm:$0xff] }
 0x8c3   : > { %11567 = vmatpush1.bf16.msra.mxu1 %v14016_v19  ;;  %v13856_v19 = vcombine.low %v5055_v6, %v5063_v43  ;;  %v4392_v6 = vld [vmem:[%s15077_s13 + $0x2f8] sm:$0xff] }
 0x8c4   : > { %11568 = vmatprep.subr.bf16.mxu1 %v14033_v31  ;;  %v13107_v31 = vcombine.high %v4304_v17, %v4312_v18  ;;  %v4640_v43 = vld [vmem:[%s15077_s13 + $0xab8] sm:$0xff] }
 0x8c5   : > { %11528 = vmatpush1.bf16.msra.mxu0 %v13776_v57  ;;  %v4576_v57 = vld [vmem:[%s15077_s13 + $0x8b8] sm:$0xff] }
 0x8c6   : > { %11529 = vmatprep.subr.bf16.mxu0 %v13793_v44  ;;  %v13362_v44 = vcombine.low %v4560_v50, %v4568_v37  ;;  %v4408_v17 = vld [vmem:[%s15077_s13 + $0x378] sm:$0xff] }
 0x8c7   : > { %11569 = vmatpush1.bf16.msra.mxu1 %v14032_v40  ;;  %v4584_v40 = vld [vmem:[%s15077_s13 + $0x8f8] sm:$0xff] }
 0x8c8   : > { %11570 = vmatprep.subr.bf16.mxu1 %v14049_v45  ;;  %v13123_v45 = vcombine.high %v4320_v28, %v4328_v29  ;;  %v13379_v48 = vcombine.high %v4576_v57, %v4584_v40  ;;  %v4656_v18 = vld [vmem:[%s15077_s13 + $0xb38] sm:$0xff] }
 0x8c9   : > { %11530 = vmatpush1.bf16.msra.mxu0 %v13792_v55  ;;  %v4600_v55 = vld [vmem:[%s15077_s13 + $0x978] sm:$0xff] }
 0x8ca   : > { %11531 = vmatprep.subr.bf16.mxu0 %v13809_v16  ;;  %v13378_v16 = vcombine.low %v4576_v57, %v4584_v40  ;;  %v13395_v35 = vcombine.high %v4592_v32, %v4600_v55  ;;  %v4664_v50 = vld [vmem:[%s15077_s13 + $0xb78] sm:$0xff] }
 0x8cb   : > { %11571 = vmatpush1.bf16.msra.mxu1 %v14048_v33  ;;  %v13122_v33 = vcombine.low %v4320_v28, %v4328_v29  ;;  %v4416_v28 = vld [vmem:[%s15077_s13 + $0x3b8] sm:$0xff] }
 0x8cc   : > { %11572 = vmatprep.subr.bf16.mxu1 %v14065_v5  ;;  %v13139_v5 = vcombine.high %v4336_v13, %v4344_v15  ;;  %v4424_v29 = vld [vmem:[%s15077_s13 + $0x3f8] sm:$0xff] }
 0x8cd   : > { %11532 = vmatpush1.bf16.msra.mxu0 %v13808_v23  ;;  %v4616_v23 = vld [vmem:[%s15077_s13 + $0x9f8] sm:$0xff] }
 0x8ce   : > { %11533 = vmatprep.subr.bf16.mxu0 %v13825_v56  ;;  %v13155_v56 = vcombine.high %v4352_v52, %v4360_v36  ;;  %v4672_v40 = vld [vmem:[%s15077_s13 + $0xbb8] sm:$0xff] }
 0x8cf   : > { %11573 = vmatpush1.bf16.msra.mxu1 %v14064_v53  ;;  %v13138_v53 = vcombine.low %v4336_v13, %v4344_v15  ;;  %v4432_v36 = vld [vmem:[%s15077_s13 + $0x438] sm:$0xff] }
 0x8d0   : > { %11574 = vmatprep.subr.bf16.mxu1 %v14081_v59  ;;  %v4368_v59 = vld [vmem:[%s15077_s13 + $0x238] sm:$0xff] }
 0x8d1   : > { %11534 = vmatpush1.bf16.msra.mxu0 %v13824_v47  ;;  %v13410_v47 = vcombine.low %v4608_v26, %v4616_v23  ;;  %v13170_v9 = vcombine.low %v4368_v59, %v4376_v60 }
 0x8d2   : > { %11535 = vmatprep.subr.bf16.mxu0 %v13841_v3  ;;  %v13427_v3 = vcombine.high %v4624_v39, %v4632_v61 }
 0x8d3   : > { %11575 = vmatpush1.bf16.msra.mxu1 %v14080_v2  ;;  %v13171_v2 = vcombine.high %v4368_v59, %v4376_v60  ;;  %v4448_v60 = vld [vmem:[%s15077_s13 + $0x4b8] sm:$0xff] }
 0x8d4   : > { %11576 = vmatprep.subr.bf16.mxu1 %v14097_v4  ;;  %v4384_v4 = vld [vmem:[%s15077_s13 + $0x2b8] sm:$0xff] }
 0x8d5   : > { %11536 = vmatpush1.bf16.msra.mxu0 %v13840_v11  ;;  %v13426_v11 = vcombine.low %v4624_v39, %v4632_v61  ;;  %v13186_v37 = vcombine.low %v4384_v4, %v4392_v6  ;;  %v4456_v39 = vld [vmem:[%s15077_s13 + $0x4f8] sm:$0xff] }
 0x8d6   : > { %11537 = vmatprep.subr.bf16.mxu0 %v13857_v14  ;;  %v13443_v14 = vcombine.high %v4640_v43, %v4648_v46  ;;  %v4704_v61 = vld [vmem:[%s15077_s13 + $0xcb8] sm:$0xff] }
 0x8d7   : > { %11577 = vmatpush1.bf16.msra.mxu1 %v14096_v12  ;;  %v13187_v12 = vcombine.high %v4384_v4, %v4392_v6  ;;  %v4464_v6 = vld [vmem:[%s15077_s13 + $0x538] sm:$0xff] }
 0x8d8   : > { %11578 = vmatprep.subr.bf16.mxu1 %v14113_v34  ;;  %v4400_v34 = vld [vmem:[%s15077_s13 + $0x338] sm:$0xff] }
 0x8d9   : > { %11538 = vmatpush1.bf16.msra.mxu0 %v13856_v19  ;;  %v13442_v19 = vcombine.low %v4640_v43, %v4648_v46  ;;  %v4472_v43 = vld [vmem:[%s15077_s13 + $0x578] sm:$0xff] }
 0x8da   : > { %11589 = vmatprep.subr.bf16.mxu0 %v13107_v31  ;;  %v4720_v46 = vld [vmem:[%s15077_s13 + $0xd38] sm:$0xff] }
 0x8db   : > { %11579 = vmatpush1.bf16.msra.mxu1 %v14112_v20  ;;  %v13203_v20 = vcombine.high %v4400_v34, %v4408_v17 }
 0x8dc   : > { %11630 = vmatprep.subr.bf16.mxu1 %v13363_v8  ;;  %11540 = vmatmul.mubr.bf16.vlgmr.msra.gmra.mrb[60].mxu0 %v15919_v22  ;;  %v13459_v8 = vcombine.high %v4656_v18, %v4664_v50 }
 0x8dd   : > { %11590 = vmatpush1.bf16.msra.mxu0 %v13106_v30  ;;  %11621 = vmatprep.mubr.bf16.mxu0 %v15729_v7  ;;  %v13394_v7 = vcombine.low %v4592_v32, %v4600_v55 }
 0x8de   : > { %11581 = vmatmul.mubr.bf16.vlgmr.msra.gmra.mrb[60].mxu1 %v15923_v25  ;;  %11591 = vmatprep.subr.bf16.mxu0 %v13123_v45 }
 0x8df   : > { %11631 = vmatpush1.bf16.msra.mxu1 %v13362_v44  ;;  %11662 = vmatprep.mubr.bf16.mxu1 %v15734_v10  ;;  %v13411_v10 = vcombine.high %v4608_v26, %v4616_v23  ;;  %v4680_v44 = vld [vmem:[%s15077_s13 + $0xbf8] sm:$0xff] }
 0x8e0   : > { %11632 = vmatprep.subr.bf16.mxu1 %v13379_v48  ;;  %v13202_v48 = vcombine.low %v4400_v34, %v4408_v17  ;;  %v13475_v52 = vcombine.high %v4672_v40, %v4680_v44  ;;  %v4440_v26 = vld [vmem:[%s15077_s13 + $0x478] sm:$0xff] }
 0x8e1   : > { %11592 = vmatpush1.bf16.msra.mxu0 %v13122_v33  ;;  %v4688_v23 = vld [vmem:[%s15077_s13 + $0xc38] sm:$0xff] }
 0x8e2   : > { %11593 = vmatprep.subr.bf16.mxu0 %v13139_v5  ;;  %v13219_v5 = vcombine.high %v4416_v28, %v4424_v29  ;;  %v4480_v17 = vld [vmem:[%s15077_s13 + $0x5b8] sm:$0xff] }
 0x8e3   : > { %11633 = vmatpush1.bf16.msra.mxu1 %v13378_v16  ;;  %v13458_v16 = vcombine.low %v4656_v18, %v4664_v50  ;;  %v4488_v18 = vld [vmem:[%s15077_s13 + $0x5f8] sm:$0xff] }
 0x8e4   : > { %11634 = vmatprep.subr.bf16.mxu1 %v13395_v35  ;;  %v4736_v50 = vld [vmem:[%s15077_s13 + $0xdb8] sm:$0xff] }
 0x8e5   : > { %11594 = vmatpush1.bf16.msra.mxu0 %v13138_v53  ;;  %v4696_v53 = vld [vmem:[%s15077_s13 + $0xc78] sm:$0xff] }
 0x8e6   : > { %11595 = vmatprep.subr.bf16.mxu0 %v13155_v56  ;;  %v13474_v56 = vcombine.low %v4672_v40, %v4680_v44  ;;  %v13491_v59 = vcombine.high %v4688_v23, %v4696_v53  ;;  %v13282_v40 = vcombine.low %v4480_v17, %v4488_v18 }
 0x8e7   : > { %11635 = vmatpush1.bf16.msra.mxu1 %v13394_v7  ;;  %v13218_v7 = vcombine.low %v4416_v28, %v4424_v29  ;;  %v4496_v28 = vld [vmem:[%s15077_s13 + $0x638] sm:$0xff] }
 0x8e8   : > { %11636 = vmatprep.subr.bf16.mxu1 %v13411_v10  ;;  %v13235_v10 = vcombine.high %v4432_v36, %v4440_v26  ;;  %v4504_v29 = vld [vmem:[%s15077_s13 + $0x678] sm:$0xff] }
 0x8e9   : > { %11596 = vmatpush1.bf16.msra.mxu0 %v13154_v62  ;;  %v4712_v62 = vld [vmem:[%s15077_s13 + $0xcf8] sm:$0xff] }
 0x8ea   : > { %11597 = vmatprep.subr.bf16.mxu0 %v13171_v2  ;;  %v13490_v2 = vcombine.low %v4688_v23, %v4696_v53  ;;  %v13507_v4 = vcombine.high %v4704_v61, %v4712_v62  ;;  %v4536_v23 = vld [vmem:[%s15077_s13 + $0x778] sm:$0xff] }
 0x8eb   : > { %11637 = vmatpush1.bf16.msra.mxu1 %v13410_v47  ;;  %v13234_v47 = vcombine.low %v4432_v36, %v4440_v26  ;;  %v4528_v26 = vld [vmem:[%s15077_s13 + $0x738] sm:$0xff] }
 0x8ec   : > { %11638 = vmatprep.subr.bf16.mxu1 %v13427_v3  ;;  %v13251_v3 = vcombine.high %v4448_v60, %v4456_v39  ;;  %v4784_v53 = vld [vmem:[%s15077_s13 + $0xf38] sm:$0xff] }
 0x8ed   : > { %11598 = vmatpush1.bf16.msra.mxu0 %v13170_v9  ;;  %v4728_v9 = vld [vmem:[%s15077_s13 + $0xd78] sm:$0xff] }
 0x8ee   : > { %11599 = vmatprep.subr.bf16.mxu0 %v13187_v12  ;;  %v13506_v12 = vcombine.low %v4704_v61, %v4712_v62  ;;  %v13523_v34 = vcombine.high %v4720_v46, %v4728_v9  ;;  %v4552_v61 = vld [vmem:[%s15077_s13 + $0x7f8] sm:$0xff] }
 0x8ef   : > { %11639 = vmatpush1.bf16.msra.mxu1 %v13426_v11  ;;  %v11295_v31 = vpop.f32.mrb[48].mxu0  ;;  %v13250_v11 = vcombine.low %v4448_v60, %v4456_v39  ;;  %v4544_v39 = vld [vmem:[%s15077_s13 + $0x7b8] sm:$0xff] }
 0x8f0   : > { %11640 = vmatprep.subr.bf16.mxu1 %v13443_v14  ;;  %v11297_v57 = vpop.f32.mrb[49].mxu0  ;;  %v13267_v14 = vcombine.high %v4464_v6, %v4472_v43  ;;  %v4800_v62 = vld [vmem:[%s15077_s13 + $0xfb8] sm:$0xff] }
 0x8f1   : > { %v11336_v30 = vpop.f32.mrb[48].mxu1  ;;  %v11299_v15 = vpop.f32.mrb[50].mxu0  ;;  %11600 = vmatpush1.bf16.msra.mxu0 %v13186_v37  ;;  %v4744_v37 = vld [vmem:[%s15077_s13 + $0xdf8] sm:$0xff] }
 0x8f2   : > { %v16807_v45 = vadd.f32 %v11336_v30, %v11295_v31  ;;  %v11338_v13 = vpop.f32.mrb[49].mxu1  ;;  %v11300_v33 = vpop.f32.mrb[51].mxu0  ;;  %11601 = vmatprep.subr.bf16.mxu0 %v13203_v20  ;;  %v13522_v20 = vcombine.low %v4720_v46, %v4728_v9  ;;  %v13283_v31 = vcombine.high %v4480_v17, %v4488_v18  ;;  %v4752_v30 = vld [vmem:[%s15077_s13 + $0xe38] sm:$0xff]  ;;  %v13538_v44 = vcombine.low %v4736_v50, %v4744_v37 }
 0x8f3   : > { %v16809_v32 = vadd.f32 %v11338_v13, %v11297_v57  ;;  %v11340_v55 = vpop.f32.mrb[50].mxu1  ;;  %11641 = vmatpush1.bf16.msra.mxu1 %v13442_v19  ;;  %v13266_v19 = vcombine.low %v4464_v6, %v4472_v43  ;;  %v4760_v57 = vld [vmem:[%s15077_s13 + $0xe78] sm:$0xff]  ;;  %v13299_v13 = vcombine.high %v4496_v28, %v4504_v29 }
 0x8f4   : > { %v11341_v35 = vpop.f32.mrb[51].mxu1  ;;  %11642 = vmatprep.subr.bf16.mxu1 %v13459_v8  ;;  %v13539_v8 = vcombine.high %v4736_v50, %v4744_v37  ;;  %v13555_v15 = vcombine.high %v4752_v30, %v4760_v57  ;;  %v4520_v55 = vld [vmem:[%s15077_s13 + $0x6f8] sm:$0xff] }
 0x8f5   : > { %11602 = vmatpush1.bf16.msra.mxu0 %v13202_v48  ;;  %v4512_v48 = vld [vmem:[%s15077_s13 + $0x6b8] sm:$0xff]  ;;  %v13554_v35 = vcombine.low %v4752_v30, %v4760_v57 }
 0x8f6   : > { %11603 = vmatprep.subr.bf16.mxu0 %v13219_v5  ;;  %v4768_v33 = vld [vmem:[%s15077_s13 + $0xeb8] sm:$0xff]  ;;  %v13298_v5 = vcombine.low %v4496_v28, %v4504_v29 }
 0x8f7   : > { %11643 = vmatpush1.bf16.msra.mxu1 %v13458_v16  ;;  %v4776_v16 = vld [vmem:[%s15077_s13 + $0xef8] sm:$0xff] }
 0x8f8   : > { %11644 = vmatprep.subr.bf16.mxu1 %v13475_v52  ;;  %v13315_v52 = vcombine.high %v4512_v48, %v4520_v55  ;;  %v13571_v36 = vcombine.high %v4768_v33, %v4776_v16  ;;  %v4816_v43 = vld [vmem:[%s15077_s13 + $0x1038] sm:$0xff] }
 0x8f9   : > { %11604 = vmatpush1.bf16.msra.mxu0 %v13218_v7  ;;  %v4792_v7 = vld [vmem:[%s15077_s13 + $0xf78] sm:$0xff] }
 0x8fa   : > { %11605 = vmatprep.subr.bf16.mxu0 %v13235_v10  ;;  %v13570_v10 = vcombine.low %v4768_v33, %v4776_v16  ;;  %v13587_v60 = vcombine.high %v4784_v53, %v4792_v7  ;;  %v4824_v46 = vld [vmem:[%s15077_s13 + $0x1078] sm:$0xff] }
 0x8fb   : > { %11645 = vmatpush1.bf16.msra.mxu1 %v13474_v56  ;;  %v13314_v56 = vcombine.low %v4512_v48, %v4520_v55  ;;  %v5072_v9 = vld [vmem:[%s15077_s13 + $0x1838] sm:$0xff]  ;;  %v13618_v37 = vcombine.low %v4816_v43, %v4824_v46 }
 0x8fc   : > { %11646 = vmatprep.subr.bf16.mxu1 %v13491_v59  ;;  %v13331_v59 = vcombine.high %v4528_v26, %v4536_v23  ;;  %v4832_v18 = vld [vmem:[%s15077_s13 + $0x10b8] sm:$0xff] }
 0x8fd   : > { %11606 = vmatpush1.bf16.msra.mxu0 %v13234_v47  ;;  %v4808_v47 = vld [vmem:[%s15077_s13 + $0xff8] sm:$0xff] }
 0x8fe   : > { %11607 = vmatprep.subr.bf16.mxu0 %v13251_v3  ;;  %v13586_v3 = vcombine.low %v4784_v53, %v4792_v7  ;;  %v13603_v6 = vcombine.high %v4800_v62, %v4808_v47  ;;  %v4840_v50 = vld [vmem:[%s15077_s13 + $0x10f8] sm:$0xff] }
 0x8ff   : > { %11647 = vmatpush1.bf16.msra.mxu1 %v13490_v2  ;;  %v13330_v2 = vcombine.low %v4528_v26, %v4536_v23  ;;  %v4848_v28 = vld [vmem:[%s15077_s13 + $0x1138] sm:$0xff] }
 0x900   : > { %11648 = vmatprep.subr.bf16.mxu1 %v13507_v4  ;;  %v13347_v4 = vcombine.high %v4544_v39, %v4552_v61  ;;  %v4856_v29 = vld [vmem:[%s15077_s13 + $0x1178] sm:$0xff] }
 0x901   : > { %11608 = vmatpush1.bf16.msra.mxu0 %v13250_v11  ;;  %v5080_v11 = vld [vmem:[%s15077_s13 + $0x1878] sm:$0xff]  ;;  %v13650_v16 = vcombine.low %v4848_v28, %v4856_v29 }
 0x902   : > { %11609 = vmatprep.subr.bf16.mxu0 %v13267_v14  ;;  %v13602_v14 = vcombine.low %v4800_v62, %v4808_v47  ;;  %v13875_v17 = vcombine.high %v5072_v9, %v5080_v11  ;;  %v5104_v57 = vld [vmem:[%s15077_s13 + $0x1938] sm:$0xff] }
 0x903   : > { %11649 = vmatpush1.bf16.msra.mxu1 %v13506_v12  ;;  %v13346_v12 = vcombine.low %v4544_v39, %v4552_v61  ;;  %v4864_v48 = vld [vmem:[%s15077_s13 + $0x11b8] sm:$0xff] }
 0x904   : > { %11650 = vmatprep.subr.bf16.mxu1 %v13523_v34  ;;  %v13619_v34 = vcombine.high %v4816_v43, %v4824_v46  ;;  %v4872_v55 = vld [vmem:[%s15077_s13 + $0x11f8] sm:$0xff] }
 0x905   : > { %11610 = vmatpush1.bf16.msra.mxu0 %v13266_v19  ;;  %v5088_v19 = vld [vmem:[%s15077_s13 + $0x18b8] sm:$0xff]  ;;  %v13666_v23 = vcombine.low %v4864_v48, %v4872_v55 }
 0x906   : > { %11611 = vmatprep.subr.bf16.mxu0 %v13283_v31  ;;  %v13874_v31 = vcombine.low %v5072_v9, %v5080_v11  ;;  %v5120_v33 = vld [vmem:[%s15077_s13 + $0x19b8] sm:$0xff] }
 0x907   : > { %11651 = vmatpush1.bf16.msra.mxu1 %v13522_v20  ;;  %v5096_v20 = vld [vmem:[%s15077_s13 + $0x18f8] sm:$0xff] }
 0x908   : > { %11652 = vmatprep.subr.bf16.mxu1 %v13539_v8  ;;  %v13635_v8 = vcombine.high %v4832_v18, %v4840_v50  ;;  %v13891_v30 = vcombine.high %v5088_v19, %v5096_v20  ;;  %v5144_v26 = vld [vmem:[%s15077_s13 + $0x1a78] sm:$0xff] }
 0x909   : > { %11612 = vmatpush1.bf16.msra.mxu0 %v13282_v40  ;;  %v5112_v40 = vld [vmem:[%s15077_s13 + $0x1978] sm:$0xff] }
 0x90a   : > { %11613 = vmatprep.subr.bf16.mxu0 %v13299_v13  ;;  %v13890_v13 = vcombine.low %v5088_v19, %v5096_v20  ;;  %v5160_v39 = vld [vmem:[%s15077_s13 + $0x1af8] sm:$0xff] }
 0x90b   : > { %11653 = vmatpush1.bf16.msra.mxu1 %v13538_v44  ;;  %v13634_v44 = vcombine.low %v4832_v18, %v4840_v50  ;;  %v5176_v43 = vld [vmem:[%s15077_s13 + $0x1b78] sm:$0xff] }
 0x90c   : > { %11654 = vmatprep.subr.bf16.mxu1 %v13555_v15  ;;  %v13651_v15 = vcombine.high %v4848_v28, %v4856_v29  ;;  %v5184_v19 = vld [vmem:[%s15077_s13 + $0x1bb8] sm:$0xff] }
 0x90d   : > { %11614 = vmatpush1.bf16.msra.mxu0 %v13298_v5  ;;  %v13667_v5 = vcombine.high %v4864_v48, %v4872_v55  ;;  %v5192_v20 = vld [vmem:[%s15077_s13 + $0x1bf8] sm:$0xff] }
 0x90e   : > { %11615 = vmatprep.subr.bf16.mxu0 %v13315_v52  ;;  %v4888_v52 = vld [vmem:[%s15077_s13 + $0x1278] sm:$0xff] }
 0x90f   : > { %11655 = vmatpush1.bf16.msra.mxu1 %v13554_v35  ;;  %v4880_v35 = vld [vmem:[%s15077_s13 + $0x1238] sm:$0xff] }
 0x910   : > { %11656 = vmatprep.subr.bf16.mxu1 %v13571_v36  ;;  %v5136_v36 = vld [vmem:[%s15077_s13 + $0x1a38] sm:$0xff]  ;;  %v13683_v7 = vcombine.high %v4880_v35, %v4888_v52  ;;  %v13682_v61 = vcombine.low %v4880_v35, %v4888_v52  ;;  %v13986_v35 = vcombine.low %v5184_v19, %v5192_v20 }
 0x911   : > { %11616 = vmatpush1.bf16.msra.mxu0 %v13314_v56  ;;  %v13939_v56 = vcombine.high %v5136_v36, %v5144_v26  ;;  %v13938_v62 = vcombine.low %v5136_v36, %v5144_v26  ;;  %v4944_v55 = vld [vmem:[%s15077_s13 + $0x1438] sm:$0xff] }
 0x912   : > { %11617 = vmatprep.subr.bf16.mxu0 %v13331_v59  ;;  %v4904_v59 = vld [vmem:[%s15077_s13 + $0x12f8] sm:$0xff] }
 0x913   : > { %11657 = vmatpush1.bf16.msra.mxu1 %v13570_v10  ;;  %v4896_v10 = vld [vmem:[%s15077_s13 + $0x12b8] sm:$0xff] }
 0x914   : > { %11658 = vmatprep.subr.bf16.mxu1 %v13587_v60  ;;  %v5152_v60 = vld [vmem:[%s15077_s13 + $0x1ab8] sm:$0xff]  ;;  %v13699_v47 = vcombine.high %v4896_v10, %v4904_v59  ;;  %v13698_v46 = vcombine.low %v4896_v10, %v4904_v59 }
 0x915   : > { %11618 = vmatpush1.bf16.msra.mxu0 %v13330_v2  ;;  %v13955_v2 = vcombine.high %v5152_v60, %v5160_v39  ;;  %v13954_v9 = vcombine.low %v5152_v60, %v5160_v39  ;;  %v4960_v26 = vld [vmem:[%s15077_s13 + $0x14b8] sm:$0xff] }
 0x916   : > { %11619 = vmatprep.subr.bf16.mxu0 %v13347_v4  ;;  %v4920_v4 = vld [vmem:[%s15077_s13 + $0x1378] sm:$0xff] }
 0x917   : > { %11659 = vmatpush1.bf16.msra.mxu1 %v13586_v3  ;;  %v4912_v3 = vld [vmem:[%s15077_s13 + $0x1338] sm:$0xff] }
 0x918   : > { %11660 = vmatprep.subr.bf16.mxu1 %v13603_v6  ;;  %v5168_v6 = vld [vmem:[%s15077_s13 + $0x1b38] sm:$0xff]  ;;  %v13715_v11 = vcombine.high %v4912_v3, %v4920_v4 }
 0x919   : > { %11620 = vmatpush1.bf16.msra.mxu0 %v13346_v12  ;;  %v4976_v39 = vld [vmem:[%s15077_s13 + $0x1538] sm:$0xff] }
 0x91a   : > { %11671 = vmatprep.subr.bf16.mxu0 %v13619_v34  ;;  %v4928_v34 = vld [vmem:[%s15077_s13 + $0x13b8] sm:$0xff] }
 0x91b   : > { %11661 = vmatpush1.bf16.msra.mxu1 %v13602_v14  ;;  %v13971_v14 = vcombine.high %v5168_v6, %v5176_v43 }
 0x91c   : > { %11712 = vmatprep.subr.bf16.mxu1 %v13875_v17  ;;  %11622 = vmatmul.mubr.bf16.vlgmr.msra.gmra.mrb[64].mxu0 %v15811_v27  ;;  %v13907_v27 = vcombine.high %v5104_v57, %v5112_v40  ;;  %v4936_v17 = vld [vmem:[%s15077_s13 + $0x13f8] sm:$0xff] }
 0x91d   : > { %11672 = vmatpush1.bf16.msra.mxu0 %v13618_v37  ;;  %11703 = vmatprep.mubr.bf16.mxu0 %v15915_v41  ;;  %v13906_v41 = vcombine.low %v5104_v57, %v5112_v40  ;;  %v4284_v40 = vld [vmem:[#allocation2 + $0x58] sm:$0xff] }
 0x91e   : > { %11663 = vmatmul.mubr.bf16.vlgmr.msra.gmra.mrb[64].mxu1 %v15813_v21  ;;  %11673 = vmatprep.subr.bf16.mxu0 %v13635_v8  ;;  %v5128_v21 = vld [vmem:[%s15077_s13 + $0x19f8] sm:$0xff] }
 0x91f   : > { %11713 = vmatpush1.bf16.msra.mxu1 %v13874_v31  ;;  %11744 = vmatprep.mubr.bf16.mxu1 %v15921_v24  ;;  %v13923_v24 = vcombine.high %v5120_v33, %v5128_v21  ;;  %v13922_v53 = vcombine.low %v5120_v33, %v5128_v21  ;;  %v4283_v31 = vld [vmem:[#allocation2 + $0x50] sm:$0xff]  ;;  %v4952_v33 = vld [vmem:[%s15077_s13 + $0x1478] sm:$0xff] }
 0x920   : > { %11714 = vmatprep.subr.bf16.mxu1 %v13891_v30  ;;  %v13714_v30 = vcombine.low %v4912_v3, %v4920_v4  ;;  %v13747_v52 = vcombine.high %v4944_v55, %v4952_v33 }
 0x921   : > { %11674 = vmatpush1.bf16.msra.mxu0 %v13634_v44 }
 0x922   : > { %11675 = vmatprep.subr.bf16.mxu0 %v13651_v15  ;;  %v13731_v15 = vcombine.high %v4928_v34, %v4936_v17 }
 0x923   : > { %11715 = vmatpush1.bf16.msra.mxu1 %v13890_v13  ;;  %v13970_v13 = vcombine.low %v5168_v6, %v5176_v43  ;;  %v4992_v43 = vld [vmem:[%s15077_s13 + $0x15b8] sm:$0xff] }
 0x924   : > { %11716 = vmatprep.subr.bf16.mxu1 %v13907_v27 }
 0x925   : > { %11676 = vmatpush1.bf16.msra.mxu0 %v13650_v16  ;;  %v5200_v16 = vld [vmem:[%s15077_s13 + $0x1c38] sm:$0xff] }
 0x926   : > { %11677 = vmatprep.subr.bf16.mxu0 %v13667_v5 }
 0x927   : > { %11717 = vmatpush1.bf16.msra.mxu1 %v13906_v41  ;;  %v5208_v41 = vld [vmem:[%s15077_s13 + $0x1c78] sm:$0xff] }
 0x928   : > { %11718 = vmatprep.subr.bf16.mxu1 %v13923_v24  ;;  %v13730_v24 = vcombine.low %v4928_v34, %v4936_v17  ;;  %v14003_v36 = vcombine.high %v5200_v16, %v5208_v41  ;;  %v14002_v10 = vcombine.low %v5200_v16, %v5208_v41 }
 0x929   : > { %11678 = vmatpush1.bf16.msra.mxu0 %v13666_v23  ;;  %v4968_v23 = vld [vmem:[%s15077_s13 + $0x14f8] sm:$0xff] }
 0x92a   : > { %11679 = vmatprep.subr.bf16.mxu0 %v13683_v7  ;;  %v5224_v7 = vld [vmem:[%s15077_s13 + $0x1cf8] sm:$0xff]  ;;  %v13763_v59 = vcombine.high %v4960_v26, %v4968_v23 }
 0x92b   : > { %11719 = vmatpush1.bf16.msra.mxu1 %v13922_v53  ;;  %v5216_v53 = vld [vmem:[%s15077_s13 + $0x1cb8] sm:$0xff] }
 0x92c   : > { %11720 = vmatprep.subr.bf16.mxu1 %v13939_v56  ;;  %v13746_v56 = vcombine.low %v4944_v55, %v4952_v33  ;;  %v14019_v60 = vcombine.high %v5216_v53, %v5224_v7  ;;  %v14018_v3 = vcombine.low %v5216_v53, %v5224_v7  ;;  %v5304_v55 = vld [vmem:[%s15077_s13 + $0x1f78] sm:$0xff] }
 0x92d   : > { %11680 = vmatpush1.bf16.msra.mxu0 %v13682_v61  ;;  %v4984_v61 = vld [vmem:[%s15077_s13 + $0x1578] sm:$0xff] }
 0x92e   : > { %11681 = vmatprep.subr.bf16.mxu0 %v13699_v47  ;;  %v5240_v47 = vld [vmem:[%s15077_s13 + $0x1d78] sm:$0xff]  ;;  %v13779_v4 = vcombine.high %v4976_v39, %v4984_v61 }
 0x92f   : > { %11721 = vmatpush1.bf16.msra.mxu1 %v13938_v62  ;;  %v11377_v12 = vpop.f32.mrb[52].mxu0  ;;  %v5232_v62 = vld [vmem:[%s15077_s13 + $0x1d38] sm:$0xff] }
 0x930   : > { %11722 = vmatprep.subr.bf16.mxu1 %v13955_v2  ;;  %v11378_v18 = vadd.f32 %v11377_v12, %v16807_v45  ;;  %v11379_v37 = vpop.f32.mrb[53].mxu0  ;;  %v13762_v2 = vcombine.low %v4960_v26, %v4968_v23  ;;  %v14035_v6 = vcombine.high %v5232_v62, %v5240_v47  ;;  %v13778_v12 = vcombine.low %v4976_v39, %v4984_v61 }
 0x931   : > { %v11418_v50 = vpop.f32.mrb[52].mxu1  ;;  %v11380_v8 = vadd.f32 %v11379_v37, %v16809_v32  ;;  %v11381_v29 = vpop.f32.mrb[54].mxu0  ;;  %11682 = vmatpush1.bf16.msra.mxu0 %v13698_v46  ;;  %v13987_v32 = vcombine.high %v5184_v19, %v5192_v20  ;;  %v5000_v46 = vld [vmem:[%s15077_s13 + $0x15f8] sm:$0xff] }
 0x932   : > { %v11420_v28 = vpop.f32.mrb[53].mxu1  ;;  %v11419_v57 = vadd.f32 %v11418_v50, %v11378_v18  ;;  %v11382_v45 = vpop.f32.mrb[55].mxu0  ;;  %11683 = vmatprep.subr.bf16.mxu0 %v13715_v11  ;;  %v5256_v11 = vld [vmem:[%s15077_s13 + $0x1df8] sm:$0xff]  ;;  %v13795_v34 = vcombine.high %v4992_v43, %v5000_v46  ;;  %v13794_v20 = vcombine.low %v4992_v43, %v5000_v46 }
 0x933   : > { %v11422_v44 = vpop.f32.mrb[54].mxu1  ;;  %11723 = vmatpush1.bf16.msra.mxu1 %v13954_v9  ;;  %v11421_v27 = vadd.f32 %v11420_v28, %v11380_v8  ;;  %v5248_v9 = vld [vmem:[%s15077_s13 + $0x1db8] sm:$0xff] }
 0x934   : > { %v11423_v48 = vpop.f32.mrb[55].mxu1  ;;  %11724 = vmatprep.subr.bf16.mxu1 %v13971_v14  ;;  %v11763_v21 = vadd.f32 %v11419_v57, %v4283_v31  ;;  %v14034_v14 = vcombine.low %v5232_v62, %v5240_v47  ;;  %v14051_v17 = vcombine.high %v5248_v9, %v5256_v11  ;;  %v5008_v18 = vld [vmem:[%s15077_s13 + $0x1638] sm:$0xff]  ;;  %v14050_v31 = vcombine.low %v5248_v9, %v5256_v11  ;;  %v4285_v11 = vld [vmem:[#allocation2 + $0x60] sm:$0xff] }
 0x935   : > { %v11764_v5 = vadd.f32 %v11421_v27, %v4284_v40  ;;  %11684 = vmatpush1.bf16.msra.mxu0 %v13714_v30  ;;  %v5016_v50 = vld [vmem:[%s15077_s13 + $0x1678] sm:$0xff] }
 0x936   : > { %11779 = vst [vmem:[#allocation2 + $0x50] sm:$0xff] %v11763_v21  ;;  %11685 = vmatprep.subr.bf16.mxu0 %v13731_v15  ;;  %v5264_v37 = vld [vmem:[%s15077_s13 + $0x1e38] sm:$0xff]  ;;  %v13811_v8 = vcombine.high %v5008_v18, %v5016_v50  ;;  %v13810_v44 = vcombine.low %v5008_v18, %v5016_v50 }
 0x937   : > { %11725 = vmatpush1.bf16.msra.mxu1 %v13970_v13  ;;  %11780 = vst [vmem:[#allocation2 + $0x58] sm:$0xff] %v11764_v5  ;;  %v5272_v19 = vld [vmem:[%s15077_s13 + $0x1e78] sm:$0xff] }
 0x938   : > { %11726 = vmatprep.subr.bf16.mxu1 %v13987_v32  ;;  %v14067_v28 = vcombine.high %v5264_v37, %v5272_v19  ;;  %v5024_v29 = vld [vmem:[%s15077_s13 + $0x16b8] sm:$0xff]  ;;  %v14066_v45 = vcombine.low %v5264_v37, %v5272_v19 }
 0x939   : > { %11686 = vmatpush1.bf16.msra.mxu0 %v13730_v24  ;;  %v5032_v30 = vld [vmem:[%s15077_s13 + $0x16f8] sm:$0xff] }
 0x93a   : > { %11687 = vmatprep.subr.bf16.mxu0 %v13747_v52  ;;  %v5280_v57 = vld [vmem:[%s15077_s13 + $0x1eb8] sm:$0xff]  ;;  %v13827_v13 = vcombine.high %v5024_v29, %v5032_v30  ;;  %v13826_v33 = vcombine.low %v5024_v29, %v5032_v30 }
 0x93b   : > { %11727 = vmatpush1.bf16.msra.mxu1 %v13986_v35  ;;  %v5288_v40 = vld [vmem:[%s15077_s13 + $0x1ef8] sm:$0xff] }
 0x93c   : > { %11728 = vmatprep.subr.bf16.mxu1 %v14003_v36  ;;  %v14083_v15 = vcombine.high %v5280_v57, %v5288_v40  ;;  %v5040_v27 = vld [vmem:[%s15077_s13 + $0x1738] sm:$0xff]  ;;  %v14082_v21 = vcombine.low %v5280_v57, %v5288_v40 }
 0x93d   : > { %11688 = vmatpush1.bf16.msra.mxu0 %v13746_v56  ;;  %v5048_v48 = vld [vmem:[%s15077_s13 + $0x1778] sm:$0xff] }
 0x93e   : > { %11689 = vmatprep.subr.bf16.mxu0 %v13763_v59  ;;  %v5296_v32 = vld [vmem:[%s15077_s13 + $0x1f38] sm:$0xff]  ;;  %v13843_v16 = vcombine.high %v5040_v27, %v5048_v48  ;;  %v13842_v36 = vcombine.low %v5040_v27, %v5048_v48 }
 0x93f   : > { %11729 = vmatpush1.bf16.msra.mxu1 %v14002_v10  ;;  %v14099_v41 = vcombine.high %v5296_v32, %v5304_v55  ;;  %v5056_v5 = vld [vmem:[%s15077_s13 + $0x17b8] sm:$0xff]  ;;  %v14098_v26 = vcombine.low %v5296_v32, %v5304_v55  ;;  %v4287_v55 = vld [vmem:[#allocation2 + $0x70] sm:$0xff] }
 0x940   : > { %11730 = vmatprep.subr.bf16.mxu1 %v14019_v60  ;;  %v5064_v24 = vld [vmem:[%s15077_s13 + $0x17f8] sm:$0xff] }
 0x941   : > { %11690 = vmatpush1.bf16.msra.mxu0 %v13762_v2  ;;  %v5312_v35 = vld [vmem:[%s15077_s13 + $0x1fb8] sm:$0xff]  ;;  %v13859_v23 = vcombine.high %v5056_v5, %v5064_v24  ;;  %v13858_v7 = vcombine.low %v5056_v5, %v5064_v24  ;;  %v4288_v5 = vld [vmem:[#allocation2 + $0x78] sm:$0xff] }
 0x942   : > { %11691 = vmatprep.subr.bf16.mxu0 %v13779_v4  ;;  %v5320_v52 = vld [vmem:[%s15077_s13 + $0x1ff8] sm:$0xff] }
 0x943   : > { %11731 = vmatpush1.bf16.msra.mxu1 %v14018_v3  ;;  %v14115_v53 = vcombine.high %v5312_v35, %v5320_v52  ;;  %v14114_v56 = vcombine.low %v5312_v35, %v5320_v52 }
 0x944   : > { %11732 = vmatprep.subr.bf16.mxu1 %v14035_v6 }
 0x945   : > { %11692 = vmatpush1.bf16.msra.mxu0 %v13778_v12 }
 0x946   : > { %11693 = vmatprep.subr.bf16.mxu0 %v13795_v34 }
 0x947   : > { %11733 = vmatpush1.bf16.msra.mxu1 %v14034_v14 }
 0x948   : > { %11734 = vmatprep.subr.bf16.mxu1 %v14051_v17 }
 0x949   : > { %11694 = vmatpush1.bf16.msra.mxu0 %v13794_v20 }
 0x94a   : > { %11695 = vmatprep.subr.bf16.mxu0 %v13811_v8 }
 0x94b   : > { %11735 = vmatpush1.bf16.msra.mxu1 %v14050_v31 }
 0x94c   : > { %11736 = vmatprep.subr.bf16.mxu1 %v14067_v28 }
 0x94d   : > { %11696 = vmatpush1.bf16.msra.mxu0 %v13810_v44 }
 0x94e   : > { %11697 = vmatprep.subr.bf16.mxu0 %v13827_v13 }
 0x94f   : > { %11737 = vmatpush1.bf16.msra.mxu1 %v14066_v45 }
 0x950   : > { %11738 = vmatprep.subr.bf16.mxu1 %v14083_v15 }
 0x951   : > { %11698 = vmatpush1.bf16.msra.mxu0 %v13826_v33 }
 0x952   : > { %11699 = vmatprep.subr.bf16.mxu0 %v13843_v16 }
 0x953   : > { %11739 = vmatpush1.bf16.msra.mxu1 %v14082_v21 }
 0x954   : > { %11740 = vmatprep.subr.bf16.mxu1 %v14099_v41 }
 0x955   : > { %11700 = vmatpush1.bf16.msra.mxu0 %v13842_v36 }
 0x956   : > { %11701 = vmatprep.subr.bf16.mxu0 %v13859_v23 }
 0x957   : > { %11741 = vmatpush1.bf16.msra.mxu1 %v14098_v26 }
 0x958   : > { %11742 = vmatprep.subr.bf16.mxu1 %v14115_v53  ;;  %v11790_v53 = vld [vmem:[#allocation2 + $0x8] sm:$0xff] (!%p14116_p8) }
 0x959   : > { %11702 = vmatpush1.bf16.msra.mxu0 %v13858_v7  ;;  %v14651_v7 = vmov (!%p14116_p8), 1966171168  }
 0x95b   : > { %11743 = vmatpush1.bf16.msra.mxu1 %v14114_v56  ;;  %v11943_v56 = vunpack.c.l.s4 (!%p14116_p8), %v14651_v7 }
 0x95c   : > { %11704 = vmatmul.mubr.bf16.vlgmr.msra.gmra.mrb[68].mxu0 %v15919_v22 }
 0x95e   : > { %11745 = vmatmul.mubr.bf16.vlgmr.msra.gmra.mrb[68].mxu1 %v15923_v25  ;;  %v4286_v25 = vld [vmem:[#allocation2 + $0x68] sm:$0xff] }
 0x96f   : > { %v11459_v10 = vpop.f32.mrb[56].mxu0 }
 0x970   : > { %v11461_v60 = vpop.f32.mrb[57].mxu0 }
 0x971   : > { %v11500_v59 = vpop.f32.mrb[56].mxu1  ;;  %v11463_v62 = vpop.f32.mrb[58].mxu0 }
 0x972   : > { %v11501_v39 = vadd.f32 %v11500_v59, %v11459_v10  ;;  %v11502_v61 = vpop.f32.mrb[57].mxu1  ;;  %v11464_v3 = vpop.f32.mrb[59].mxu0  ;;  %v16918_v10 = vld [vmem:[%s375_s2] sm:$0xff] (!%p14116_p8)  ;;  %v11798_v59 = vld [vmem:[#allocation2 + $0x48] sm:$0xff] (!%p14116_p8)  ;;  %v11944_v62 = vunpack.c.0.s8 (!%p14116_p8), %v11943_v56 }
 0x973   : > { %v11503_v47 = vadd.f32 %v11502_v61, %v11461_v60  ;;  %v11504_v2 = vpop.f32.mrb[58].mxu1  ;;  %v16922_v60 = vld [vmem:[%s375_s2 + $0x8] sm:$0xff] (!%p14116_p8)  ;;  %v11832_v7 = vrot.slane (!%p14116_p8), %v16918_v10, %v15900_v0 }
 0x974   : > { %v11505_v4 = vpop.f32.mrb[59].mxu1  ;;  %v11848_v61 = vrot.slane (!%p14116_p8), %v16922_v60, %v15705_v49  ;;  %v11938_v2 = vld [vmem:[%s384_s21 + $0x8] sm:$0xff] (!%p14116_p8)  ;;  %v11864_v56 = vrot.slane (!%p14116_p8), %v16922_v60, %v15900_v0 }
 0x976   : > { %v11898_v4 = vadd.f32 (!%p14116_p8), %v11848_v61, %v11798_v59  ;;  %v11794_v61 = vld [vmem:[#allocation2 + $0x28] sm:$0xff] (!%p14116_p8) }
 0x9af   : > { %v11541_v6 = vpop.f32.mrb[60].mxu0 }
 0x9b0   : > { %v11542_v43 = vadd.f32 %v11541_v6, %v11501_v39  ;;  %v11543_v9 = vpop.f32.mrb[61].mxu0  ;;  %v11816_v39 = vrot.slane (!%p14116_p8), %v16918_v10, %v15705_v49  ;;  %v16933_v6 = vsub.s32 (!%p14116_p8), %v11944_v62, %v15700_v38  ;;  %v11797_v49 = vld [vmem:[#allocation2 + $0x40] sm:$0xff] (!%p14116_p8)  ;;  %v11856_v38 = vrot.slane (!%p14116_p8), %v16922_v60, %v15711_v51 }
 0x9b1   : > { %v11582_v46 = vpop.f32.mrb[60].mxu1  ;;  %v11544_v12 = vadd.f32 %v11543_v9, %v11503_v47  ;;  %v11545_v22 = vpop.f32.mrb[62].mxu0  ;;  %v11937_v47 = vld [vmem:[%s384_s21] sm:$0xff] (!%p14116_p8) }
 0x9b2   : > { %v11584_v14 = vpop.f32.mrb[61].mxu1  ;;  %v11583_v34 = vadd.f32 %v11582_v46, %v11542_v43  ;;  %v11546_v18 = vpop.f32.mrb[63].mxu0  ;;  %v11890_v3 = vadd.f32 (!%p14116_p8), %v11816_v39, %v11790_v53  ;;  %v11812_v43 = vrot.slane (!%p14116_p8), %v16918_v10, %v15784_v54  ;;  %v11844_v46 = vrot.slane (!%p14116_p8), %v16922_v60, %v15784_v54  ;;  %v11800_v54 = vld [vmem:[#allocation2 + $0x58] sm:$0xff] (!%p14116_p8) }
 0x9b3   : > { %v11586_v17 = vpop.f32.mrb[62].mxu1  ;;  %v11585_v50 = vadd.f32 %v11584_v14, %v11544_v12  ;;  %v11789_v12 = vld [vmem:[#allocation2] sm:$0xff] (!%p14116_p8)  ;;  %v11948_v14 = vrot.slane (!%p14116_p8), %v11937_v47, %v16933_v6  ;;  %v11997_v22 = vrot.slane (!%p14116_p8), %v11938_v2, %v16933_v6 }
 0x9b4   : > { %v11587_v37 = vpop.f32.mrb[63].mxu1  ;;  %v11765_v19 = vadd.f32 %v11583_v34, %v4285_v11  ;;  %v11906_v9 = vmax.f32 (!%p14116_p8), %v11890_v3, 0.0  ;;  %v11914_v11 = vmax.f32 (!%p14116_p8), %v11898_v4, 0.0  ;;  %v11824_v34 = vrot.slane (!%p14116_p8), %v16918_v10, %v15711_v51 }
 0x9b5   : > { %v11766_v20 = vadd.f32 %v11585_v50, %v4286_v25  ;;  %v11941_v25 = vcombine.high (!%p14116_p8), %v11937_v47, %v11937_v47  ;;  %v11990_v17 = vcombine.high (!%p14116_p8), %v11938_v2, %v11938_v2  ;;  %v11792_v37 = vld [vmem:[#allocation2 + $0x18] sm:$0xff] (!%p14116_p8)  ;;  %v11894_v2 = vadd.f32 (!%p14116_p8), %v11832_v7, %v11794_v61 }
 0x9b6   : > { %11781 = vst [vmem:[#allocation2 + $0x60] sm:$0xff] %v11765_v19  ;;  %v11922_v18 = vpack.c.bf16 (!%p14116_p8), %v11906_v9, %v11906_v9  ;;  %v11930_v50 = vpack.c.bf16 (!%p14116_p8), %v11914_v11, %v11914_v11  ;;  %v11956_v19 = vcombine.high (!%p14116_p8), %v11948_v14, %v11948_v14 }
 0x9b7   : > { %11782 = vst [vmem:[#allocation2 + $0x68] sm:$0xff] %v11766_v20  ;;  %v12005_v20 = vcombine.high (!%p14116_p8), %v11997_v22, %v11997_v22 }
 0x9b8   : > { %12087 = vmatprep.mubr.bf16.mxu1 (!%p14116_p8), %v11922_v18  ;;  %12247 = vmatprep.mubr.bf16.mxu0 (!%p14116_p8), %v11930_v50  ;;  %v11840_v18 = vrot.slane (!%p14116_p8), %v16918_v10, %v15903_v1  ;;  %v11872_v50 = vrot.slane (!%p14116_p8), %v16922_v60, %v15903_v1 }
 0x9b9   : > { %v12027_v51 = vrot.slane (!%p14116_p8), %v12005_v20, %v16933_v6 }
 0x9bb   : > { %12215 = vmatprep.subr.bf16.mxu0 (!%p14116_p8), %v12027_v51 }
 0x9be   : > { %v11802_v62 = vld [vmem:[#allocation2 + $0x68] sm:$0xff] (!%p14116_p8) }
 0x9bf   : > { %v11902_v3 = vadd.f32 (!%p14116_p8), %v11864_v56, %v11802_v62 }
 0x9ef   : > { %v11623_v31 = vpop.f32.mrb[64].mxu0 }
 0x9f0   : > { %v11625_v28 = vpop.f32.mrb[65].mxu0 }
 0x9f1   : > { %v11664_v8 = vpop.f32.mrb[64].mxu1  ;;  %v11627_v57 = vpop.f32.mrb[66].mxu0 }
 0x9f2   : > { %v11665_v29 = vadd.f32 %v11664_v8, %v11623_v31  ;;  %v11666_v30 = vpop.f32.mrb[65].mxu1  ;;  %v11628_v45 = vpop.f32.mrb[67].mxu0  ;;  %v11889_v31 = vadd.f32 (!%p14116_p8), %v11812_v43, %v11789_v12  ;;  %v11897_v8 = vadd.f32 (!%p14116_p8), %v11844_v46, %v11797_v49  ;;  %v11892_v57 = vadd.f32 (!%p14116_p8), %v11824_v34, %v11792_v37  ;;  %v11793_v34 = vld [vmem:[#allocation2 + $0x20] sm:$0xff] (!%p14116_p8) }
 0x9f3   : > { %v11667_v40 = vadd.f32 %v11666_v30, %v11625_v28  ;;  %v11668_v44 = vpop.f32.mrb[66].mxu1  ;;  %v11964_v28 = vrot.slane (!%p14116_p8), %v11948_v14, %v16933_v6  ;;  %v11978_v30 = vrot.slane (!%p14116_p8), %v11956_v19, %v16933_v6  ;;  %v12004_v45 = vrot.slane (!%p14116_p8), %v11990_v17, %v16933_v6  ;;  %v11796_v19 = vld [vmem:[#allocation2 + $0x38] sm:$0xff] (!%p14116_p8) }
 0x9f4   : > { %v11669_v13 = vpop.f32.mrb[67].mxu1  ;;  %v11955_v44 = vrot.slane (!%p14116_p8), %v11941_v25, %v16933_v6  ;;  %v11910_v43 = vmax.f32 (!%p14116_p8), %v11894_v2, 0.0  ;;  %v11918_v46 = vmax.f32 (!%p14116_p8), %v11902_v3, 0.0  ;;  %v11828_v12 = vrot.slane (!%p14116_p8), %v16918_v10, %v15894_v63 }
 0x9f5   : > { %v11988_v13 = vcombine.high (!%p14116_p8), %v11978_v30, %v11978_v30  ;;  %12055 = vmatprep.subr.bf16.mxu1 (!%p14116_p8), %v11978_v30  ;;  %v11860_v49 = vrot.slane (!%p14116_p8), %v16922_v60, %v15894_v63 }
 0x9f6   : > { %12056 = vmatpush1.bf16.xpose.msra.mxu1 (!%p14116_p8), %v11964_v28  ;;  %v11971_v14 = vrot.slane (!%p14116_p8), %v11955_v44, %v16933_v6  ;;  %v11926_v25 = vpack.c.bf16 (!%p14116_p8), %v11910_v43, %v11910_v43  ;;  %v11934_v17 = vpack.c.bf16 (!%p14116_p8), %v11918_v46, %v11918_v46  ;;  %v11893_v63 = vadd.f32 (!%p14116_p8), %v11828_v12, %v11793_v34 }
 0x9f7   : > { %12095 = vmatprep.subr.bf16.mxu1 (!%p14116_p8), %v11988_v13 }
 0xa2f   : > { %v11705_v15 = vpop.f32.mrb[68].mxu0 }
 0xa30   : > { %v11706_v27 = vadd.f32 %v11705_v15, %v11665_v29  ;;  %v11707_v32 = vpop.f32.mrb[69].mxu0  ;;  %v12013_v29 = vrot.slane (!%p14116_p8), %v11997_v22, %v16933_v6  ;;  %v12037_v15 = vcombine.high (!%p14116_p8), %v12027_v51, %v12027_v51  ;;  %v12020_v22 = vrot.slane (!%p14116_p8), %v12004_v45, %v16933_v6 }
 0xa31   : > { %v11746_v48 = vpop.f32.mrb[68].mxu1  ;;  %v11708_v33 = vadd.f32 %v11707_v32, %v11667_v40  ;;  %v11709_v16 = vpop.f32.mrb[70].mxu0  ;;  %11788 = sbr.rel (%p14116_p8) target bundleno = 2868 (0xb34), region = 72  ;;  %v11900_v40 = vadd.f32 (!%p14116_p8), %v11856_v38, %v11800_v54  ;;  %v11908_v32 = vmax.f32 (!%p14116_p8), %v11892_v57, 0.0  ;;  %v11801_v38 = vld [vmem:[#allocation2 + $0x60] sm:$0xff] (!%p14116_p8) }
 0xa32   : > { %v11748_v21 = vpop.f32.mrb[69].mxu1  ;;  %v11747_v41 = vadd.f32 %v11746_v48, %v11706_v27  ;;  %v11710_v35 = vpop.f32.mrb[71].mxu0  ;;  %v11905_v27 = vmax.f32 (!%p14116_p8), %v11889_v31, 0.0  ;;  %v11913_v48 = vmax.f32 (!%p14116_p8), %v11897_v8, 0.0  ;;  %12216 = vmatpush1.bf16.xpose.msra.mxu0 (!%p14116_p8), %v12013_v29  ;;  %v11901_v31 = vadd.f32 (!%p14116_p8), %v11860_v49, %v11801_v38 }
 0xa33   : > { %v11750_v24 = vpop.f32.mrb[70].mxu1  ;;  %v11749_v52 = vadd.f32 %v11748_v21, %v11708_v33  ;;  %12255 = vmatprep.subr.bf16.mxu0 (!%p14116_p8), %v12037_v15  ;;  %v11957_v33 = vcombine.high (!%p14116_p8), %v11955_v44, %v11955_v44  ;;  %v12006_v21 = vcombine.high (!%p14116_p8), %v12004_v45, %v12004_v45  ;;  %v11986_v35 = vcombine.high (!%p14116_p8), %v11964_v28, %v11964_v28  ;;  %v11795_v15 = vld [vmem:[#allocation2 + $0x30] sm:$0xff] (!%p14116_p8) }
 0xa34   : > { %v11751_v36 = vpop.f32.mrb[71].mxu1  ;;  %v11767_v26 = vadd.f32 %v11747_v41, %v4287_v55  ;;  %v11916_v55 = vmax.f32 (!%p14116_p8), %v11900_v40, 0.0  ;;  %v11921_v16 = vpack.c.bf16 (!%p14116_p8), %v11905_v27, %v11905_v27  ;;  %v11929_v41 = vpack.c.bf16 (!%p14116_p8), %v11913_v48, %v11913_v48 }
 0xa35   : > { %v11768_v23 = vadd.f32 %v11749_v52, %v4288_v5  ;;  %v11820_v5 = vrot.slane (!%p14116_p8), %v16918_v10, %v15787_v58  ;;  %v11852_v24 = vrot.slane (!%p14116_p8), %v16922_v60, %v15787_v58  ;;  %v12035_v52 = vcombine.high (!%p14116_p8), %v12013_v29, %v12013_v29  ;;  %v11791_v36 = vld [vmem:[#allocation2 + $0x10] sm:$0xff] (!%p14116_p8) }
 0xa36   : > { %11783 = vst [vmem:[#allocation2 + $0x70] sm:$0xff] %v11767_v26  ;;  %v11799_v26 = vld [vmem:[#allocation2 + $0x50] sm:$0xff] (!%p14116_p8)  ;;  %v11932_v53 = vpack.c.bf16 (!%p14116_p8), %v11916_v55, %v11916_v55  ;;  %v11985_v59 = vrot.slane (!%p14116_p8), %v11957_v33, %v16933_v6  ;;  %v12034_v39 = vrot.slane (!%p14116_p8), %v12006_v21, %v16933_v6  ;;  %12088 = vmatmul.mubr.bf16.vlgmr.msra.gmra.mrb[0].mxu1 (!%p14116_p8), %v11921_v16  ;;  %v11909_v28 = vmax.f32 (!%p14116_p8), %v11893_v63, 0.0 }
 0xa37   : > { %11784 = vst [vmem:[#allocation2 + $0x78] sm:$0xff] %v11768_v23  ;;  %v11924_v23 = vpack.c.bf16 (!%p14116_p8), %v11908_v32, %v11908_v32  ;;  %v11891_v58 = vadd.f32 (!%p14116_p8), %v11820_v5, %v11791_v36  ;;  %v11899_v47 = vadd.f32 (!%p14116_p8), %v11852_v24, %v11799_v26  ;;  %12096 = vmatpush1.bf16.xpose.msra.mxu1 (!%p14116_p8), %v11986_v35  ;;  %v11917_v29 = vmax.f32 (!%p14116_p8), %v11901_v31, 0.0 }
 0xa38   : > { %12135 = vmatprep.subr.bf16.mxu1 %v11985_v59  ;;  %v11989_v37 = vcombine.high %v11985_v59, %v11985_v59  ;;  %v12038_v54 = vcombine.high %v12034_v39, %v12034_v39  ;;  %v11896_v6 = vadd.f32 %v11840_v18, %v11796_v19  ;;  %v11925_v51 = vpack.c.bf16 %v11909_v28, %v11909_v28 }
 0xa39   : > { %12248 = vmatmul.mubr.bf16.vlgmr.msra.gmra.mrb[0].mxu0 %v11929_v41  ;;  %12127 = vmatprep.mubr.bf16.mxu1 %v11924_v23  ;;  %v11907_v4 = vmax.f32 %v11891_v58, 0.0  ;;  %v11915_v0 = vmax.f32 %v11899_v47, 0.0  ;;  %v11933_v57 = vpack.c.bf16 %v11917_v29, %v11917_v29  ;;  %v11836_v40 = vrot.slane %v16918_v10, %v15897_v42 }
 0xa3a   : > { %12256 = vmatpush1.bf16.xpose.msra.mxu0 %v12035_v52  ;;  %12287 = vmatprep.mubr.bf16.mxu0 %v11932_v53  ;;  %v11912_v30 = vmax.f32 %v11896_v6, 0.0  ;;  %v11868_v44 = vrot.slane %v16922_v60, %v15897_v42  ;;  %v11987_v45 = vcombine.high %v11971_v14, %v11971_v14  ;;  %v12036_v13 = vcombine.high %v12020_v22, %v12020_v22 }
 0xa3b   : > { %12295 = vmatprep.subr.bf16.mxu0 %v12034_v39  ;;  %v11923_v9 = vpack.c.bf16 %v11907_v4, %v11907_v4  ;;  %v11931_v11 = vpack.c.bf16 %v11915_v0, %v11915_v0  ;;  %v11895_v55 = vadd.f32 %v11836_v40, %v11795_v15 }
 0xa3c   : > { %v11928_v48 = vpack.c.bf16 %v11912_v30, %v11912_v30 }
 0xa3d   : > { %v11803_v27 = vld [vmem:[#allocation2 + $0x70] sm:$0xff]  ;;  %v11911_v21 = vmax.f32 %v11895_v55, 0.0 }
 0xa3e   : > { %v11804_v20 = vld [vmem:[#allocation2 + $0x78] sm:$0xff]  ;;  %v11903_v33 = vadd.f32 %v11868_v44, %v11803_v27 }
 0xa3f   : > { %v11904_v8 = vadd.f32 %v11872_v50, %v11804_v20  ;;  %v11927_v16 = vpack.c.bf16 %v11911_v21, %v11911_v21 }
 0xa40   : > { %v11919_v10 = vmax.f32 %v11903_v33, 0.0 }
 0xa41   : > { %v11920_v1 = vmax.f32 %v11904_v8, 0.0 }
 0xa42   : > { %12128 = vmatmul.mubr.bf16.vlgmr.msra.gmra.mrb[0].mxu1 %v11923_v9  ;;  %v11935_v41 = vpack.c.bf16 %v11919_v10, %v11919_v10 }
 0xa43   : > { %12136 = vmatpush1.bf16.xpose.msra.mxu1 %v11971_v14  ;;  %12167 = vmatprep.mubr.bf16.mxu1 %v11926_v25  ;;  %v11936_v32 = vpack.c.bf16 %v11920_v1, %v11920_v1 }
 0xa44   : > { %12175 = vmatprep.subr.bf16.mxu1 %v11989_v37 }
 0xa45   : > { %12288 = vmatmul.mubr.bf16.vlgmr.msra.gmra.mrb[0].mxu0 %v11931_v11 }
 0xa46   : > { %12296 = vmatpush1.bf16.xpose.msra.mxu0 %v12020_v22  ;;  %12327 = vmatprep.mubr.bf16.mxu0 %v11934_v17 }
 0xa47   : > { %12335 = vmatprep.subr.bf16.mxu0 %v12038_v54 }
 0xa4e   : > { %12168 = vmatmul.mubr.bf16.vlgmr.msra.gmra.mrb[0].mxu1 %v11925_v51 }
 0xa4f   : > { %12176 = vmatpush1.bf16.xpose.msra.mxu1 %v11987_v45  ;;  %12207 = vmatprep.mubr.bf16.mxu1 %v11928_v48 }
 0xa51   : > { %12328 = vmatmul.mubr.bf16.vlgmr.msra.gmra.mrb[0].mxu0 %v11933_v57 }
 0xa52   : > { %12336 = vmatpush1.bf16.xpose.msra.mxu0 %v12036_v13  ;;  %12367 = vmatprep.mubr.bf16.mxu0 %v11936_v32 }
 0xa5a   : > { %12208 = vmatmul.mubr.bf16.vlgmr.msra.gmra.mrb[0].mxu1 %v11927_v16 }
 0xa5d   : > { %12368 = vmatmul.mubr.bf16.vlgmr.msra.gmra.mrb[0].mxu0 %v11935_v41 }
 0xb2d   : > { %v12209_v42 = vpop.f32.mrb[0].mxu1 }
 0xb2e   : > { %v12211_v24 = vpop.f32.mrb[1].mxu1 }
 0xb2f   : > { %v12212_v52 = vpop.f32.mrb[2].mxu1 }
 0xb30   : > { %v12369_v60 = vpop.f32.mrb[0].mxu0  ;;  %v12213_v26 = vpop.f32.mrb[3].mxu1 }
 0xb31   : > { %v14181_v5 = vadd.f32 %v12369_v60, %v12209_v42  ;;  %v12371_v35 = vpop.f32.mrb[1].mxu0 }
 0xb32   : > { %v12372_v36 = vpop.f32.mrb[2].mxu0 }
 0xb33   : > { %12376 = vst.msk [vmem:[%s15096_s0] sm:$0xff] %vm12375_vm0, %v14181_v5  ;;  %v12373_v23 = vpop.f32.mrb[3].mxu0 }
 0xb34 PF: > { %s25_s10 = sadd.s32 1, %s14638_s10   ;;  %s17124_s21 = sld [smem:[#allocation15_spill]] }
 0xb35   : > { %p16977_p11 = scmp.ge.s32.totalorder %s25_s10, 6   ;;  %s17125_s22 = sld [smem:[#allocation16_spill]] }
 0xb36   : > { %s17126_s23 = sld [smem:[#allocation28_spill]]  ;;  %s17127_s24 = sld [smem:[#allocation17_spill]] }
 0xb37   : > { %s17128_s13 = sld [smem:[#allocation29_spill]]  ;;  %s17129_s27 = sld [smem:[#allocation18_spill]] }
 0xb38   : > { %s17130_s28 = sld [smem:[#allocation19_spill]]  ;;  %s17131_s29 = sld [smem:[#allocation24_spill]] }
 0xb39   : > { %s17132_s1 = sld [smem:[#allocation22_spill]]  ;;  %s17133_s14 = sld [smem:[#allocation26_spill]] }
 0xb3a   : > { %s17134_s25 = smov %s14606_s26  ;;  %s17136_s30 = smov %s14630_s8 }
 0xb3b   : > { %s17137_s7 = smov %s14634_s9  ;;  %24 = sbr.rel (!%p16977_p11) target bundleno = 18 (0x12), region = 140 }
 0xb3d   : > { %s17135_s26 = smov %s17128_s13 }
 0xb3f   : > { %s17138_s8 = smov %s17132_s1  ;;  %s17139_s9 = smov %s17133_s14 }
 0xb42   :  { %12396 = vsyncpa [#allocation4], 1 }
 0xb43   :  { %12398 = vsyncpa [#allocation4 + $0x1], 1 }
 0xb44   :  { %12399 = vsyncpa [#allocation6], 1 }
 0xb45   :  { %12401 = vsyncpa [#allocation6 + $0x1], 1 }
 0xb46   :  { %12402 = vsyncpa [#allocation9], 1 }
 0xb47   :  { %12404 = vsyncpa [#allocation9 + $0x1], 1 }

</bundles_post_ra>
